<compile_context>
chip_gen: v7x
topology: tpu7x:2x2x1
jax: 0.10.0
libtpu: 0.0.40
codegen_flags: <defaults>
</compile_context>

<pallas_src>
import math
from functools import partial

import jax
import jax.numpy as jnp
from jax.experimental import pallas as pl
from jax.experimental.pallas import tpu as pltpu


NEG_BIG = -1e30   # bias for padded output lanes (log_softmax-safe filler)


def _round_up(x, m):
    return ((x + m - 1) // m) * m


# ----------------------------------------------------------------------------
# Fused kernel: both RNNs, all layers, linear + log_softmax epilogues.
# ----------------------------------------------------------------------------
def make_fused_model_kernel(T, B, E, GP, OP, L, V):
    PER = 3 + 4 * L   # per-RNN weight refs: embed, L*(wih,whh,bgi,bhn), lin_w, lin_b

    def kernel(*refs):
        tok1_ref, tok2_ref, len_ref = refs[0:3]
        w1 = refs[3:3 + PER]
        w2 = refs[3 + PER:3 + 2 * PER]
        out1_ref, out2_ref = refs[3 + 2 * PER:5 + 2 * PER]
        gi1, seq1, gi2, seq2 = refs[5 + 2 * PER:]

        len_vec = len_ref[...]                                  # (B, 1) int32
        vocab_iota = jax.lax.broadcasted_iota(jnp.int32, (T * B, V), 1)

        def run_rnn(tok_ref, wrefs, h0s, out_ref, gi_scr, seq_scr):
            emb_ref = wrefs[0]
            lw_ref, lb_ref = wrefs[1 + 4 * L], wrefs[2 + 4 * L]
            h_finals = []
            for l in range(L):
                wih_ref, whh_ref, bgi_ref, bhn_ref = wrefs[1 + 4 * l:5 + 4 * l]
                if l == 0:
                    # In-kernel embedding lookup (one-hot matmul, tiny vocab)
                    # fused with the bulk input projection over ALL timesteps.
                    # Independent of h, so it can be scheduled early / overlap
                    # with the other RNN's recurrence.
                    onehot = (tok_ref[...] == vocab_iota).astype(jnp.float32)
                    x0 = jnp.dot(onehot, emb_ref[...],
                                 preferred_element_type=jnp.float32)
                    gi_scr[...] = jnp.dot(
                        x0, wih_ref[...],
                        preferred_element_type=jnp.float32) + bgi_ref[...]
                else:
                    gi_scr[...] = jnp.dot(
                        seq_scr[...], wih_ref[...],
                        preferred_element_type=jnp.float32) + bgi_ref[...]

                whh = whh_ref[...]                              # (GP, 3*GP)
                bhn = bhn_ref[...]                              # (1, GP)
                h = h0s[l]                                      # (B, GP)

                # Serial recurrence: one fused (GP, 3*GP) dot per step, gate
                # slices lane-aligned at multiples of 128 (free vreg selects).
                for t in range(T):
                    gh = jnp.dot(h, whh, preferred_element_type=jnp.float32)
                    gi_t = gi_scr[pl.ds(t * B, B), :]
                    r = jax.nn.sigmoid(gi_t[:, :GP] + gh[:, :GP])
                    z = jax.nn.sigmoid(gi_t[:, GP:2 * GP] + gh[:, GP:2 * GP])
                    n = jnp.tanh(gi_t[:, 2 * GP:] + r * (gh[:, 2 * GP:] + bhn))
                    h_new = (1.0 - z) * n + z * h
                    valid = len_vec > t                         # (B, 1) bool
                    h = jnp.where(valid, h_new, h)              # freeze past length
                    seq_scr[pl.ds(t * B, B), :] = jnp.where(valid, h, 0.0)
                h_finals.append(h)

            # Linear + log_softmax epilogue; lane-dense (T*B, OP) store.
            y = jnp.dot(seq_scr[...], lw_ref[...],
                        preferred_element_type=jnp.float32) + lb_ref[...]
            mx = jnp.max(y, axis=-1, keepdims=True)
            lse = mx + jnp.log(jnp.sum(jnp.exp(y - mx), axis=-1, keepdims=True))
            out_ref[...] = y - lse
            return h_finals

        h0 = [jnp.zeros((B, GP), jnp.float32) for _ in range(L)]
        h1 = run_rnn(tok1_ref, w1, h0, out1_ref, gi1, seq1)
        run_rnn(tok2_ref, w2, h1, out2_ref, gi2, seq2)   # h0 of RNN2 = final h of RNN1

    return kernel


# ----------------------------------------------------------------------------
# Wrapper (mirrors Model.forward: returns (outputs1, outputs2), batch-first).
# ----------------------------------------------------------------------------
def _flatten_rnn_params(p):
    ws = [p["embed"]]
    for lp in p["layers"]:
        ws += [lp["wih"], lp["whh"], lp["bgi"], lp["bhn"]]
    ws += [p["lin_w"], p["lin_b"]]
    return ws


@partial(jax.jit, static_argnames=("out_dim",))
def model_forward(input1, input2, lengths, params1, params2, *, out_dim):
    B, T = input1.shape
    V, E = params1["embed"].shape
    L = len(params1["layers"])
    GP = params1["layers"][0]["whh"].shape[0]
    OP = params1["lin_w"].shape[1]

    # Tiny int glue only: time-major flattened tokens (row = t*B + b) and a
    # (B,1) lengths column.  Everything float stays inside the kernel.
    tok1 = jnp.transpose(input1).reshape(T * B, 1).astype(jnp.int32)
    tok2 = jnp.transpose(input2).reshape(T * B, 1).astype(jnp.int32)
    len_v = lengths.reshape(B, 1).astype(jnp.int32)

    operands = [tok1, tok2, len_v] + _flatten_rnn_params(params1) + \
               _flatten_rnn_params(params2)

    def full_spec(a):
        nd = a.ndim
        return pl.BlockSpec(a.shape, lambda i, _nd=nd: (0,) * _nd)

    out1_p, out2_p = pl.pallas_call(
        make_fused_model_kernel(T, B, E, GP, OP, L, V),
        out_shape=(jax.ShapeDtypeStruct((T * B, OP), jnp.float32),
                   jax.ShapeDtypeStruct((T * B, OP), jnp.float32)),
        grid=(1,),
        in_specs=[full_spec(a) for a in operands],
        out_specs=(pl.BlockSpec((T * B, OP), lambda i: (0, 0)),
                   pl.BlockSpec((T * B, OP), lambda i: (0, 0))),
        scratch_shapes=[
            pltpu.VMEM((T * B, 3 * GP), jnp.float32),   # gi  (RNN1)
            pltpu.VMEM((T * B, GP), jnp.float32),       # seq (RNN1)
            pltpu.VMEM((T * B, 3 * GP), jnp.float32),   # gi  (RNN2)
            pltpu.VMEM((T * B, GP), jnp.float32),       # seq (RNN2)
        ],
        compiler_params=pltpu.CompilerParams(
            dimension_semantics=("arbitrary",)),
    )(*operands)

    def post(o):   # (T*B, OP) -> (B, T, O)
        return jnp.transpose(o[:, :out_dim].reshape(T, B, out_dim), (1, 0, 2))

    return post(out1_p), post(out2_p)


# ----------------------------------------------------------------------------
# Deterministic parameter init (PyTorch-equivalent shapes, synthetic values).
# Weights are stored pre-transposed, gate-concatenated (PyTorch order r,z,n)
# and lane-padded: each gate occupies lanes [g*GP, g*GP+H) of a GP=128 block;
# b_hh for the r/z gates is folded into the input-side bias; the n-gate b_hh
# stays separate (must remain inside the r*(...) term).
# ----------------------------------------------------------------------------
def init_rnn_params(key, vocab, E, H, O, num_layers, GP, OP):
    keys = jax.random.split(key, 3 + num_layers)
    embed = jax.random.normal(keys[0], (vocab, E), jnp.float32)
    embed = embed.at[0].set(0.0)                         # padding_idx=0
    bound = 1.0 / math.sqrt(H)
    layers = []
    for l in range(num_layers):
        kk = jax.random.split(keys[3 + l], 4)
        in_dim = E if l == 0 else H
        in_pad = E if l == 0 else GP
        wih = jax.random.uniform(kk[0], (in_dim, 3 * H), jnp.float32, -bound, bound)
        whh = jax.random.uniform(kk[1], (H, 3 * H), jnp.float32, -bound, bound)
        bih = jax.random.uniform(kk[2], (3 * H,), jnp.float32, -bound, bound)
        bhh = jax.random.uniform(kk[3], (3 * H,), jnp.float32, -bound, bound)
        wih_p = jnp.zeros((in_pad, 3 * GP), jnp.float32)
        whh_p = jnp.zeros((GP, 3 * GP), jnp.float32)
        bgi_p = jnp.zeros((1, 3 * GP), jnp.float32)
        for g in range(3):
            wih_p = wih_p.at[:in_dim, g * GP:g * GP + H].set(wih[:, g * H:(g + 1) * H])
            whh_p = whh_p.at[:H, g * GP:g * GP + H].set(whh[:, g * H:(g + 1) * H])
            b = bih[g * H:(g + 1) * H] + (bhh[g * H:(g + 1) * H] if g < 2 else 0.0)
            bgi_p = bgi_p.at[0, g * GP:g * GP + H].set(b)
        bhn_p = jnp.zeros((1, GP), jnp.float32).at[0, :H].set(bhh[2 * H:3 * H])
        layers.append(dict(wih=wih_p, whh=whh_p, bgi=bgi_p, bhn=bhn_p))
    lin_w = jax.random.uniform(keys[1], (H, O), jnp.float32, -bound, bound)
    lin_b = jax.random.uniform(keys[2], (O,), jnp.float32, -bound, bound)
    lw_p = jnp.zeros((GP, OP), jnp.float32).at[:H, :O].set(lin_w)
    lb_p = jnp.full((1, OP), NEG_BIG, jnp.float32).at[0, :O].set(lin_b)
    return dict(embed=embed, layers=layers, lin_w=lw_p, lin_b=lb_p)


if __name__ == "__main__":
    # Config: num_layers=2, dropout inactive (eval), embed_dim=16, hidden_dim=32.
    VOCAB, EMBED, HIDDEN, OUT = 16, 16, 32, 16
    NUM_LAYERS = 2
    B, T = 2, 8
    GP = _round_up(HIDDEN, 128)   # 128: one lane-aligned block per GRU gate
    OP = _round_up(OUT, 128)      # 128: lane-dense output slab

    key = jax.random.PRNGKey(0)
    k_p1, k_p2, k_i1, k_i2 = jax.random.split(key, 4)

    params1 = init_rnn_params(k_p1, VOCAB, EMBED, HIDDEN, OUT, NUM_LAYERS, GP, OP)
    params2 = init_rnn_params(k_p2, VOCAB, EMBED, HIDDEN, OUT, NUM_LAYERS, GP, OP)

    # Lengths sorted descending, max == T (required by the PyTorch .view()).
    lengths = jnp.array([T, 5], dtype=jnp.int32)
    tpos = jnp.arange(T)[None, :]
    valid = tpos < lengths[:, None]
    input1 = jnp.where(valid, jax.random.randint(k_i1, (B, T), 1, VOCAB), 0)
    input2 = jnp.where(valid, jax.random.randint(k_i2, (B, T), 1, VOCAB), 0)

    out1, out2 = model_forward(input1, input2, lengths, params1, params2, out_dim=OUT)
    jax.block_until_ready((out1, out2))
    assert out1.shape == (B, T, OUT) and out2.shape == (B, T, OUT)
    assert bool(jnp.all(jnp.isfinite(out1))) and bool(jnp.all(jnp.isfinite(out2)))
    # log_softmax rows must be valid distributions
    s1 = jnp.exp(out1).sum(-1)
    s2 = jnp.exp(out2).sum(-1)
    assert bool(jnp.all(jnp.abs(s1 - 1.0) < 1e-3)) and bool(jnp.all(jnp.abs(s2 - 1.0) < 1e-3))
    print("KERNEL_OK")
</pallas_src>

<mosaic_0001>
module attributes {stable_mosaic.version = 11 : i64} {
  func.func @kernel(%arg0: i32, %arg1: memref<16x1xi32, #tpu.memory_space<vmem>>, %arg2: memref<16x1xi32, #tpu.memory_space<vmem>>, %arg3: memref<2x1xi32, #tpu.memory_space<vmem>>, %arg4: memref<16x16xf32, #tpu.memory_space<vmem>>, %arg5: memref<16x384xf32, #tpu.memory_space<vmem>>, %arg6: memref<128x384xf32, #tpu.memory_space<vmem>>, %arg7: memref<1x384xf32, #tpu.memory_space<vmem>>, %arg8: memref<1x128xf32, #tpu.memory_space<vmem>>, %arg9: memref<128x384xf32, #tpu.memory_space<vmem>>, %arg10: memref<128x384xf32, #tpu.memory_space<vmem>>, %arg11: memref<1x384xf32, #tpu.memory_space<vmem>>, %arg12: memref<1x128xf32, #tpu.memory_space<vmem>>, %arg13: memref<128x128xf32, #tpu.memory_space<vmem>>, %arg14: memref<1x128xf32, #tpu.memory_space<vmem>>, %arg15: memref<16x16xf32, #tpu.memory_space<vmem>>, %arg16: memref<16x384xf32, #tpu.memory_space<vmem>>, %arg17: memref<128x384xf32, #tpu.memory_space<vmem>>, %arg18: memref<1x384xf32, #tpu.memory_space<vmem>>, %arg19: memref<1x128xf32, #tpu.memory_space<vmem>>, %arg20: memref<128x384xf32, #tpu.memory_space<vmem>>, %arg21: memref<128x384xf32, #tpu.memory_space<vmem>>, %arg22: memref<1x384xf32, #tpu.memory_space<vmem>>, %arg23: memref<1x128xf32, #tpu.memory_space<vmem>>, %arg24: memref<128x128xf32, #tpu.memory_space<vmem>>, %arg25: memref<1x128xf32, #tpu.memory_space<vmem>>, %arg26: memref<16x128xf32, #tpu.memory_space<vmem>>, %arg27: memref<16x128xf32, #tpu.memory_space<vmem>>, %arg28: memref<16x384xf32, #tpu.memory_space<vmem>>, %arg29: memref<16x128xf32, #tpu.memory_space<vmem>>, %arg30: memref<16x384xf32, #tpu.memory_space<vmem>>, %arg31: memref<16x128xf32, #tpu.memory_space<vmem>>) attributes {dimension_semantics = [#tpu.dimension_semantics<arbitrary>], iteration_bounds = array<i64: 1>, scalar_prefetch = 0 : i64, scratch_operands = 4 : i64, tpu.core_type = #tpu.core_type<tc>, window_params = [{pipeline_mode = #tpu.pipeline_mode<synchronous>, transform_indices = @transform_0, window_bounds = array<i64: 16, 1>}, {pipeline_mode = #tpu.pipeline_mode<synchronous>, transform_indices = @transform_1, window_bounds = array<i64: 16, 1>}, {pipeline_mode = #tpu.pipeline_mode<synchronous>, transform_indices = @transform_2, window_bounds = array<i64: 2, 1>}, {pipeline_mode = #tpu.pipeline_mode<synchronous>, transform_indices = @transform_3, window_bounds = array<i64: 16, 16>}, {pipeline_mode = #tpu.pipeline_mode<synchronous>, transform_indices = @transform_4, window_bounds = array<i64: 16, 384>}, {pipeline_mode = #tpu.pipeline_mode<synchronous>, transform_indices = @transform_5, window_bounds = array<i64: 128, 384>}, {pipeline_mode = #tpu.pipeline_mode<synchronous>, transform_indices = @transform_6, window_bounds = array<i64: 1, 384>}, {pipeline_mode = #tpu.pipeline_mode<synchronous>, transform_indices = @transform_7, window_bounds = array<i64: 1, 128>}, {pipeline_mode = #tpu.pipeline_mode<synchronous>, transform_indices = @transform_8, window_bounds = array<i64: 128, 384>}, {pipeline_mode = #tpu.pipeline_mode<synchronous>, transform_indices = @transform_9, window_bounds = array<i64: 128, 384>}, {pipeline_mode = #tpu.pipeline_mode<synchronous>, transform_indices = @transform_10, window_bounds = array<i64: 1, 384>}, {pipeline_mode = #tpu.pipeline_mode<synchronous>, transform_indices = @transform_11, window_bounds = array<i64: 1, 128>}, {pipeline_mode = #tpu.pipeline_mode<synchronous>, transform_indices = @transform_12, window_bounds = array<i64: 128, 128>}, {pipeline_mode = #tpu.pipeline_mode<synchronous>, transform_indices = @transform_13, window_bounds = array<i64: 1, 128>}, {pipeline_mode = #tpu.pipeline_mode<synchronous>, transform_indices = @transform_14, window_bounds = array<i64: 16, 16>}, {pipeline_mode = #tpu.pipeline_mode<synchronous>, transform_indices = @transform_15, window_bounds = array<i64: 16, 384>}, {pipeline_mode = #tpu.pipeline_mode<synchronous>, transform_indices = @transform_16, window_bounds = array<i64: 128, 384>}, {pipeline_mode = #tpu.pipeline_mode<synchronous>, transform_indices = @transform_17, window_bounds = array<i64: 1, 384>}, {pipeline_mode = #tpu.pipeline_mode<synchronous>, transform_indices = @transform_18, window_bounds = array<i64: 1, 128>}, {pipeline_mode = #tpu.pipeline_mode<synchronous>, transform_indices = @transform_19, window_bounds = array<i64: 128, 384>}, {pipeline_mode = #tpu.pipeline_mode<synchronous>, transform_indices = @transform_20, window_bounds = array<i64: 128, 384>}, {pipeline_mode = #tpu.pipeline_mode<synchronous>, transform_indices = @transform_21, window_bounds = array<i64: 1, 384>}, {pipeline_mode = #tpu.pipeline_mode<synchronous>, transform_indices = @transform_22, window_bounds = array<i64: 1, 128>}, {pipeline_mode = #tpu.pipeline_mode<synchronous>, transform_indices = @transform_23, window_bounds = array<i64: 128, 128>}, {pipeline_mode = #tpu.pipeline_mode<synchronous>, transform_indices = @transform_24, window_bounds = array<i64: 1, 128>}, {pipeline_mode = #tpu.pipeline_mode<synchronous>, transform_indices = @transform_25, window_bounds = array<i64: 16, 128>}, {pipeline_mode = #tpu.pipeline_mode<synchronous>, transform_indices = @transform_26, window_bounds = array<i64: 16, 128>}]} {
    %c0 = arith.constant 0 : index
    %c0_0 = arith.constant 0 : index
    %0 = vector.load %arg3[%c0, %c0_0] : memref<2x1xi32, #tpu.memory_space<vmem>>, vector<2x1xi32>
    %1 = tpu.iota {dimensions = array<i32: 1>} : vector<16x16xi32>
    %cst = arith.constant 0.000000e+00 : f32
    %2 = vector.broadcast %cst : f32 to vector<2x128xf32>
    %cst_1 = arith.constant 0.000000e+00 : f32
    %3 = vector.broadcast %cst_1 : f32 to vector<2x128xf32>
    %c0_2 = arith.constant 0 : index
    %c0_3 = arith.constant 0 : index
    %4 = vector.load %arg1[%c0_2, %c0_3] : memref<16x1xi32, #tpu.memory_space<vmem>>, vector<16x1xi32>
    %5 = vector.broadcast %4 : vector<16x1xi32> to vector<16x16xi32>
    %6 = arith.cmpi eq, %5, %1 : vector<16x16xi32>
    %7 = arith.extui %6 : vector<16x16xi1> to vector<16x16xi32>
    %8 = arith.sitofp %7 : vector<16x16xi32> to vector<16x16xf32>
    %c0_4 = arith.constant 0 : index
    %c0_5 = arith.constant 0 : index
    %9 = vector.load %arg4[%c0_4, %c0_5] : memref<16x16xf32, #tpu.memory_space<vmem>>, vector<16x16xf32>
    %cst_6 = arith.constant dense<0.000000e+00> : vector<16x16xf32>
    %10 = tpu.matmul %8, %9, %cst_6 {dimension_numbers = #tpu.dot_dimension_numbers<[1], [0], [0], [1], [0, 0, 1, 1], [], []>} : vector<16x16xf32>, vector<16x16xf32>, vector<16x16xf32> -> vector<16x16xf32>
    %c0_7 = arith.constant 0 : index
    %c0_8 = arith.constant 0 : index
    %11 = vector.load %arg5[%c0_7, %c0_8] : memref<16x384xf32, #tpu.memory_space<vmem>>, vector<16x384xf32>
    %cst_9 = arith.constant dense<0.000000e+00> : vector<16x384xf32>
    %12 = tpu.matmul %10, %11, %cst_9 {dimension_numbers = #tpu.dot_dimension_numbers<[1], [0], [0], [1], [0, 0, 1, 1], [], []>} : vector<16x16xf32>, vector<16x384xf32>, vector<16x384xf32> -> vector<16x384xf32>
    %c0_10 = arith.constant 0 : index
    %c0_11 = arith.constant 0 : index
    %13 = vector.load %arg7[%c0_10, %c0_11] : memref<1x384xf32, #tpu.memory_space<vmem>>, vector<1x384xf32>
    %14 = vector.broadcast %13 : vector<1x384xf32> to vector<16x384xf32>
    %15 = arith.addf %12, %14 : vector<16x384xf32>
    %c0_12 = arith.constant 0 : index
    %c0_13 = arith.constant 0 : index
    %16 = vector.load %arg28[%c0_12, %c0_13] : memref<16x384xf32, #tpu.memory_space<vmem>>, vector<16x384xf32>
    tpu.vector_store %arg28[%c0_12, %c0_13], %15 {strides = array<i32>} : memref<16x384xf32, #tpu.memory_space<vmem>>, vector<16x384xf32>,
    %c0_14 = arith.constant 0 : index
    %c0_15 = arith.constant 0 : index
    %17 = vector.load %arg6[%c0_14, %c0_15] : memref<128x384xf32, #tpu.memory_space<vmem>>, vector<128x384xf32>
    %c0_16 = arith.constant 0 : index
    %c0_17 = arith.constant 0 : index
    %18 = vector.load %arg8[%c0_16, %c0_17] : memref<1x128xf32, #tpu.memory_space<vmem>>, vector<1x128xf32>
    %cst_18 = arith.constant dense<0.000000e+00> : vector<2x384xf32>
    %19 = tpu.matmul %2, %17, %cst_18 {dimension_numbers = #tpu.dot_dimension_numbers<[1], [0], [0], [1], [0, 0, 1, 1], [], []>} : vector<2x128xf32>, vector<128x384xf32>, vector<2x384xf32> -> vector<2x384xf32>
    %c0_19 = arith.constant 0 : index
    %c0_20 = arith.constant 0 : index
    %20 = vector.load %arg28[%c0_19, %c0_20] : memref<16x384xf32, #tpu.memory_space<vmem>>, vector<2x384xf32>
    %21 = vector.extract_strided_slice %20 {offsets = [0, 0], sizes = [2, 128], strides = [1, 1]} : vector<2x384xf32> to vector<2x128xf32>
    %22 = vector.extract_strided_slice %19 {offsets = [0, 0], sizes = [2, 128], strides = [1, 1]} : vector<2x384xf32> to vector<2x128xf32>
    %23 = arith.addf %21, %22 : vector<2x128xf32>
    %24 = arith.negf %23 : vector<2x128xf32>
    %25 = math.exp %24 : vector<2x128xf32>
    %cst_21 = arith.constant 1.000000e+00 : f32
    %26 = vector.broadcast %cst_21 : f32 to vector<2x128xf32>
    %27 = arith.addf %26, %25 : vector<2x128xf32>
    %28 = arith.divf %26, %27 : vector<2x128xf32>
    %29 = vector.extract_strided_slice %20 {offsets = [0, 128], sizes = [2, 128], strides = [1, 1]} : vector<2x384xf32> to vector<2x128xf32>
    %30 = vector.extract_strided_slice %19 {offsets = [0, 128], sizes = [2, 128], strides = [1, 1]} : vector<2x384xf32> to vector<2x128xf32>
    %31 = arith.addf %29, %30 : vector<2x128xf32>
    %32 = arith.negf %31 : vector<2x128xf32>
    %33 = math.exp %32 : vector<2x128xf32>
    %cst_22 = arith.constant 1.000000e+00 : f32
    %34 = vector.broadcast %cst_22 : f32 to vector<2x128xf32>
    %35 = arith.addf %34, %33 : vector<2x128xf32>
    %36 = arith.divf %34, %35 : vector<2x128xf32>
    %37 = vector.extract_strided_slice %20 {offsets = [0, 256], sizes = [2, 128], strides = [1, 1]} : vector<2x384xf32> to vector<2x128xf32>
    %38 = vector.extract_strided_slice %19 {offsets = [0, 256], sizes = [2, 128], strides = [1, 1]} : vector<2x384xf32> to vector<2x128xf32>
    %39 = vector.broadcast %18 : vector<1x128xf32> to vector<2x128xf32>
    %40 = arith.addf %38, %39 : vector<2x128xf32>
    %41 = arith.mulf %28, %40 : vector<2x128xf32>
    %42 = arith.addf %37, %41 : vector<2x128xf32>
    %43 = math.tanh %42 : vector<2x128xf32>
    %cst_23 = arith.constant 1.000000e+00 : f32
    %44 = vector.broadcast %cst_23 : f32 to vector<2x128xf32>
    %45 = arith.subf %44, %36 : vector<2x128xf32>
    %46 = arith.mulf %45, %43 : vector<2x128xf32>
    %47 = arith.mulf %36, %2 : vector<2x128xf32>
    %48 = arith.addf %46, %47 : vector<2x128xf32>
    %c0_i32 = arith.constant 0 : i32
    %49 = vector.broadcast %c0_i32 : i32 to vector<2x1xi32>
    %50 = arith.cmpi sgt, %0, %49 : vector<2x1xi32>
    %51 = vector.shape_cast %50 : vector<2x1xi1> to vector<2x1xi1>
    %52 = vector.broadcast %51 : vector<2x1xi1> to vector<2x128xi1>
    %53 = arith.select %52, %48, %2 : vector<2x128xi1>, vector<2x128xf32>
    %cst_24 = arith.constant 0.000000e+00 : f32
    %54 = vector.shape_cast %50 : vector<2x1xi1> to vector<2x1xi1>
    %55 = vector.broadcast %54 : vector<2x1xi1> to vector<2x128xi1>
    %56 = vector.broadcast %cst_24 : f32 to vector<2x128xf32>
    %57 = arith.select %55, %53, %56 : vector<2x128xi1>, vector<2x128xf32>
    %c0_25 = arith.constant 0 : index
    %c0_26 = arith.constant 0 : index
    %58 = vector.load %arg29[%c0_25, %c0_26] : memref<16x128xf32, #tpu.memory_space<vmem>>, vector<2x128xf32>
    tpu.vector_store %arg29[%c0_25, %c0_26], %57 {strides = array<i32>} : memref<16x128xf32, #tpu.memory_space<vmem>>, vector<2x128xf32>,
    %cst_27 = arith.constant dense<0.000000e+00> : vector<2x384xf32>
    %59 = tpu.matmul %53, %17, %cst_27 {dimension_numbers = #tpu.dot_dimension_numbers<[1], [0], [0], [1], [0, 0, 1, 1], [], []>} : vector<2x128xf32>, vector<128x384xf32>, vector<2x384xf32> -> vector<2x384xf32>
    %c2 = arith.constant 2 : index
    %c0_28 = arith.constant 0 : index
    %60 = vector.load %arg28[%c2, %c0_28] : memref<16x384xf32, #tpu.memory_space<vmem>>, vector<2x384xf32>
    %61 = vector.extract_strided_slice %60 {offsets = [0, 0], sizes = [2, 128], strides = [1, 1]} : vector<2x384xf32> to vector<2x128xf32>
    %62 = vector.extract_strided_slice %59 {offsets = [0, 0], sizes = [2, 128], strides = [1, 1]} : vector<2x384xf32> to vector<2x128xf32>
    %63 = arith.addf %61, %62 : vector<2x128xf32>
    %64 = arith.negf %63 : vector<2x128xf32>
    %65 = math.exp %64 : vector<2x128xf32>
    %cst_29 = arith.constant 1.000000e+00 : f32
    %66 = vector.broadcast %cst_29 : f32 to vector<2x128xf32>
    %67 = arith.addf %66, %65 : vector<2x128xf32>
    %68 = arith.divf %66, %67 : vector<2x128xf32>
    %69 = vector.extract_strided_slice %60 {offsets = [0, 128], sizes = [2, 128], strides = [1, 1]} : vector<2x384xf32> to vector<2x128xf32>
    %70 = vector.extract_strided_slice %59 {offsets = [0, 128], sizes = [2, 128], strides = [1, 1]} : vector<2x384xf32> to vector<2x128xf32>
    %71 = arith.addf %69, %70 : vector<2x128xf32>
    %72 = arith.negf %71 : vector<2x128xf32>
    %73 = math.exp %72 : vector<2x128xf32>
    %cst_30 = arith.constant 1.000000e+00 : f32
    %74 = vector.broadcast %cst_30 : f32 to vector<2x128xf32>
    %75 = arith.addf %74, %73 : vector<2x128xf32>
    %76 = arith.divf %74, %75 : vector<2x128xf32>
    %77 = vector.extract_strided_slice %60 {offsets = [0, 256], sizes = [2, 128], strides = [1, 1]} : vector<2x384xf32> to vector<2x128xf32>
    %78 = vector.extract_strided_slice %59 {offsets = [0, 256], sizes = [2, 128], strides = [1, 1]} : vector<2x384xf32> to vector<2x128xf32>
    %79 = vector.broadcast %18 : vector<1x128xf32> to vector<2x128xf32>
    %80 = arith.addf %78, %79 : vector<2x128xf32>
    %81 = arith.mulf %68, %80 : vector<2x128xf32>
    %82 = arith.addf %77, %81 : vector<2x128xf32>
    %83 = math.tanh %82 : vector<2x128xf32>
    %cst_31 = arith.constant 1.000000e+00 : f32
    %84 = vector.broadcast %cst_31 : f32 to vector<2x128xf32>
    %85 = arith.subf %84, %76 : vector<2x128xf32>
    %86 = arith.mulf %85, %83 : vector<2x128xf32>
    %87 = arith.mulf %76, %53 : vector<2x128xf32>
    %88 = arith.addf %86, %87 : vector<2x128xf32>
    %c1_i32 = arith.constant 1 : i32
    %89 = vector.broadcast %c1_i32 : i32 to vector<2x1xi32>
    %90 = arith.cmpi sgt, %0, %89 : vector<2x1xi32>
    %91 = vector.shape_cast %90 : vector<2x1xi1> to vector<2x1xi1>
    %92 = vector.broadcast %91 : vector<2x1xi1> to vector<2x128xi1>
    %93 = arith.select %92, %88, %53 : vector<2x128xi1>, vector<2x128xf32>
    %cst_32 = arith.constant 0.000000e+00 : f32
    %94 = vector.shape_cast %90 : vector<2x1xi1> to vector<2x1xi1>
    %95 = vector.broadcast %94 : vector<2x1xi1> to vector<2x128xi1>
    %96 = vector.broadcast %cst_32 : f32 to vector<2x128xf32>
    %97 = arith.select %95, %93, %96 : vector<2x128xi1>, vector<2x128xf32>
    %c2_33 = arith.constant 2 : index
    %c0_34 = arith.constant 0 : index
    %98 = vector.load %arg29[%c2_33, %c0_34] : memref<16x128xf32, #tpu.memory_space<vmem>>, vector<2x128xf32>
    tpu.vector_store %arg29[%c2_33, %c0_34], %97 {strides = array<i32>} : memref<16x128xf32, #tpu.memory_space<vmem>>, vector<2x128xf32>,
    %cst_35 = arith.constant dense<0.000000e+00> : vector<2x384xf32>
    %99 = tpu.matmul %93, %17, %cst_35 {dimension_numbers = #tpu.dot_dimension_numbers<[1], [0], [0], [1], [0, 0, 1, 1], [], []>} : vector<2x128xf32>, vector<128x384xf32>, vector<2x384xf32> -> vector<2x384xf32>
    %c4 = arith.constant 4 : index
    %c0_36 = arith.constant 0 : index
    %100 = vector.load %arg28[%c4, %c0_36] : memref<16x384xf32, #tpu.memory_space<vmem>>, vector<2x384xf32>
    %101 = vector.extract_strided_slice %100 {offsets = [0, 0], sizes = [2, 128], strides = [1, 1]} : vector<2x384xf32> to vector<2x128xf32>
    %102 = vector.extract_strided_slice %99 {offsets = [0, 0], sizes = [2, 128], strides = [1, 1]} : vector<2x384xf32> to vector<2x128xf32>
    %103 = arith.addf %101, %102 : vector<2x128xf32>
    %104 = arith.negf %103 : vector<2x128xf32>
    %105 = math.exp %104 : vector<2x128xf32>
    %cst_37 = arith.constant 1.000000e+00 : f32
    %106 = vector.broadcast %cst_37 : f32 to vector<2x128xf32>
    %107 = arith.addf %106, %105 : vector<2x128xf32>
    %108 = arith.divf %106, %107 : vector<2x128xf32>
    %109 = vector.extract_strided_slice %100 {offsets = [0, 128], sizes = [2, 128], strides = [1, 1]} : vector<2x384xf32> to vector<2x128xf32>
    %110 = vector.extract_strided_slice %99 {offsets = [0, 128], sizes = [2, 128], strides = [1, 1]} : vector<2x384xf32> to vector<2x128xf32>
    %111 = arith.addf %109, %110 : vector<2x128xf32>
    %112 = arith.negf %111 : vector<2x128xf32>
    %113 = math.exp %112 : vector<2x128xf32>
    %cst_38 = arith.constant 1.000000e+00 : f32
    %114 = vector.broadcast %cst_38 : f32 to vector<2x128xf32>
    %115 = arith.addf %114, %113 : vector<2x128xf32>
    %116 = arith.divf %114, %115 : vector<2x128xf32>
    %117 = vector.extract_strided_slice %100 {offsets = [0, 256], sizes = [2, 128], strides = [1, 1]} : vector<2x384xf32> to vector<2x128xf32>
    %118 = vector.extract_strided_slice %99 {offsets = [0, 256], sizes = [2, 128], strides = [1, 1]} : vector<2x384xf32> to vector<2x128xf32>
    %119 = vector.broadcast %18 : vector<1x128xf32> to vector<2x128xf32>
    %120 = arith.addf %118, %119 : vector<2x128xf32>
    %121 = arith.mulf %108, %120 : vector<2x128xf32>
    %122 = arith.addf %117, %121 : vector<2x128xf32>
    %123 = math.tanh %122 : vector<2x128xf32>
    %cst_39 = arith.constant 1.000000e+00 : f32
    %124 = vector.broadcast %cst_39 : f32 to vector<2x128xf32>
    %125 = arith.subf %124, %116 : vector<2x128xf32>
    %126 = arith.mulf %125, %123 : vector<2x128xf32>
    %127 = arith.mulf %116, %93 : vector<2x128xf32>
    %128 = arith.addf %126, %127 : vector<2x128xf32>
    %c2_i32 = arith.constant 2 : i32
    %129 = vector.broadcast %c2_i32 : i32 to vector<2x1xi32>
    %130 = arith.cmpi sgt, %0, %129 : vector<2x1xi32>
    %131 = vector.shape_cast %130 : vector<2x1xi1> to vector<2x1xi1>
    %132 = vector.broadcast %131 : vector<2x1xi1> to vector<2x128xi1>
    %133 = arith.select %132, %128, %93 : vector<2x128xi1>, vector<2x128xf32>
    %cst_40 = arith.constant 0.000000e+00 : f32
    %134 = vector.shape_cast %130 : vector<2x1xi1> to vector<2x1xi1>
    %135 = vector.broadcast %134 : vector<2x1xi1> to vector<2x128xi1>
    %136 = vector.broadcast %cst_40 : f32 to vector<2x128xf32>
    %137 = arith.select %135, %133, %136 : vector<2x128xi1>, vector<2x128xf32>
    %c4_41 = arith.constant 4 : index
    %c0_42 = arith.constant 0 : index
    %138 = vector.load %arg29[%c4_41, %c0_42] : memref<16x128xf32, #tpu.memory_space<vmem>>, vector<2x128xf32>
    tpu.vector_store %arg29[%c4_41, %c0_42], %137 {strides = array<i32>} : memref<16x128xf32, #tpu.memory_space<vmem>>, vector<2x128xf32>,
    %cst_43 = arith.constant dense<0.000000e+00> : vector<2x384xf32>
    %139 = tpu.matmul %133, %17, %cst_43 {dimension_numbers = #tpu.dot_dimension_numbers<[1], [0], [0], [1], [0, 0, 1, 1], [], []>} : vector<2x128xf32>, vector<128x384xf32>, vector<2x384xf32> -> vector<2x384xf32>
    %c6 = arith.constant 6 : index
    %c0_44 = arith.constant 0 : index
    %140 = vector.load %arg28[%c6, %c0_44] : memref<16x384xf32, #tpu.memory_space<vmem>>, vector<2x384xf32>
    %141 = vector.extract_strided_slice %140 {offsets = [0, 0], sizes = [2, 128], strides = [1, 1]} : vector<2x384xf32> to vector<2x128xf32>
    %142 = vector.extract_strided_slice %139 {offsets = [0, 0], sizes = [2, 128], strides = [1, 1]} : vector<2x384xf32> to vector<2x128xf32>
    %143 = arith.addf %141, %142 : vector<2x128xf32>
    %144 = arith.negf %143 : vector<2x128xf32>
    %145 = math.exp %144 : vector<2x128xf32>
    %cst_45 = arith.constant 1.000000e+00 : f32
    %146 = vector.broadcast %cst_45 : f32 to vector<2x128xf32>
    %147 = arith.addf %146, %145 : vector<2x128xf32>
    %148 = arith.divf %146, %147 : vector<2x128xf32>
    %149 = vector.extract_strided_slice %140 {offsets = [0, 128], sizes = [2, 128], strides = [1, 1]} : vector<2x384xf32> to vector<2x128xf32>
    %150 = vector.extract_strided_slice %139 {offsets = [0, 128], sizes = [2, 128], strides = [1, 1]} : vector<2x384xf32> to vector<2x128xf32>
    %151 = arith.addf %149, %150 : vector<2x128xf32>
    %152 = arith.negf %151 : vector<2x128xf32>
    %153 = math.exp %152 : vector<2x128xf32>
    %cst_46 = arith.constant 1.000000e+00 : f32
    %154 = vector.broadcast %cst_46 : f32 to vector<2x128xf32>
    %155 = arith.addf %154, %153 : vector<2x128xf32>
    %156 = arith.divf %154, %155 : vector<2x128xf32>
    %157 = vector.extract_strided_slice %140 {offsets = [0, 256], sizes = [2, 128], strides = [1, 1]} : vector<2x384xf32> to vector<2x128xf32>
    %158 = vector.extract_strided_slice %139 {offsets = [0, 256], sizes = [2, 128], strides = [1, 1]} : vector<2x384xf32> to vector<2x128xf32>
    %159 = vector.broadcast %18 : vector<1x128xf32> to vector<2x128xf32>
    %160 = arith.addf %158, %159 : vector<2x128xf32>
    %161 = arith.mulf %148, %160 : vector<2x128xf32>
    %162 = arith.addf %157, %161 : vector<2x128xf32>
    %163 = math.tanh %162 : vector<2x128xf32>
    %cst_47 = arith.constant 1.000000e+00 : f32
    %164 = vector.broadcast %cst_47 : f32 to vector<2x128xf32>
    %165 = arith.subf %164, %156 : vector<2x128xf32>
    %166 = arith.mulf %165, %163 : vector<2x128xf32>
    %167 = arith.mulf %156, %133 : vector<2x128xf32>
    %168 = arith.addf %166, %167 : vector<2x128xf32>
    %c3_i32 = arith.constant 3 : i32
    %169 = vector.broadcast %c3_i32 : i32 to vector<2x1xi32>
    %170 = arith.cmpi sgt, %0, %169 : vector<2x1xi32>
    %171 = vector.shape_cast %170 : vector<2x1xi1> to vector<2x1xi1>
    %172 = vector.broadcast %171 : vector<2x1xi1> to vector<2x128xi1>
    %173 = arith.select %172, %168, %133 : vector<2x128xi1>, vector<2x128xf32>
    %cst_48 = arith.constant 0.000000e+00 : f32
    %174 = vector.shape_cast %170 : vector<2x1xi1> to vector<2x1xi1>
    %175 = vector.broadcast %174 : vector<2x1xi1> to vector<2x128xi1>
    %176 = vector.broadcast %cst_48 : f32 to vector<2x128xf32>
    %177 = arith.select %175, %173, %176 : vector<2x128xi1>, vector<2x128xf32>
    %c6_49 = arith.constant 6 : index
    %c0_50 = arith.constant 0 : index
    %178 = vector.load %arg29[%c6_49, %c0_50] : memref<16x128xf32, #tpu.memory_space<vmem>>, vector<2x128xf32>
    tpu.vector_store %arg29[%c6_49, %c0_50], %177 {strides = array<i32>} : memref<16x128xf32, #tpu.memory_space<vmem>>, vector<2x128xf32>,
    %cst_51 = arith.constant dense<0.000000e+00> : vector<2x384xf32>
    %179 = tpu.matmul %173, %17, %cst_51 {dimension_numbers = #tpu.dot_dimension_numbers<[1], [0], [0], [1], [0, 0, 1, 1], [], []>} : vector<2x128xf32>, vector<128x384xf32>, vector<2x384xf32> -> vector<2x384xf32>
    %c8 = arith.constant 8 : index
    %c0_52 = arith.constant 0 : index
    %180 = vector.load %arg28[%c8, %c0_52] : memref<16x384xf32, #tpu.memory_space<vmem>>, vector<2x384xf32>
    %181 = vector.extract_strided_slice %180 {offsets = [0, 0], sizes = [2, 128], strides = [1, 1]} : vector<2x384xf32> to vector<2x128xf32>
    %182 = vector.extract_strided_slice %179 {offsets = [0, 0], sizes = [2, 128], strides = [1, 1]} : vector<2x384xf32> to vector<2x128xf32>
    %183 = arith.addf %181, %182 : vector<2x128xf32>
    %184 = arith.negf %183 : vector<2x128xf32>
    %185 = math.exp %184 : vector<2x128xf32>
    %cst_53 = arith.constant 1.000000e+00 : f32
    %186 = vector.broadcast %cst_53 : f32 to vector<2x128xf32>
    %187 = arith.addf %186, %185 : vector<2x128xf32>
    %188 = arith.divf %186, %187 : vector<2x128xf32>
    %189 = vector.extract_strided_slice %180 {offsets = [0, 128], sizes = [2, 128], strides = [1, 1]} : vector<2x384xf32> to vector<2x128xf32>
    %190 = vector.extract_strided_slice %179 {offsets = [0, 128], sizes = [2, 128], strides = [1, 1]} : vector<2x384xf32> to vector<2x128xf32>
    %191 = arith.addf %189, %190 : vector<2x128xf32>
    %192 = arith.negf %191 : vector<2x128xf32>
    %193 = math.exp %192 : vector<2x128xf32>
    %cst_54 = arith.constant 1.000000e+00 : f32
    %194 = vector.broadcast %cst_54 : f32 to vector<2x128xf32>
    %195 = arith.addf %194, %193 : vector<2x128xf32>
    %196 = arith.divf %194, %195 : vector<2x128xf32>
    %197 = vector.extract_strided_slice %180 {offsets = [0, 256], sizes = [2, 128], strides = [1, 1]} : vector<2x384xf32> to vector<2x128xf32>
    %198 = vector.extract_strided_slice %179 {offsets = [0, 256], sizes = [2, 128], strides = [1, 1]} : vector<2x384xf32> to vector<2x128xf32>
    %199 = vector.broadcast %18 : vector<1x128xf32> to vector<2x128xf32>
    %200 = arith.addf %198, %199 : vector<2x128xf32>
    %201 = arith.mulf %188, %200 : vector<2x128xf32>
    %202 = arith.addf %197, %201 : vector<2x128xf32>
    %203 = math.tanh %202 : vector<2x128xf32>
    %cst_55 = arith.constant 1.000000e+00 : f32
    %204 = vector.broadcast %cst_55 : f32 to vector<2x128xf32>
    %205 = arith.subf %204, %196 : vector<2x128xf32>
    %206 = arith.mulf %205, %203 : vector<2x128xf32>
    %207 = arith.mulf %196, %173 : vector<2x128xf32>
    %208 = arith.addf %206, %207 : vector<2x128xf32>
    %c4_i32 = arith.constant 4 : i32
    %209 = vector.broadcast %c4_i32 : i32 to vector<2x1xi32>
    %210 = arith.cmpi sgt, %0, %209 : vector<2x1xi32>
    %211 = vector.shape_cast %210 : vector<2x1xi1> to vector<2x1xi1>
    %212 = vector.broadcast %211 : vector<2x1xi1> to vector<2x128xi1>
    %213 = arith.select %212, %208, %173 : vector<2x128xi1>, vector<2x128xf32>
    %cst_56 = arith.constant 0.000000e+00 : f32
    %214 = vector.shape_cast %210 : vector<2x1xi1> to vector<2x1xi1>
    %215 = vector.broadcast %214 : vector<2x1xi1> to vector<2x128xi1>
    %216 = vector.broadcast %cst_56 : f32 to vector<2x128xf32>
    %217 = arith.select %215, %213, %216 : vector<2x128xi1>, vector<2x128xf32>
    %c8_57 = arith.constant 8 : index
    %c0_58 = arith.constant 0 : index
    %218 = vector.load %arg29[%c8_57, %c0_58] : memref<16x128xf32, #tpu.memory_space<vmem>>, vector<2x128xf32>
    tpu.vector_store %arg29[%c8_57, %c0_58], %217 {strides = array<i32>} : memref<16x128xf32, #tpu.memory_space<vmem>>, vector<2x128xf32>,
    %cst_59 = arith.constant dense<0.000000e+00> : vector<2x384xf32>
    %219 = tpu.matmul %213, %17, %cst_59 {dimension_numbers = #tpu.dot_dimension_numbers<[1], [0], [0], [1], [0, 0, 1, 1], [], []>} : vector<2x128xf32>, vector<128x384xf32>, vector<2x384xf32> -> vector<2x384xf32>
    %c10 = arith.constant 10 : index
    %c0_60 = arith.constant 0 : index
    %220 = vector.load %arg28[%c10, %c0_60] : memref<16x384xf32, #tpu.memory_space<vmem>>, vector<2x384xf32>
    %221 = vector.extract_strided_slice %220 {offsets = [0, 0], sizes = [2, 128], strides = [1, 1]} : vector<2x384xf32> to vector<2x128xf32>
    %222 = vector.extract_strided_slice %219 {offsets = [0, 0], sizes = [2, 128], strides = [1, 1]} : vector<2x384xf32> to vector<2x128xf32>
    %223 = arith.addf %221, %222 : vector<2x128xf32>
    %224 = arith.negf %223 : vector<2x128xf32>
    %225 = math.exp %224 : vector<2x128xf32>
    %cst_61 = arith.constant 1.000000e+00 : f32
    %226 = vector.broadcast %cst_61 : f32 to vector<2x128xf32>
    %227 = arith.addf %226, %225 : vector<2x128xf32>
    %228 = arith.divf %226, %227 : vector<2x128xf32>
    %229 = vector.extract_strided_slice %220 {offsets = [0, 128], sizes = [2, 128], strides = [1, 1]} : vector<2x384xf32> to vector<2x128xf32>
    %230 = vector.extract_strided_slice %219 {offsets = [0, 128], sizes = [2, 128], strides = [1, 1]} : vector<2x384xf32> to vector<2x128xf32>
    %231 = arith.addf %229, %230 : vector<2x128xf32>
    %232 = arith.negf %231 : vector<2x128xf32>
    %233 = math.exp %232 : vector<2x128xf32>
    %cst_62 = arith.constant 1.000000e+00 : f32
    %234 = vector.broadcast %cst_62 : f32 to vector<2x128xf32>
    %235 = arith.addf %234, %233 : vector<2x128xf32>
    %236 = arith.divf %234, %235 : vector<2x128xf32>
    %237 = vector.extract_strided_slice %220 {offsets = [0, 256], sizes = [2, 128], strides = [1, 1]} : vector<2x384xf32> to vector<2x128xf32>
    %238 = vector.extract_strided_slice %219 {offsets = [0, 256], sizes = [2, 128], strides = [1, 1]} : vector<2x384xf32> to vector<2x128xf32>
    %239 = vector.broadcast %18 : vector<1x128xf32> to vector<2x128xf32>
    %240 = arith.addf %238, %239 : vector<2x128xf32>
    %241 = arith.mulf %228, %240 : vector<2x128xf32>
    %242 = arith.addf %237, %241 : vector<2x128xf32>
    %243 = math.tanh %242 : vector<2x128xf32>
    %cst_63 = arith.constant 1.000000e+00 : f32
    %244 = vector.broadcast %cst_63 : f32 to vector<2x128xf32>
    %245 = arith.subf %244, %236 : vector<2x128xf32>
    %246 = arith.mulf %245, %243 : vector<2x128xf32>
    %247 = arith.mulf %236, %213 : vector<2x128xf32>
    %248 = arith.addf %246, %247 : vector<2x128xf32>
    %c5_i32 = arith.constant 5 : i32
    %249 = vector.broadcast %c5_i32 : i32 to vector<2x1xi32>
    %250 = arith.cmpi sgt, %0, %249 : vector<2x1xi32>
    %251 = vector.shape_cast %250 : vector<2x1xi1> to vector<2x1xi1>
    %252 = vector.broadcast %251 : vector<2x1xi1> to vector<2x128xi1>
    %253 = arith.select %252, %248, %213 : vector<2x128xi1>, vector<2x128xf32>
    %cst_64 = arith.constant 0.000000e+00 : f32
    %254 = vector.shape_cast %250 : vector<2x1xi1> to vector<2x1xi1>
    %255 = vector.broadcast %254 : vector<2x1xi1> to vector<2x128xi1>
    %256 = vector.broadcast %cst_64 : f32 to vector<2x128xf32>
    %257 = arith.select %255, %253, %256 : vector<2x128xi1>, vector<2x128xf32>
    %c10_65 = arith.constant 10 : index
    %c0_66 = arith.constant 0 : index
    %258 = vector.load %arg29[%c10_65, %c0_66] : memref<16x128xf32, #tpu.memory_space<vmem>>, vector<2x128xf32>
    tpu.vector_store %arg29[%c10_65, %c0_66], %257 {strides = array<i32>} : memref<16x128xf32, #tpu.memory_space<vmem>>, vector<2x128xf32>,
    %cst_67 = arith.constant dense<0.000000e+00> : vector<2x384xf32>
    %259 = tpu.matmul %253, %17, %cst_67 {dimension_numbers = #tpu.dot_dimension_numbers<[1], [0], [0], [1], [0, 0, 1, 1], [], []>} : vector<2x128xf32>, vector<128x384xf32>, vector<2x384xf32> -> vector<2x384xf32>
    %c12 = arith.constant 12 : index
    %c0_68 = arith.constant 0 : index
    %260 = vector.load %arg28[%c12, %c0_68] : memref<16x384xf32, #tpu.memory_space<vmem>>, vector<2x384xf32>
    %261 = vector.extract_strided_slice %260 {offsets = [0, 0], sizes = [2, 128], strides = [1, 1]} : vector<2x384xf32> to vector<2x128xf32>
    %262 = vector.extract_strided_slice %259 {offsets = [0, 0], sizes = [2, 128], strides = [1, 1]} : vector<2x384xf32> to vector<2x128xf32>
    %263 = arith.addf %261, %262 : vector<2x128xf32>
    %264 = arith.negf %263 : vector<2x128xf32>
    %265 = math.exp %264 : vector<2x128xf32>
    %cst_69 = arith.constant 1.000000e+00 : f32
    %266 = vector.broadcast %cst_69 : f32 to vector<2x128xf32>
    %267 = arith.addf %266, %265 : vector<2x128xf32>
    %268 = arith.divf %266, %267 : vector<2x128xf32>
    %269 = vector.extract_strided_slice %260 {offsets = [0, 128], sizes = [2, 128], strides = [1, 1]} : vector<2x384xf32> to vector<2x128xf32>
    %270 = vector.extract_strided_slice %259 {offsets = [0, 128], sizes = [2, 128], strides = [1, 1]} : vector<2x384xf32> to vector<2x128xf32>
    %271 = arith.addf %269, %270 : vector<2x128xf32>
    %272 = arith.negf %271 : vector<2x128xf32>
    %273 = math.exp %272 : vector<2x128xf32>
    %cst_70 = arith.constant 1.000000e+00 : f32
    %274 = vector.broadcast %cst_70 : f32 to vector<2x128xf32>
    %275 = arith.addf %274, %273 : vector<2x128xf32>
    %276 = arith.divf %274, %275 : vector<2x128xf32>
    %277 = vector.extract_strided_slice %260 {offsets = [0, 256], sizes = [2, 128], strides = [1, 1]} : vector<2x384xf32> to vector<2x128xf32>
    %278 = vector.extract_strided_slice %259 {offsets = [0, 256], sizes = [2, 128], strides = [1, 1]} : vector<2x384xf32> to vector<2x128xf32>
    %279 = vector.broadcast %18 : vector<1x128xf32> to vector<2x128xf32>
    %280 = arith.addf %278, %279 : vector<2x128xf32>
    %281 = arith.mulf %268, %280 : vector<2x128xf32>
    %282 = arith.addf %277, %281 : vector<2x128xf32>
    %283 = math.tanh %282 : vector<2x128xf32>
    %cst_71 = arith.constant 1.000000e+00 : f32
    %284 = vector.broadcast %cst_71 : f32 to vector<2x128xf32>
    %285 = arith.subf %284, %276 : vector<2x128xf32>
    %286 = arith.mulf %285, %283 : vector<2x128xf32>
    %287 = arith.mulf %276, %253 : vector<2x128xf32>
    %288 = arith.addf %286, %287 : vector<2x128xf32>
    %c6_i32 = arith.constant 6 : i32
    %289 = vector.broadcast %c6_i32 : i32 to vector<2x1xi32>
    %290 = arith.cmpi sgt, %0, %289 : vector<2x1xi32>
    %291 = vector.shape_cast %290 : vector<2x1xi1> to vector<2x1xi1>
    %292 = vector.broadcast %291 : vector<2x1xi1> to vector<2x128xi1>
    %293 = arith.select %292, %288, %253 : vector<2x128xi1>, vector<2x128xf32>
    %cst_72 = arith.constant 0.000000e+00 : f32
    %294 = vector.shape_cast %290 : vector<2x1xi1> to vector<2x1xi1>
    %295 = vector.broadcast %294 : vector<2x1xi1> to vector<2x128xi1>
    %296 = vector.broadcast %cst_72 : f32 to vector<2x128xf32>
    %297 = arith.select %295, %293, %296 : vector<2x128xi1>, vector<2x128xf32>
    %c12_73 = arith.constant 12 : index
    %c0_74 = arith.constant 0 : index
    %298 = vector.load %arg29[%c12_73, %c0_74] : memref<16x128xf32, #tpu.memory_space<vmem>>, vector<2x128xf32>
    tpu.vector_store %arg29[%c12_73, %c0_74], %297 {strides = array<i32>} : memref<16x128xf32, #tpu.memory_space<vmem>>, vector<2x128xf32>,
    %cst_75 = arith.constant dense<0.000000e+00> : vector<2x384xf32>
    %299 = tpu.matmul %293, %17, %cst_75 {dimension_numbers = #tpu.dot_dimension_numbers<[1], [0], [0], [1], [0, 0, 1, 1], [], []>} : vector<2x128xf32>, vector<128x384xf32>, vector<2x384xf32> -> vector<2x384xf32>
    %c14 = arith.constant 14 : index
    %c0_76 = arith.constant 0 : index
    %300 = vector.load %arg28[%c14, %c0_76] : memref<16x384xf32, #tpu.memory_space<vmem>>, vector<2x384xf32>
    %301 = vector.extract_strided_slice %300 {offsets = [0, 0], sizes = [2, 128], strides = [1, 1]} : vector<2x384xf32> to vector<2x128xf32>
    %302 = vector.extract_strided_slice %299 {offsets = [0, 0], sizes = [2, 128], strides = [1, 1]} : vector<2x384xf32> to vector<2x128xf32>
    %303 = arith.addf %301, %302 : vector<2x128xf32>
    %304 = arith.negf %303 : vector<2x128xf32>
    %305 = math.exp %304 : vector<2x128xf32>
    %cst_77 = arith.constant 1.000000e+00 : f32
    %306 = vector.broadcast %cst_77 : f32 to vector<2x128xf32>
    %307 = arith.addf %306, %305 : vector<2x128xf32>
    %308 = arith.divf %306, %307 : vector<2x128xf32>
    %309 = vector.extract_strided_slice %300 {offsets = [0, 128], sizes = [2, 128], strides = [1, 1]} : vector<2x384xf32> to vector<2x128xf32>
    %310 = vector.extract_strided_slice %299 {offsets = [0, 128], sizes = [2, 128], strides = [1, 1]} : vector<2x384xf32> to vector<2x128xf32>
    %311 = arith.addf %309, %310 : vector<2x128xf32>
    %312 = arith.negf %311 : vector<2x128xf32>
    %313 = math.exp %312 : vector<2x128xf32>
    %cst_78 = arith.constant 1.000000e+00 : f32
    %314 = vector.broadcast %cst_78 : f32 to vector<2x128xf32>
    %315 = arith.addf %314, %313 : vector<2x128xf32>
    %316 = arith.divf %314, %315 : vector<2x128xf32>
    %317 = vector.extract_strided_slice %300 {offsets = [0, 256], sizes = [2, 128], strides = [1, 1]} : vector<2x384xf32> to vector<2x128xf32>
    %318 = vector.extract_strided_slice %299 {offsets = [0, 256], sizes = [2, 128], strides = [1, 1]} : vector<2x384xf32> to vector<2x128xf32>
    %319 = vector.broadcast %18 : vector<1x128xf32> to vector<2x128xf32>
    %320 = arith.addf %318, %319 : vector<2x128xf32>
    %321 = arith.mulf %308, %320 : vector<2x128xf32>
    %322 = arith.addf %317, %321 : vector<2x128xf32>
    %323 = math.tanh %322 : vector<2x128xf32>
    %cst_79 = arith.constant 1.000000e+00 : f32
    %324 = vector.broadcast %cst_79 : f32 to vector<2x128xf32>
    %325 = arith.subf %324, %316 : vector<2x128xf32>
    %326 = arith.mulf %325, %323 : vector<2x128xf32>
    %327 = arith.mulf %316, %293 : vector<2x128xf32>
    %328 = arith.addf %326, %327 : vector<2x128xf32>
    %c7_i32 = arith.constant 7 : i32
    %329 = vector.broadcast %c7_i32 : i32 to vector<2x1xi32>
    %330 = arith.cmpi sgt, %0, %329 : vector<2x1xi32>
    %331 = vector.shape_cast %330 : vector<2x1xi1> to vector<2x1xi1>
    %332 = vector.broadcast %331 : vector<2x1xi1> to vector<2x128xi1>
    %333 = arith.select %332, %328, %293 : vector<2x128xi1>, vector<2x128xf32>
    %cst_80 = arith.constant 0.000000e+00 : f32
    %334 = vector.shape_cast %330 : vector<2x1xi1> to vector<2x1xi1>
    %335 = vector.broadcast %334 : vector<2x1xi1> to vector<2x128xi1>
    %336 = vector.broadcast %cst_80 : f32 to vector<2x128xf32>
    %337 = arith.select %335, %333, %336 : vector<2x128xi1>, vector<2x128xf32>
    %c14_81 = arith.constant 14 : index
    %c0_82 = arith.constant 0 : index
    %338 = vector.load %arg29[%c14_81, %c0_82] : memref<16x128xf32, #tpu.memory_space<vmem>>, vector<2x128xf32>
    tpu.vector_store %arg29[%c14_81, %c0_82], %337 {strides = array<i32>} : memref<16x128xf32, #tpu.memory_space<vmem>>, vector<2x128xf32>,
    %c0_83 = arith.constant 0 : index
    %c0_84 = arith.constant 0 : index
    %339 = vector.load %arg29[%c0_83, %c0_84] : memref<16x128xf32, #tpu.memory_space<vmem>>, vector<16x128xf32>
    %c0_85 = arith.constant 0 : index
    %c0_86 = arith.constant 0 : index
    %340 = vector.load %arg9[%c0_85, %c0_86] : memref<128x384xf32, #tpu.memory_space<vmem>>, vector<128x384xf32>
    %cst_87 = arith.constant dense<0.000000e+00> : vector<16x384xf32>
    %341 = tpu.matmul %339, %340, %cst_87 {dimension_numbers = #tpu.dot_dimension_numbers<[1], [0], [0], [1], [0, 0, 1, 1], [], []>} : vector<16x128xf32>, vector<128x384xf32>, vector<16x384xf32> -> vector<16x384xf32>
    %c0_88 = arith.constant 0 : index
    %c0_89 = arith.constant 0 : index
    %342 = vector.load %arg11[%c0_88, %c0_89] : memref<1x384xf32, #tpu.memory_space<vmem>>, vector<1x384xf32>
    %343 = vector.broadcast %342 : vector<1x384xf32> to vector<16x384xf32>
    %344 = arith.addf %341, %343 : vector<16x384xf32>
    %c0_90 = arith.constant 0 : index
    %c0_91 = arith.constant 0 : index
    %345 = vector.load %arg28[%c0_90, %c0_91] : memref<16x384xf32, #tpu.memory_space<vmem>>, vector<16x384xf32>
    tpu.vector_store %arg28[%c0_90, %c0_91], %344 {strides = array<i32>} : memref<16x384xf32, #tpu.memory_space<vmem>>, vector<16x384xf32>,
    %c0_92 = arith.constant 0 : index
    %c0_93 = arith.constant 0 : index
    %346 = vector.load %arg10[%c0_92, %c0_93] : memref<128x384xf32, #tpu.memory_space<vmem>>, vector<128x384xf32>
    %c0_94 = arith.constant 0 : index
    %c0_95 = arith.constant 0 : index
    %347 = vector.load %arg12[%c0_94, %c0_95] : memref<1x128xf32, #tpu.memory_space<vmem>>, vector<1x128xf32>
    %cst_96 = arith.constant dense<0.000000e+00> : vector<2x384xf32>
    %348 = tpu.matmul %3, %346, %cst_96 {dimension_numbers = #tpu.dot_dimension_numbers<[1], [0], [0], [1], [0, 0, 1, 1], [], []>} : vector<2x128xf32>, vector<128x384xf32>, vector<2x384xf32> -> vector<2x384xf32>
    %c0_97 = arith.constant 0 : index
    %c0_98 = arith.constant 0 : index
    %349 = vector.load %arg28[%c0_97, %c0_98] : memref<16x384xf32, #tpu.memory_space<vmem>>, vector<2x384xf32>
    %350 = vector.extract_strided_slice %349 {offsets = [0, 0], sizes = [2, 128], strides = [1, 1]} : vector<2x384xf32> to vector<2x128xf32>
    %351 = vector.extract_strided_slice %348 {offsets = [0, 0], sizes = [2, 128], strides = [1, 1]} : vector<2x384xf32> to vector<2x128xf32>
    %352 = arith.addf %350, %351 : vector<2x128xf32>
    %353 = arith.negf %352 : vector<2x128xf32>
    %354 = math.exp %353 : vector<2x128xf32>
    %cst_99 = arith.constant 1.000000e+00 : f32
    %355 = vector.broadcast %cst_99 : f32 to vector<2x128xf32>
    %356 = arith.addf %355, %354 : vector<2x128xf32>
    %357 = arith.divf %355, %356 : vector<2x128xf32>
    %358 = vector.extract_strided_slice %349 {offsets = [0, 128], sizes = [2, 128], strides = [1, 1]} : vector<2x384xf32> to vector<2x128xf32>
    %359 = vector.extract_strided_slice %348 {offsets = [0, 128], sizes = [2, 128], strides = [1, 1]} : vector<2x384xf32> to vector<2x128xf32>
    %360 = arith.addf %358, %359 : vector<2x128xf32>
    %361 = arith.negf %360 : vector<2x128xf32>
    %362 = math.exp %361 : vector<2x128xf32>
    %cst_100 = arith.constant 1.000000e+00 : f32
    %363 = vector.broadcast %cst_100 : f32 to vector<2x128xf32>
    %364 = arith.addf %363, %362 : vector<2x128xf32>
    %365 = arith.divf %363, %364 : vector<2x128xf32>
    %366 = vector.extract_strided_slice %349 {offsets = [0, 256], sizes = [2, 128], strides = [1, 1]} : vector<2x384xf32> to vector<2x128xf32>
    %367 = vector.extract_strided_slice %348 {offsets = [0, 256], sizes = [2, 128], strides = [1, 1]} : vector<2x384xf32> to vector<2x128xf32>
    %368 = vector.broadcast %347 : vector<1x128xf32> to vector<2x128xf32>
    %369 = arith.addf %367, %368 : vector<2x128xf32>
    %370 = arith.mulf %357, %369 : vector<2x128xf32>
    %371 = arith.addf %366, %370 : vector<2x128xf32>
    %372 = math.tanh %371 : vector<2x128xf32>
    %cst_101 = arith.constant 1.000000e+00 : f32
    %373 = vector.broadcast %cst_101 : f32 to vector<2x128xf32>
    %374 = arith.subf %373, %365 : vector<2x128xf32>
    %375 = arith.mulf %374, %372 : vector<2x128xf32>
    %376 = arith.mulf %365, %3 : vector<2x128xf32>
    %377 = arith.addf %375, %376 : vector<2x128xf32>
    %c0_i32_102 = arith.constant 0 : i32
    %378 = vector.broadcast %c0_i32_102 : i32 to vector<2x1xi32>
    %379 = arith.cmpi sgt, %0, %378 : vector<2x1xi32>
    %380 = vector.shape_cast %379 : vector<2x1xi1> to vector<2x1xi1>
    %381 = vector.broadcast %380 : vector<2x1xi1> to vector<2x128xi1>
    %382 = arith.select %381, %377, %3 : vector<2x128xi1>, vector<2x128xf32>
    %cst_103 = arith.constant 0.000000e+00 : f32
    %383 = vector.shape_cast %379 : vector<2x1xi1> to vector<2x1xi1>
    %384 = vector.broadcast %383 : vector<2x1xi1> to vector<2x128xi1>
    %385 = vector.broadcast %cst_103 : f32 to vector<2x128xf32>
    %386 = arith.select %384, %382, %385 : vector<2x128xi1>, vector<2x128xf32>
    %c0_104 = arith.constant 0 : index
    %c0_105 = arith.constant 0 : index
    %387 = vector.load %arg29[%c0_104, %c0_105] : memref<16x128xf32, #tpu.memory_space<vmem>>, vector<2x128xf32>
    tpu.vector_store %arg29[%c0_104, %c0_105], %386 {strides = array<i32>} : memref<16x128xf32, #tpu.memory_space<vmem>>, vector<2x128xf32>,
    %cst_106 = arith.constant dense<0.000000e+00> : vector<2x384xf32>
    %388 = tpu.matmul %382, %346, %cst_106 {dimension_numbers = #tpu.dot_dimension_numbers<[1], [0], [0], [1], [0, 0, 1, 1], [], []>} : vector<2x128xf32>, vector<128x384xf32>, vector<2x384xf32> -> vector<2x384xf32>
    %c2_107 = arith.constant 2 : index
    %c0_108 = arith.constant 0 : index
    %389 = vector.load %arg28[%c2_107, %c0_108] : memref<16x384xf32, #tpu.memory_space<vmem>>, vector<2x384xf32>
    %390 = vector.extract_strided_slice %389 {offsets = [0, 0], sizes = [2, 128], strides = [1, 1]} : vector<2x384xf32> to vector<2x128xf32>
    %391 = vector.extract_strided_slice %388 {offsets = [0, 0], sizes = [2, 128], strides = [1, 1]} : vector<2x384xf32> to vector<2x128xf32>
    %392 = arith.addf %390, %391 : vector<2x128xf32>
    %393 = arith.negf %392 : vector<2x128xf32>
    %394 = math.exp %393 : vector<2x128xf32>
    %cst_109 = arith.constant 1.000000e+00 : f32
    %395 = vector.broadcast %cst_109 : f32 to vector<2x128xf32>
    %396 = arith.addf %395, %394 : vector<2x128xf32>
    %397 = arith.divf %395, %396 : vector<2x128xf32>
    %398 = vector.extract_strided_slice %389 {offsets = [0, 128], sizes = [2, 128], strides = [1, 1]} : vector<2x384xf32> to vector<2x128xf32>
    %399 = vector.extract_strided_slice %388 {offsets = [0, 128], sizes = [2, 128], strides = [1, 1]} : vector<2x384xf32> to vector<2x128xf32>
    %400 = arith.addf %398, %399 : vector<2x128xf32>
    %401 = arith.negf %400 : vector<2x128xf32>
    %402 = math.exp %401 : vector<2x128xf32>
    %cst_110 = arith.constant 1.000000e+00 : f32
    %403 = vector.broadcast %cst_110 : f32 to vector<2x128xf32>
    %404 = arith.addf %403, %402 : vector<2x128xf32>
    %405 = arith.divf %403, %404 : vector<2x128xf32>
    %406 = vector.extract_strided_slice %389 {offsets = [0, 256], sizes = [2, 128], strides = [1, 1]} : vector<2x384xf32> to vector<2x128xf32>
    %407 = vector.extract_strided_slice %388 {offsets = [0, 256], sizes = [2, 128], strides = [1, 1]} : vector<2x384xf32> to vector<2x128xf32>
    %408 = vector.broadcast %347 : vector<1x128xf32> to vector<2x128xf32>
    %409 = arith.addf %407, %408 : vector<2x128xf32>
    %410 = arith.mulf %397, %409 : vector<2x128xf32>
    %411 = arith.addf %406, %410 : vector<2x128xf32>
    %412 = math.tanh %411 : vector<2x128xf32>
    %cst_111 = arith.constant 1.000000e+00 : f32
    %413 = vector.broadcast %cst_111 : f32 to vector<2x128xf32>
    %414 = arith.subf %413, %405 : vector<2x128xf32>
    %415 = arith.mulf %414, %412 : vector<2x128xf32>
    %416 = arith.mulf %405, %382 : vector<2x128xf32>
    %417 = arith.addf %415, %416 : vector<2x128xf32>
    %c1_i32_112 = arith.constant 1 : i32
    %418 = vector.broadcast %c1_i32_112 : i32 to vector<2x1xi32>
    %419 = arith.cmpi sgt, %0, %418 : vector<2x1xi32>
    %420 = vector.shape_cast %419 : vector<2x1xi1> to vector<2x1xi1>
    %421 = vector.broadcast %420 : vector<2x1xi1> to vector<2x128xi1>
    %422 = arith.select %421, %417, %382 : vector<2x128xi1>, vector<2x128xf32>
    %cst_113 = arith.constant 0.000000e+00 : f32
    %423 = vector.shape_cast %419 : vector<2x1xi1> to vector<2x1xi1>
    %424 = vector.broadcast %423 : vector<2x1xi1> to vector<2x128xi1>
    %425 = vector.broadcast %cst_113 : f32 to vector<2x128xf32>
    %426 = arith.select %424, %422, %425 : vector<2x128xi1>, vector<2x128xf32>
    %c2_114 = arith.constant 2 : index
    %c0_115 = arith.constant 0 : index
    %427 = vector.load %arg29[%c2_114, %c0_115] : memref<16x128xf32, #tpu.memory_space<vmem>>, vector<2x128xf32>
    tpu.vector_store %arg29[%c2_114, %c0_115], %426 {strides = array<i32>} : memref<16x128xf32, #tpu.memory_space<vmem>>, vector<2x128xf32>,
    %cst_116 = arith.constant dense<0.000000e+00> : vector<2x384xf32>
    %428 = tpu.matmul %422, %346, %cst_116 {dimension_numbers = #tpu.dot_dimension_numbers<[1], [0], [0], [1], [0, 0, 1, 1], [], []>} : vector<2x128xf32>, vector<128x384xf32>, vector<2x384xf32> -> vector<2x384xf32>
    %c4_117 = arith.constant 4 : index
    %c0_118 = arith.constant 0 : index
    %429 = vector.load %arg28[%c4_117, %c0_118] : memref<16x384xf32, #tpu.memory_space<vmem>>, vector<2x384xf32>
    %430 = vector.extract_strided_slice %429 {offsets = [0, 0], sizes = [2, 128], strides = [1, 1]} : vector<2x384xf32> to vector<2x128xf32>
    %431 = vector.extract_strided_slice %428 {offsets = [0, 0], sizes = [2, 128], strides = [1, 1]} : vector<2x384xf32> to vector<2x128xf32>
    %432 = arith.addf %430, %431 : vector<2x128xf32>
    %433 = arith.negf %432 : vector<2x128xf32>
    %434 = math.exp %433 : vector<2x128xf32>
    %cst_119 = arith.constant 1.000000e+00 : f32
    %435 = vector.broadcast %cst_119 : f32 to vector<2x128xf32>
    %436 = arith.addf %435, %434 : vector<2x128xf32>
    %437 = arith.divf %435, %436 : vector<2x128xf32>
    %438 = vector.extract_strided_slice %429 {offsets = [0, 128], sizes = [2, 128], strides = [1, 1]} : vector<2x384xf32> to vector<2x128xf32>
    %439 = vector.extract_strided_slice %428 {offsets = [0, 128], sizes = [2, 128], strides = [1, 1]} : vector<2x384xf32> to vector<2x128xf32>
    %440 = arith.addf %438, %439 : vector<2x128xf32>
    %441 = arith.negf %440 : vector<2x128xf32>
    %442 = math.exp %441 : vector<2x128xf32>
    %cst_120 = arith.constant 1.000000e+00 : f32
    %443 = vector.broadcast %cst_120 : f32 to vector<2x128xf32>
    %444 = arith.addf %443, %442 : vector<2x128xf32>
    %445 = arith.divf %443, %444 : vector<2x128xf32>
    %446 = vector.extract_strided_slice %429 {offsets = [0, 256], sizes = [2, 128], strides = [1, 1]} : vector<2x384xf32> to vector<2x128xf32>
    %447 = vector.extract_strided_slice %428 {offsets = [0, 256], sizes = [2, 128], strides = [1, 1]} : vector<2x384xf32> to vector<2x128xf32>
    %448 = vector.broadcast %347 : vector<1x128xf32> to vector<2x128xf32>
    %449 = arith.addf %447, %448 : vector<2x128xf32>
    %450 = arith.mulf %437, %449 : vector<2x128xf32>
    %451 = arith.addf %446, %450 : vector<2x128xf32>
    %452 = math.tanh %451 : vector<2x128xf32>
    %cst_121 = arith.constant 1.000000e+00 : f32
    %453 = vector.broadcast %cst_121 : f32 to vector<2x128xf32>
    %454 = arith.subf %453, %445 : vector<2x128xf32>
    %455 = arith.mulf %454, %452 : vector<2x128xf32>
    %456 = arith.mulf %445, %422 : vector<2x128xf32>
    %457 = arith.addf %455, %456 : vector<2x128xf32>
    %c2_i32_122 = arith.constant 2 : i32
    %458 = vector.broadcast %c2_i32_122 : i32 to vector<2x1xi32>
    %459 = arith.cmpi sgt, %0, %458 : vector<2x1xi32>
    %460 = vector.shape_cast %459 : vector<2x1xi1> to vector<2x1xi1>
    %461 = vector.broadcast %460 : vector<2x1xi1> to vector<2x128xi1>
    %462 = arith.select %461, %457, %422 : vector<2x128xi1>, vector<2x128xf32>
    %cst_123 = arith.constant 0.000000e+00 : f32
    %463 = vector.shape_cast %459 : vector<2x1xi1> to vector<2x1xi1>
    %464 = vector.broadcast %463 : vector<2x1xi1> to vector<2x128xi1>
    %465 = vector.broadcast %cst_123 : f32 to vector<2x128xf32>
    %466 = arith.select %464, %462, %465 : vector<2x128xi1>, vector<2x128xf32>
    %c4_124 = arith.constant 4 : index
    %c0_125 = arith.constant 0 : index
    %467 = vector.load %arg29[%c4_124, %c0_125] : memref<16x128xf32, #tpu.memory_space<vmem>>, vector<2x128xf32>
    tpu.vector_store %arg29[%c4_124, %c0_125], %466 {strides = array<i32>} : memref<16x128xf32, #tpu.memory_space<vmem>>, vector<2x128xf32>,
    %cst_126 = arith.constant dense<0.000000e+00> : vector<2x384xf32>
    %468 = tpu.matmul %462, %346, %cst_126 {dimension_numbers = #tpu.dot_dimension_numbers<[1], [0], [0], [1], [0, 0, 1, 1], [], []>} : vector<2x128xf32>, vector<128x384xf32>, vector<2x384xf32> -> vector<2x384xf32>
    %c6_127 = arith.constant 6 : index
    %c0_128 = arith.constant 0 : index
    %469 = vector.load %arg28[%c6_127, %c0_128] : memref<16x384xf32, #tpu.memory_space<vmem>>, vector<2x384xf32>
    %470 = vector.extract_strided_slice %469 {offsets = [0, 0], sizes = [2, 128], strides = [1, 1]} : vector<2x384xf32> to vector<2x128xf32>
    %471 = vector.extract_strided_slice %468 {offsets = [0, 0], sizes = [2, 128], strides = [1, 1]} : vector<2x384xf32> to vector<2x128xf32>
    %472 = arith.addf %470, %471 : vector<2x128xf32>
    %473 = arith.negf %472 : vector<2x128xf32>
    %474 = math.exp %473 : vector<2x128xf32>
    %cst_129 = arith.constant 1.000000e+00 : f32
    %475 = vector.broadcast %cst_129 : f32 to vector<2x128xf32>
    %476 = arith.addf %475, %474 : vector<2x128xf32>
    %477 = arith.divf %475, %476 : vector<2x128xf32>
    %478 = vector.extract_strided_slice %469 {offsets = [0, 128], sizes = [2, 128], strides = [1, 1]} : vector<2x384xf32> to vector<2x128xf32>
    %479 = vector.extract_strided_slice %468 {offsets = [0, 128], sizes = [2, 128], strides = [1, 1]} : vector<2x384xf32> to vector<2x128xf32>
    %480 = arith.addf %478, %479 : vector<2x128xf32>
    %481 = arith.negf %480 : vector<2x128xf32>
    %482 = math.exp %481 : vector<2x128xf32>
    %cst_130 = arith.constant 1.000000e+00 : f32
    %483 = vector.broadcast %cst_130 : f32 to vector<2x128xf32>
    %484 = arith.addf %483, %482 : vector<2x128xf32>
    %485 = arith.divf %483, %484 : vector<2x128xf32>
    %486 = vector.extract_strided_slice %469 {offsets = [0, 256], sizes = [2, 128], strides = [1, 1]} : vector<2x384xf32> to vector<2x128xf32>
    %487 = vector.extract_strided_slice %468 {offsets = [0, 256], sizes = [2, 128], strides = [1, 1]} : vector<2x384xf32> to vector<2x128xf32>
    %488 = vector.broadcast %347 : vector<1x128xf32> to vector<2x128xf32>
    %489 = arith.addf %487, %488 : vector<2x128xf32>
    %490 = arith.mulf %477, %489 : vector<2x128xf32>
    %491 = arith.addf %486, %490 : vector<2x128xf32>
    %492 = math.tanh %491 : vector<2x128xf32>
    %cst_131 = arith.constant 1.000000e+00 : f32
    %493 = vector.broadcast %cst_131 : f32 to vector<2x128xf32>
    %494 = arith.subf %493, %485 : vector<2x128xf32>
    %495 = arith.mulf %494, %492 : vector<2x128xf32>
    %496 = arith.mulf %485, %462 : vector<2x128xf32>
    %497 = arith.addf %495, %496 : vector<2x128xf32>
    %c3_i32_132 = arith.constant 3 : i32
    %498 = vector.broadcast %c3_i32_132 : i32 to vector<2x1xi32>
    %499 = arith.cmpi sgt, %0, %498 : vector<2x1xi32>
    %500 = vector.shape_cast %499 : vector<2x1xi1> to vector<2x1xi1>
    %501 = vector.broadcast %500 : vector<2x1xi1> to vector<2x128xi1>
    %502 = arith.select %501, %497, %462 : vector<2x128xi1>, vector<2x128xf32>
    %cst_133 = arith.constant 0.000000e+00 : f32
    %503 = vector.shape_cast %499 : vector<2x1xi1> to vector<2x1xi1>
    %504 = vector.broadcast %503 : vector<2x1xi1> to vector<2x128xi1>
    %505 = vector.broadcast %cst_133 : f32 to vector<2x128xf32>
    %506 = arith.select %504, %502, %505 : vector<2x128xi1>, vector<2x128xf32>
    %c6_134 = arith.constant 6 : index
    %c0_135 = arith.constant 0 : index
    %507 = vector.load %arg29[%c6_134, %c0_135] : memref<16x128xf32, #tpu.memory_space<vmem>>, vector<2x128xf32>
    tpu.vector_store %arg29[%c6_134, %c0_135], %506 {strides = array<i32>} : memref<16x128xf32, #tpu.memory_space<vmem>>, vector<2x128xf32>,
    %cst_136 = arith.constant dense<0.000000e+00> : vector<2x384xf32>
    %508 = tpu.matmul %502, %346, %cst_136 {dimension_numbers = #tpu.dot_dimension_numbers<[1], [0], [0], [1], [0, 0, 1, 1], [], []>} : vector<2x128xf32>, vector<128x384xf32>, vector<2x384xf32> -> vector<2x384xf32>
    %c8_137 = arith.constant 8 : index
    %c0_138 = arith.constant 0 : index
    %509 = vector.load %arg28[%c8_137, %c0_138] : memref<16x384xf32, #tpu.memory_space<vmem>>, vector<2x384xf32>
    %510 = vector.extract_strided_slice %509 {offsets = [0, 0], sizes = [2, 128], strides = [1, 1]} : vector<2x384xf32> to vector<2x128xf32>
    %511 = vector.extract_strided_slice %508 {offsets = [0, 0], sizes = [2, 128], strides = [1, 1]} : vector<2x384xf32> to vector<2x128xf32>
    %512 = arith.addf %510, %511 : vector<2x128xf32>
    %513 = arith.negf %512 : vector<2x128xf32>
    %514 = math.exp %513 : vector<2x128xf32>
    %cst_139 = arith.constant 1.000000e+00 : f32
    %515 = vector.broadcast %cst_139 : f32 to vector<2x128xf32>
    %516 = arith.addf %515, %514 : vector<2x128xf32>
    %517 = arith.divf %515, %516 : vector<2x128xf32>
    %518 = vector.extract_strided_slice %509 {offsets = [0, 128], sizes = [2, 128], strides = [1, 1]} : vector<2x384xf32> to vector<2x128xf32>
    %519 = vector.extract_strided_slice %508 {offsets = [0, 128], sizes = [2, 128], strides = [1, 1]} : vector<2x384xf32> to vector<2x128xf32>
    %520 = arith.addf %518, %519 : vector<2x128xf32>
    %521 = arith.negf %520 : vector<2x128xf32>
    %522 = math.exp %521 : vector<2x128xf32>
    %cst_140 = arith.constant 1.000000e+00 : f32
    %523 = vector.broadcast %cst_140 : f32 to vector<2x128xf32>
    %524 = arith.addf %523, %522 : vector<2x128xf32>
    %525 = arith.divf %523, %524 : vector<2x128xf32>
    %526 = vector.extract_strided_slice %509 {offsets = [0, 256], sizes = [2, 128], strides = [1, 1]} : vector<2x384xf32> to vector<2x128xf32>
    %527 = vector.extract_strided_slice %508 {offsets = [0, 256], sizes = [2, 128], strides = [1, 1]} : vector<2x384xf32> to vector<2x128xf32>
    %528 = vector.broadcast %347 : vector<1x128xf32> to vector<2x128xf32>
    %529 = arith.addf %527, %528 : vector<2x128xf32>
    %530 = arith.mulf %517, %529 : vector<2x128xf32>
    %531 = arith.addf %526, %530 : vector<2x128xf32>
    %532 = math.tanh %531 : vector<2x128xf32>
    %cst_141 = arith.constant 1.000000e+00 : f32
    %533 = vector.broadcast %cst_141 : f32 to vector<2x128xf32>
    %534 = arith.subf %533, %525 : vector<2x128xf32>
    %535 = arith.mulf %534, %532 : vector<2x128xf32>
    %536 = arith.mulf %525, %502 : vector<2x128xf32>
    %537 = arith.addf %535, %536 : vector<2x128xf32>
    %c4_i32_142 = arith.constant 4 : i32
    %538 = vector.broadcast %c4_i32_142 : i32 to vector<2x1xi32>
    %539 = arith.cmpi sgt, %0, %538 : vector<2x1xi32>
    %540 = vector.shape_cast %539 : vector<2x1xi1> to vector<2x1xi1>
    %541 = vector.broadcast %540 : vector<2x1xi1> to vector<2x128xi1>
    %542 = arith.select %541, %537, %502 : vector<2x128xi1>, vector<2x128xf32>
    %cst_143 = arith.constant 0.000000e+00 : f32
    %543 = vector.shape_cast %539 : vector<2x1xi1> to vector<2x1xi1>
    %544 = vector.broadcast %543 : vector<2x1xi1> to vector<2x128xi1>
    %545 = vector.broadcast %cst_143 : f32 to vector<2x128xf32>
    %546 = arith.select %544, %542, %545 : vector<2x128xi1>, vector<2x128xf32>
    %c8_144 = arith.constant 8 : index
    %c0_145 = arith.constant 0 : index
    %547 = vector.load %arg29[%c8_144, %c0_145] : memref<16x128xf32, #tpu.memory_space<vmem>>, vector<2x128xf32>
    tpu.vector_store %arg29[%c8_144, %c0_145], %546 {strides = array<i32>} : memref<16x128xf32, #tpu.memory_space<vmem>>, vector<2x128xf32>,
    %cst_146 = arith.constant dense<0.000000e+00> : vector<2x384xf32>
    %548 = tpu.matmul %542, %346, %cst_146 {dimension_numbers = #tpu.dot_dimension_numbers<[1], [0], [0], [1], [0, 0, 1, 1], [], []>} : vector<2x128xf32>, vector<128x384xf32>, vector<2x384xf32> -> vector<2x384xf32>
    %c10_147 = arith.constant 10 : index
    %c0_148 = arith.constant 0 : index
    %549 = vector.load %arg28[%c10_147, %c0_148] : memref<16x384xf32, #tpu.memory_space<vmem>>, vector<2x384xf32>
    %550 = vector.extract_strided_slice %549 {offsets = [0, 0], sizes = [2, 128], strides = [1, 1]} : vector<2x384xf32> to vector<2x128xf32>
    %551 = vector.extract_strided_slice %548 {offsets = [0, 0], sizes = [2, 128], strides = [1, 1]} : vector<2x384xf32> to vector<2x128xf32>
    %552 = arith.addf %550, %551 : vector<2x128xf32>
    %553 = arith.negf %552 : vector<2x128xf32>
    %554 = math.exp %553 : vector<2x128xf32>
    %cst_149 = arith.constant 1.000000e+00 : f32
    %555 = vector.broadcast %cst_149 : f32 to vector<2x128xf32>
    %556 = arith.addf %555, %554 : vector<2x128xf32>
    %557 = arith.divf %555, %556 : vector<2x128xf32>
    %558 = vector.extract_strided_slice %549 {offsets = [0, 128], sizes = [2, 128], strides = [1, 1]} : vector<2x384xf32> to vector<2x128xf32>
    %559 = vector.extract_strided_slice %548 {offsets = [0, 128], sizes = [2, 128], strides = [1, 1]} : vector<2x384xf32> to vector<2x128xf32>
    %560 = arith.addf %558, %559 : vector<2x128xf32>
    %561 = arith.negf %560 : vector<2x128xf32>
    %562 = math.exp %561 : vector<2x128xf32>
    %cst_150 = arith.constant 1.000000e+00 : f32
    %563 = vector.broadcast %cst_150 : f32 to vector<2x128xf32>
    %564 = arith.addf %563, %562 : vector<2x128xf32>
    %565 = arith.divf %563, %564 : vector<2x128xf32>
    %566 = vector.extract_strided_slice %549 {offsets = [0, 256], sizes = [2, 128], strides = [1, 1]} : vector<2x384xf32> to vector<2x128xf32>
    %567 = vector.extract_strided_slice %548 {offsets = [0, 256], sizes = [2, 128], strides = [1, 1]} : vector<2x384xf32> to vector<2x128xf32>
    %568 = vector.broadcast %347 : vector<1x128xf32> to vector<2x128xf32>
    %569 = arith.addf %567, %568 : vector<2x128xf32>
    %570 = arith.mulf %557, %569 : vector<2x128xf32>
    %571 = arith.addf %566, %570 : vector<2x128xf32>
    %572 = math.tanh %571 : vector<2x128xf32>
    %cst_151 = arith.constant 1.000000e+00 : f32
    %573 = vector.broadcast %cst_151 : f32 to vector<2x128xf32>
    %574 = arith.subf %573, %565 : vector<2x128xf32>
    %575 = arith.mulf %574, %572 : vector<2x128xf32>
    %576 = arith.mulf %565, %542 : vector<2x128xf32>
    %577 = arith.addf %575, %576 : vector<2x128xf32>
    %c5_i32_152 = arith.constant 5 : i32
    %578 = vector.broadcast %c5_i32_152 : i32 to vector<2x1xi32>
    %579 = arith.cmpi sgt, %0, %578 : vector<2x1xi32>
    %580 = vector.shape_cast %579 : vector<2x1xi1> to vector<2x1xi1>
    %581 = vector.broadcast %580 : vector<2x1xi1> to vector<2x128xi1>
    %582 = arith.select %581, %577, %542 : vector<2x128xi1>, vector<2x128xf32>
    %cst_153 = arith.constant 0.000000e+00 : f32
    %583 = vector.shape_cast %579 : vector<2x1xi1> to vector<2x1xi1>
    %584 = vector.broadcast %583 : vector<2x1xi1> to vector<2x128xi1>
    %585 = vector.broadcast %cst_153 : f32 to vector<2x128xf32>
    %586 = arith.select %584, %582, %585 : vector<2x128xi1>, vector<2x128xf32>
    %c10_154 = arith.constant 10 : index
    %c0_155 = arith.constant 0 : index
    %587 = vector.load %arg29[%c10_154, %c0_155] : memref<16x128xf32, #tpu.memory_space<vmem>>, vector<2x128xf32>
    tpu.vector_store %arg29[%c10_154, %c0_155], %586 {strides = array<i32>} : memref<16x128xf32, #tpu.memory_space<vmem>>, vector<2x128xf32>,
    %cst_156 = arith.constant dense<0.000000e+00> : vector<2x384xf32>
    %588 = tpu.matmul %582, %346, %cst_156 {dimension_numbers = #tpu.dot_dimension_numbers<[1], [0], [0], [1], [0, 0, 1, 1], [], []>} : vector<2x128xf32>, vector<128x384xf32>, vector<2x384xf32> -> vector<2x384xf32>
    %c12_157 = arith.constant 12 : index
    %c0_158 = arith.constant 0 : index
    %589 = vector.load %arg28[%c12_157, %c0_158] : memref<16x384xf32, #tpu.memory_space<vmem>>, vector<2x384xf32>
    %590 = vector.extract_strided_slice %589 {offsets = [0, 0], sizes = [2, 128], strides = [1, 1]} : vector<2x384xf32> to vector<2x128xf32>
    %591 = vector.extract_strided_slice %588 {offsets = [0, 0], sizes = [2, 128], strides = [1, 1]} : vector<2x384xf32> to vector<2x128xf32>
    %592 = arith.addf %590, %591 : vector<2x128xf32>
    %593 = arith.negf %592 : vector<2x128xf32>
    %594 = math.exp %593 : vector<2x128xf32>
    %cst_159 = arith.constant 1.000000e+00 : f32
    %595 = vector.broadcast %cst_159 : f32 to vector<2x128xf32>
    %596 = arith.addf %595, %594 : vector<2x128xf32>
    %597 = arith.divf %595, %596 : vector<2x128xf32>
    %598 = vector.extract_strided_slice %589 {offsets = [0, 128], sizes = [2, 128], strides = [1, 1]} : vector<2x384xf32> to vector<2x128xf32>
    %599 = vector.extract_strided_slice %588 {offsets = [0, 128], sizes = [2, 128], strides = [1, 1]} : vector<2x384xf32> to vector<2x128xf32>
    %600 = arith.addf %598, %599 : vector<2x128xf32>
    %601 = arith.negf %600 : vector<2x128xf32>
    %602 = math.exp %601 : vector<2x128xf32>
    %cst_160 = arith.constant 1.000000e+00 : f32
    %603 = vector.broadcast %cst_160 : f32 to vector<2x128xf32>
    %604 = arith.addf %603, %602 : vector<2x128xf32>
    %605 = arith.divf %603, %604 : vector<2x128xf32>
    %606 = vector.extract_strided_slice %589 {offsets = [0, 256], sizes = [2, 128], strides = [1, 1]} : vector<2x384xf32> to vector<2x128xf32>
    %607 = vector.extract_strided_slice %588 {offsets = [0, 256], sizes = [2, 128], strides = [1, 1]} : vector<2x384xf32> to vector<2x128xf32>
    %608 = vector.broadcast %347 : vector<1x128xf32> to vector<2x128xf32>
    %609 = arith.addf %607, %608 : vector<2x128xf32>
    %610 = arith.mulf %597, %609 : vector<2x128xf32>
    %611 = arith.addf %606, %610 : vector<2x128xf32>
    %612 = math.tanh %611 : vector<2x128xf32>
    %cst_161 = arith.constant 1.000000e+00 : f32
    %613 = vector.broadcast %cst_161 : f32 to vector<2x128xf32>
    %614 = arith.subf %613, %605 : vector<2x128xf32>
    %615 = arith.mulf %614, %612 : vector<2x128xf32>
    %616 = arith.mulf %605, %582 : vector<2x128xf32>
    %617 = arith.addf %615, %616 : vector<2x128xf32>
    %c6_i32_162 = arith.constant 6 : i32
    %618 = vector.broadcast %c6_i32_162 : i32 to vector<2x1xi32>
    %619 = arith.cmpi sgt, %0, %618 : vector<2x1xi32>
    %620 = vector.shape_cast %619 : vector<2x1xi1> to vector<2x1xi1>
    %621 = vector.broadcast %620 : vector<2x1xi1> to vector<2x128xi1>
    %622 = arith.select %621, %617, %582 : vector<2x128xi1>, vector<2x128xf32>
    %cst_163 = arith.constant 0.000000e+00 : f32
    %623 = vector.shape_cast %619 : vector<2x1xi1> to vector<2x1xi1>
    %624 = vector.broadcast %623 : vector<2x1xi1> to vector<2x128xi1>
    %625 = vector.broadcast %cst_163 : f32 to vector<2x128xf32>
    %626 = arith.select %624, %622, %625 : vector<2x128xi1>, vector<2x128xf32>
    %c12_164 = arith.constant 12 : index
    %c0_165 = arith.constant 0 : index
    %627 = vector.load %arg29[%c12_164, %c0_165] : memref<16x128xf32, #tpu.memory_space<vmem>>, vector<2x128xf32>
    tpu.vector_store %arg29[%c12_164, %c0_165], %626 {strides = array<i32>} : memref<16x128xf32, #tpu.memory_space<vmem>>, vector<2x128xf32>,
    %cst_166 = arith.constant dense<0.000000e+00> : vector<2x384xf32>
    %628 = tpu.matmul %622, %346, %cst_166 {dimension_numbers = #tpu.dot_dimension_numbers<[1], [0], [0], [1], [0, 0, 1, 1], [], []>} : vector<2x128xf32>, vector<128x384xf32>, vector<2x384xf32> -> vector<2x384xf32>
    %c14_167 = arith.constant 14 : index
    %c0_168 = arith.constant 0 : index
    %629 = vector.load %arg28[%c14_167, %c0_168] : memref<16x384xf32, #tpu.memory_space<vmem>>, vector<2x384xf32>
    %630 = vector.extract_strided_slice %629 {offsets = [0, 0], sizes = [2, 128], strides = [1, 1]} : vector<2x384xf32> to vector<2x128xf32>
    %631 = vector.extract_strided_slice %628 {offsets = [0, 0], sizes = [2, 128], strides = [1, 1]} : vector<2x384xf32> to vector<2x128xf32>
    %632 = arith.addf %630, %631 : vector<2x128xf32>
    %633 = arith.negf %632 : vector<2x128xf32>
    %634 = math.exp %633 : vector<2x128xf32>
    %cst_169 = arith.constant 1.000000e+00 : f32
    %635 = vector.broadcast %cst_169 : f32 to vector<2x128xf32>
    %636 = arith.addf %635, %634 : vector<2x128xf32>
    %637 = arith.divf %635, %636 : vector<2x128xf32>
    %638 = vector.extract_strided_slice %629 {offsets = [0, 128], sizes = [2, 128], strides = [1, 1]} : vector<2x384xf32> to vector<2x128xf32>
    %639 = vector.extract_strided_slice %628 {offsets = [0, 128], sizes = [2, 128], strides = [1, 1]} : vector<2x384xf32> to vector<2x128xf32>
    %640 = arith.addf %638, %639 : vector<2x128xf32>
    %641 = arith.negf %640 : vector<2x128xf32>
    %642 = math.exp %641 : vector<2x128xf32>
    %cst_170 = arith.constant 1.000000e+00 : f32
    %643 = vector.broadcast %cst_170 : f32 to vector<2x128xf32>
    %644 = arith.addf %643, %642 : vector<2x128xf32>
    %645 = arith.divf %643, %644 : vector<2x128xf32>
    %646 = vector.extract_strided_slice %629 {offsets = [0, 256], sizes = [2, 128], strides = [1, 1]} : vector<2x384xf32> to vector<2x128xf32>
    %647 = vector.extract_strided_slice %628 {offsets = [0, 256], sizes = [2, 128], strides = [1, 1]} : vector<2x384xf32> to vector<2x128xf32>
    %648 = vector.broadcast %347 : vector<1x128xf32> to vector<2x128xf32>
    %649 = arith.addf %647, %648 : vector<2x128xf32>
    %650 = arith.mulf %637, %649 : vector<2x128xf32>
    %651 = arith.addf %646, %650 : vector<2x128xf32>
    %652 = math.tanh %651 : vector<2x128xf32>
    %cst_171 = arith.constant 1.000000e+00 : f32
    %653 = vector.broadcast %cst_171 : f32 to vector<2x128xf32>
    %654 = arith.subf %653, %645 : vector<2x128xf32>
    %655 = arith.mulf %654, %652 : vector<2x128xf32>
    %656 = arith.mulf %645, %622 : vector<2x128xf32>
    %657 = arith.addf %655, %656 : vector<2x128xf32>
    %c7_i32_172 = arith.constant 7 : i32
    %658 = vector.broadcast %c7_i32_172 : i32 to vector<2x1xi32>
    %659 = arith.cmpi sgt, %0, %658 : vector<2x1xi32>
    %660 = vector.shape_cast %659 : vector<2x1xi1> to vector<2x1xi1>
    %661 = vector.broadcast %660 : vector<2x1xi1> to vector<2x128xi1>
    %662 = arith.select %661, %657, %622 : vector<2x128xi1>, vector<2x128xf32>
    %cst_173 = arith.constant 0.000000e+00 : f32
    %663 = vector.shape_cast %659 : vector<2x1xi1> to vector<2x1xi1>
    %664 = vector.broadcast %663 : vector<2x1xi1> to vector<2x128xi1>
    %665 = vector.broadcast %cst_173 : f32 to vector<2x128xf32>
    %666 = arith.select %664, %662, %665 : vector<2x128xi1>, vector<2x128xf32>
    %c14_174 = arith.constant 14 : index
    %c0_175 = arith.constant 0 : index
    %667 = vector.load %arg29[%c14_174, %c0_175] : memref<16x128xf32, #tpu.memory_space<vmem>>, vector<2x128xf32>
    tpu.vector_store %arg29[%c14_174, %c0_175], %666 {strides = array<i32>} : memref<16x128xf32, #tpu.memory_space<vmem>>, vector<2x128xf32>,
    %c0_176 = arith.constant 0 : index
    %c0_177 = arith.constant 0 : index
    %668 = vector.load %arg29[%c0_176, %c0_177] : memref<16x128xf32, #tpu.memory_space<vmem>>, vector<16x128xf32>
    %c0_178 = arith.constant 0 : index
    %c0_179 = arith.constant 0 : index
    %669 = vector.load %arg13[%c0_178, %c0_179] : memref<128x128xf32, #tpu.memory_space<vmem>>, vector<128x128xf32>
    %cst_180 = arith.constant dense<0.000000e+00> : vector<16x128xf32>
    %670 = tpu.matmul %668, %669, %cst_180 {dimension_numbers = #tpu.dot_dimension_numbers<[1], [0], [0], [1], [0, 0, 1, 1], [], []>} : vector<16x128xf32>, vector<128x128xf32>, vector<16x128xf32> -> vector<16x128xf32>
    %c0_181 = arith.constant 0 : index
    %c0_182 = arith.constant 0 : index
    %671 = vector.load %arg14[%c0_181, %c0_182] : memref<1x128xf32, #tpu.memory_space<vmem>>, vector<1x128xf32>
    %672 = vector.broadcast %671 : vector<1x128xf32> to vector<16x128xf32>
    %673 = arith.addf %670, %672 : vector<16x128xf32>
    %cst_183 = arith.constant dense<0xFF800000> : vector<16xf32>
    %674 = vector.multi_reduction <maximumf>, %673, %cst_183 [1] : vector<16x128xf32> to vector<16xf32>
    %675 = vector.shape_cast %674 : vector<16xf32> to vector<16x1xf32>
    %676 = vector.broadcast %675 : vector<16x1xf32> to vector<16x128xf32>
    %677 = arith.subf %673, %676 : vector<16x128xf32>
    %678 = math.exp %677 : vector<16x128xf32>
    %cst_184 = arith.constant dense<0.000000e+00> : vector<16xf32>
    %679 = vector.multi_reduction <add>, %678, %cst_184 [1] : vector<16x128xf32> to vector<16xf32>
    %680 = vector.shape_cast %679 : vector<16xf32> to vector<16x1xf32>
    %681 = math.log %680 : vector<16x1xf32>
    %682 = arith.addf %675, %681 : vector<16x1xf32>
    %683 = vector.broadcast %682 : vector<16x1xf32> to vector<16x128xf32>
    %684 = arith.subf %673, %683 : vector<16x128xf32>
    %c0_185 = arith.constant 0 : index
    %c0_186 = arith.constant 0 : index
    %685 = vector.load %arg26[%c0_185, %c0_186] : memref<16x128xf32, #tpu.memory_space<vmem>>, vector<16x128xf32>
    tpu.vector_store %arg26[%c0_185, %c0_186], %684 {strides = array<i32>} : memref<16x128xf32, #tpu.memory_space<vmem>>, vector<16x128xf32>,
    %c0_187 = arith.constant 0 : index
    %c0_188 = arith.constant 0 : index
    %686 = vector.load %arg2[%c0_187, %c0_188] : memref<16x1xi32, #tpu.memory_space<vmem>>, vector<16x1xi32>
    %687 = vector.broadcast %686 : vector<16x1xi32> to vector<16x16xi32>
    %688 = arith.cmpi eq, %687, %1 : vector<16x16xi32>
    %689 = arith.extui %688 : vector<16x16xi1> to vector<16x16xi32>
    %690 = arith.sitofp %689 : vector<16x16xi32> to vector<16x16xf32>
    %c0_189 = arith.constant 0 : index
    %c0_190 = arith.constant 0 : index
    %691 = vector.load %arg15[%c0_189, %c0_190] : memref<16x16xf32, #tpu.memory_space<vmem>>, vector<16x16xf32>
    %cst_191 = arith.constant dense<0.000000e+00> : vector<16x16xf32>
    %692 = tpu.matmul %690, %691, %cst_191 {dimension_numbers = #tpu.dot_dimension_numbers<[1], [0], [0], [1], [0, 0, 1, 1], [], []>} : vector<16x16xf32>, vector<16x16xf32>, vector<16x16xf32> -> vector<16x16xf32>
    %c0_192 = arith.constant 0 : index
    %c0_193 = arith.constant 0 : index
    %693 = vector.load %arg16[%c0_192, %c0_193] : memref<16x384xf32, #tpu.memory_space<vmem>>, vector<16x384xf32>
    %cst_194 = arith.constant dense<0.000000e+00> : vector<16x384xf32>
    %694 = tpu.matmul %692, %693, %cst_194 {dimension_numbers = #tpu.dot_dimension_numbers<[1], [0], [0], [1], [0, 0, 1, 1], [], []>} : vector<16x16xf32>, vector<16x384xf32>, vector<16x384xf32> -> vector<16x384xf32>
    %c0_195 = arith.constant 0 : index
    %c0_196 = arith.constant 0 : index
    %695 = vector.load %arg18[%c0_195, %c0_196] : memref<1x384xf32, #tpu.memory_space<vmem>>, vector<1x384xf32>
    %696 = vector.broadcast %695 : vector<1x384xf32> to vector<16x384xf32>
    %697 = arith.addf %694, %696 : vector<16x384xf32>
    %c0_197 = arith.constant 0 : index
    %c0_198 = arith.constant 0 : index
    %698 = vector.load %arg30[%c0_197, %c0_198] : memref<16x384xf32, #tpu.memory_space<vmem>>, vector<16x384xf32>
    tpu.vector_store %arg30[%c0_197, %c0_198], %697 {strides = array<i32>} : memref<16x384xf32, #tpu.memory_space<vmem>>, vector<16x384xf32>,
    %c0_199 = arith.constant 0 : index
    %c0_200 = arith.constant 0 : index
    %699 = vector.load %arg17[%c0_199, %c0_200] : memref<128x384xf32, #tpu.memory_space<vmem>>, vector<128x384xf32>
    %c0_201 = arith.constant 0 : index
    %c0_202 = arith.constant 0 : index
    %700 = vector.load %arg19[%c0_201, %c0_202] : memref<1x128xf32, #tpu.memory_space<vmem>>, vector<1x128xf32>
    %cst_203 = arith.constant dense<0.000000e+00> : vector<2x384xf32>
    %701 = tpu.matmul %333, %699, %cst_203 {dimension_numbers = #tpu.dot_dimension_numbers<[1], [0], [0], [1], [0, 0, 1, 1], [], []>} : vector<2x128xf32>, vector<128x384xf32>, vector<2x384xf32> -> vector<2x384xf32>
    %c0_204 = arith.constant 0 : index
    %c0_205 = arith.constant 0 : index
    %702 = vector.load %arg30[%c0_204, %c0_205] : memref<16x384xf32, #tpu.memory_space<vmem>>, vector<2x384xf32>
    %703 = vector.extract_strided_slice %702 {offsets = [0, 0], sizes = [2, 128], strides = [1, 1]} : vector<2x384xf32> to vector<2x128xf32>
    %704 = vector.extract_strided_slice %701 {offsets = [0, 0], sizes = [2, 128], strides = [1, 1]} : vector<2x384xf32> to vector<2x128xf32>
    %705 = arith.addf %703, %704 : vector<2x128xf32>
    %706 = arith.negf %705 : vector<2x128xf32>
    %707 = math.exp %706 : vector<2x128xf32>
    %cst_206 = arith.constant 1.000000e+00 : f32
    %708 = vector.broadcast %cst_206 : f32 to vector<2x128xf32>
    %709 = arith.addf %708, %707 : vector<2x128xf32>
    %710 = arith.divf %708, %709 : vector<2x128xf32>
    %711 = vector.extract_strided_slice %702 {offsets = [0, 128], sizes = [2, 128], strides = [1, 1]} : vector<2x384xf32> to vector<2x128xf32>
    %712 = vector.extract_strided_slice %701 {offsets = [0, 128], sizes = [2, 128], strides = [1, 1]} : vector<2x384xf32> to vector<2x128xf32>
    %713 = arith.addf %711, %712 : vector<2x128xf32>
    %714 = arith.negf %713 : vector<2x128xf32>
    %715 = math.exp %714 : vector<2x128xf32>
    %cst_207 = arith.constant 1.000000e+00 : f32
    %716 = vector.broadcast %cst_207 : f32 to vector<2x128xf32>
    %717 = arith.addf %716, %715 : vector<2x128xf32>
    %718 = arith.divf %716, %717 : vector<2x128xf32>
    %719 = vector.extract_strided_slice %702 {offsets = [0, 256], sizes = [2, 128], strides = [1, 1]} : vector<2x384xf32> to vector<2x128xf32>
    %720 = vector.extract_strided_slice %701 {offsets = [0, 256], sizes = [2, 128], strides = [1, 1]} : vector<2x384xf32> to vector<2x128xf32>
    %721 = vector.broadcast %700 : vector<1x128xf32> to vector<2x128xf32>
    %722 = arith.addf %720, %721 : vector<2x128xf32>
    %723 = arith.mulf %710, %722 : vector<2x128xf32>
    %724 = arith.addf %719, %723 : vector<2x128xf32>
    %725 = math.tanh %724 : vector<2x128xf32>
    %cst_208 = arith.constant 1.000000e+00 : f32
    %726 = vector.broadcast %cst_208 : f32 to vector<2x128xf32>
    %727 = arith.subf %726, %718 : vector<2x128xf32>
    %728 = arith.mulf %727, %725 : vector<2x128xf32>
    %729 = arith.mulf %718, %333 : vector<2x128xf32>
    %730 = arith.addf %728, %729 : vector<2x128xf32>
    %c0_i32_209 = arith.constant 0 : i32
    %731 = vector.broadcast %c0_i32_209 : i32 to vector<2x1xi32>
    %732 = arith.cmpi sgt, %0, %731 : vector<2x1xi32>
    %733 = vector.shape_cast %732 : vector<2x1xi1> to vector<2x1xi1>
    %734 = vector.broadcast %733 : vector<2x1xi1> to vector<2x128xi1>
    %735 = arith.select %734, %730, %333 : vector<2x128xi1>, vector<2x128xf32>
    %cst_210 = arith.constant 0.000000e+00 : f32
    %736 = vector.shape_cast %732 : vector<2x1xi1> to vector<2x1xi1>
    %737 = vector.broadcast %736 : vector<2x1xi1> to vector<2x128xi1>
    %738 = vector.broadcast %cst_210 : f32 to vector<2x128xf32>
    %739 = arith.select %737, %735, %738 : vector<2x128xi1>, vector<2x128xf32>
    %c0_211 = arith.constant 0 : index
    %c0_212 = arith.constant 0 : index
    %740 = vector.load %arg31[%c0_211, %c0_212] : memref<16x128xf32, #tpu.memory_space<vmem>>, vector<2x128xf32>
    tpu.vector_store %arg31[%c0_211, %c0_212], %739 {strides = array<i32>} : memref<16x128xf32, #tpu.memory_space<vmem>>, vector<2x128xf32>,
    %cst_213 = arith.constant dense<0.000000e+00> : vector<2x384xf32>
    %741 = tpu.matmul %735, %699, %cst_213 {dimension_numbers = #tpu.dot_dimension_numbers<[1], [0], [0], [1], [0, 0, 1, 1], [], []>} : vector<2x128xf32>, vector<128x384xf32>, vector<2x384xf32> -> vector<2x384xf32>
    %c2_214 = arith.constant 2 : index
    %c0_215 = arith.constant 0 : index
    %742 = vector.load %arg30[%c2_214, %c0_215] : memref<16x384xf32, #tpu.memory_space<vmem>>, vector<2x384xf32>
    %743 = vector.extract_strided_slice %742 {offsets = [0, 0], sizes = [2, 128], strides = [1, 1]} : vector<2x384xf32> to vector<2x128xf32>
    %744 = vector.extract_strided_slice %741 {offsets = [0, 0], sizes = [2, 128], strides = [1, 1]} : vector<2x384xf32> to vector<2x128xf32>
    %745 = arith.addf %743, %744 : vector<2x128xf32>
    %746 = arith.negf %745 : vector<2x128xf32>
    %747 = math.exp %746 : vector<2x128xf32>
    %cst_216 = arith.constant 1.000000e+00 : f32
    %748 = vector.broadcast %cst_216 : f32 to vector<2x128xf32>
    %749 = arith.addf %748, %747 : vector<2x128xf32>
    %750 = arith.divf %748, %749 : vector<2x128xf32>
    %751 = vector.extract_strided_slice %742 {offsets = [0, 128], sizes = [2, 128], strides = [1, 1]} : vector<2x384xf32> to vector<2x128xf32>
    %752 = vector.extract_strided_slice %741 {offsets = [0, 128], sizes = [2, 128], strides = [1, 1]} : vector<2x384xf32> to vector<2x128xf32>
    %753 = arith.addf %751, %752 : vector<2x128xf32>
    %754 = arith.negf %753 : vector<2x128xf32>
    %755 = math.exp %754 : vector<2x128xf32>
    %cst_217 = arith.constant 1.000000e+00 : f32
    %756 = vector.broadcast %cst_217 : f32 to vector<2x128xf32>
    %757 = arith.addf %756, %755 : vector<2x128xf32>
    %758 = arith.divf %756, %757 : vector<2x128xf32>
    %759 = vector.extract_strided_slice %742 {offsets = [0, 256], sizes = [2, 128], strides = [1, 1]} : vector<2x384xf32> to vector<2x128xf32>
    %760 = vector.extract_strided_slice %741 {offsets = [0, 256], sizes = [2, 128], strides = [1, 1]} : vector<2x384xf32> to vector<2x128xf32>
    %761 = vector.broadcast %700 : vector<1x128xf32> to vector<2x128xf32>
    %762 = arith.addf %760, %761 : vector<2x128xf32>
    %763 = arith.mulf %750, %762 : vector<2x128xf32>
    %764 = arith.addf %759, %763 : vector<2x128xf32>
    %765 = math.tanh %764 : vector<2x128xf32>
    %cst_218 = arith.constant 1.000000e+00 : f32
    %766 = vector.broadcast %cst_218 : f32 to vector<2x128xf32>
    %767 = arith.subf %766, %758 : vector<2x128xf32>
    %768 = arith.mulf %767, %765 : vector<2x128xf32>
    %769 = arith.mulf %758, %735 : vector<2x128xf32>
    %770 = arith.addf %768, %769 : vector<2x128xf32>
    %c1_i32_219 = arith.constant 1 : i32
    %771 = vector.broadcast %c1_i32_219 : i32 to vector<2x1xi32>
    %772 = arith.cmpi sgt, %0, %771 : vector<2x1xi32>
    %773 = vector.shape_cast %772 : vector<2x1xi1> to vector<2x1xi1>
    %774 = vector.broadcast %773 : vector<2x1xi1> to vector<2x128xi1>
    %775 = arith.select %774, %770, %735 : vector<2x128xi1>, vector<2x128xf32>
    %cst_220 = arith.constant 0.000000e+00 : f32
    %776 = vector.shape_cast %772 : vector<2x1xi1> to vector<2x1xi1>
    %777 = vector.broadcast %776 : vector<2x1xi1> to vector<2x128xi1>
    %778 = vector.broadcast %cst_220 : f32 to vector<2x128xf32>
    %779 = arith.select %777, %775, %778 : vector<2x128xi1>, vector<2x128xf32>
    %c2_221 = arith.constant 2 : index
    %c0_222 = arith.constant 0 : index
    %780 = vector.load %arg31[%c2_221, %c0_222] : memref<16x128xf32, #tpu.memory_space<vmem>>, vector<2x128xf32>
    tpu.vector_store %arg31[%c2_221, %c0_222], %779 {strides = array<i32>} : memref<16x128xf32, #tpu.memory_space<vmem>>, vector<2x128xf32>,
    %cst_223 = arith.constant dense<0.000000e+00> : vector<2x384xf32>
    %781 = tpu.matmul %775, %699, %cst_223 {dimension_numbers = #tpu.dot_dimension_numbers<[1], [0], [0], [1], [0, 0, 1, 1], [], []>} : vector<2x128xf32>, vector<128x384xf32>, vector<2x384xf32> -> vector<2x384xf32>
    %c4_224 = arith.constant 4 : index
    %c0_225 = arith.constant 0 : index
    %782 = vector.load %arg30[%c4_224, %c0_225] : memref<16x384xf32, #tpu.memory_space<vmem>>, vector<2x384xf32>
    %783 = vector.extract_strided_slice %782 {offsets = [0, 0], sizes = [2, 128], strides = [1, 1]} : vector<2x384xf32> to vector<2x128xf32>
    %784 = vector.extract_strided_slice %781 {offsets = [0, 0], sizes = [2, 128], strides = [1, 1]} : vector<2x384xf32> to vector<2x128xf32>
    %785 = arith.addf %783, %784 : vector<2x128xf32>
    %786 = arith.negf %785 : vector<2x128xf32>
    %787 = math.exp %786 : vector<2x128xf32>
    %cst_226 = arith.constant 1.000000e+00 : f32
    %788 = vector.broadcast %cst_226 : f32 to vector<2x128xf32>
    %789 = arith.addf %788, %787 : vector<2x128xf32>
    %790 = arith.divf %788, %789 : vector<2x128xf32>
    %791 = vector.extract_strided_slice %782 {offsets = [0, 128], sizes = [2, 128], strides = [1, 1]} : vector<2x384xf32> to vector<2x128xf32>
    %792 = vector.extract_strided_slice %781 {offsets = [0, 128], sizes = [2, 128], strides = [1, 1]} : vector<2x384xf32> to vector<2x128xf32>
    %793 = arith.addf %791, %792 : vector<2x128xf32>
    %794 = arith.negf %793 : vector<2x128xf32>
    %795 = math.exp %794 : vector<2x128xf32>
    %cst_227 = arith.constant 1.000000e+00 : f32
    %796 = vector.broadcast %cst_227 : f32 to vector<2x128xf32>
    %797 = arith.addf %796, %795 : vector<2x128xf32>
    %798 = arith.divf %796, %797 : vector<2x128xf32>
    %799 = vector.extract_strided_slice %782 {offsets = [0, 256], sizes = [2, 128], strides = [1, 1]} : vector<2x384xf32> to vector<2x128xf32>
    %800 = vector.extract_strided_slice %781 {offsets = [0, 256], sizes = [2, 128], strides = [1, 1]} : vector<2x384xf32> to vector<2x128xf32>
    %801 = vector.broadcast %700 : vector<1x128xf32> to vector<2x128xf32>
    %802 = arith.addf %800, %801 : vector<2x128xf32>
    %803 = arith.mulf %790, %802 : vector<2x128xf32>
    %804 = arith.addf %799, %803 : vector<2x128xf32>
    %805 = math.tanh %804 : vector<2x128xf32>
    %cst_228 = arith.constant 1.000000e+00 : f32
    %806 = vector.broadcast %cst_228 : f32 to vector<2x128xf32>
    %807 = arith.subf %806, %798 : vector<2x128xf32>
    %808 = arith.mulf %807, %805 : vector<2x128xf32>
    %809 = arith.mulf %798, %775 : vector<2x128xf32>
    %810 = arith.addf %808, %809 : vector<2x128xf32>
    %c2_i32_229 = arith.constant 2 : i32
    %811 = vector.broadcast %c2_i32_229 : i32 to vector<2x1xi32>
    %812 = arith.cmpi sgt, %0, %811 : vector<2x1xi32>
    %813 = vector.shape_cast %812 : vector<2x1xi1> to vector<2x1xi1>
    %814 = vector.broadcast %813 : vector<2x1xi1> to vector<2x128xi1>
    %815 = arith.select %814, %810, %775 : vector<2x128xi1>, vector<2x128xf32>
    %cst_230 = arith.constant 0.000000e+00 : f32
    %816 = vector.shape_cast %812 : vector<2x1xi1> to vector<2x1xi1>
    %817 = vector.broadcast %816 : vector<2x1xi1> to vector<2x128xi1>
    %818 = vector.broadcast %cst_230 : f32 to vector<2x128xf32>
    %819 = arith.select %817, %815, %818 : vector<2x128xi1>, vector<2x128xf32>
    %c4_231 = arith.constant 4 : index
    %c0_232 = arith.constant 0 : index
    %820 = vector.load %arg31[%c4_231, %c0_232] : memref<16x128xf32, #tpu.memory_space<vmem>>, vector<2x128xf32>
    tpu.vector_store %arg31[%c4_231, %c0_232], %819 {strides = array<i32>} : memref<16x128xf32, #tpu.memory_space<vmem>>, vector<2x128xf32>,
    %cst_233 = arith.constant dense<0.000000e+00> : vector<2x384xf32>
    %821 = tpu.matmul %815, %699, %cst_233 {dimension_numbers = #tpu.dot_dimension_numbers<[1], [0], [0], [1], [0, 0, 1, 1], [], []>} : vector<2x128xf32>, vector<128x384xf32>, vector<2x384xf32> -> vector<2x384xf32>
    %c6_234 = arith.constant 6 : index
    %c0_235 = arith.constant 0 : index
    %822 = vector.load %arg30[%c6_234, %c0_235] : memref<16x384xf32, #tpu.memory_space<vmem>>, vector<2x384xf32>
    %823 = vector.extract_strided_slice %822 {offsets = [0, 0], sizes = [2, 128], strides = [1, 1]} : vector<2x384xf32> to vector<2x128xf32>
    %824 = vector.extract_strided_slice %821 {offsets = [0, 0], sizes = [2, 128], strides = [1, 1]} : vector<2x384xf32> to vector<2x128xf32>
    %825 = arith.addf %823, %824 : vector<2x128xf32>
    %826 = arith.negf %825 : vector<2x128xf32>
    %827 = math.exp %826 : vector<2x128xf32>
    %cst_236 = arith.constant 1.000000e+00 : f32
    %828 = vector.broadcast %cst_236 : f32 to vector<2x128xf32>
    %829 = arith.addf %828, %827 : vector<2x128xf32>
    %830 = arith.divf %828, %829 : vector<2x128xf32>
    %831 = vector.extract_strided_slice %822 {offsets = [0, 128], sizes = [2, 128], strides = [1, 1]} : vector<2x384xf32> to vector<2x128xf32>
    %832 = vector.extract_strided_slice %821 {offsets = [0, 128], sizes = [2, 128], strides = [1, 1]} : vector<2x384xf32> to vector<2x128xf32>
    %833 = arith.addf %831, %832 : vector<2x128xf32>
    %834 = arith.negf %833 : vector<2x128xf32>
    %835 = math.exp %834 : vector<2x128xf32>
    %cst_237 = arith.constant 1.000000e+00 : f32
    %836 = vector.broadcast %cst_237 : f32 to vector<2x128xf32>
    %837 = arith.addf %836, %835 : vector<2x128xf32>
    %838 = arith.divf %836, %837 : vector<2x128xf32>
    %839 = vector.extract_strided_slice %822 {offsets = [0, 256], sizes = [2, 128], strides = [1, 1]} : vector<2x384xf32> to vector<2x128xf32>
    %840 = vector.extract_strided_slice %821 {offsets = [0, 256], sizes = [2, 128], strides = [1, 1]} : vector<2x384xf32> to vector<2x128xf32>
    %841 = vector.broadcast %700 : vector<1x128xf32> to vector<2x128xf32>
    %842 = arith.addf %840, %841 : vector<2x128xf32>
    %843 = arith.mulf %830, %842 : vector<2x128xf32>
    %844 = arith.addf %839, %843 : vector<2x128xf32>
    %845 = math.tanh %844 : vector<2x128xf32>
    %cst_238 = arith.constant 1.000000e+00 : f32
    %846 = vector.broadcast %cst_238 : f32 to vector<2x128xf32>
    %847 = arith.subf %846, %838 : vector<2x128xf32>
    %848 = arith.mulf %847, %845 : vector<2x128xf32>
    %849 = arith.mulf %838, %815 : vector<2x128xf32>
    %850 = arith.addf %848, %849 : vector<2x128xf32>
    %c3_i32_239 = arith.constant 3 : i32
    %851 = vector.broadcast %c3_i32_239 : i32 to vector<2x1xi32>
    %852 = arith.cmpi sgt, %0, %851 : vector<2x1xi32>
    %853 = vector.shape_cast %852 : vector<2x1xi1> to vector<2x1xi1>
    %854 = vector.broadcast %853 : vector<2x1xi1> to vector<2x128xi1>
    %855 = arith.select %854, %850, %815 : vector<2x128xi1>, vector<2x128xf32>
    %cst_240 = arith.constant 0.000000e+00 : f32
    %856 = vector.shape_cast %852 : vector<2x1xi1> to vector<2x1xi1>
    %857 = vector.broadcast %856 : vector<2x1xi1> to vector<2x128xi1>
    %858 = vector.broadcast %cst_240 : f32 to vector<2x128xf32>
    %859 = arith.select %857, %855, %858 : vector<2x128xi1>, vector<2x128xf32>
    %c6_241 = arith.constant 6 : index
    %c0_242 = arith.constant 0 : index
    %860 = vector.load %arg31[%c6_241, %c0_242] : memref<16x128xf32, #tpu.memory_space<vmem>>, vector<2x128xf32>
    tpu.vector_store %arg31[%c6_241, %c0_242], %859 {strides = array<i32>} : memref<16x128xf32, #tpu.memory_space<vmem>>, vector<2x128xf32>,
    %cst_243 = arith.constant dense<0.000000e+00> : vector<2x384xf32>
    %861 = tpu.matmul %855, %699, %cst_243 {dimension_numbers = #tpu.dot_dimension_numbers<[1], [0], [0], [1], [0, 0, 1, 1], [], []>} : vector<2x128xf32>, vector<128x384xf32>, vector<2x384xf32> -> vector<2x384xf32>
    %c8_244 = arith.constant 8 : index
    %c0_245 = arith.constant 0 : index
    %862 = vector.load %arg30[%c8_244, %c0_245] : memref<16x384xf32, #tpu.memory_space<vmem>>, vector<2x384xf32>
    %863 = vector.extract_strided_slice %862 {offsets = [0, 0], sizes = [2, 128], strides = [1, 1]} : vector<2x384xf32> to vector<2x128xf32>
    %864 = vector.extract_strided_slice %861 {offsets = [0, 0], sizes = [2, 128], strides = [1, 1]} : vector<2x384xf32> to vector<2x128xf32>
    %865 = arith.addf %863, %864 : vector<2x128xf32>
    %866 = arith.negf %865 : vector<2x128xf32>
    %867 = math.exp %866 : vector<2x128xf32>
    %cst_246 = arith.constant 1.000000e+00 : f32
    %868 = vector.broadcast %cst_246 : f32 to vector<2x128xf32>
    %869 = arith.addf %868, %867 : vector<2x128xf32>
    %870 = arith.divf %868, %869 : vector<2x128xf32>
    %871 = vector.extract_strided_slice %862 {offsets = [0, 128], sizes = [2, 128], strides = [1, 1]} : vector<2x384xf32> to vector<2x128xf32>
    %872 = vector.extract_strided_slice %861 {offsets = [0, 128], sizes = [2, 128], strides = [1, 1]} : vector<2x384xf32> to vector<2x128xf32>
    %873 = arith.addf %871, %872 : vector<2x128xf32>
    %874 = arith.negf %873 : vector<2x128xf32>
    %875 = math.exp %874 : vector<2x128xf32>
    %cst_247 = arith.constant 1.000000e+00 : f32
    %876 = vector.broadcast %cst_247 : f32 to vector<2x128xf32>
    %877 = arith.addf %876, %875 : vector<2x128xf32>
    %878 = arith.divf %876, %877 : vector<2x128xf32>
    %879 = vector.extract_strided_slice %862 {offsets = [0, 256], sizes = [2, 128], strides = [1, 1]} : vector<2x384xf32> to vector<2x128xf32>
    %880 = vector.extract_strided_slice %861 {offsets = [0, 256], sizes = [2, 128], strides = [1, 1]} : vector<2x384xf32> to vector<2x128xf32>
    %881 = vector.broadcast %700 : vector<1x128xf32> to vector<2x128xf32>
    %882 = arith.addf %880, %881 : vector<2x128xf32>
    %883 = arith.mulf %870, %882 : vector<2x128xf32>
    %884 = arith.addf %879, %883 : vector<2x128xf32>
    %885 = math.tanh %884 : vector<2x128xf32>
    %cst_248 = arith.constant 1.000000e+00 : f32
    %886 = vector.broadcast %cst_248 : f32 to vector<2x128xf32>
    %887 = arith.subf %886, %878 : vector<2x128xf32>
    %888 = arith.mulf %887, %885 : vector<2x128xf32>
    %889 = arith.mulf %878, %855 : vector<2x128xf32>
    %890 = arith.addf %888, %889 : vector<2x128xf32>
    %c4_i32_249 = arith.constant 4 : i32
    %891 = vector.broadcast %c4_i32_249 : i32 to vector<2x1xi32>
    %892 = arith.cmpi sgt, %0, %891 : vector<2x1xi32>
    %893 = vector.shape_cast %892 : vector<2x1xi1> to vector<2x1xi1>
    %894 = vector.broadcast %893 : vector<2x1xi1> to vector<2x128xi1>
    %895 = arith.select %894, %890, %855 : vector<2x128xi1>, vector<2x128xf32>
    %cst_250 = arith.constant 0.000000e+00 : f32
    %896 = vector.shape_cast %892 : vector<2x1xi1> to vector<2x1xi1>
    %897 = vector.broadcast %896 : vector<2x1xi1> to vector<2x128xi1>
    %898 = vector.broadcast %cst_250 : f32 to vector<2x128xf32>
    %899 = arith.select %897, %895, %898 : vector<2x128xi1>, vector<2x128xf32>
    %c8_251 = arith.constant 8 : index
    %c0_252 = arith.constant 0 : index
    %900 = vector.load %arg31[%c8_251, %c0_252] : memref<16x128xf32, #tpu.memory_space<vmem>>, vector<2x128xf32>
    tpu.vector_store %arg31[%c8_251, %c0_252], %899 {strides = array<i32>} : memref<16x128xf32, #tpu.memory_space<vmem>>, vector<2x128xf32>,
    %cst_253 = arith.constant dense<0.000000e+00> : vector<2x384xf32>
    %901 = tpu.matmul %895, %699, %cst_253 {dimension_numbers = #tpu.dot_dimension_numbers<[1], [0], [0], [1], [0, 0, 1, 1], [], []>} : vector<2x128xf32>, vector<128x384xf32>, vector<2x384xf32> -> vector<2x384xf32>
    %c10_254 = arith.constant 10 : index
    %c0_255 = arith.constant 0 : index
    %902 = vector.load %arg30[%c10_254, %c0_255] : memref<16x384xf32, #tpu.memory_space<vmem>>, vector<2x384xf32>
    %903 = vector.extract_strided_slice %902 {offsets = [0, 0], sizes = [2, 128], strides = [1, 1]} : vector<2x384xf32> to vector<2x128xf32>
    %904 = vector.extract_strided_slice %901 {offsets = [0, 0], sizes = [2, 128], strides = [1, 1]} : vector<2x384xf32> to vector<2x128xf32>
    %905 = arith.addf %903, %904 : vector<2x128xf32>
    %906 = arith.negf %905 : vector<2x128xf32>
    %907 = math.exp %906 : vector<2x128xf32>
    %cst_256 = arith.constant 1.000000e+00 : f32
    %908 = vector.broadcast %cst_256 : f32 to vector<2x128xf32>
    %909 = arith.addf %908, %907 : vector<2x128xf32>
    %910 = arith.divf %908, %909 : vector<2x128xf32>
    %911 = vector.extract_strided_slice %902 {offsets = [0, 128], sizes = [2, 128], strides = [1, 1]} : vector<2x384xf32> to vector<2x128xf32>
    %912 = vector.extract_strided_slice %901 {offsets = [0, 128], sizes = [2, 128], strides = [1, 1]} : vector<2x384xf32> to vector<2x128xf32>
    %913 = arith.addf %911, %912 : vector<2x128xf32>
    %914 = arith.negf %913 : vector<2x128xf32>
    %915 = math.exp %914 : vector<2x128xf32>
    %cst_257 = arith.constant 1.000000e+00 : f32
    %916 = vector.broadcast %cst_257 : f32 to vector<2x128xf32>
    %917 = arith.addf %916, %915 : vector<2x128xf32>
    %918 = arith.divf %916, %917 : vector<2x128xf32>
    %919 = vector.extract_strided_slice %902 {offsets = [0, 256], sizes = [2, 128], strides = [1, 1]} : vector<2x384xf32> to vector<2x128xf32>
    %920 = vector.extract_strided_slice %901 {offsets = [0, 256], sizes = [2, 128], strides = [1, 1]} : vector<2x384xf32> to vector<2x128xf32>
    %921 = vector.broadcast %700 : vector<1x128xf32> to vector<2x128xf32>
    %922 = arith.addf %920, %921 : vector<2x128xf32>
    %923 = arith.mulf %910, %922 : vector<2x128xf32>
    %924 = arith.addf %919, %923 : vector<2x128xf32>
    %925 = math.tanh %924 : vector<2x128xf32>
    %cst_258 = arith.constant 1.000000e+00 : f32
    %926 = vector.broadcast %cst_258 : f32 to vector<2x128xf32>
    %927 = arith.subf %926, %918 : vector<2x128xf32>
    %928 = arith.mulf %927, %925 : vector<2x128xf32>
    %929 = arith.mulf %918, %895 : vector<2x128xf32>
    %930 = arith.addf %928, %929 : vector<2x128xf32>
    %c5_i32_259 = arith.constant 5 : i32
    %931 = vector.broadcast %c5_i32_259 : i32 to vector<2x1xi32>
    %932 = arith.cmpi sgt, %0, %931 : vector<2x1xi32>
    %933 = vector.shape_cast %932 : vector<2x1xi1> to vector<2x1xi1>
    %934 = vector.broadcast %933 : vector<2x1xi1> to vector<2x128xi1>
    %935 = arith.select %934, %930, %895 : vector<2x128xi1>, vector<2x128xf32>
    %cst_260 = arith.constant 0.000000e+00 : f32
    %936 = vector.shape_cast %932 : vector<2x1xi1> to vector<2x1xi1>
    %937 = vector.broadcast %936 : vector<2x1xi1> to vector<2x128xi1>
    %938 = vector.broadcast %cst_260 : f32 to vector<2x128xf32>
    %939 = arith.select %937, %935, %938 : vector<2x128xi1>, vector<2x128xf32>
    %c10_261 = arith.constant 10 : index
    %c0_262 = arith.constant 0 : index
    %940 = vector.load %arg31[%c10_261, %c0_262] : memref<16x128xf32, #tpu.memory_space<vmem>>, vector<2x128xf32>
    tpu.vector_store %arg31[%c10_261, %c0_262], %939 {strides = array<i32>} : memref<16x128xf32, #tpu.memory_space<vmem>>, vector<2x128xf32>,
    %cst_263 = arith.constant dense<0.000000e+00> : vector<2x384xf32>
    %941 = tpu.matmul %935, %699, %cst_263 {dimension_numbers = #tpu.dot_dimension_numbers<[1], [0], [0], [1], [0, 0, 1, 1], [], []>} : vector<2x128xf32>, vector<128x384xf32>, vector<2x384xf32> -> vector<2x384xf32>
    %c12_264 = arith.constant 12 : index
    %c0_265 = arith.constant 0 : index
    %942 = vector.load %arg30[%c12_264, %c0_265] : memref<16x384xf32, #tpu.memory_space<vmem>>, vector<2x384xf32>
    %943 = vector.extract_strided_slice %942 {offsets = [0, 0], sizes = [2, 128], strides = [1, 1]} : vector<2x384xf32> to vector<2x128xf32>
    %944 = vector.extract_strided_slice %941 {offsets = [0, 0], sizes = [2, 128], strides = [1, 1]} : vector<2x384xf32> to vector<2x128xf32>
    %945 = arith.addf %943, %944 : vector<2x128xf32>
    %946 = arith.negf %945 : vector<2x128xf32>
    %947 = math.exp %946 : vector<2x128xf32>
    %cst_266 = arith.constant 1.000000e+00 : f32
    %948 = vector.broadcast %cst_266 : f32 to vector<2x128xf32>
    %949 = arith.addf %948, %947 : vector<2x128xf32>
    %950 = arith.divf %948, %949 : vector<2x128xf32>
    %951 = vector.extract_strided_slice %942 {offsets = [0, 128], sizes = [2, 128], strides = [1, 1]} : vector<2x384xf32> to vector<2x128xf32>
    %952 = vector.extract_strided_slice %941 {offsets = [0, 128], sizes = [2, 128], strides = [1, 1]} : vector<2x384xf32> to vector<2x128xf32>
    %953 = arith.addf %951, %952 : vector<2x128xf32>
    %954 = arith.negf %953 : vector<2x128xf32>
    %955 = math.exp %954 : vector<2x128xf32>
    %cst_267 = arith.constant 1.000000e+00 : f32
    %956 = vector.broadcast %cst_267 : f32 to vector<2x128xf32>
    %957 = arith.addf %956, %955 : vector<2x128xf32>
    %958 = arith.divf %956, %957 : vector<2x128xf32>
    %959 = vector.extract_strided_slice %942 {offsets = [0, 256], sizes = [2, 128], strides = [1, 1]} : vector<2x384xf32> to vector<2x128xf32>
    %960 = vector.extract_strided_slice %941 {offsets = [0, 256], sizes = [2, 128], strides = [1, 1]} : vector<2x384xf32> to vector<2x128xf32>
    %961 = vector.broadcast %700 : vector<1x128xf32> to vector<2x128xf32>
    %962 = arith.addf %960, %961 : vector<2x128xf32>
    %963 = arith.mulf %950, %962 : vector<2x128xf32>
    %964 = arith.addf %959, %963 : vector<2x128xf32>
    %965 = math.tanh %964 : vector<2x128xf32>
    %cst_268 = arith.constant 1.000000e+00 : f32
    %966 = vector.broadcast %cst_268 : f32 to vector<2x128xf32>
    %967 = arith.subf %966, %958 : vector<2x128xf32>
    %968 = arith.mulf %967, %965 : vector<2x128xf32>
    %969 = arith.mulf %958, %935 : vector<2x128xf32>
    %970 = arith.addf %968, %969 : vector<2x128xf32>
    %c6_i32_269 = arith.constant 6 : i32
    %971 = vector.broadcast %c6_i32_269 : i32 to vector<2x1xi32>
    %972 = arith.cmpi sgt, %0, %971 : vector<2x1xi32>
    %973 = vector.shape_cast %972 : vector<2x1xi1> to vector<2x1xi1>
    %974 = vector.broadcast %973 : vector<2x1xi1> to vector<2x128xi1>
    %975 = arith.select %974, %970, %935 : vector<2x128xi1>, vector<2x128xf32>
    %cst_270 = arith.constant 0.000000e+00 : f32
    %976 = vector.shape_cast %972 : vector<2x1xi1> to vector<2x1xi1>
    %977 = vector.broadcast %976 : vector<2x1xi1> to vector<2x128xi1>
    %978 = vector.broadcast %cst_270 : f32 to vector<2x128xf32>
    %979 = arith.select %977, %975, %978 : vector<2x128xi1>, vector<2x128xf32>
    %c12_271 = arith.constant 12 : index
    %c0_272 = arith.constant 0 : index
    %980 = vector.load %arg31[%c12_271, %c0_272] : memref<16x128xf32, #tpu.memory_space<vmem>>, vector<2x128xf32>
    tpu.vector_store %arg31[%c12_271, %c0_272], %979 {strides = array<i32>} : memref<16x128xf32, #tpu.memory_space<vmem>>, vector<2x128xf32>,
    %cst_273 = arith.constant dense<0.000000e+00> : vector<2x384xf32>
    %981 = tpu.matmul %975, %699, %cst_273 {dimension_numbers = #tpu.dot_dimension_numbers<[1], [0], [0], [1], [0, 0, 1, 1], [], []>} : vector<2x128xf32>, vector<128x384xf32>, vector<2x384xf32> -> vector<2x384xf32>
    %c14_274 = arith.constant 14 : index
    %c0_275 = arith.constant 0 : index
    %982 = vector.load %arg30[%c14_274, %c0_275] : memref<16x384xf32, #tpu.memory_space<vmem>>, vector<2x384xf32>
    %983 = vector.extract_strided_slice %982 {offsets = [0, 0], sizes = [2, 128], strides = [1, 1]} : vector<2x384xf32> to vector<2x128xf32>
    %984 = vector.extract_strided_slice %981 {offsets = [0, 0], sizes = [2, 128], strides = [1, 1]} : vector<2x384xf32> to vector<2x128xf32>
    %985 = arith.addf %983, %984 : vector<2x128xf32>
    %986 = arith.negf %985 : vector<2x128xf32>
    %987 = math.exp %986 : vector<2x128xf32>
    %cst_276 = arith.constant 1.000000e+00 : f32
    %988 = vector.broadcast %cst_276 : f32 to vector<2x128xf32>
    %989 = arith.addf %988, %987 : vector<2x128xf32>
    %990 = arith.divf %988, %989 : vector<2x128xf32>
    %991 = vector.extract_strided_slice %982 {offsets = [0, 128], sizes = [2, 128], strides = [1, 1]} : vector<2x384xf32> to vector<2x128xf32>
    %992 = vector.extract_strided_slice %981 {offsets = [0, 128], sizes = [2, 128], strides = [1, 1]} : vector<2x384xf32> to vector<2x128xf32>
    %993 = arith.addf %991, %992 : vector<2x128xf32>
    %994 = arith.negf %993 : vector<2x128xf32>
    %995 = math.exp %994 : vector<2x128xf32>
    %cst_277 = arith.constant 1.000000e+00 : f32
    %996 = vector.broadcast %cst_277 : f32 to vector<2x128xf32>
    %997 = arith.addf %996, %995 : vector<2x128xf32>
    %998 = arith.divf %996, %997 : vector<2x128xf32>
    %999 = vector.extract_strided_slice %982 {offsets = [0, 256], sizes = [2, 128], strides = [1, 1]} : vector<2x384xf32> to vector<2x128xf32>
    %1000 = vector.extract_strided_slice %981 {offsets = [0, 256], sizes = [2, 128], strides = [1, 1]} : vector<2x384xf32> to vector<2x128xf32>
    %1001 = vector.broadcast %700 : vector<1x128xf32> to vector<2x128xf32>
    %1002 = arith.addf %1000, %1001 : vector<2x128xf32>
    %1003 = arith.mulf %990, %1002 : vector<2x128xf32>
    %1004 = arith.addf %999, %1003 : vector<2x128xf32>
    %1005 = math.tanh %1004 : vector<2x128xf32>
    %cst_278 = arith.constant 1.000000e+00 : f32
    %1006 = vector.broadcast %cst_278 : f32 to vector<2x128xf32>
    %1007 = arith.subf %1006, %998 : vector<2x128xf32>
    %1008 = arith.mulf %1007, %1005 : vector<2x128xf32>
    %1009 = arith.mulf %998, %975 : vector<2x128xf32>
    %1010 = arith.addf %1008, %1009 : vector<2x128xf32>
    %c7_i32_279 = arith.constant 7 : i32
    %1011 = vector.broadcast %c7_i32_279 : i32 to vector<2x1xi32>
    %1012 = arith.cmpi sgt, %0, %1011 : vector<2x1xi32>
    %1013 = vector.shape_cast %1012 : vector<2x1xi1> to vector<2x1xi1>
    %1014 = vector.broadcast %1013 : vector<2x1xi1> to vector<2x128xi1>
    %1015 = arith.select %1014, %1010, %975 : vector<2x128xi1>, vector<2x128xf32>
    %cst_280 = arith.constant 0.000000e+00 : f32
    %1016 = vector.shape_cast %1012 : vector<2x1xi1> to vector<2x1xi1>
    %1017 = vector.broadcast %1016 : vector<2x1xi1> to vector<2x128xi1>
    %1018 = vector.broadcast %cst_280 : f32 to vector<2x128xf32>
    %1019 = arith.select %1017, %1015, %1018 : vector<2x128xi1>, vector<2x128xf32>
    %c14_281 = arith.constant 14 : index
    %c0_282 = arith.constant 0 : index
    %1020 = vector.load %arg31[%c14_281, %c0_282] : memref<16x128xf32, #tpu.memory_space<vmem>>, vector<2x128xf32>
    tpu.vector_store %arg31[%c14_281, %c0_282], %1019 {strides = array<i32>} : memref<16x128xf32, #tpu.memory_space<vmem>>, vector<2x128xf32>,
    %c0_283 = arith.constant 0 : index
    %c0_284 = arith.constant 0 : index
    %1021 = vector.load %arg31[%c0_283, %c0_284] : memref<16x128xf32, #tpu.memory_space<vmem>>, vector<16x128xf32>
    %c0_285 = arith.constant 0 : index
    %c0_286 = arith.constant 0 : index
    %1022 = vector.load %arg20[%c0_285, %c0_286] : memref<128x384xf32, #tpu.memory_space<vmem>>, vector<128x384xf32>
    %cst_287 = arith.constant dense<0.000000e+00> : vector<16x384xf32>
    %1023 = tpu.matmul %1021, %1022, %cst_287 {dimension_numbers = #tpu.dot_dimension_numbers<[1], [0], [0], [1], [0, 0, 1, 1], [], []>} : vector<16x128xf32>, vector<128x384xf32>, vector<16x384xf32> -> vector<16x384xf32>
    %c0_288 = arith.constant 0 : index
    %c0_289 = arith.constant 0 : index
    %1024 = vector.load %arg22[%c0_288, %c0_289] : memref<1x384xf32, #tpu.memory_space<vmem>>, vector<1x384xf32>
    %1025 = vector.broadcast %1024 : vector<1x384xf32> to vector<16x384xf32>
    %1026 = arith.addf %1023, %1025 : vector<16x384xf32>
    %c0_290 = arith.constant 0 : index
    %c0_291 = arith.constant 0 : index
    %1027 = vector.load %arg30[%c0_290, %c0_291] : memref<16x384xf32, #tpu.memory_space<vmem>>, vector<16x384xf32>
    tpu.vector_store %arg30[%c0_290, %c0_291], %1026 {strides = array<i32>} : memref<16x384xf32, #tpu.memory_space<vmem>>, vector<16x384xf32>,
    %c0_292 = arith.constant 0 : index
    %c0_293 = arith.constant 0 : index
    %1028 = vector.load %arg21[%c0_292, %c0_293] : memref<128x384xf32, #tpu.memory_space<vmem>>, vector<128x384xf32>
    %c0_294 = arith.constant 0 : index
    %c0_295 = arith.constant 0 : index
    %1029 = vector.load %arg23[%c0_294, %c0_295] : memref<1x128xf32, #tpu.memory_space<vmem>>, vector<1x128xf32>
    %cst_296 = arith.constant dense<0.000000e+00> : vector<2x384xf32>
    %1030 = tpu.matmul %662, %1028, %cst_296 {dimension_numbers = #tpu.dot_dimension_numbers<[1], [0], [0], [1], [0, 0, 1, 1], [], []>} : vector<2x128xf32>, vector<128x384xf32>, vector<2x384xf32> -> vector<2x384xf32>
    %c0_297 = arith.constant 0 : index
    %c0_298 = arith.constant 0 : index
    %1031 = vector.load %arg30[%c0_297, %c0_298] : memref<16x384xf32, #tpu.memory_space<vmem>>, vector<2x384xf32>
    %1032 = vector.extract_strided_slice %1031 {offsets = [0, 0], sizes = [2, 128], strides = [1, 1]} : vector<2x384xf32> to vector<2x128xf32>
    %1033 = vector.extract_strided_slice %1030 {offsets = [0, 0], sizes = [2, 128], strides = [1, 1]} : vector<2x384xf32> to vector<2x128xf32>
    %1034 = arith.addf %1032, %1033 : vector<2x128xf32>
    %1035 = arith.negf %1034 : vector<2x128xf32>
    %1036 = math.exp %1035 : vector<2x128xf32>
    %cst_299 = arith.constant 1.000000e+00 : f32
    %1037 = vector.broadcast %cst_299 : f32 to vector<2x128xf32>
    %1038 = arith.addf %1037, %1036 : vector<2x128xf32>
    %1039 = arith.divf %1037, %1038 : vector<2x128xf32>
    %1040 = vector.extract_strided_slice %1031 {offsets = [0, 128], sizes = [2, 128], strides = [1, 1]} : vector<2x384xf32> to vector<2x128xf32>
    %1041 = vector.extract_strided_slice %1030 {offsets = [0, 128], sizes = [2, 128], strides = [1, 1]} : vector<2x384xf32> to vector<2x128xf32>
    %1042 = arith.addf %1040, %1041 : vector<2x128xf32>
    %1043 = arith.negf %1042 : vector<2x128xf32>
    %1044 = math.exp %1043 : vector<2x128xf32>
    %cst_300 = arith.constant 1.000000e+00 : f32
    %1045 = vector.broadcast %cst_300 : f32 to vector<2x128xf32>
    %1046 = arith.addf %1045, %1044 : vector<2x128xf32>
    %1047 = arith.divf %1045, %1046 : vector<2x128xf32>
    %1048 = vector.extract_strided_slice %1031 {offsets = [0, 256], sizes = [2, 128], strides = [1, 1]} : vector<2x384xf32> to vector<2x128xf32>
    %1049 = vector.extract_strided_slice %1030 {offsets = [0, 256], sizes = [2, 128], strides = [1, 1]} : vector<2x384xf32> to vector<2x128xf32>
    %1050 = vector.broadcast %1029 : vector<1x128xf32> to vector<2x128xf32>
    %1051 = arith.addf %1049, %1050 : vector<2x128xf32>
    %1052 = arith.mulf %1039, %1051 : vector<2x128xf32>
    %1053 = arith.addf %1048, %1052 : vector<2x128xf32>
    %1054 = math.tanh %1053 : vector<2x128xf32>
    %cst_301 = arith.constant 1.000000e+00 : f32
    %1055 = vector.broadcast %cst_301 : f32 to vector<2x128xf32>
    %1056 = arith.subf %1055, %1047 : vector<2x128xf32>
    %1057 = arith.mulf %1056, %1054 : vector<2x128xf32>
    %1058 = arith.mulf %1047, %662 : vector<2x128xf32>
    %1059 = arith.addf %1057, %1058 : vector<2x128xf32>
    %c0_i32_302 = arith.constant 0 : i32
    %1060 = vector.broadcast %c0_i32_302 : i32 to vector<2x1xi32>
    %1061 = arith.cmpi sgt, %0, %1060 : vector<2x1xi32>
    %1062 = vector.shape_cast %1061 : vector<2x1xi1> to vector<2x1xi1>
    %1063 = vector.broadcast %1062 : vector<2x1xi1> to vector<2x128xi1>
    %1064 = arith.select %1063, %1059, %662 : vector<2x128xi1>, vector<2x128xf32>
    %cst_303 = arith.constant 0.000000e+00 : f32
    %1065 = vector.shape_cast %1061 : vector<2x1xi1> to vector<2x1xi1>
    %1066 = vector.broadcast %1065 : vector<2x1xi1> to vector<2x128xi1>
    %1067 = vector.broadcast %cst_303 : f32 to vector<2x128xf32>
    %1068 = arith.select %1066, %1064, %1067 : vector<2x128xi1>, vector<2x128xf32>
    %c0_304 = arith.constant 0 : index
    %c0_305 = arith.constant 0 : index
    %1069 = vector.load %arg31[%c0_304, %c0_305] : memref<16x128xf32, #tpu.memory_space<vmem>>, vector<2x128xf32>
    tpu.vector_store %arg31[%c0_304, %c0_305], %1068 {strides = array<i32>} : memref<16x128xf32, #tpu.memory_space<vmem>>, vector<2x128xf32>,
    %cst_306 = arith.constant dense<0.000000e+00> : vector<2x384xf32>
    %1070 = tpu.matmul %1064, %1028, %cst_306 {dimension_numbers = #tpu.dot_dimension_numbers<[1], [0], [0], [1], [0, 0, 1, 1], [], []>} : vector<2x128xf32>, vector<128x384xf32>, vector<2x384xf32> -> vector<2x384xf32>
    %c2_307 = arith.constant 2 : index
    %c0_308 = arith.constant 0 : index
    %1071 = vector.load %arg30[%c2_307, %c0_308] : memref<16x384xf32, #tpu.memory_space<vmem>>, vector<2x384xf32>
    %1072 = vector.extract_strided_slice %1071 {offsets = [0, 0], sizes = [2, 128], strides = [1, 1]} : vector<2x384xf32> to vector<2x128xf32>
    %1073 = vector.extract_strided_slice %1070 {offsets = [0, 0], sizes = [2, 128], strides = [1, 1]} : vector<2x384xf32> to vector<2x128xf32>
    %1074 = arith.addf %1072, %1073 : vector<2x128xf32>
    %1075 = arith.negf %1074 : vector<2x128xf32>
    %1076 = math.exp %1075 : vector<2x128xf32>
    %cst_309 = arith.constant 1.000000e+00 : f32
    %1077 = vector.broadcast %cst_309 : f32 to vector<2x128xf32>
    %1078 = arith.addf %1077, %1076 : vector<2x128xf32>
    %1079 = arith.divf %1077, %1078 : vector<2x128xf32>
    %1080 = vector.extract_strided_slice %1071 {offsets = [0, 128], sizes = [2, 128], strides = [1, 1]} : vector<2x384xf32> to vector<2x128xf32>
    %1081 = vector.extract_strided_slice %1070 {offsets = [0, 128], sizes = [2, 128], strides = [1, 1]} : vector<2x384xf32> to vector<2x128xf32>
    %1082 = arith.addf %1080, %1081 : vector<2x128xf32>
    %1083 = arith.negf %1082 : vector<2x128xf32>
    %1084 = math.exp %1083 : vector<2x128xf32>
    %cst_310 = arith.constant 1.000000e+00 : f32
    %1085 = vector.broadcast %cst_310 : f32 to vector<2x128xf32>
    %1086 = arith.addf %1085, %1084 : vector<2x128xf32>
    %1087 = arith.divf %1085, %1086 : vector<2x128xf32>
    %1088 = vector.extract_strided_slice %1071 {offsets = [0, 256], sizes = [2, 128], strides = [1, 1]} : vector<2x384xf32> to vector<2x128xf32>
    %1089 = vector.extract_strided_slice %1070 {offsets = [0, 256], sizes = [2, 128], strides = [1, 1]} : vector<2x384xf32> to vector<2x128xf32>
    %1090 = vector.broadcast %1029 : vector<1x128xf32> to vector<2x128xf32>
    %1091 = arith.addf %1089, %1090 : vector<2x128xf32>
    %1092 = arith.mulf %1079, %1091 : vector<2x128xf32>
    %1093 = arith.addf %1088, %1092 : vector<2x128xf32>
    %1094 = math.tanh %1093 : vector<2x128xf32>
    %cst_311 = arith.constant 1.000000e+00 : f32
    %1095 = vector.broadcast %cst_311 : f32 to vector<2x128xf32>
    %1096 = arith.subf %1095, %1087 : vector<2x128xf32>
    %1097 = arith.mulf %1096, %1094 : vector<2x128xf32>
    %1098 = arith.mulf %1087, %1064 : vector<2x128xf32>
    %1099 = arith.addf %1097, %1098 : vector<2x128xf32>
    %c1_i32_312 = arith.constant 1 : i32
    %1100 = vector.broadcast %c1_i32_312 : i32 to vector<2x1xi32>
    %1101 = arith.cmpi sgt, %0, %1100 : vector<2x1xi32>
    %1102 = vector.shape_cast %1101 : vector<2x1xi1> to vector<2x1xi1>
    %1103 = vector.broadcast %1102 : vector<2x1xi1> to vector<2x128xi1>
    %1104 = arith.select %1103, %1099, %1064 : vector<2x128xi1>, vector<2x128xf32>
    %cst_313 = arith.constant 0.000000e+00 : f32
    %1105 = vector.shape_cast %1101 : vector<2x1xi1> to vector<2x1xi1>
    %1106 = vector.broadcast %1105 : vector<2x1xi1> to vector<2x128xi1>
    %1107 = vector.broadcast %cst_313 : f32 to vector<2x128xf32>
    %1108 = arith.select %1106, %1104, %1107 : vector<2x128xi1>, vector<2x128xf32>
    %c2_314 = arith.constant 2 : index
    %c0_315 = arith.constant 0 : index
    %1109 = vector.load %arg31[%c2_314, %c0_315] : memref<16x128xf32, #tpu.memory_space<vmem>>, vector<2x128xf32>
    tpu.vector_store %arg31[%c2_314, %c0_315], %1108 {strides = array<i32>} : memref<16x128xf32, #tpu.memory_space<vmem>>, vector<2x128xf32>,
    %cst_316 = arith.constant dense<0.000000e+00> : vector<2x384xf32>
    %1110 = tpu.matmul %1104, %1028, %cst_316 {dimension_numbers = #tpu.dot_dimension_numbers<[1], [0], [0], [1], [0, 0, 1, 1], [], []>} : vector<2x128xf32>, vector<128x384xf32>, vector<2x384xf32> -> vector<2x384xf32>
    %c4_317 = arith.constant 4 : index
    %c0_318 = arith.constant 0 : index
    %1111 = vector.load %arg30[%c4_317, %c0_318] : memref<16x384xf32, #tpu.memory_space<vmem>>, vector<2x384xf32>
    %1112 = vector.extract_strided_slice %1111 {offsets = [0, 0], sizes = [2, 128], strides = [1, 1]} : vector<2x384xf32> to vector<2x128xf32>
    %1113 = vector.extract_strided_slice %1110 {offsets = [0, 0], sizes = [2, 128], strides = [1, 1]} : vector<2x384xf32> to vector<2x128xf32>
    %1114 = arith.addf %1112, %1113 : vector<2x128xf32>
    %1115 = arith.negf %1114 : vector<2x128xf32>
    %1116 = math.exp %1115 : vector<2x128xf32>
    %cst_319 = arith.constant 1.000000e+00 : f32
    %1117 = vector.broadcast %cst_319 : f32 to vector<2x128xf32>
    %1118 = arith.addf %1117, %1116 : vector<2x128xf32>
    %1119 = arith.divf %1117, %1118 : vector<2x128xf32>
    %1120 = vector.extract_strided_slice %1111 {offsets = [0, 128], sizes = [2, 128], strides = [1, 1]} : vector<2x384xf32> to vector<2x128xf32>
    %1121 = vector.extract_strided_slice %1110 {offsets = [0, 128], sizes = [2, 128], strides = [1, 1]} : vector<2x384xf32> to vector<2x128xf32>
    %1122 = arith.addf %1120, %1121 : vector<2x128xf32>
    %1123 = arith.negf %1122 : vector<2x128xf32>
    %1124 = math.exp %1123 : vector<2x128xf32>
    %cst_320 = arith.constant 1.000000e+00 : f32
    %1125 = vector.broadcast %cst_320 : f32 to vector<2x128xf32>
    %1126 = arith.addf %1125, %1124 : vector<2x128xf32>
    %1127 = arith.divf %1125, %1126 : vector<2x128xf32>
    %1128 = vector.extract_strided_slice %1111 {offsets = [0, 256], sizes = [2, 128], strides = [1, 1]} : vector<2x384xf32> to vector<2x128xf32>
    %1129 = vector.extract_strided_slice %1110 {offsets = [0, 256], sizes = [2, 128], strides = [1, 1]} : vector<2x384xf32> to vector<2x128xf32>
    %1130 = vector.broadcast %1029 : vector<1x128xf32> to vector<2x128xf32>
    %1131 = arith.addf %1129, %1130 : vector<2x128xf32>
    %1132 = arith.mulf %1119, %1131 : vector<2x128xf32>
    %1133 = arith.addf %1128, %1132 : vector<2x128xf32>
    %1134 = math.tanh %1133 : vector<2x128xf32>
    %cst_321 = arith.constant 1.000000e+00 : f32
    %1135 = vector.broadcast %cst_321 : f32 to vector<2x128xf32>
    %1136 = arith.subf %1135, %1127 : vector<2x128xf32>
    %1137 = arith.mulf %1136, %1134 : vector<2x128xf32>
    %1138 = arith.mulf %1127, %1104 : vector<2x128xf32>
    %1139 = arith.addf %1137, %1138 : vector<2x128xf32>
    %c2_i32_322 = arith.constant 2 : i32
    %1140 = vector.broadcast %c2_i32_322 : i32 to vector<2x1xi32>
    %1141 = arith.cmpi sgt, %0, %1140 : vector<2x1xi32>
    %1142 = vector.shape_cast %1141 : vector<2x1xi1> to vector<2x1xi1>
    %1143 = vector.broadcast %1142 : vector<2x1xi1> to vector<2x128xi1>
    %1144 = arith.select %1143, %1139, %1104 : vector<2x128xi1>, vector<2x128xf32>
    %cst_323 = arith.constant 0.000000e+00 : f32
    %1145 = vector.shape_cast %1141 : vector<2x1xi1> to vector<2x1xi1>
    %1146 = vector.broadcast %1145 : vector<2x1xi1> to vector<2x128xi1>
    %1147 = vector.broadcast %cst_323 : f32 to vector<2x128xf32>
    %1148 = arith.select %1146, %1144, %1147 : vector<2x128xi1>, vector<2x128xf32>
    %c4_324 = arith.constant 4 : index
    %c0_325 = arith.constant 0 : index
    %1149 = vector.load %arg31[%c4_324, %c0_325] : memref<16x128xf32, #tpu.memory_space<vmem>>, vector<2x128xf32>
    tpu.vector_store %arg31[%c4_324, %c0_325], %1148 {strides = array<i32>} : memref<16x128xf32, #tpu.memory_space<vmem>>, vector<2x128xf32>,
    %cst_326 = arith.constant dense<0.000000e+00> : vector<2x384xf32>
    %1150 = tpu.matmul %1144, %1028, %cst_326 {dimension_numbers = #tpu.dot_dimension_numbers<[1], [0], [0], [1], [0, 0, 1, 1], [], []>} : vector<2x128xf32>, vector<128x384xf32>, vector<2x384xf32> -> vector<2x384xf32>
    %c6_327 = arith.constant 6 : index
    %c0_328 = arith.constant 0 : index
    %1151 = vector.load %arg30[%c6_327, %c0_328] : memref<16x384xf32, #tpu.memory_space<vmem>>, vector<2x384xf32>
    %1152 = vector.extract_strided_slice %1151 {offsets = [0, 0], sizes = [2, 128], strides = [1, 1]} : vector<2x384xf32> to vector<2x128xf32>
    %1153 = vector.extract_strided_slice %1150 {offsets = [0, 0], sizes = [2, 128], strides = [1, 1]} : vector<2x384xf32> to vector<2x128xf32>
    %1154 = arith.addf %1152, %1153 : vector<2x128xf32>
    %1155 = arith.negf %1154 : vector<2x128xf32>
    %1156 = math.exp %1155 : vector<2x128xf32>
    %cst_329 = arith.constant 1.000000e+00 : f32
    %1157 = vector.broadcast %cst_329 : f32 to vector<2x128xf32>
    %1158 = arith.addf %1157, %1156 : vector<2x128xf32>
    %1159 = arith.divf %1157, %1158 : vector<2x128xf32>
    %1160 = vector.extract_strided_slice %1151 {offsets = [0, 128], sizes = [2, 128], strides = [1, 1]} : vector<2x384xf32> to vector<2x128xf32>
    %1161 = vector.extract_strided_slice %1150 {offsets = [0, 128], sizes = [2, 128], strides = [1, 1]} : vector<2x384xf32> to vector<2x128xf32>
    %1162 = arith.addf %1160, %1161 : vector<2x128xf32>
    %1163 = arith.negf %1162 : vector<2x128xf32>
    %1164 = math.exp %1163 : vector<2x128xf32>
    %cst_330 = arith.constant 1.000000e+00 : f32
    %1165 = vector.broadcast %cst_330 : f32 to vector<2x128xf32>
    %1166 = arith.addf %1165, %1164 : vector<2x128xf32>
    %1167 = arith.divf %1165, %1166 : vector<2x128xf32>
    %1168 = vector.extract_strided_slice %1151 {offsets = [0, 256], sizes = [2, 128], strides = [1, 1]} : vector<2x384xf32> to vector<2x128xf32>
    %1169 = vector.extract_strided_slice %1150 {offsets = [0, 256], sizes = [2, 128], strides = [1, 1]} : vector<2x384xf32> to vector<2x128xf32>
    %1170 = vector.broadcast %1029 : vector<1x128xf32> to vector<2x128xf32>
    %1171 = arith.addf %1169, %1170 : vector<2x128xf32>
    %1172 = arith.mulf %1159, %1171 : vector<2x128xf32>
    %1173 = arith.addf %1168, %1172 : vector<2x128xf32>
    %1174 = math.tanh %1173 : vector<2x128xf32>
    %cst_331 = arith.constant 1.000000e+00 : f32
    %1175 = vector.broadcast %cst_331 : f32 to vector<2x128xf32>
    %1176 = arith.subf %1175, %1167 : vector<2x128xf32>
    %1177 = arith.mulf %1176, %1174 : vector<2x128xf32>
    %1178 = arith.mulf %1167, %1144 : vector<2x128xf32>
    %1179 = arith.addf %1177, %1178 : vector<2x128xf32>
    %c3_i32_332 = arith.constant 3 : i32
    %1180 = vector.broadcast %c3_i32_332 : i32 to vector<2x1xi32>
    %1181 = arith.cmpi sgt, %0, %1180 : vector<2x1xi32>
    %1182 = vector.shape_cast %1181 : vector<2x1xi1> to vector<2x1xi1>
    %1183 = vector.broadcast %1182 : vector<2x1xi1> to vector<2x128xi1>
    %1184 = arith.select %1183, %1179, %1144 : vector<2x128xi1>, vector<2x128xf32>
    %cst_333 = arith.constant 0.000000e+00 : f32
    %1185 = vector.shape_cast %1181 : vector<2x1xi1> to vector<2x1xi1>
    %1186 = vector.broadcast %1185 : vector<2x1xi1> to vector<2x128xi1>
    %1187 = vector.broadcast %cst_333 : f32 to vector<2x128xf32>
    %1188 = arith.select %1186, %1184, %1187 : vector<2x128xi1>, vector<2x128xf32>
    %c6_334 = arith.constant 6 : index
    %c0_335 = arith.constant 0 : index
    %1189 = vector.load %arg31[%c6_334, %c0_335] : memref<16x128xf32, #tpu.memory_space<vmem>>, vector<2x128xf32>
    tpu.vector_store %arg31[%c6_334, %c0_335], %1188 {strides = array<i32>} : memref<16x128xf32, #tpu.memory_space<vmem>>, vector<2x128xf32>,
    %cst_336 = arith.constant dense<0.000000e+00> : vector<2x384xf32>
    %1190 = tpu.matmul %1184, %1028, %cst_336 {dimension_numbers = #tpu.dot_dimension_numbers<[1], [0], [0], [1], [0, 0, 1, 1], [], []>} : vector<2x128xf32>, vector<128x384xf32>, vector<2x384xf32> -> vector<2x384xf32>
    %c8_337 = arith.constant 8 : index
    %c0_338 = arith.constant 0 : index
    %1191 = vector.load %arg30[%c8_337, %c0_338] : memref<16x384xf32, #tpu.memory_space<vmem>>, vector<2x384xf32>
    %1192 = vector.extract_strided_slice %1191 {offsets = [0, 0], sizes = [2, 128], strides = [1, 1]} : vector<2x384xf32> to vector<2x128xf32>
    %1193 = vector.extract_strided_slice %1190 {offsets = [0, 0], sizes = [2, 128], strides = [1, 1]} : vector<2x384xf32> to vector<2x128xf32>
    %1194 = arith.addf %1192, %1193 : vector<2x128xf32>
    %1195 = arith.negf %1194 : vector<2x128xf32>
    %1196 = math.exp %1195 : vector<2x128xf32>
    %cst_339 = arith.constant 1.000000e+00 : f32
    %1197 = vector.broadcast %cst_339 : f32 to vector<2x128xf32>
    %1198 = arith.addf %1197, %1196 : vector<2x128xf32>
    %1199 = arith.divf %1197, %1198 : vector<2x128xf32>
    %1200 = vector.extract_strided_slice %1191 {offsets = [0, 128], sizes = [2, 128], strides = [1, 1]} : vector<2x384xf32> to vector<2x128xf32>
    %1201 = vector.extract_strided_slice %1190 {offsets = [0, 128], sizes = [2, 128], strides = [1, 1]} : vector<2x384xf32> to vector<2x128xf32>
    %1202 = arith.addf %1200, %1201 : vector<2x128xf32>
    %1203 = arith.negf %1202 : vector<2x128xf32>
    %1204 = math.exp %1203 : vector<2x128xf32>
    %cst_340 = arith.constant 1.000000e+00 : f32
    %1205 = vector.broadcast %cst_340 : f32 to vector<2x128xf32>
    %1206 = arith.addf %1205, %1204 : vector<2x128xf32>
    %1207 = arith.divf %1205, %1206 : vector<2x128xf32>
    %1208 = vector.extract_strided_slice %1191 {offsets = [0, 256], sizes = [2, 128], strides = [1, 1]} : vector<2x384xf32> to vector<2x128xf32>
    %1209 = vector.extract_strided_slice %1190 {offsets = [0, 256], sizes = [2, 128], strides = [1, 1]} : vector<2x384xf32> to vector<2x128xf32>
    %1210 = vector.broadcast %1029 : vector<1x128xf32> to vector<2x128xf32>
    %1211 = arith.addf %1209, %1210 : vector<2x128xf32>
    %1212 = arith.mulf %1199, %1211 : vector<2x128xf32>
    %1213 = arith.addf %1208, %1212 : vector<2x128xf32>
    %1214 = math.tanh %1213 : vector<2x128xf32>
    %cst_341 = arith.constant 1.000000e+00 : f32
    %1215 = vector.broadcast %cst_341 : f32 to vector<2x128xf32>
    %1216 = arith.subf %1215, %1207 : vector<2x128xf32>
    %1217 = arith.mulf %1216, %1214 : vector<2x128xf32>
    %1218 = arith.mulf %1207, %1184 : vector<2x128xf32>
    %1219 = arith.addf %1217, %1218 : vector<2x128xf32>
    %c4_i32_342 = arith.constant 4 : i32
    %1220 = vector.broadcast %c4_i32_342 : i32 to vector<2x1xi32>
    %1221 = arith.cmpi sgt, %0, %1220 : vector<2x1xi32>
    %1222 = vector.shape_cast %1221 : vector<2x1xi1> to vector<2x1xi1>
    %1223 = vector.broadcast %1222 : vector<2x1xi1> to vector<2x128xi1>
    %1224 = arith.select %1223, %1219, %1184 : vector<2x128xi1>, vector<2x128xf32>
    %cst_343 = arith.constant 0.000000e+00 : f32
    %1225 = vector.shape_cast %1221 : vector<2x1xi1> to vector<2x1xi1>
    %1226 = vector.broadcast %1225 : vector<2x1xi1> to vector<2x128xi1>
    %1227 = vector.broadcast %cst_343 : f32 to vector<2x128xf32>
    %1228 = arith.select %1226, %1224, %1227 : vector<2x128xi1>, vector<2x128xf32>
    %c8_344 = arith.constant 8 : index
    %c0_345 = arith.constant 0 : index
    %1229 = vector.load %arg31[%c8_344, %c0_345] : memref<16x128xf32, #tpu.memory_space<vmem>>, vector<2x128xf32>
    tpu.vector_store %arg31[%c8_344, %c0_345], %1228 {strides = array<i32>} : memref<16x128xf32, #tpu.memory_space<vmem>>, vector<2x128xf32>,
    %cst_346 = arith.constant dense<0.000000e+00> : vector<2x384xf32>
    %1230 = tpu.matmul %1224, %1028, %cst_346 {dimension_numbers = #tpu.dot_dimension_numbers<[1], [0], [0], [1], [0, 0, 1, 1], [], []>} : vector<2x128xf32>, vector<128x384xf32>, vector<2x384xf32> -> vector<2x384xf32>
    %c10_347 = arith.constant 10 : index
    %c0_348 = arith.constant 0 : index
    %1231 = vector.load %arg30[%c10_347, %c0_348] : memref<16x384xf32, #tpu.memory_space<vmem>>, vector<2x384xf32>
    %1232 = vector.extract_strided_slice %1231 {offsets = [0, 0], sizes = [2, 128], strides = [1, 1]} : vector<2x384xf32> to vector<2x128xf32>
    %1233 = vector.extract_strided_slice %1230 {offsets = [0, 0], sizes = [2, 128], strides = [1, 1]} : vector<2x384xf32> to vector<2x128xf32>
    %1234 = arith.addf %1232, %1233 : vector<2x128xf32>
    %1235 = arith.negf %1234 : vector<2x128xf32>
    %1236 = math.exp %1235 : vector<2x128xf32>
    %cst_349 = arith.constant 1.000000e+00 : f32
    %1237 = vector.broadcast %cst_349 : f32 to vector<2x128xf32>
    %1238 = arith.addf %1237, %1236 : vector<2x128xf32>
    %1239 = arith.divf %1237, %1238 : vector<2x128xf32>
    %1240 = vector.extract_strided_slice %1231 {offsets = [0, 128], sizes = [2, 128], strides = [1, 1]} : vector<2x384xf32> to vector<2x128xf32>
    %1241 = vector.extract_strided_slice %1230 {offsets = [0, 128], sizes = [2, 128], strides = [1, 1]} : vector<2x384xf32> to vector<2x128xf32>
    %1242 = arith.addf %1240, %1241 : vector<2x128xf32>
    %1243 = arith.negf %1242 : vector<2x128xf32>
    %1244 = math.exp %1243 : vector<2x128xf32>
    %cst_350 = arith.constant 1.000000e+00 : f32
    %1245 = vector.broadcast %cst_350 : f32 to vector<2x128xf32>
    %1246 = arith.addf %1245, %1244 : vector<2x128xf32>
    %1247 = arith.divf %1245, %1246 : vector<2x128xf32>
    %1248 = vector.extract_strided_slice %1231 {offsets = [0, 256], sizes = [2, 128], strides = [1, 1]} : vector<2x384xf32> to vector<2x128xf32>
    %1249 = vector.extract_strided_slice %1230 {offsets = [0, 256], sizes = [2, 128], strides = [1, 1]} : vector<2x384xf32> to vector<2x128xf32>
    %1250 = vector.broadcast %1029 : vector<1x128xf32> to vector<2x128xf32>
    %1251 = arith.addf %1249, %1250 : vector<2x128xf32>
    %1252 = arith.mulf %1239, %1251 : vector<2x128xf32>
    %1253 = arith.addf %1248, %1252 : vector<2x128xf32>
    %1254 = math.tanh %1253 : vector<2x128xf32>
    %cst_351 = arith.constant 1.000000e+00 : f32
    %1255 = vector.broadcast %cst_351 : f32 to vector<2x128xf32>
    %1256 = arith.subf %1255, %1247 : vector<2x128xf32>
    %1257 = arith.mulf %1256, %1254 : vector<2x128xf32>
    %1258 = arith.mulf %1247, %1224 : vector<2x128xf32>
    %1259 = arith.addf %1257, %1258 : vector<2x128xf32>
    %c5_i32_352 = arith.constant 5 : i32
    %1260 = vector.broadcast %c5_i32_352 : i32 to vector<2x1xi32>
    %1261 = arith.cmpi sgt, %0, %1260 : vector<2x1xi32>
    %1262 = vector.shape_cast %1261 : vector<2x1xi1> to vector<2x1xi1>
    %1263 = vector.broadcast %1262 : vector<2x1xi1> to vector<2x128xi1>
    %1264 = arith.select %1263, %1259, %1224 : vector<2x128xi1>, vector<2x128xf32>
    %cst_353 = arith.constant 0.000000e+00 : f32
    %1265 = vector.shape_cast %1261 : vector<2x1xi1> to vector<2x1xi1>
    %1266 = vector.broadcast %1265 : vector<2x1xi1> to vector<2x128xi1>
    %1267 = vector.broadcast %cst_353 : f32 to vector<2x128xf32>
    %1268 = arith.select %1266, %1264, %1267 : vector<2x128xi1>, vector<2x128xf32>
    %c10_354 = arith.constant 10 : index
    %c0_355 = arith.constant 0 : index
    %1269 = vector.load %arg31[%c10_354, %c0_355] : memref<16x128xf32, #tpu.memory_space<vmem>>, vector<2x128xf32>
    tpu.vector_store %arg31[%c10_354, %c0_355], %1268 {strides = array<i32>} : memref<16x128xf32, #tpu.memory_space<vmem>>, vector<2x128xf32>,
    %cst_356 = arith.constant dense<0.000000e+00> : vector<2x384xf32>
    %1270 = tpu.matmul %1264, %1028, %cst_356 {dimension_numbers = #tpu.dot_dimension_numbers<[1], [0], [0], [1], [0, 0, 1, 1], [], []>} : vector<2x128xf32>, vector<128x384xf32>, vector<2x384xf32> -> vector<2x384xf32>
    %c12_357 = arith.constant 12 : index
    %c0_358 = arith.constant 0 : index
    %1271 = vector.load %arg30[%c12_357, %c0_358] : memref<16x384xf32, #tpu.memory_space<vmem>>, vector<2x384xf32>
    %1272 = vector.extract_strided_slice %1271 {offsets = [0, 0], sizes = [2, 128], strides = [1, 1]} : vector<2x384xf32> to vector<2x128xf32>
    %1273 = vector.extract_strided_slice %1270 {offsets = [0, 0], sizes = [2, 128], strides = [1, 1]} : vector<2x384xf32> to vector<2x128xf32>
    %1274 = arith.addf %1272, %1273 : vector<2x128xf32>
    %1275 = arith.negf %1274 : vector<2x128xf32>
    %1276 = math.exp %1275 : vector<2x128xf32>
    %cst_359 = arith.constant 1.000000e+00 : f32
    %1277 = vector.broadcast %cst_359 : f32 to vector<2x128xf32>
    %1278 = arith.addf %1277, %1276 : vector<2x128xf32>
    %1279 = arith.divf %1277, %1278 : vector<2x128xf32>
    %1280 = vector.extract_strided_slice %1271 {offsets = [0, 128], sizes = [2, 128], strides = [1, 1]} : vector<2x384xf32> to vector<2x128xf32>
    %1281 = vector.extract_strided_slice %1270 {offsets = [0, 128], sizes = [2, 128], strides = [1, 1]} : vector<2x384xf32> to vector<2x128xf32>
    %1282 = arith.addf %1280, %1281 : vector<2x128xf32>
    %1283 = arith.negf %1282 : vector<2x128xf32>
    %1284 = math.exp %1283 : vector<2x128xf32>
    %cst_360 = arith.constant 1.000000e+00 : f32
    %1285 = vector.broadcast %cst_360 : f32 to vector<2x128xf32>
    %1286 = arith.addf %1285, %1284 : vector<2x128xf32>
    %1287 = arith.divf %1285, %1286 : vector<2x128xf32>
    %1288 = vector.extract_strided_slice %1271 {offsets = [0, 256], sizes = [2, 128], strides = [1, 1]} : vector<2x384xf32> to vector<2x128xf32>
    %1289 = vector.extract_strided_slice %1270 {offsets = [0, 256], sizes = [2, 128], strides = [1, 1]} : vector<2x384xf32> to vector<2x128xf32>
    %1290 = vector.broadcast %1029 : vector<1x128xf32> to vector<2x128xf32>
    %1291 = arith.addf %1289, %1290 : vector<2x128xf32>
    %1292 = arith.mulf %1279, %1291 : vector<2x128xf32>
    %1293 = arith.addf %1288, %1292 : vector<2x128xf32>
    %1294 = math.tanh %1293 : vector<2x128xf32>
    %cst_361 = arith.constant 1.000000e+00 : f32
    %1295 = vector.broadcast %cst_361 : f32 to vector<2x128xf32>
    %1296 = arith.subf %1295, %1287 : vector<2x128xf32>
    %1297 = arith.mulf %1296, %1294 : vector<2x128xf32>
    %1298 = arith.mulf %1287, %1264 : vector<2x128xf32>
    %1299 = arith.addf %1297, %1298 : vector<2x128xf32>
    %c6_i32_362 = arith.constant 6 : i32
    %1300 = vector.broadcast %c6_i32_362 : i32 to vector<2x1xi32>
    %1301 = arith.cmpi sgt, %0, %1300 : vector<2x1xi32>
    %1302 = vector.shape_cast %1301 : vector<2x1xi1> to vector<2x1xi1>
    %1303 = vector.broadcast %1302 : vector<2x1xi1> to vector<2x128xi1>
    %1304 = arith.select %1303, %1299, %1264 : vector<2x128xi1>, vector<2x128xf32>
    %cst_363 = arith.constant 0.000000e+00 : f32
    %1305 = vector.shape_cast %1301 : vector<2x1xi1> to vector<2x1xi1>
    %1306 = vector.broadcast %1305 : vector<2x1xi1> to vector<2x128xi1>
    %1307 = vector.broadcast %cst_363 : f32 to vector<2x128xf32>
    %1308 = arith.select %1306, %1304, %1307 : vector<2x128xi1>, vector<2x128xf32>
    %c12_364 = arith.constant 12 : index
    %c0_365 = arith.constant 0 : index
    %1309 = vector.load %arg31[%c12_364, %c0_365] : memref<16x128xf32, #tpu.memory_space<vmem>>, vector<2x128xf32>
    tpu.vector_store %arg31[%c12_364, %c0_365], %1308 {strides = array<i32>} : memref<16x128xf32, #tpu.memory_space<vmem>>, vector<2x128xf32>,
    %cst_366 = arith.constant dense<0.000000e+00> : vector<2x384xf32>
    %1310 = tpu.matmul %1304, %1028, %cst_366 {dimension_numbers = #tpu.dot_dimension_numbers<[1], [0], [0], [1], [0, 0, 1, 1], [], []>} : vector<2x128xf32>, vector<128x384xf32>, vector<2x384xf32> -> vector<2x384xf32>
    %c14_367 = arith.constant 14 : index
    %c0_368 = arith.constant 0 : index
    %1311 = vector.load %arg30[%c14_367, %c0_368] : memref<16x384xf32, #tpu.memory_space<vmem>>, vector<2x384xf32>
    %1312 = vector.extract_strided_slice %1311 {offsets = [0, 0], sizes = [2, 128], strides = [1, 1]} : vector<2x384xf32> to vector<2x128xf32>
    %1313 = vector.extract_strided_slice %1310 {offsets = [0, 0], sizes = [2, 128], strides = [1, 1]} : vector<2x384xf32> to vector<2x128xf32>
    %1314 = arith.addf %1312, %1313 : vector<2x128xf32>
    %1315 = arith.negf %1314 : vector<2x128xf32>
    %1316 = math.exp %1315 : vector<2x128xf32>
    %cst_369 = arith.constant 1.000000e+00 : f32
    %1317 = vector.broadcast %cst_369 : f32 to vector<2x128xf32>
    %1318 = arith.addf %1317, %1316 : vector<2x128xf32>
    %1319 = arith.divf %1317, %1318 : vector<2x128xf32>
    %1320 = vector.extract_strided_slice %1311 {offsets = [0, 128], sizes = [2, 128], strides = [1, 1]} : vector<2x384xf32> to vector<2x128xf32>
    %1321 = vector.extract_strided_slice %1310 {offsets = [0, 128], sizes = [2, 128], strides = [1, 1]} : vector<2x384xf32> to vector<2x128xf32>
    %1322 = arith.addf %1320, %1321 : vector<2x128xf32>
    %1323 = arith.negf %1322 : vector<2x128xf32>
    %1324 = math.exp %1323 : vector<2x128xf32>
    %cst_370 = arith.constant 1.000000e+00 : f32
    %1325 = vector.broadcast %cst_370 : f32 to vector<2x128xf32>
    %1326 = arith.addf %1325, %1324 : vector<2x128xf32>
    %1327 = arith.divf %1325, %1326 : vector<2x128xf32>
    %1328 = vector.extract_strided_slice %1311 {offsets = [0, 256], sizes = [2, 128], strides = [1, 1]} : vector<2x384xf32> to vector<2x128xf32>
    %1329 = vector.extract_strided_slice %1310 {offsets = [0, 256], sizes = [2, 128], strides = [1, 1]} : vector<2x384xf32> to vector<2x128xf32>
    %1330 = vector.broadcast %1029 : vector<1x128xf32> to vector<2x128xf32>
    %1331 = arith.addf %1329, %1330 : vector<2x128xf32>
    %1332 = arith.mulf %1319, %1331 : vector<2x128xf32>
    %1333 = arith.addf %1328, %1332 : vector<2x128xf32>
    %1334 = math.tanh %1333 : vector<2x128xf32>
    %cst_371 = arith.constant 1.000000e+00 : f32
    %1335 = vector.broadcast %cst_371 : f32 to vector<2x128xf32>
    %1336 = arith.subf %1335, %1327 : vector<2x128xf32>
    %1337 = arith.mulf %1336, %1334 : vector<2x128xf32>
    %1338 = arith.mulf %1327, %1304 : vector<2x128xf32>
    %1339 = arith.addf %1337, %1338 : vector<2x128xf32>
    %c7_i32_372 = arith.constant 7 : i32
    %1340 = vector.broadcast %c7_i32_372 : i32 to vector<2x1xi32>
    %1341 = arith.cmpi sgt, %0, %1340 : vector<2x1xi32>
    %1342 = vector.shape_cast %1341 : vector<2x1xi1> to vector<2x1xi1>
    %1343 = vector.broadcast %1342 : vector<2x1xi1> to vector<2x128xi1>
    %1344 = arith.select %1343, %1339, %1304 : vector<2x128xi1>, vector<2x128xf32>
    %cst_373 = arith.constant 0.000000e+00 : f32
    %1345 = vector.shape_cast %1341 : vector<2x1xi1> to vector<2x1xi1>
    %1346 = vector.broadcast %1345 : vector<2x1xi1> to vector<2x128xi1>
    %1347 = vector.broadcast %cst_373 : f32 to vector<2x128xf32>
    %1348 = arith.select %1346, %1344, %1347 : vector<2x128xi1>, vector<2x128xf32>
    %c14_374 = arith.constant 14 : index
    %c0_375 = arith.constant 0 : index
    %1349 = vector.load %arg31[%c14_374, %c0_375] : memref<16x128xf32, #tpu.memory_space<vmem>>, vector<2x128xf32>
    tpu.vector_store %arg31[%c14_374, %c0_375], %1348 {strides = array<i32>} : memref<16x128xf32, #tpu.memory_space<vmem>>, vector<2x128xf32>,
    %c0_376 = arith.constant 0 : index
    %c0_377 = arith.constant 0 : index
    %1350 = vector.load %arg31[%c0_376, %c0_377] : memref<16x128xf32, #tpu.memory_space<vmem>>, vector<16x128xf32>
    %c0_378 = arith.constant 0 : index
    %c0_379 = arith.constant 0 : index
    %1351 = vector.load %arg24[%c0_378, %c0_379] : memref<128x128xf32, #tpu.memory_space<vmem>>, vector<128x128xf32>
    %cst_380 = arith.constant dense<0.000000e+00> : vector<16x128xf32>
    %1352 = tpu.matmul %1350, %1351, %cst_380 {dimension_numbers = #tpu.dot_dimension_numbers<[1], [0], [0], [1], [0, 0, 1, 1], [], []>} : vector<16x128xf32>, vector<128x128xf32>, vector<16x128xf32> -> vector<16x128xf32>
    %c0_381 = arith.constant 0 : index
    %c0_382 = arith.constant 0 : index
    %1353 = vector.load %arg25[%c0_381, %c0_382] : memref<1x128xf32, #tpu.memory_space<vmem>>, vector<1x128xf32>
    %1354 = vector.broadcast %1353 : vector<1x128xf32> to vector<16x128xf32>
    %1355 = arith.addf %1352, %1354 : vector<16x128xf32>
    %cst_383 = arith.constant dense<0xFF800000> : vector<16xf32>
    %1356 = vector.multi_reduction <maximumf>, %1355, %cst_383 [1] : vector<16x128xf32> to vector<16xf32>
    %1357 = vector.shape_cast %1356 : vector<16xf32> to vector<16x1xf32>
    %1358 = vector.broadcast %1357 : vector<16x1xf32> to vector<16x128xf32>
    %1359 = arith.subf %1355, %1358 : vector<16x128xf32>
    %1360 = math.exp %1359 : vector<16x128xf32>
    %cst_384 = arith.constant dense<0.000000e+00> : vector<16xf32>
    %1361 = vector.multi_reduction <add>, %1360, %cst_384 [1] : vector<16x128xf32> to vector<16xf32>
    %1362 = vector.shape_cast %1361 : vector<16xf32> to vector<16x1xf32>
    %1363 = math.log %1362 : vector<16x1xf32>
    %1364 = arith.addf %1357, %1363 : vector<16x1xf32>
    %1365 = vector.broadcast %1364 : vector<16x1xf32> to vector<16x128xf32>
    %1366 = arith.subf %1355, %1365 : vector<16x128xf32>
    %c0_385 = arith.constant 0 : index
    %c0_386 = arith.constant 0 : index
    %1367 = vector.load %arg27[%c0_385, %c0_386] : memref<16x128xf32, #tpu.memory_space<vmem>>, vector<16x128xf32>
    tpu.vector_store %arg27[%c0_385, %c0_386], %1366 {strides = array<i32>} : memref<16x128xf32, #tpu.memory_space<vmem>>, vector<16x128xf32>,
    return
  }
  func.func @transform_0(%arg0: i32) -> (i32, i32) {
    %c0_i32 = arith.constant 0 : i32
    %c0_i32_0 = arith.constant 0 : i32
    %c0_i32_1 = arith.constant 0 : i32
    return %c0_i32, %c0_i32_0 : i32, i32
  }
  func.func @transform_1(%arg0: i32) -> (i32, i32) {
    %c0_i32 = arith.constant 0 : i32
    %c0_i32_0 = arith.constant 0 : i32
    %c0_i32_1 = arith.constant 0 : i32
    return %c0_i32, %c0_i32_0 : i32, i32
  }
  func.func @transform_2(%arg0: i32) -> (i32, i32) {
    %c0_i32 = arith.constant 0 : i32
    %c0_i32_0 = arith.constant 0 : i32
    %c0_i32_1 = arith.constant 0 : i32
    return %c0_i32, %c0_i32_0 : i32, i32
  }
  func.func @transform_3(%arg0: i32) -> (i32, i32) {
    %c0_i32 = arith.constant 0 : i32
    %c0_i32_0 = arith.constant 0 : i32
    %c0_i32_1 = arith.constant 0 : i32
    return %c0_i32, %c0_i32_0 : i32, i32
  }
  func.func @transform_4(%arg0: i32) -> (i32, i32) {
    %c0_i32 = arith.constant 0 : i32
    %c0_i32_0 = arith.constant 0 : i32
    %c0_i32_1 = arith.constant 0 : i32
    return %c0_i32, %c0_i32_0 : i32, i32
  }
  func.func @transform_5(%arg0: i32) -> (i32, i32) {
    %c0_i32 = arith.constant 0 : i32
    %c0_i32_0 = arith.constant 0 : i32
    %c0_i32_1 = arith.constant 0 : i32
    return %c0_i32, %c0_i32_0 : i32, i32
  }
  func.func @transform_6(%arg0: i32) -> (i32, i32) {
    %c0_i32 = arith.constant 0 : i32
    %c0_i32_0 = arith.constant 0 : i32
    %c0_i32_1 = arith.constant 0 : i32
    return %c0_i32, %c0_i32_0 : i32, i32
  }
  func.func @transform_7(%arg0: i32) -> (i32, i32) {
    %c0_i32 = arith.constant 0 : i32
    %c0_i32_0 = arith.constant 0 : i32
    %c0_i32_1 = arith.constant 0 : i32
    return %c0_i32, %c0_i32_0 : i32, i32
  }
  func.func @transform_8(%arg0: i32) -> (i32, i32) {
    %c0_i32 = arith.constant 0 : i32
    %c0_i32_0 = arith.constant 0 : i32
    %c0_i32_1 = arith.constant 0 : i32
    return %c0_i32, %c0_i32_0 : i32, i32
  }
  func.func @transform_9(%arg0: i32) -> (i32, i32) {
    %c0_i32 = arith.constant 0 : i32
    %c0_i32_0 = arith.constant 0 : i32
    %c0_i32_1 = arith.constant 0 : i32
    return %c0_i32, %c0_i32_0 : i32, i32
  }
  func.func @transform_10(%arg0: i32) -> (i32, i32) {
    %c0_i32 = arith.constant 0 : i32
    %c0_i32_0 = arith.constant 0 : i32
    %c0_i32_1 = arith.constant 0 : i32
    return %c0_i32, %c0_i32_0 : i32, i32
  }
  func.func @transform_11(%arg0: i32) -> (i32, i32) {
    %c0_i32 = arith.constant 0 : i32
    %c0_i32_0 = arith.constant 0 : i32
    %c0_i32_1 = arith.constant 0 : i32
    return %c0_i32, %c0_i32_0 : i32, i32
  }
  func.func @transform_12(%arg0: i32) -> (i32, i32) {
    %c0_i32 = arith.constant 0 : i32
    %c0_i32_0 = arith.constant 0 : i32
    %c0_i32_1 = arith.constant 0 : i32
    return %c0_i32, %c0_i32_0 : i32, i32
  }
  func.func @transform_13(%arg0: i32) -> (i32, i32) {
    %c0_i32 = arith.constant 0 : i32
    %c0_i32_0 = arith.constant 0 : i32
    %c0_i32_1 = arith.constant 0 : i32
    return %c0_i32, %c0_i32_0 : i32, i32
  }
  func.func @transform_14(%arg0: i32) -> (i32, i32) {
    %c0_i32 = arith.constant 0 : i32
    %c0_i32_0 = arith.constant 0 : i32
    %c0_i32_1 = arith.constant 0 : i32
    return %c0_i32, %c0_i32_0 : i32, i32
  }
  func.func @transform_15(%arg0: i32) -> (i32, i32) {
    %c0_i32 = arith.constant 0 : i32
    %c0_i32_0 = arith.constant 0 : i32
    %c0_i32_1 = arith.constant 0 : i32
    return %c0_i32, %c0_i32_0 : i32, i32
  }
  func.func @transform_16(%arg0: i32) -> (i32, i32) {
    %c0_i32 = arith.constant 0 : i32
    %c0_i32_0 = arith.constant 0 : i32
    %c0_i32_1 = arith.constant 0 : i32
    return %c0_i32, %c0_i32_0 : i32, i32
  }
  func.func @transform_17(%arg0: i32) -> (i32, i32) {
    %c0_i32 = arith.constant 0 : i32
    %c0_i32_0 = arith.constant 0 : i32
    %c0_i32_1 = arith.constant 0 : i32
    return %c0_i32, %c0_i32_0 : i32, i32
  }
  func.func @transform_18(%arg0: i32) -> (i32, i32) {
    %c0_i32 = arith.constant 0 : i32
    %c0_i32_0 = arith.constant 0 : i32
    %c0_i32_1 = arith.constant 0 : i32
    return %c0_i32, %c0_i32_0 : i32, i32
  }
  func.func @transform_19(%arg0: i32) -> (i32, i32) {
    %c0_i32 = arith.constant 0 : i32
    %c0_i32_0 = arith.constant 0 : i32
    %c0_i32_1 = arith.constant 0 : i32
    return %c0_i32, %c0_i32_0 : i32, i32
  }
  func.func @transform_20(%arg0: i32) -> (i32, i32) {
    %c0_i32 = arith.constant 0 : i32
    %c0_i32_0 = arith.constant 0 : i32
    %c0_i32_1 = arith.constant 0 : i32
    return %c0_i32, %c0_i32_0 : i32, i32
  }
  func.func @transform_21(%arg0: i32) -> (i32, i32) {
    %c0_i32 = arith.constant 0 : i32
    %c0_i32_0 = arith.constant 0 : i32
    %c0_i32_1 = arith.constant 0 : i32
    return %c0_i32, %c0_i32_0 : i32, i32
  }
  func.func @transform_22(%arg0: i32) -> (i32, i32) {
    %c0_i32 = arith.constant 0 : i32
    %c0_i32_0 = arith.constant 0 : i32
    %c0_i32_1 = arith.constant 0 : i32
    return %c0_i32, %c0_i32_0 : i32, i32
  }
  func.func @transform_23(%arg0: i32) -> (i32, i32) {
    %c0_i32 = arith.constant 0 : i32
    %c0_i32_0 = arith.constant 0 : i32
    %c0_i32_1 = arith.constant 0 : i32
    return %c0_i32, %c0_i32_0 : i32, i32
  }
  func.func @transform_24(%arg0: i32) -> (i32, i32) {
    %c0_i32 = arith.constant 0 : i32
    %c0_i32_0 = arith.constant 0 : i32
    %c0_i32_1 = arith.constant 0 : i32
    return %c0_i32, %c0_i32_0 : i32, i32
  }
  func.func @transform_25(%arg0: i32) -> (i32, i32) {
    %c0_i32 = arith.constant 0 : i32
    %c0_i32_0 = arith.constant 0 : i32
    %c0_i32_1 = arith.constant 0 : i32
    return %c0_i32, %c0_i32_0 : i32, i32
  }
  func.func @transform_26(%arg0: i32) -> (i32, i32) {
    %c0_i32 = arith.constant 0 : i32
    %c0_i32_0 = arith.constant 0 : i32
    %c0_i32_1 = arith.constant 0 : i32
    return %c0_i32, %c0_i32_0 : i32, i32
  }
}

</mosaic_0001>

<bundles_post_ra>
// kernel: model_forward.1
= control target key start
LH: loop header
LB: loop body
LE: loop exit
PB: predicated region body
PF: predicated region fallthrough
CT: control target
= control target key end

     0   :  { %s14568_s0 = inlined_call_operand.vmem [shape: s32[16,1], index: 0, kind: input, shape index: {}]   ;;  %s14569_s1 = inlined_call_operand.vmem [shape: s32[16,1], index: 1, kind: input, shape index: {}]   ;;  %s14570_s2 = inlined_call_operand.vmem [shape: s32[2,1], index: 2, kind: input, shape index: {}]   ;;  %s14571_s3 = inlined_call_operand.hbm [shape: f32[16,16], index: 3, kind: input, shape index: {}]   ;;  %s14572_s4 = inlined_call_operand.hbm [shape: f32[16,384], index: 4, kind: input, shape index: {}]   ;;  %s14573_s5 = inlined_call_operand.hbm [shape: f32[128,384], index: 5, kind: input, shape index: {}]   ;;  %s14574_s6 = inlined_call_operand.vmem [shape: f32[1,384], index: 6, kind: input, shape index: {}]   ;;  %s14575_s7 = inlined_call_operand.vmem [shape: f32[1,128], index: 7, kind: input, shape index: {}]   ;;  %s14576_s8 = inlined_call_operand.hbm [shape: f32[128,384], index: 8, kind: input, shape index: {}]   ;;  %s14577_s9 = inlined_call_operand.hbm [shape: f32[128,384], index: 9, kind: input, shape index: {}]   ;;  %s14578_s10 = inlined_call_operand.hbm [shape: f32[1,384], index: 10, kind: input, shape index: {}]   ;;  %s14579_s11 = inlined_call_operand.hbm [shape: f32[1,128], index: 11, kind: input, shape index: {}]   ;;  %s14580_s12 = inlined_call_operand.vmem [shape: f32[128,128], index: 12, kind: input, shape index: {}]   ;;  %s14581_s13 = inlined_call_operand.hbm [shape: f32[1,128], index: 13, kind: input, shape index: {}]   ;;  %s14582_s14 = inlined_call_operand.hbm [shape: f32[16,16], index: 14, kind: input, shape index: {}]   ;;  %s14583_s15 = inlined_call_operand.hbm [shape: f32[16,384], index: 15, kind: input, shape index: {}]   ;;  %s14584_s16 = inlined_call_operand.hbm [shape: f32[128,384], index: 16, kind: input, shape index: {}]   ;;  %s14585_s17 = inlined_call_operand.vmem [shape: f32[1,384], index: 17, kind: input, shape index: {}]   ;;  %s14586_s18 = inlined_call_operand.vmem [shape: f32[1,128], index: 18, kind: input, shape index: {}]   ;;  %s14587_s19 = inlined_call_operand.hbm [shape: f32[128,384], index: 19, kind: input, shape index: {}]   ;;  %s14588_s20 = inlined_call_operand.hbm [shape: f32[128,384], index: 20, kind: input, shape index: {}]   ;;  %s14589_s21 = inlined_call_operand.vmem [shape: f32[1,384], index: 21, kind: input, shape index: {}]   ;;  %s14590_s22 = inlined_call_operand.vmem [shape: f32[1,128], index: 22, kind: input, shape index: {}]   ;;  %s14591_s23 = inlined_call_operand.hbm [shape: f32[128,128], index: 23, kind: input, shape index: {}]   ;;  %s14592_s24 = inlined_call_operand.vmem [shape: f32[1,128], index: 24, kind: input, shape index: {}]   ;;  %s14593_s25 = inlined_call_operand.vmem [shape: f32[16,128], index: 25, kind: output, shape index: {0}]   ;;  %s14594_s26 = inlined_call_operand.vmem [shape: f32[16,128], index: 26, kind: output, shape index: {1}]  }
   0x1   :  { %14606 = sst [smem:[#allocation36_spill]] %s14568_s0 }
   0x2   :  { %14607 = sst [smem:[#allocation37_spill]] %s14569_s1 }
   0x3   :  { %14608 = sst [smem:[#allocation38_spill]] %s14570_s2 }
   0x4   :  { %14609 = sst [smem:[#allocation39_spill]] %s14571_s3 }
   0x5   :  { %14610 = sst [smem:[#allocation40_spill]] %s14572_s4 }
   0x6   :  { %14611 = sst [smem:[#allocation41_spill]] %s14573_s5 }
   0x7   :  { %14612 = sst [smem:[#allocation42_spill]] %s14574_s6 }
   0x8   :  { %14613 = sst [smem:[#allocation43_spill]] %s14575_s7 }
   0x9   :  { %14614 = sst [smem:[#allocation44_spill]] %s14576_s8 }
   0xa   :  { %14615 = sst [smem:[#allocation45_spill]] %s14577_s9 }
   0xb   :  { %14616 = sst [smem:[#allocation46_spill]] %s14578_s10 }
   0xc   :  { %14617 = sst [smem:[#allocation47_spill]] %s14590_s22 }
   0xd   :  { %14618 = sst [smem:[#allocation48_spill]] %s14592_s24 }
   0xe   :  { %14619 = sst [smem:[#allocation49_spill]] %s14594_s26 }
   0xf   :  { %32 = vsyncpa [#allocation7], 0 }
  0x10   :  { %33 = vsyncpa [#allocation9], 0 }
  0x11   :  { %34 = vsyncpa [#allocation12], 0 }
  0x12   :  { %35 = vsyncpa [#allocation15], 0 }
  0x13   :  { %36 = vsyncpa [#allocation18], 0 }
  0x14   :  { %37 = vsyncpa [#allocation21], 0 }
  0x15   :  { %38 = vsyncpa [#allocation24], 0 }
  0x16   :  { %39 = vsyncpa [#allocation27], 0  ;;  %s12290_s27 = smov [#allocation8]   ;;  %s14620_s8 = sld [smem:[#allocation40_spill]] }
  0x17   :  { %s63_s3 = sshll.u32 %s12290_s27, 4  ;;  %s64_s3 = int_to_ptr.vmem [resolvable:$true] %s63_s3 }
  0x1c   :  { %s11966_s4 = scalar_lea.hbm %s14620_s8, 768 }
  0x1d   :  { %p11967_p0 = scmp.ne.s32.totalorder %s14620_s8, %s11966_s4  ;;  %p11970_p1 = scmp.lt.u32.totalorder %s11966_s4, %s14620_s8 }
  0x1f   :  { %p11972_p2 = pnand %p11970_p1, %p11967_p0 }
  0x21   :  { %11975 = shalt.err (!%p11972_p2)
}
  0x22   :  { %s11976_s2 = scalar_lea.vmem %s64_s3, 768  ;;  %p11981_p4 = scmp.lt.s32.totalorder %s64_s3, %s64_s3 }
  0x23   :  { %p11977_p3 = scmp.ne.s32.totalorder %s64_s3, %s11976_s2  ;;  %p11982_p5 = scmp.lt.s32.totalorder %s11976_s2, %s11976_s2 }
  0x25   :  { %p11983_p6 = por %p11982_p5, %p11981_p4 }
  0x27   :  { %p11984_p7 = pnand %p11983_p6, %p11977_p3 }
  0x29   :  { %11987 = shalt.err (!%p11984_p7)
}
  0x2a   :  { %s12291_s5 = smov 384   ;;  %s12292_s10 = smov 24  }
  0x2b   :  { %69 = dma.hbm_to_vmem [thread:$0]  %s14620_s8, 768, %s64_s3, [#allocation9], %s12291_s5, %s12291_s5, %s12292_s10  }
  0x2c   :  { %s12293_s27 = smov [#allocation11]   ;;  %s12294_s28 = smov [#allocation14]  }
  0x2d   :  { %s91_s7 = sshll.u32 %s12293_s27, 4  ;;  %s116_s4 = sshll.u32 %s12294_s28, 4  ;;  %s92_s7 = int_to_ptr.vmem [resolvable:$true] %s91_s7  ;;  %s117_s4 = int_to_ptr.vmem [resolvable:$true] %s116_s4 }
  0x2e   :  { %s14621_s9 = sld [smem:[#allocation44_spill]] }
  0x34   :  { %s11988_s30 = scalar_lea.hbm %s14621_s9, 6144 }
  0x35   :  { %p11989_p8 = scmp.ne.s32.totalorder %s14621_s9, %s11988_s30  ;;  %p11992_p9 = scmp.lt.u32.totalorder %s11988_s30, %s14621_s9 }
  0x37   :  { %p11994_p10 = pnand %p11992_p9, %p11989_p8 }
  0x39   :  { %11997 = shalt.err (!%p11994_p10)
}
  0x3a   :  { %s11998_s3 = scalar_lea.vmem %s92_s7, 6144  ;;  %p12003_p12 = scmp.lt.s32.totalorder %s92_s7, %s92_s7 }
  0x3b   :  { %p11999_p11 = scmp.ne.s32.totalorder %s92_s7, %s11998_s3  ;;  %p12004_p13 = scmp.lt.s32.totalorder %s11998_s3, %s11998_s3 }
  0x3d   :  { %p12005_p0 = por %p12004_p13, %p12003_p12 }
  0x3f   :  { %p12006_p1 = pnand %p12005_p0, %p11999_p11 }
  0x41   :  { %12009 = shalt.err (!%p12006_p1)
}
  0x42   :  { %97 = dma.hbm_to_vmem [thread:$0]  %s14621_s9, 6144, %s92_s7, [#allocation12], %s12291_s5, %s12291_s5, %s12292_s10  }
  0x43   :  { %s14622_s24 = sld [smem:[#allocation46_spill]] }
  0x49   :  { %s12010_s1 = scalar_lea.hbm %s14622_s24, 48 }
  0x4a   :  { %p12011_p2 = scmp.ne.s32.totalorder %s14622_s24, %s12010_s1  ;;  %p12014_p3 = scmp.lt.u32.totalorder %s12010_s1, %s14622_s24 }
  0x4c   :  { %p12016_p4 = pnand %p12014_p3, %p12011_p2 }
  0x4e   :  { %12019 = shalt.err (!%p12016_p4)
}
  0x4f   :  { %s12020_s30 = scalar_lea.vmem %s117_s4, 48  ;;  %s12024_s2 = scalar_lea.vmem %s117_s4, 64 }
  0x50   :  { %p12021_p5 = scmp.ne.s32.totalorder %s117_s4, %s12020_s30  ;;  %p12025_p6 = scmp.lt.s32.totalorder %s117_s4, %s117_s4 }
  0x51   :  { %p12026_p7 = scmp.lt.s32.totalorder %s12024_s2, %s12020_s30 }
  0x53   :  { %p12027_p8 = por %p12026_p7, %p12025_p6 }
  0x55   :  { %p12028_p9 = pnand %p12027_p8, %p12021_p5 }
  0x57   :  { %12031 = shalt.err (!%p12028_p9)
}
  0x58   :  { %119 = dma.hbm_to_vmem [thread:$0]  %s14622_s24, 48, %s117_s4, [#allocation15]  }
  0x59   :  { %s12295_s3 = smov [#allocation17]   ;;  %s12296_s6 = smov [#allocation20]  }
  0x5a   :  { %s138_s8 = sshll.u32 %s12295_s3, 4  ;;  %s159_s26 = sshll.u32 %s12296_s6, 4  ;;  %s139_s8 = int_to_ptr.vmem [resolvable:$true] %s138_s8  ;;  %s160_s26 = int_to_ptr.vmem [resolvable:$true] %s159_s26 }
  0x5b   :  { %s12032_s27 = scalar_lea.hbm %s14581_s13, 16 }
  0x5c   :  { %p12033_p10 = scmp.ne.s32.totalorder %s14581_s13, %s12032_s27  ;;  %p12036_p11 = scmp.lt.u32.totalorder %s12032_s27, %s14581_s13 }
  0x5e   :  { %p12038_p12 = pnand %p12036_p11, %p12033_p10 }
  0x60   :  { %12041 = shalt.err (!%p12038_p12)
}
  0x61   :  { %s12042_s4 = scalar_lea.vmem %s139_s8, 16  ;;  %s12046_s24 = scalar_lea.vmem %s139_s8, 32 }
  0x62   :  { %p12043_p13 = scmp.ne.s32.totalorder %s139_s8, %s12042_s4  ;;  %p12047_p0 = scmp.lt.s32.totalorder %s139_s8, %s139_s8 }
  0x63   :  { %p12048_p1 = scmp.lt.s32.totalorder %s12046_s24, %s12042_s4 }
  0x65   :  { %p12049_p2 = por %p12048_p1, %p12047_p0 }
  0x67   :  { %p12050_p3 = pnand %p12049_p2, %p12043_p13 }
  0x69   :  { %12053 = shalt.err (!%p12050_p3)
}
  0x6a   :  { %141 = dma.hbm_to_vmem [thread:$0]  %s14581_s13, 16, %s139_s8, [#allocation18]  }
  0x6b   :  { %s12054_s6 = scalar_lea.hbm %s14583_s15, 768 }
  0x6c   :  { %p12055_p4 = scmp.ne.s32.totalorder %s14583_s15, %s12054_s6  ;;  %p12058_p5 = scmp.lt.u32.totalorder %s12054_s6, %s14583_s15 }
  0x6e   :  { %p12060_p6 = pnand %p12058_p5, %p12055_p4 }
  0x70   :  { %12063 = shalt.err (!%p12060_p6)
}
  0x71   :  { %s12064_s29 = scalar_lea.vmem %s160_s26, 768  ;;  %p12069_p8 = scmp.lt.s32.totalorder %s160_s26, %s160_s26 }
  0x72   :  { %p12065_p7 = scmp.ne.s32.totalorder %s160_s26, %s12064_s29  ;;  %p12070_p9 = scmp.lt.s32.totalorder %s12064_s29, %s12064_s29 }
  0x74   :  { %p12071_p10 = por %p12070_p9, %p12069_p8 }
  0x76   :  { %p12072_p11 = pnand %p12071_p10, %p12065_p7 }
  0x78   :  { %12075 = shalt.err (!%p12072_p11)
}
  0x79   :  { %165 = dma.hbm_to_vmem [thread:$0]  %s14583_s15, 768, %s160_s26, [#allocation21], %s12291_s5, %s12291_s5, %s12292_s10  }
  0x7a   :  { %s12297_s0 = smov [#allocation23]   ;;  %s12298_s4 = smov [#allocation6]  }
  0x7b   :  { %s187_s30 = sshll.u32 %s12297_s0, 4  ;;  %s51_s24 = sshll.u32 %s12298_s4, 4  ;;  %s188_s30 = int_to_ptr.vmem [resolvable:$true] %s187_s30  ;;  %s52_s24 = int_to_ptr.vmem [resolvable:$true] %s51_s24 }
  0x7c   :  { %s12076_s9 = scalar_lea.hbm %s14587_s19, 6144 }
  0x7d   :  { %p12077_p12 = scmp.ne.s32.totalorder %s14587_s19, %s12076_s9  ;;  %p12080_p13 = scmp.lt.u32.totalorder %s12076_s9, %s14587_s19 }
  0x7f   :  { %p12082_p0 = pnand %p12080_p13, %p12077_p12 }
  0x81   :  { %12085 = shalt.err (!%p12082_p0)
}
  0x82   :  { %s12086_s15 = scalar_lea.vmem %s188_s30, 6144  ;;  %p12091_p2 = scmp.lt.s32.totalorder %s188_s30, %s188_s30 }
  0x83   :  { %p12087_p1 = scmp.ne.s32.totalorder %s188_s30, %s12086_s15  ;;  %p12092_p3 = scmp.lt.s32.totalorder %s12086_s15, %s12086_s15 }
  0x85   :  { %p12093_p4 = por %p12092_p3, %p12091_p2 }
  0x87   :  { %p12094_p5 = pnand %p12093_p4, %p12087_p1 }
  0x89   :  { %12097 = shalt.err (!%p12094_p5)
}
  0x8a   :  { %193 = dma.hbm_to_vmem [thread:$0]  %s14587_s19, 6144, %s188_s30, [#allocation24], %s12291_s5, %s12291_s5, %s12292_s10  }
  0x8b   :  { %s14623_s13 = sld [smem:[#allocation39_spill]] }
  0x91   :  { %s12098_s8 = scalar_lea.hbm %s14623_s13, 256 }
  0x92   :  { %p12099_p6 = scmp.ne.s32.totalorder %s14623_s13, %s12098_s8  ;;  %p12102_p7 = scmp.lt.u32.totalorder %s12098_s8, %s14623_s13 }
  0x94   :  { %p12104_p8 = pnand %p12102_p7, %p12099_p6 }
  0x96   :  { %12107 = shalt.err (!%p12104_p8)
}
  0x97   :  { %s12108_s9 = scalar_lea.vmem %s52_s24, 256  ;;  %p12113_p10 = scmp.lt.s32.totalorder %s52_s24, %s52_s24 }
  0x98   :  { %p12109_p9 = scmp.ne.s32.totalorder %s52_s24, %s12108_s9  ;;  %p12114_p11 = scmp.lt.s32.totalorder %s12108_s9, %s12108_s9 }
  0x9a   :  { %p12115_p12 = por %p12114_p11, %p12113_p10 }
  0x9c   :  { %p12116_p13 = pnand %p12115_p12, %p12109_p9 }
  0x9e   :  { %12119 = shalt.err (!%p12116_p13)
}
  0x9f   :  { %s12299_s19 = smov 128   ;;  %s12300_s30 = smov 8  }
  0xa0   :  { %57 = dma.hbm_to_vmem [thread:$0]  %s14623_s13, 256, %s52_s24, [#allocation7], %s12299_s19, %s12299_s19, %s12300_s30  }
  0xa1   :  { %s12301_s22 = smov [#allocation10]   ;;  %s12302_s15 = smov [#allocation13]  }
  0xa2   :  { %s75_s1 = sshll.u32 %s12301_s22, 4  ;;  %s103_s26 = sshll.u32 %s12302_s15, 4  ;;  %s76_s1 = int_to_ptr.vmem [resolvable:$true] %s75_s1  ;;  %s104_s26 = int_to_ptr.vmem [resolvable:$true] %s103_s26 }
  0xa3   :  { %s14624_s29 = sld [smem:[#allocation41_spill]] }
  0xa9   :  { %s12120_s8 = scalar_lea.hbm %s14624_s29, 6144 }
  0xaa   :  { %p12121_p0 = scmp.ne.s32.totalorder %s14624_s29, %s12120_s8  ;;  %p12124_p1 = scmp.lt.u32.totalorder %s12120_s8, %s14624_s29 }
  0xac   :  { %p12126_p2 = pnand %p12124_p1, %p12121_p0 }
  0xae   :  { %12129 = shalt.err (!%p12126_p2)
}
  0xaf   :  { %s12130_s24 = scalar_lea.vmem %s76_s1, 6144  ;;  %p12135_p4 = scmp.lt.s32.totalorder %s76_s1, %s76_s1 }
  0xb0   :  { %p12131_p3 = scmp.ne.s32.totalorder %s76_s1, %s12130_s24  ;;  %p12136_p5 = scmp.lt.s32.totalorder %s12130_s24, %s12130_s24 }
  0xb2   :  { %p12137_p6 = por %p12136_p5, %p12135_p4 }
  0xb4   :  { %p12138_p7 = pnand %p12137_p6, %p12131_p3 }
  0xb6   :  { %12141 = shalt.err (!%p12138_p7)
}
  0xb7   :  { %81 = dma.hbm_to_vmem [thread:$0]  %s14624_s29, 6144, %s76_s1, [#allocation9], %s12291_s5, %s12291_s5, %s12292_s10  }
  0xb8   :  { %s14625_s22 = sld [smem:[#allocation45_spill]] }
  0xbe   :  { %s12142_s15 = scalar_lea.hbm %s14625_s22, 6144 }
  0xbf   :  { %p12143_p8 = scmp.ne.s32.totalorder %s14625_s22, %s12142_s15  ;;  %p12146_p9 = scmp.lt.u32.totalorder %s12142_s15, %s14625_s22 }
  0xc1   :  { %p12148_p10 = pnand %p12146_p9, %p12143_p8 }
  0xc3   :  { %12151 = shalt.err (!%p12148_p10)
}
  0xc4   :  { %s12152_s4 = scalar_lea.vmem %s104_s26, 6144  ;;  %p12157_p12 = scmp.lt.s32.totalorder %s104_s26, %s104_s26 }
  0xc5   :  { %p12153_p11 = scmp.ne.s32.totalorder %s104_s26, %s12152_s4  ;;  %p12158_p13 = scmp.lt.s32.totalorder %s12152_s4, %s12152_s4 }
  0xc7   :  { %p12159_p0 = por %p12158_p13, %p12157_p12 }
  0xc9   :  { %p12160_p1 = pnand %p12159_p0, %p12153_p11 }
  0xcb   :  { %12163 = shalt.err (!%p12160_p1)
}
  0xcc   :  { %109 = dma.hbm_to_vmem [thread:$0]  %s14625_s22, 6144, %s104_s26, [#allocation12], %s12291_s5, %s12291_s5, %s12292_s10  }
  0xcd   :  { %s12303_s2 = smov [#allocation16]   ;;  %s12304_s24 = smov [#allocation19]  }
  0xce   :  { %s126_s7 = sshll.u32 %s12303_s2, 4  ;;  %s147_s13 = sshll.u32 %s12304_s24, 4  ;;  %s127_s7 = int_to_ptr.vmem [resolvable:$true] %s126_s7  ;;  %s148_s13 = int_to_ptr.vmem [resolvable:$true] %s147_s13 }
  0xcf   :  { %s12164_s6 = scalar_lea.hbm %s14579_s11, 16 }
  0xd0   :  { %p12165_p2 = scmp.ne.s32.totalorder %s14579_s11, %s12164_s6  ;;  %p12168_p3 = scmp.lt.u32.totalorder %s12164_s6, %s14579_s11 }
  0xd2   :  { %p12170_p4 = pnand %p12168_p3, %p12165_p2 }
  0xd4   :  { %12173 = shalt.err (!%p12170_p4)
}
  0xd5   :  { %s12174_s26 = scalar_lea.vmem %s127_s7, 16  ;;  %s12178_s22 = scalar_lea.vmem %s127_s7, 32 }
  0xd6   :  { %p12175_p5 = scmp.ne.s32.totalorder %s127_s7, %s12174_s26  ;;  %p12179_p6 = scmp.lt.s32.totalorder %s127_s7, %s127_s7 }
  0xd7   :  { %p12180_p7 = scmp.lt.s32.totalorder %s12178_s22, %s12174_s26 }
  0xd9   :  { %p12181_p8 = por %p12180_p7, %p12179_p6 }
  0xdb   :  { %p12182_p9 = pnand %p12181_p8, %p12175_p5 }
  0xdd   :  { %12185 = shalt.err (!%p12182_p9)
}
  0xde   :  { %129 = dma.hbm_to_vmem [thread:$0]  %s14579_s11, 16, %s127_s7, [#allocation15]  }
  0xdf   :  { %s12186_s2 = scalar_lea.hbm %s14582_s14, 256 }
  0xe0   :  { %p12187_p10 = scmp.ne.s32.totalorder %s14582_s14, %s12186_s2  ;;  %p12190_p11 = scmp.lt.u32.totalorder %s12186_s2, %s14582_s14 }
  0xe2   :  { %p12192_p12 = pnand %p12190_p11, %p12187_p10 }
  0xe4   :  { %12195 = shalt.err (!%p12192_p12)
}
  0xe5   :  { %s12196_s15 = scalar_lea.vmem %s148_s13, 256  ;;  %p12201_p0 = scmp.lt.s32.totalorder %s148_s13, %s148_s13 }
  0xe6   :  { %p12197_p13 = scmp.ne.s32.totalorder %s148_s13, %s12196_s15  ;;  %p12202_p1 = scmp.lt.s32.totalorder %s12196_s15, %s12196_s15 }
  0xe8   :  { %p12203_p2 = por %p12202_p1, %p12201_p0 }
  0xea   :  { %p12204_p3 = pnand %p12203_p2, %p12197_p13 }
  0xec   :  { %12207 = shalt.err (!%p12204_p3)
}
  0xed   :  { %153 = dma.hbm_to_vmem [thread:$0]  %s14582_s14, 256, %s148_s13, [#allocation18], %s12299_s19, %s12299_s19, %s12300_s30  }
  0xee   :  { %s12305_s27 = smov [#allocation22]   ;;  %s12306_s8 = smov [#allocation25]  }
  0xef   :  { %s171_s28 = sshll.u32 %s12305_s27, 4  ;;  %s199_s26 = sshll.u32 %s12306_s8, 4  ;;  %s172_s28 = int_to_ptr.vmem [resolvable:$true] %s171_s28  ;;  %s200_s26 = int_to_ptr.vmem [resolvable:$true] %s199_s26 }
  0xf0   :  { %s12208_s4 = scalar_lea.hbm %s14584_s16, 6144 }
  0xf1   :  { %p12209_p4 = scmp.ne.s32.totalorder %s14584_s16, %s12208_s4  ;;  %p12212_p5 = scmp.lt.u32.totalorder %s12208_s4, %s14584_s16 }
  0xf3   :  { %p12214_p6 = pnand %p12212_p5, %p12209_p4 }
  0xf5   :  { %12217 = shalt.err (!%p12214_p6)
}
  0xf6   :  { %s12218_s14 = scalar_lea.vmem %s172_s28, 6144  ;;  %p12223_p8 = scmp.lt.s32.totalorder %s172_s28, %s172_s28 }
  0xf7   :  { %p12219_p7 = scmp.ne.s32.totalorder %s172_s28, %s12218_s14  ;;  %p12224_p9 = scmp.lt.s32.totalorder %s12218_s14, %s12218_s14 }
  0xf9   :  { %p12225_p10 = por %p12224_p9, %p12223_p8 }
  0xfb   :  { %p12226_p11 = pnand %p12225_p10, %p12219_p7 }
  0xfd   :  { %12229 = shalt.err (!%p12226_p11)
}
  0xfe   :  { %177 = dma.hbm_to_vmem [thread:$0]  %s14584_s16, 6144, %s172_s28, [#allocation21], %s12291_s5, %s12291_s5, %s12292_s10  }
  0xff   :  { %s12230_s15 = scalar_lea.hbm %s14588_s20, 6144 }
 0x100   :  { %p12231_p12 = scmp.ne.s32.totalorder %s14588_s20, %s12230_s15  ;;  %p12234_p13 = scmp.lt.u32.totalorder %s12230_s15, %s14588_s20 }
 0x102   :  { %p12236_p0 = pnand %p12234_p13, %p12231_p12 }
 0x104   :  { %12239 = shalt.err (!%p12236_p0)
}
 0x105   :  { %s12240_s22 = scalar_lea.vmem %s200_s26, 6144  ;;  %p12245_p2 = scmp.lt.s32.totalorder %s200_s26, %s200_s26 }
 0x106   :  { %p12241_p1 = scmp.ne.s32.totalorder %s200_s26, %s12240_s22  ;;  %p12246_p3 = scmp.lt.s32.totalorder %s12240_s22, %s12240_s22 }
 0x108   :  { %p12247_p4 = por %p12246_p3, %p12245_p2 }
 0x10a   :  { %p12248_p5 = pnand %p12247_p4, %p12241_p1 }
 0x10c   :  { %12251 = shalt.err (!%p12248_p5)
}
 0x10d   :  { %205 = dma.hbm_to_vmem [thread:$0]  %s14588_s20, 6144, %s200_s26, [#allocation24], %s12291_s5, %s12291_s5, %s12292_s10  }
 0x10e   :  { %s12307_s0 = smov [#allocation26]   ;;  %s12252_s2 = scalar_lea.hbm %s14591_s23, 2048 }
 0x10f   :  { %s215_s4 = sshll.u32 %s12307_s0, 4  ;;  %p12253_p6 = scmp.ne.s32.totalorder %s14591_s23, %s12252_s2  ;;  %s216_s4 = int_to_ptr.vmem [resolvable:$true] %s215_s4 }
 0x110   :  { %p12256_p7 = scmp.lt.u32.totalorder %s12252_s2, %s14591_s23 }
 0x112   :  { %p12258_p8 = pnand %p12256_p7, %p12253_p6 }
 0x114   :  { %12261 = shalt.err (!%p12258_p8)
}
 0x115   :  { %s12262_s3 = scalar_lea.vmem %s216_s4, 2048  ;;  %p12267_p10 = scmp.lt.s32.totalorder %s216_s4, %s216_s4 }
 0x116   :  { %p12263_p9 = scmp.ne.s32.totalorder %s216_s4, %s12262_s3  ;;  %p12268_p11 = scmp.lt.s32.totalorder %s12262_s3, %s12262_s3 }
 0x118   :  { %p12269_p12 = por %p12268_p11, %p12267_p10 }
 0x11a   :  { %p12270_p13 = pnand %p12269_p12, %p12263_p9 }
 0x11c   :  { %12273 = shalt.err (!%p12270_p13)
}
 0x11d   :  { %221 = dma.hbm_to_vmem [thread:$0]  %s14591_s23, 2048, %s216_s4, [#allocation27], %s12299_s19, %s12299_s19, %s12300_s30  }
 0x11e   :  { %12274 = dma.done.wait [#allocation7], 256  }
 0x11f   :  { %12275 = vsyncadd [#allocation7], 4294967040 }
 0x120   :  { %12276 = dma.done.wait [#allocation9], 6912  }
 0x121   :  { %12277 = vsyncadd [#allocation9], 4294960384 }
 0x122   :  { %12278 = dma.done.wait [#allocation12], 12288  }
 0x123   :  { %12279 = vsyncadd [#allocation12], 4294955008 }
 0x124   :  { %12280 = dma.done.wait [#allocation15], 64  }
 0x125   :  { %12281 = vsyncadd [#allocation15], 4294967232 }
 0x126   :  { %12282 = dma.done.wait [#allocation18], 272  }
 0x127   :  { %12283 = vsyncadd [#allocation18], 4294967024 }
 0x128   :  { %12284 = dma.done.wait [#allocation21], 6912  }
 0x129   :  { %12285 = vsyncadd [#allocation21], 4294960384 }
 0x12a   :  { %12286 = dma.done.wait [#allocation24], 12288  }
 0x12b   :  { %12287 = vsyncadd [#allocation24], 4294955008 }
 0x12c   :  { %12288 = dma.done.wait [#allocation27], 2048  }
 0x12d   :  { %12289 = vsyncadd [#allocation27], 4294965248  ;;  %v12308_v0 = vmov 0   ;;  %s14626_s19 = sld [smem:[#allocation36_spill]]  ;;  %s14627_s6 = sld [smem:[#allocation38_spill]]  ;;  %v283_v3 = vld [vmem:[#allocation6] sm:$0xff]  ;;  %v267_v17 = vlaneseq }
 0x12e   :  { %11624 = vset.pattern.permute.xlu0 %v12308_v0  ;;  %11625 = vset.pattern.permute.xlu1 %v12308_v0  ;;  %v284_v4 = vld [vmem:[#allocation6 + $0x8] sm:$0xff]  ;;  %s14628_s8 = sld [smem:[#allocation37_spill]]  ;;  %v368_v11 = vld [vmem:[#allocation8 + $0x8] sm:$0xff]  ;;  %v371_v12 = vld [vmem:[#allocation8 + $0x20] sm:$0xff]  ;;  %vm285_vm3 = vcmask 130048   ;;  %v12309_v22 = vmov 0.0  }
 0x12f   :  { %v9594_v6 = vpack.c.bf16 %v284_v4, %v283_v3  ;;  %v9598_v13 = vpack.c.bf16 %v371_v12, %v368_v11  ;;  %v369_v14 = vld [vmem:[#allocation8 + $0x10] sm:$0xff]  ;;  %v372_v15 = vld [vmem:[#allocation8 + $0x28] sm:$0xff]  ;;  %v12671_v18 = vand.u32 127, %v267_v17  ;;  %v367_v20 = vld [vmem:[#allocation8] sm:$0xff]  ;;  %v12310_v30 = vmov 0.0|0.0   ;;  %s14629_s4 = sld [smem:[#allocation42_spill]] }
 0x130   :  { %v9602_v16 = vpack.c.bf16 %v372_v15, %v369_v14  ;;  %v370_v21 = vld [vmem:[#allocation8 + $0x18] sm:$0xff]  ;;  %v558_v28 = vld [vmem:[#allocation10 + $0x20] sm:$0xff]  ;;  %v557_v38 = vld [vmem:[#allocation10 + $0x18] sm:$0xff]  ;;  %vm12311_vm11 = vmmov 0   ;;  %s14630_s2 = sld [smem:[#allocation43_spill]]  ;;  %s14631_s27 = sld [smem:[#allocation47_spill]] }
 0x131   :  { %9595 = vmatprep.subr.bf16.mxu1 %v9594_v6  ;;  %v9600_v25 = vpack.c.bf16 %v370_v21, %v367_v20  ;;  %v555_v27 = vld [vmem:[#allocation10 + $0x8] sm:$0xff]  ;;  %v554_v37 = vld [vmem:[#allocation10] sm:$0xff]  ;;  %v561_v39 = vld [vmem:[#allocation10 + $0x38] sm:$0xff]  ;;  %s14632_s0 = sld [smem:[#allocation48_spill]]  ;;  %s14633_s24 = sld [smem:[#allocation49_spill]] }
 0x132   :  { %9597 = vmatpush3.bf16.msra.mxu1 %v9594_v6  ;;  %9603 = vmatprep.subr.bf16.mxu0 %v9602_v16  ;;  %v12680_v29 = vpack.c.bf16 %v558_v28, %v555_v27  ;;  %v564_v40 = vld [vmem:[#allocation10 + $0x50] sm:$0xff]  ;;  %v559_v42 = vld [vmem:[#allocation10 + $0x28] sm:$0xff]  ;;  %v12697_v43 = vpack.c.bf16 %v557_v38, %v554_v37  ;;  %v570_v50 = vld [vmem:[#allocation10 + $0x80] sm:$0xff] }
 0x133   :  { %v269_v1 = vld [vmem:[%s14626_s19] sm:$0xff]  ;;  %v270_v5 = vld [vmem:[%s14626_s19 + $0x8] sm:$0xff]  ;;  %9599 = vmatprep.subr.bf16.mxu1 %v9598_v13  ;;  %9605 = vmatpush3.bf16.msra.mxu0 %v9602_v16  ;;  %v556_v41 = vld [vmem:[#allocation10 + $0x10] sm:$0xff]  ;;  %v12699_v45 = vpack.c.bf16 %v564_v40, %v561_v39 }
 0x134   :  { %v12656_v2 = vld [vmem:[%s14627_s6] sm:$0x3]  ;;  %272 = vperm.xlu0 %11624, %v269_v1   ;;  %9638 = vmatprep.subr.bf16.mxu0 %v12310_v30  ;;  %v3944_v36 = vld [vmem:[%s14628_s8 + $0x8] sm:$0xff]  ;;  %v560_v46 = vld [vmem:[#allocation10 + $0x30] sm:$0xff]  ;;  %v12701_v51 = vpack.c.bf16 %v559_v42, %v556_v41 }
 0x135   :  { %vm1151_vm0 = vcmp.gt.s32.totalorder %v12656_v2, 2  ;;  %vm1519_vm1 = vcmp.gt.s32.totalorder %v12656_v2, 4  ;;  %vm1896_vm2 = vcmp.gt.s32.totalorder %v12656_v2, 6  ;;  %v3943_v10 = vld [vmem:[%s14628_s8] sm:$0xff]  ;;  %vm775_vm6 = vcmp.gt.s32.totalorder %v12656_v2, 0  ;;  %v563_v47 = vld [vmem:[#allocation10 + $0x48] sm:$0xff] }
 0x136   :  { %v1152_v7 = vsel %vm1151_vm0, 1, %v12308_v0  ;;  %v1520_v8 = vsel %vm1519_vm1, 1, %v12308_v0  ;;  %v1897_v9 = vsel %vm1896_vm2, 1, %v12308_v0  ;;  %vm961_vm7 = vcmp.gt.s32.totalorder %v12656_v2, 1  ;;  %v567_v49 = vld [vmem:[#allocation10 + $0x68] sm:$0xff]  ;;  %v562_v52 = vld [vmem:[#allocation10 + $0x40] sm:$0xff] }
 0x137   :  { %v776_v31 = vsel %vm775_vm6, 1, %v12308_v0  ;;  %v962_v32 = vsel %vm961_vm7, 1, %v12308_v0  ;;  %vm1341_vm8 = vcmp.gt.s32.totalorder %v12656_v2, 3  ;;  %vm1706_vm9 = vcmp.gt.s32.totalorder %v12656_v2, 5  ;;  %v565_v53 = vld [vmem:[#allocation10 + $0x58] sm:$0xff]  ;;  %v566_v56 = vld [vmem:[#allocation10 + $0x60] sm:$0xff] }
 0x138   :  { %275 = vperm.xlu0 %11624, %v270_v5   ;;  %778 = vperm.xlu1 %11625, %v776_v31   ;;  %v1342_v33 = vsel %vm1341_vm8, 1, %v12308_v0  ;;  %v1707_v34 = vsel %vm1706_vm9, 1, %v12308_v0  ;;  %vm2086_vm10 = vcmp.gt.s32.totalorder %v12656_v2, 7  ;;  %v12707_v54 = vpack.c.bf16 %v563_v47, %v560_v46  ;;  %v569_v57 = vld [vmem:[#allocation10 + $0x78] sm:$0xff]  ;;  %v576_v59 = vld [vmem:[#allocation10 + $0xb0] sm:$0xff]  ;;  %v571_v62 = vld [vmem:[#allocation10 + $0x88] sm:$0xff] }
 0x139   :  { %v2087_v35 = vsel %vm2086_vm10, 1, %v12308_v0  ;;  %v12711_v55 = vpack.c.bf16 %v570_v50, %v567_v49  ;;  %v573_v58 = vld [vmem:[#allocation10 + $0x98] sm:$0xff]  ;;  %v12714_v60 = vpack.c.bf16 %v565_v53, %v562_v52  ;;  %v568_v61 = vld [vmem:[#allocation10 + $0x70] sm:$0xff]  ;;  %v12721_v63 = vpack.c.bf16 %v569_v57, %v566_v56  ;;  %v575_v2 = vld [vmem:[#allocation10 + $0xa8] sm:$0xff] }
 0x13a   :  { %v12725_v0 = vpack.c.bf16 %v576_v59, %v573_v58  ;;  %v572_v1 = vld [vmem:[#allocation10 + $0x90] sm:$0xff]  ;;  %v579_v3 = vld [vmem:[#allocation10 + $0xc8] sm:$0xff]  ;;  %v582_v4 = vld [vmem:[#allocation10 + $0xe0] sm:$0xff]  ;;  %v12728_v5 = vpack.c.bf16 %v571_v62, %v568_v61  ;;  %v376_v52 = vshrl.u32 %v267_v17, 7 }
 0x13b   :  { %v574_v6 = vld [vmem:[#allocation10 + $0xa0] sm:$0xff]  ;;  %v581_v11 = vld [vmem:[#allocation10 + $0xd8] sm:$0xff]  ;;  %v588_v13 = vld [vmem:[#allocation10 + $0x110] sm:$0xff] }
 0x13c   :  { %1154 = vperm.xlu0 %11624, %v1152_v7   ;;  %964 = vperm.xlu1 %11625, %v962_v32   ;;  %v577_v7 = vld [vmem:[#allocation10 + $0xb8] sm:$0xff]  ;;  %v580_v15 = vld [vmem:[#allocation10 + $0xd0] sm:$0xff]  ;;  %v583_v16 = vld [vmem:[#allocation10 + $0xe8] sm:$0xff]  ;;  %v12821_v53 = vsub.s32 0, %v376_v52  ;;  %v12826_v57 = vsub.s32 1, %v376_v52  ;;  %v12828_v58 = vsub.s32 2, %v376_v52 }
 0x13d   :  { %v585_v12 = vld [vmem:[#allocation10 + $0xf8] sm:$0xff]  ;;  %v12738_v14 = vpack.c.bf16 %v577_v7, %v574_v6  ;;  %v584_v21 = vld [vmem:[#allocation10 + $0xf0] sm:$0xff]  ;;  %v586_v27 = vld [vmem:[#allocation10 + $0x100] sm:$0xff] }
 0x13e   :  { %v12745_v20 = vpack.c.bf16 %v588_v13, %v585_v12  ;;  %v589_v28 = vld [vmem:[#allocation10 + $0x118] sm:$0xff]  ;;  %v592_v38 = vld [vmem:[#allocation10 + $0x130] sm:$0xff]  ;;  %v595_v39 = vld [vmem:[#allocation10 + $0x148] sm:$0xff] }
 0x13f   :  { %v12758_v37 = vpack.c.bf16 %v589_v28, %v586_v27  ;;  %v596_v42 = vld [vmem:[#allocation10 + $0x150] sm:$0xff]  ;;  %v12768_v46 = vpack.c.bf16 %v595_v39, %v592_v38  ;;  %v598_v47 = vld [vmem:[#allocation10 + $0x160] sm:$0xff] }
 0x140   :  { %1522 = vperm.xlu0 %11624, %v1520_v8   ;;  %1344 = vperm.xlu1 %11625, %v1342_v33   ;;  %v12732_v8 = vpack.c.bf16 %v575_v2, %v572_v1  ;;  %v590_v33 = vld [vmem:[#allocation10 + $0x120] sm:$0xff] }
 0x141   :  { %v373_v56 = vld [vmem:[%s14629_s4] sm:$0x7] }
 0x142   :  { %v378_v59 = vrot.slane %v373_v56, %v12821_v53  ;;  %v382_v61 = vrot.slane %v373_v56, %v12826_v57  ;;  %v386_v62 = vrot.slane %v373_v56, %v12828_v58 }
 0x144   :  { %1899 = vperm.xlu0 %11624, %v1897_v9   ;;  %1709 = vperm.xlu1 %11625, %v1707_v34   ;;  %v12735_v9 = vpack.c.bf16 %v582_v4, %v579_v3  ;;  %v593_v34 = vld [vmem:[#allocation10 + $0x138] sm:$0xff] }
 0x145   :  { %v12762_v40 = vpack.c.bf16 %v593_v34, %v590_v33 }
 0x148   :  { %3946 = vperm.xlu0 %11624, %v3943_v10   ;;  %2089 = vperm.xlu1 %11625, %v2087_v35   ;;  %v578_v10 = vld [vmem:[#allocation10 + $0xc0] sm:$0xff]  ;;  %v597_v35 = vld [vmem:[#allocation10 + $0x158] sm:$0xff] }
 0x14c   :  { %3949 = vperm.xlu1 %11625, %v3944_v36   ;;  %v600_v36 = vld [vmem:[#allocation10 + $0x170] sm:$0xff] }
 0x14d   :  { %v12765_v41 = vpack.c.bf16 %v600_v36, %v597_v35 }
 0x1b3   :  { %v273_v19 = vpop.permute.xlu0 %272 }
 0x1b4   :  { %vm277_vm4 = vcmp.eq.s32.totalorder %v273_v19, %v12671_v18  ;;  %v12742_v19 = vpack.c.bf16 %v581_v11, %v578_v10 }
 0x1b5   :  { %v7584_v23 = vsel %vm277_vm4, 1.0, %v12309_v22 }
 0x1b6   :  { %8310 = vmatprep.mubr.msk.f32.mxu1 %vm285_vm3, %v7584_v23  ;;  %v587_v23 = vld [vmem:[#allocation10 + $0x108] sm:$0xff] }
 0x1b7   :  { %v276_v24 = vpop.permute.xlu0 %275  ;;  %v12752_v31 = vpack.c.bf16 %v587_v23, %v584_v21 }
 0x1b8   :  { %vm278_vm5 = vcmp.eq.s32.totalorder %v276_v24, %v12671_v18  ;;  %v591_v24 = vld [vmem:[#allocation10 + $0x128] sm:$0xff] }
 0x1b9   :  { %v7585_v26 = vsel %vm278_vm5, 1.0, %v12309_v22 }
 0x1ba   :  { %8311 = vmatmul.mubr.msk.f32.vlgmr.msra.gmra.mrb[0].mxu1 %vm285_vm3, %v7585_v26  ;;  %v12748_v26 = vpack.c.bf16 %v583_v16, %v580_v15 }
 0x1bb   :  { %9601 = vmatpush1.bf16.msra.mxu1 %v9600_v25  ;;  %460 = vmatprep.mubr.f32.mxu1 %v12309_v22  ;;  %v594_v25 = vld [vmem:[#allocation10 + $0x140] sm:$0xff] }
 0x1bc   :  { %9607 = vmatprep.subr.bf16.mxu1 %v12680_v29  ;;  %v12755_v32 = vpack.c.bf16 %v594_v25, %v591_v24 }
 0x28d   :  { %v8312_v44 = vpop.f32.mrb[0].mxu1 }
 0x28e   :  { %v358_v48 = vpop.f32.mrb[1].mxu1 }
 0x28f   :  { %7588 = vmatmul.mubr.msk.f32.vlgmr.msra.gmra.mrb[2].mxu1 %vm285_vm3, %v358_v48  ;;  %8317 = vmatprep.mubr.msk.f32.mxu0 %vm285_vm3, %v358_v48  ;;  %v601_v48 = vld [vmem:[#allocation10 + $0x178] sm:$0xff] }
 0x290   :  { %9609 = vmatpush1.bf16.msra.mxu1 %v12697_v43  ;;  %8318 = vmatmul.mubr.msk.f32.vlgmr.msra.gmra.mrb[0].mxu0 %vm285_vm3, %v8312_v44  ;;  %v12776_v50 = vpack.c.bf16 %v601_v48, %v598_v47 }
 0x291   :  { %466 = vmatprep.mubr.f32.mxu1 %v12309_v22  ;;  %9611 = vmatprep.subr.bf16.mxu1 %v12699_v45 }
 0x292   :  { %9640 = vmatpush3.bf16.msra.mxu0 %v12701_v51  ;;  %8352 = vmatprep.mubr.msk.f32.mxu0 %vm12311_vm11, %v12309_v22 }
 0x293   :  { %7589 = vmatmul.mubr.msk.f32.gmra.mrb[4].mxu1 %vm285_vm3, %v8312_v44  ;;  %9641 = vmatprep.subr.bf16.mxu0 %v12310_v30  ;;  %v599_v44 = vld [vmem:[#allocation10 + $0x168] sm:$0xff] }
 0x294   :  { %9613 = vmatpush1.bf16.msra.mxu1 %v12707_v54  ;;  %667 = vmatprep.mubr.f32.mxu1 %v12309_v22  ;;  %v12772_v49 = vpack.c.bf16 %v599_v44, %v596_v42  ;;  %v12836_v42 = vld [vmem:[%s14630_s2] ss:$0 sm:$0xff] }
 0x295   :  { %9615 = vmatprep.subr.bf16.mxu1 %v12711_v55 }
 0x296   :  { %9643 = vmatpush3.bf16.msra.mxu0 %v12714_v60 }
 0x297   :  { %9644 = vmatprep.subr.bf16.mxu0 %v12310_v30 }
 0x298   :  { %9617 = vmatpush1.bf16.msra.mxu1 %v12721_v63 }
 0x299   :  { %9619 = vmatprep.subr.bf16.mxu1 %v12725_v0 }
 0x29a   :  { %9646 = vmatpush3.bf16.msra.mxu0 %v12728_v5 }
 0x29b   :  { %9647 = vmatprep.subr.bf16.mxu0 %v12310_v30 }
 0x29c   :  { %9621 = vmatpush1.bf16.msra.mxu1 %v12732_v8 }
 0x29d   :  { %9623 = vmatprep.subr.bf16.mxu1 %v12735_v9 }
 0x29e   :  { %9649 = vmatpush3.bf16.msra.mxu0 %v12738_v14 }
 0x29f   :  { %9650 = vmatprep.subr.bf16.mxu0 %v12310_v30 }
 0x2a0   :  { %9625 = vmatpush1.bf16.msra.mxu1 %v12742_v19 }
 0x2a1   :  { %9627 = vmatprep.subr.bf16.mxu1 %v12745_v20 }
 0x2a2   :  { %9652 = vmatpush3.bf16.msra.mxu0 %v12748_v26 }
 0x2a3   :  { %9653 = vmatprep.subr.bf16.mxu0 %v12310_v30 }
 0x2a4   :  { %9629 = vmatpush1.bf16.msra.mxu1 %v12752_v31 }
 0x2a5   :  { %9631 = vmatprep.subr.bf16.mxu1 %v12755_v32 }
 0x2a6   :  { %9655 = vmatpush3.bf16.msra.mxu0 %v12758_v37 }
 0x2a7   :  { %9656 = vmatprep.subr.bf16.mxu0 %v12310_v30 }
 0x2a8   :  { %9633 = vmatpush1.bf16.msra.mxu1 %v12762_v40 }
 0x2a9   :  { %9635 = vmatprep.subr.bf16.mxu1 %v12765_v41 }
 0x2aa   :  { %9658 = vmatpush3.bf16.msra.mxu0 %v12768_v46 }
 0x2ab   :  { %9659 = vmatprep.subr.bf16.mxu0 %v12310_v30 }
 0x2ac   :  { %9637 = vmatpush1.bf16.msra.mxu1 %v12772_v49 }
 0x2ad   :  { %9663 = vmatprep.subr.bf16.mxu1 %v12680_v29 }
 0x2ae   :  { %9661 = vmatpush3.bf16.msra.mxu0 %v12776_v50 }
 0x2af   :  { %668 = vmatmul.mubr.f32.vlgmr.msra.gmra.mrb[6].mxu1 %v12309_v22  ;;  %9694 = vmatprep.subr.bf16.mxu0 %v12310_v30 }
 0x2b0   :  { %9665 = vmatpush1.bf16.msra.mxu1 %v12697_v43  ;;  %847 = vmatprep.mubr.f32.mxu1 %v12309_v22 }
 0x2b1   :  { %8353 = vmatmul.mubr.f32.vlgmr.msra.gmra.mrb[2].mxu0 %v12309_v22  ;;  %9667 = vmatprep.subr.bf16.mxu1 %v12699_v45 }
 0x2b2   :  { %9696 = vmatpush3.bf16.msra.mxu0 %v12701_v51  ;;  %8387 = vmatprep.mubr.msk.f32.mxu0 %vm12311_vm11, %v12309_v22 }
 0x2b3   :  { %9697 = vmatprep.subr.bf16.mxu0 %v12310_v30 }
 0x2b4   :  { %9669 = vmatpush1.bf16.msra.mxu1 %v12707_v54 }
 0x2b5   :  { %9671 = vmatprep.subr.bf16.mxu1 %v12711_v55 }
 0x2b6   :  { %9699 = vmatpush3.bf16.msra.mxu0 %v12714_v60 }
 0x2b7   :  { %9700 = vmatprep.subr.bf16.mxu0 %v12310_v30 }
 0x2b8   :  { %9673 = vmatpush1.bf16.msra.mxu1 %v12721_v63 }
 0x2b9   :  { %9675 = vmatprep.subr.bf16.mxu1 %v12725_v0 }
 0x2ba   :  { %9702 = vmatpush3.bf16.msra.mxu0 %v12728_v5 }
 0x2bb   :  { %9703 = vmatprep.subr.bf16.mxu0 %v12310_v30 }
 0x2bc   :  { %9677 = vmatpush1.bf16.msra.mxu1 %v12732_v8 }
 0x2bd   :  { %9679 = vmatprep.subr.bf16.mxu1 %v12735_v9 }
 0x2be   :  { %9705 = vmatpush3.bf16.msra.mxu0 %v12738_v14 }
 0x2bf   :  { %9706 = vmatprep.subr.bf16.mxu0 %v12310_v30 }
 0x2c0   :  { %9681 = vmatpush1.bf16.msra.mxu1 %v12742_v19 }
 0x2c1   :  { %9683 = vmatprep.subr.bf16.mxu1 %v12745_v20 }
 0x2c2   :  { %9708 = vmatpush3.bf16.msra.mxu0 %v12748_v26 }
 0x2c3   :  { %9709 = vmatprep.subr.bf16.mxu0 %v12310_v30 }
 0x2c4   :  { %9685 = vmatpush1.bf16.msra.mxu1 %v12752_v31 }
 0x2c5   :  { %9687 = vmatprep.subr.bf16.mxu1 %v12755_v32 }
 0x2c6   :  { %9711 = vmatpush3.bf16.msra.mxu0 %v12758_v37 }
 0x2c7   :  { %9712 = vmatprep.subr.bf16.mxu0 %v12310_v30 }
 0x2c8   :  { %9689 = vmatpush1.bf16.msra.mxu1 %v12762_v40 }
 0x2c9   :  { %9691 = vmatprep.subr.bf16.mxu1 %v12765_v41 }
 0x2ca   :  { %9714 = vmatpush3.bf16.msra.mxu0 %v12768_v46 }
 0x2cb   :  { %9715 = vmatprep.subr.bf16.mxu0 %v12310_v30 }
 0x2cc   :  { %9693 = vmatpush1.bf16.msra.mxu1 %v12772_v49 }
 0x2cd   :  { %9719 = vmatprep.subr.bf16.mxu1 %v12680_v29 }
 0x2ce   :  { %9717 = vmatpush3.bf16.msra.mxu0 %v12776_v50 }
 0x2cf   :  { %9750 = vmatprep.subr.bf16.mxu0 %v12310_v30 }
 0x362   :  { %v462_v1 = vpop.f32.mrb[2].mxu1 }
 0x363   :  { %v463_v2 = vadd.f32 %v462_v1, %v378_v59  ;;  %v464_v3 = vpop.f32.mrb[3].mxu1  ;;  %v8319_v17 = vpop.f32.mrb[0].mxu0 }
 0x364   :  { %v465_v4 = vadd.f32 %v464_v3, %v382_v61  ;;  %v545_v6 = vadd.f32 %v8319_v17, %v386_v62  ;;  %v539_v7 = vpop.f32.mrb[1].mxu0 }
 0x365   :  { %548 = vst [vmem:[#allocation2] sm:$0xff] %v463_v2  ;;  %v540_v10 = vadd.f32 %v539_v7, %v386_v62  ;;  %v12839_v2 = vpop.permute.xlu1 %778 }
 0x366   :  { %549 = vst [vmem:[#allocation2 + $0x8] sm:$0xff] %v465_v4  ;;  %553 = vst [vmem:[#allocation2 + $0x28] sm:$0xff] %v545_v6  ;;  %v468_v11 = vpop.f32.mrb[4].mxu1  ;;  %vm780_vm12 = vcmp.eq.s32.totalorder %v12839_v2, 1 }
 0x367   :  { %550 = vst [vmem:[#allocation2 + $0x10] sm:$0xff] %v540_v10  ;;  %v469_v12 = vadd.f32 %v468_v11, %v378_v59  ;;  %v470_v13 = vpop.f32.mrb[5].mxu1 }
 0x368   :  { %v471_v15 = vadd.f32 %v470_v13, %v382_v61 }
 0x369   :  { %551 = vst [vmem:[#allocation2 + $0x18] sm:$0xff] %v469_v12 }
 0x36a   :  { %552 = vst [vmem:[#allocation2 + $0x20] sm:$0xff] %v471_v15 }
 0x36c   :  { %v744_v21 = vld [vmem:[#allocation2] sm:$0x3]  ;;  %v924_v15 = vld [vmem:[#allocation2] sm:$0xc] }
 0x36d   :  { %v745_v28 = vld [vmem:[#allocation2 + $0x8] sm:$0x3] }
 0x36e   :  { %v746_v56 = vld [vmem:[#allocation2 + $0x10] sm:$0x3] }
 0x382   :  { %v669_v16 = vpop.f32.mrb[6].mxu1 }
 0x383   :  { %v747_v23 = vadd.f32 %v744_v21, %v669_v16  ;;  %v671_v24 = vpop.f32.mrb[7].mxu1 }
 0x384   :  { %v740_v25 = vpop.f32.mrb[2].mxu0  ;;  %v754_v34 = vadd.f32 %v745_v28, %v671_v24  ;;  %v925_v24 = vld [vmem:[#allocation2 + $0x8] sm:$0xc] }
 0x385   :  { %v7592_v27 = vmul.f32 -1.442695, %v747_v23  ;;  %v8354_v33 = vpop.f32.mrb[3].mxu0  ;;  %v767_v47 = vadd.f32 %v12836_v42, %v740_v25 }
 0x386   :  { %v7593_v35 = vmul.f32 -1.442695, %v754_v34 }
 0x387   :  { %11626 = vpow2.f32 %v7592_v27 }
 0x388   :  { %11628 = vpow2.f32 %v7593_v35 }
 0x391   :  { %v11627_v36 = vpop.eup %11626 }
 0x392   :  { %v751_v38 = vadd.f32 1.0, %v11627_v36  ;;  %v11629_v39 = vpop.eup %11628 }
 0x393   :  { %v758_v44 = vadd.f32 1.0, %v11629_v39 }
 0x394   :  { %11630 = vrcp.f32 %v751_v38 }
 0x395   :  { %11632 = vrcp.f32 %v758_v44 }
 0x39e   :  { %v11631_v48 = vpop.eup %11630 }
 0x39f   :  { %v768_v52 = vmul.f32 %v11631_v48, %v767_v47  ;;  %v11633_v61 = vpop.eup %11632  ;;  %v926_v47 = vld [vmem:[#allocation2 + $0x10] sm:$0xc] }
 0x3a0   :  { %v771_v62 = vsub.f32 1.0, %v11633_v61  ;;  %v773_v17 = vmul.f32 0.0, %v11633_v61 }
 0x3a1   :  { %v769_v59 = vadd.f32 %v768_v52, %v746_v56 }
 0x3a3   :  { %11634 = vtanh.f32 %v769_v59 }
 0x3ad   :  { %v11635_v1 = vpop.eup %11634 }
 0x3ae   :  { %v772_v3 = vmul.f32 %v11635_v1, %v771_v62 }
 0x3b0   :  { %v774_v4 = vadd.f32 %v773_v17, %v772_v3  ;;  %v12888_v17 = vpop.permute.xlu1 %964 }
 0x3b1   :  { %vm966_vm13 = vcmp.eq.s32.totalorder %v12888_v17, 1 }
 0x3b2   :  { %7595 = vmatmul.mubr.msk.f32.vlgmr.msra.gmra.mrb[8].mxu1 %vm780_vm12, %v774_v4  ;;  %8388 = vmatmul.mubr.msk.f32.vlgmr.msra.gmra.mrb[4].mxu0 %vm780_vm12, %v774_v4  ;;  %v12848_v6 = vsel %vm780_vm12, %v774_v4, 0.0 }
 0x3b3   :  { %9721 = vmatpush1.bf16.msra.mxu1 %v12697_v43  ;;  %9752 = vmatpush3.bf16.msra.mxu0 %v12701_v51  ;;  %782 = vst [vmem:[#allocation3] sm:$0x3] %v12848_v6  ;;  %v957_v59 = vrot.slane %v12848_v6, 6 }
 0x3b4   :  { %9723 = vmatprep.subr.bf16.mxu1 %v12699_v45  ;;  %9753 = vmatprep.subr.bf16.mxu0 %v12310_v30 }
 0x3b5   :  { %1037 = vmatprep.mubr.f32.mxu1 %v12309_v22  ;;  %8422 = vmatprep.mubr.msk.f32.mxu0 %vm12311_vm11, %v12309_v22 }
 0x3b7   :  { %9725 = vmatpush1.bf16.msra.mxu1 %v12707_v54  ;;  %9755 = vmatpush3.bf16.msra.mxu0 %v12714_v60 }
 0x3b8   :  { %9727 = vmatprep.subr.bf16.mxu1 %v12711_v55  ;;  %9756 = vmatprep.subr.bf16.mxu0 %v12310_v30 }
 0x3bb   :  { %9729 = vmatpush1.bf16.msra.mxu1 %v12721_v63  ;;  %9758 = vmatpush3.bf16.msra.mxu0 %v12728_v5 }
 0x3bc   :  { %9731 = vmatprep.subr.bf16.mxu1 %v12725_v0  ;;  %9759 = vmatprep.subr.bf16.mxu0 %v12310_v30 }
 0x3bf   :  { %9733 = vmatpush1.bf16.msra.mxu1 %v12732_v8  ;;  %9761 = vmatpush3.bf16.msra.mxu0 %v12738_v14 }
 0x3c0   :  { %9735 = vmatprep.subr.bf16.mxu1 %v12735_v9  ;;  %9762 = vmatprep.subr.bf16.mxu0 %v12310_v30 }
 0x3c3   :  { %9737 = vmatpush1.bf16.msra.mxu1 %v12742_v19  ;;  %9764 = vmatpush3.bf16.msra.mxu0 %v12748_v26 }
 0x3c4   :  { %9739 = vmatprep.subr.bf16.mxu1 %v12745_v20  ;;  %9765 = vmatprep.subr.bf16.mxu0 %v12310_v30 }
 0x3c7   :  { %9741 = vmatpush1.bf16.msra.mxu1 %v12752_v31  ;;  %9767 = vmatpush3.bf16.msra.mxu0 %v12758_v37 }
 0x3c8   :  { %9743 = vmatprep.subr.bf16.mxu1 %v12755_v32  ;;  %9768 = vmatprep.subr.bf16.mxu0 %v12310_v30 }
 0x3cb   :  { %9745 = vmatpush1.bf16.msra.mxu1 %v12762_v40  ;;  %9770 = vmatpush3.bf16.msra.mxu0 %v12768_v46 }
 0x3cc   :  { %9747 = vmatprep.subr.bf16.mxu1 %v12765_v41  ;;  %9771 = vmatprep.subr.bf16.mxu0 %v12310_v30 }
 0x3cf   :  { %9749 = vmatpush1.bf16.msra.mxu1 %v12772_v49  ;;  %9773 = vmatpush3.bf16.msra.mxu0 %v12776_v50 }
 0x3d0   :  { %9775 = vmatprep.subr.bf16.mxu1 %v12680_v29  ;;  %9806 = vmatprep.subr.bf16.mxu0 %v12310_v30 }
 0x485   :  { %v849_v7 = vpop.f32.mrb[8].mxu1  ;;  %v920_v10 = vpop.f32.mrb[4].mxu0 }
 0x486   :  { %v928_v11 = vrot.slane %v849_v7, 6  ;;  %v851_v12 = vpop.f32.mrb[9].mxu1  ;;  %v8389_v13 = vpop.f32.mrb[5].mxu0  ;;  %v947_v35 = vadd.f32 %v12836_v42, %v920_v10 }
 0x487   :  { %v938_v16 = vrot.slane %v851_v12, 6 }
 0x488   :  { %v930_v21 = vadd.f32 %v928_v11, %v924_v15  ;;  %v949_v38 = vrot.slane %v947_v35, 6 }
 0x489   :  { %v940_v25 = vadd.f32 %v938_v16, %v925_v24  ;;  %v1114_v16 = vld [vmem:[#allocation2] sm:$0x30] }
 0x48a   :  { %v7597_v23 = vmul.f32 -1.442695, %v930_v21 }
 0x48b   :  { %v7598_v27 = vmul.f32 -1.442695, %v940_v25  ;;  %v1115_v25 = vld [vmem:[#allocation2 + $0x8] sm:$0x30] }
 0x48c   :  { %11636 = vpow2.f32 %v7597_v23 }
 0x48d   :  { %11638 = vpow2.f32 %v7598_v27 }
 0x496   :  { %v11637_v28 = vpop.eup %11636 }
 0x497   :  { %v934_v33 = vadd.f32 1.0, %v11637_v28  ;;  %v11639_v34 = vpop.eup %11638 }
 0x498   :  { %v944_v36 = vadd.f32 1.0, %v11639_v34 }
 0x499   :  { %11640 = vrcp.f32 %v934_v33 }
 0x49a   :  { %11642 = vrcp.f32 %v944_v36 }
 0x4a3   :  { %v11641_v39 = vpop.eup %11640 }
 0x4a4   :  { %v951_v44 = vmul.f32 %v11641_v39, %v949_v38  ;;  %v11643_v52 = vpop.eup %11642 }
 0x4a5   :  { %v954_v56 = vsub.f32 1.0, %v11643_v52  ;;  %v959_v1 = vmul.f32 %v11643_v52, %v957_v59 }
 0x4a6   :  { %v952_v48 = vadd.f32 %v951_v44, %v926_v47 }
 0x4a8   :  { %11644 = vtanh.f32 %v952_v48  ;;  %v1116_v48 = vld [vmem:[#allocation2 + $0x10] sm:$0x30] }
 0x4b2   :  { %v11645_v61 = vpop.eup %11644 }
 0x4b3   :  { %v955_v62 = vmul.f32 %v11645_v61, %v954_v56 }
 0x4b5   :  { %v960_v3 = vadd.f32 %v959_v1, %v955_v62 }
 0x4b7   :  { %v968_v4 = vrot.slane %v960_v3, 2 }
 0x4b9   :  { %v12894_v7 = vsel %vm966_vm13, %v968_v4, %v12848_v6  ;;  %v971_v10 = vsel %vm966_vm13, %v968_v4, 0.0  ;;  %v12937_v4 = vpop.permute.xlu0 %1154 }
 0x4ba   :  { %972 = vst [vmem:[#allocation3 + $0x2] sm:$0x3] %v971_v10  ;;  %1038 = vmatmul.mubr.f32.vlgmr.msra.gmra.mrb[10].mxu1 %v12894_v7  ;;  %8423 = vmatmul.mubr.f32.vlgmr.msra.gmra.mrb[6].mxu0 %v12894_v7  ;;  %v1147_v59 = vrot.slane %v12894_v7, 4  ;;  %vm1156_vm14 = vcmp.eq.s32.totalorder %v12937_v4, 1 }
 0x4bb   :  { %9777 = vmatpush1.bf16.msra.mxu1 %v12697_v43  ;;  %9808 = vmatpush3.bf16.msra.mxu0 %v12701_v51 }
 0x4bc   :  { %9779 = vmatprep.subr.bf16.mxu1 %v12699_v45  ;;  %9809 = vmatprep.subr.bf16.mxu0 %v12310_v30 }
 0x4bd   :  { %1227 = vmatprep.mubr.f32.mxu1 %v12309_v22  ;;  %8457 = vmatprep.mubr.msk.f32.mxu0 %vm12311_vm11, %v12309_v22 }
 0x4bf   :  { %9781 = vmatpush1.bf16.msra.mxu1 %v12707_v54  ;;  %9811 = vmatpush3.bf16.msra.mxu0 %v12714_v60 }
 0x4c0   :  { %9783 = vmatprep.subr.bf16.mxu1 %v12711_v55  ;;  %9812 = vmatprep.subr.bf16.mxu0 %v12310_v30 }
 0x4c3   :  { %9785 = vmatpush1.bf16.msra.mxu1 %v12721_v63  ;;  %9814 = vmatpush3.bf16.msra.mxu0 %v12728_v5 }
 0x4c4   :  { %9787 = vmatprep.subr.bf16.mxu1 %v12725_v0  ;;  %9815 = vmatprep.subr.bf16.mxu0 %v12310_v30 }
 0x4c7   :  { %9789 = vmatpush1.bf16.msra.mxu1 %v12732_v8  ;;  %9817 = vmatpush3.bf16.msra.mxu0 %v12738_v14 }
 0x4c8   :  { %9791 = vmatprep.subr.bf16.mxu1 %v12735_v9  ;;  %9818 = vmatprep.subr.bf16.mxu0 %v12310_v30 }
 0x4cb   :  { %9793 = vmatpush1.bf16.msra.mxu1 %v12742_v19  ;;  %9820 = vmatpush3.bf16.msra.mxu0 %v12748_v26 }
 0x4cc   :  { %9795 = vmatprep.subr.bf16.mxu1 %v12745_v20  ;;  %9821 = vmatprep.subr.bf16.mxu0 %v12310_v30 }
 0x4cf   :  { %9797 = vmatpush1.bf16.msra.mxu1 %v12752_v31  ;;  %9823 = vmatpush3.bf16.msra.mxu0 %v12758_v37 }
 0x4d0   :  { %9799 = vmatprep.subr.bf16.mxu1 %v12755_v32  ;;  %9824 = vmatprep.subr.bf16.mxu0 %v12310_v30 }
 0x4d3   :  { %9801 = vmatpush1.bf16.msra.mxu1 %v12762_v40  ;;  %9826 = vmatpush3.bf16.msra.mxu0 %v12768_v46 }
 0x4d4   :  { %9803 = vmatprep.subr.bf16.mxu1 %v12765_v41  ;;  %9827 = vmatprep.subr.bf16.mxu0 %v12310_v30 }
 0x4d7   :  { %9805 = vmatpush1.bf16.msra.mxu1 %v12772_v49  ;;  %9829 = vmatpush3.bf16.msra.mxu0 %v12776_v50 }
 0x4d8   :  { %9831 = vmatprep.subr.bf16.mxu1 %v12680_v29  ;;  %9862 = vmatprep.subr.bf16.mxu0 %v12310_v30 }
 0x58d   :  { %v1039_v6 = vpop.f32.mrb[10].mxu1  ;;  %v1110_v11 = vpop.f32.mrb[6].mxu0 }
 0x58e   :  { %v1118_v12 = vrot.slane %v1039_v6, 4  ;;  %v1041_v13 = vpop.f32.mrb[11].mxu1  ;;  %v8424_v15 = vpop.f32.mrb[7].mxu0  ;;  %v1137_v36 = vadd.f32 %v12836_v42, %v1110_v11 }
 0x58f   :  { %v1128_v21 = vrot.slane %v1041_v13, 4 }
 0x590   :  { %v1120_v23 = vadd.f32 %v1118_v12, %v1114_v16  ;;  %v1139_v39 = vrot.slane %v1137_v36, 4 }
 0x591   :  { %v1130_v27 = vadd.f32 %v1128_v21, %v1115_v25 }
 0x592   :  { %v7599_v24 = vmul.f32 -1.442695, %v1120_v23  ;;  %v1304_v23 = vld [vmem:[#allocation2] sm:$0xc0] }
 0x593   :  { %v7600_v28 = vmul.f32 -1.442695, %v1130_v27 }
 0x594   :  { %11646 = vpow2.f32 %v7599_v24 }
 0x595   :  { %11648 = vpow2.f32 %v7600_v28  ;;  %v1305_v28 = vld [vmem:[#allocation2 + $0x8] sm:$0xc0] }
 0x59e   :  { %v11647_v33 = vpop.eup %11646 }
 0x59f   :  { %v1124_v34 = vadd.f32 1.0, %v11647_v33  ;;  %v11649_v35 = vpop.eup %11648 }
 0x5a0   :  { %v1134_v38 = vadd.f32 1.0, %v11649_v35 }
 0x5a1   :  { %11650 = vrcp.f32 %v1124_v34 }
 0x5a2   :  { %11652 = vrcp.f32 %v1134_v38 }
 0x5ab   :  { %v11651_v44 = vpop.eup %11650 }
 0x5ac   :  { %v1141_v47 = vmul.f32 %v11651_v44, %v1139_v39  ;;  %v11653_v56 = vpop.eup %11652 }
 0x5ad   :  { %v1144_v61 = vsub.f32 1.0, %v11653_v56  ;;  %v1149_v3 = vmul.f32 %v11653_v56, %v1147_v59  ;;  %v1306_v56 = vld [vmem:[#allocation2 + $0x10] sm:$0xc0] }
 0x5ae   :  { %v1142_v52 = vadd.f32 %v1141_v47, %v1116_v48 }
 0x5b0   :  { %11654 = vtanh.f32 %v1142_v52 }
 0x5ba   :  { %v11655_v62 = vpop.eup %11654 }
 0x5bb   :  { %v1145_v1 = vmul.f32 %v11655_v62, %v1144_v61 }
 0x5bd   :  { %v1150_v10 = vadd.f32 %v1149_v3, %v1145_v1 }
 0x5bf   :  { %v1158_v6 = vrot.slane %v1150_v10, 4 }
 0x5c1   :  { %v12943_v11 = vsel %vm1156_vm14, %v1158_v6, %v12894_v7  ;;  %v1161_v12 = vsel %vm1156_vm14, %v1158_v6, 0.0 }
 0x5c2   :  { %1162 = vst [vmem:[#allocation3 + $0x4] sm:$0x3] %v1161_v12  ;;  %1228 = vmatmul.mubr.f32.vlgmr.msra.gmra.mrb[12].mxu1 %v12943_v11  ;;  %8458 = vmatmul.mubr.f32.vlgmr.msra.gmra.mrb[8].mxu0 %v12943_v11  ;;  %v1337_v62 = vrot.slane %v12943_v11, 2 }
 0x5c3   :  { %9833 = vmatpush1.bf16.msra.mxu1 %v12697_v43  ;;  %9864 = vmatpush3.bf16.msra.mxu0 %v12701_v51 }
 0x5c4   :  { %9835 = vmatprep.subr.bf16.mxu1 %v12699_v45  ;;  %9865 = vmatprep.subr.bf16.mxu0 %v12310_v30 }
 0x5c5   :  { %1417 = vmatprep.mubr.f32.mxu1 %v12309_v22  ;;  %8492 = vmatprep.mubr.msk.f32.mxu0 %vm12311_vm11, %v12309_v22 }
 0x5c7   :  { %9837 = vmatpush1.bf16.msra.mxu1 %v12707_v54  ;;  %9867 = vmatpush3.bf16.msra.mxu0 %v12714_v60 }
 0x5c8   :  { %9839 = vmatprep.subr.bf16.mxu1 %v12711_v55  ;;  %9868 = vmatprep.subr.bf16.mxu0 %v12310_v30 }
 0x5cb   :  { %9841 = vmatpush1.bf16.msra.mxu1 %v12721_v63  ;;  %9870 = vmatpush3.bf16.msra.mxu0 %v12728_v5 }
 0x5cc   :  { %9843 = vmatprep.subr.bf16.mxu1 %v12725_v0  ;;  %9871 = vmatprep.subr.bf16.mxu0 %v12310_v30 }
 0x5cf   :  { %9845 = vmatpush1.bf16.msra.mxu1 %v12732_v8  ;;  %9873 = vmatpush3.bf16.msra.mxu0 %v12738_v14 }
 0x5d0   :  { %9847 = vmatprep.subr.bf16.mxu1 %v12735_v9  ;;  %9874 = vmatprep.subr.bf16.mxu0 %v12310_v30 }
 0x5d3   :  { %9849 = vmatpush1.bf16.msra.mxu1 %v12742_v19  ;;  %9876 = vmatpush3.bf16.msra.mxu0 %v12748_v26 }
 0x5d4   :  { %9851 = vmatprep.subr.bf16.mxu1 %v12745_v20  ;;  %9877 = vmatprep.subr.bf16.mxu0 %v12310_v30 }
 0x5d7   :  { %9853 = vmatpush1.bf16.msra.mxu1 %v12752_v31  ;;  %9879 = vmatpush3.bf16.msra.mxu0 %v12758_v37 }
 0x5d8   :  { %9855 = vmatprep.subr.bf16.mxu1 %v12755_v32  ;;  %9880 = vmatprep.subr.bf16.mxu0 %v12310_v30 }
 0x5db   :  { %9857 = vmatpush1.bf16.msra.mxu1 %v12762_v40  ;;  %9882 = vmatpush3.bf16.msra.mxu0 %v12768_v46 }
 0x5dc   :  { %9859 = vmatprep.subr.bf16.mxu1 %v12765_v41  ;;  %9883 = vmatprep.subr.bf16.mxu0 %v12310_v30 }
 0x5df   :  { %9861 = vmatpush1.bf16.msra.mxu1 %v12772_v49  ;;  %9885 = vmatpush3.bf16.msra.mxu0 %v12776_v50 }
 0x5e0   :  { %9887 = vmatprep.subr.bf16.mxu1 %v12680_v29  ;;  %9918 = vmatprep.subr.bf16.mxu0 %v12310_v30 }
 0x695   :  { %v1229_v7 = vpop.f32.mrb[12].mxu1  ;;  %v1300_v13 = vpop.f32.mrb[8].mxu0 }
 0x696   :  { %v1308_v15 = vrot.slane %v1229_v7, 2  ;;  %v1231_v16 = vpop.f32.mrb[13].mxu1  ;;  %v8459_v21 = vpop.f32.mrb[9].mxu0  ;;  %v1327_v39 = vadd.f32 %v12836_v42, %v1300_v13 }
 0x697   :  { %v1318_v24 = vrot.slane %v1231_v16, 2  ;;  %v12986_v7 = vpop.permute.xlu1 %1344  ;;  %v1494_v21 = vld [vmem:[#allocation2 + $0x18] sm:$0x3] }
 0x698   :  { %v1310_v25 = vadd.f32 %v1308_v15, %v1304_v23  ;;  %v1329_v47 = vrot.slane %v1327_v39, 2  ;;  %vm1346_vm15 = vcmp.eq.s32.totalorder %v12986_v7, 1 }
 0x699   :  { %v1320_v33 = vadd.f32 %v1318_v24, %v1305_v28 }
 0x69a   :  { %v7601_v27 = vmul.f32 -1.442695, %v1310_v25 }
 0x69b   :  { %v7602_v34 = vmul.f32 -1.442695, %v1320_v33  ;;  %v1495_v33 = vld [vmem:[#allocation2 + $0x20] sm:$0x3] }
 0x69c   :  { %11656 = vpow2.f32 %v7601_v27 }
 0x69d   :  { %11658 = vpow2.f32 %v7602_v34 }
 0x6a6   :  { %v11657_v35 = vpop.eup %11656 }
 0x6a7   :  { %v1314_v36 = vadd.f32 1.0, %v11657_v35  ;;  %v11659_v38 = vpop.eup %11658 }
 0x6a8   :  { %v1324_v44 = vadd.f32 1.0, %v11659_v38 }
 0x6a9   :  { %11660 = vrcp.f32 %v1314_v36 }
 0x6aa   :  { %11662 = vrcp.f32 %v1324_v44 }
 0x6b3   :  { %v11661_v48 = vpop.eup %11660 }
 0x6b4   :  { %v1331_v52 = vmul.f32 %v11661_v48, %v1329_v47  ;;  %v11663_v61 = vpop.eup %11662 }
 0x6b5   :  { %v1334_v1 = vsub.f32 1.0, %v11663_v61  ;;  %v1339_v6 = vmul.f32 %v11663_v61, %v1337_v62 }
 0x6b6   :  { %v1332_v59 = vadd.f32 %v1331_v52, %v1306_v56  ;;  %v1496_v56 = vld [vmem:[#allocation2 + $0x28] sm:$0x3] }
 0x6b8   :  { %11664 = vtanh.f32 %v1332_v59 }
 0x6c2   :  { %v11665_v3 = vpop.eup %11664 }
 0x6c3   :  { %v1335_v10 = vmul.f32 %v11665_v3, %v1334_v1  ;;  %v13034_v3 = vpop.permute.xlu0 %1522 }
 0x6c4   :  { %vm1524_vm0 = vcmp.eq.s32.totalorder %v13034_v3, 1 }
 0x6c5   :  { %v1340_v12 = vadd.f32 %v1339_v6, %v1335_v10 }
 0x6c7   :  { %v1348_v15 = vrot.slane %v1340_v12, 6 }
 0x6c9   :  { %v12992_v13 = vsel %vm1346_vm15, %v1348_v15, %v12943_v11  ;;  %v1351_v16 = vsel %vm1346_vm15, %v1348_v15, 0.0 }
 0x6ca   :  { %1352 = vst [vmem:[#allocation3 + $0x6] sm:$0x3] %v1351_v16  ;;  %1418 = vmatmul.mubr.f32.vlgmr.msra.gmra.mrb[14].mxu1 %v12992_v13  ;;  %8493 = vmatmul.mubr.f32.vlgmr.msra.gmra.mrb[10].mxu0 %v12992_v13 }
 0x6cb   :  { %9889 = vmatpush1.bf16.msra.mxu1 %v12697_v43  ;;  %9920 = vmatpush3.bf16.msra.mxu0 %v12701_v51 }
 0x6cc   :  { %9891 = vmatprep.subr.bf16.mxu1 %v12699_v45  ;;  %9921 = vmatprep.subr.bf16.mxu0 %v12310_v30 }
 0x6cd   :  { %1592 = vmatprep.mubr.f32.mxu1 %v12309_v22  ;;  %8527 = vmatprep.mubr.msk.f32.mxu0 %vm12311_vm11, %v12309_v22 }
 0x6cf   :  { %9893 = vmatpush1.bf16.msra.mxu1 %v12707_v54  ;;  %9923 = vmatpush3.bf16.msra.mxu0 %v12714_v60 }
 0x6d0   :  { %9895 = vmatprep.subr.bf16.mxu1 %v12711_v55  ;;  %9924 = vmatprep.subr.bf16.mxu0 %v12310_v30 }
 0x6d3   :  { %9897 = vmatpush1.bf16.msra.mxu1 %v12721_v63  ;;  %9926 = vmatpush3.bf16.msra.mxu0 %v12728_v5 }
 0x6d4   :  { %9899 = vmatprep.subr.bf16.mxu1 %v12725_v0  ;;  %9927 = vmatprep.subr.bf16.mxu0 %v12310_v30 }
 0x6d7   :  { %9901 = vmatpush1.bf16.msra.mxu1 %v12732_v8  ;;  %9929 = vmatpush3.bf16.msra.mxu0 %v12738_v14 }
 0x6d8   :  { %9903 = vmatprep.subr.bf16.mxu1 %v12735_v9  ;;  %9930 = vmatprep.subr.bf16.mxu0 %v12310_v30 }
 0x6db   :  { %9905 = vmatpush1.bf16.msra.mxu1 %v12742_v19  ;;  %9932 = vmatpush3.bf16.msra.mxu0 %v12748_v26 }
 0x6dc   :  { %9907 = vmatprep.subr.bf16.mxu1 %v12745_v20  ;;  %9933 = vmatprep.subr.bf16.mxu0 %v12310_v30 }
 0x6df   :  { %9909 = vmatpush1.bf16.msra.mxu1 %v12752_v31  ;;  %9935 = vmatpush3.bf16.msra.mxu0 %v12758_v37 }
 0x6e0   :  { %9911 = vmatprep.subr.bf16.mxu1 %v12755_v32  ;;  %9936 = vmatprep.subr.bf16.mxu0 %v12310_v30 }
 0x6e3   :  { %9913 = vmatpush1.bf16.msra.mxu1 %v12762_v40  ;;  %9938 = vmatpush3.bf16.msra.mxu0 %v12768_v46 }
 0x6e4   :  { %9915 = vmatprep.subr.bf16.mxu1 %v12765_v41  ;;  %9939 = vmatprep.subr.bf16.mxu0 %v12310_v30 }
 0x6e7   :  { %9917 = vmatpush1.bf16.msra.mxu1 %v12772_v49  ;;  %9941 = vmatpush3.bf16.msra.mxu0 %v12776_v50 }
 0x6e8   :  { %9943 = vmatprep.subr.bf16.mxu1 %v12680_v29  ;;  %9974 = vmatprep.subr.bf16.mxu0 %v12310_v30 }
 0x79d   :  { %v1419_v11 = vpop.f32.mrb[14].mxu1  ;;  %v1490_v23 = vpop.f32.mrb[10].mxu0 }
 0x79e   :  { %v1497_v24 = vadd.f32 %v1494_v21, %v1419_v11  ;;  %v1421_v25 = vpop.f32.mrb[15].mxu1  ;;  %v8494_v27 = vpop.f32.mrb[11].mxu0  ;;  %v1511_v47 = vadd.f32 %v12836_v42, %v1490_v23 }
 0x79f   :  { %v1504_v34 = vadd.f32 %v1495_v33, %v1421_v25  ;;  %v1669_v25 = vld [vmem:[#allocation2 + $0x18] sm:$0xc] }
 0x7a0   :  { %v7603_v28 = vmul.f32 -1.442695, %v1497_v24 }
 0x7a1   :  { %v7604_v35 = vmul.f32 -1.442695, %v1504_v34  ;;  %v1670_v34 = vld [vmem:[#allocation2 + $0x20] sm:$0xc] }
 0x7a2   :  { %11666 = vpow2.f32 %v7603_v28 }
 0x7a3   :  { %11668 = vpow2.f32 %v7604_v35 }
 0x7ac   :  { %v11667_v36 = vpop.eup %11666 }
 0x7ad   :  { %v1501_v38 = vadd.f32 1.0, %v11667_v36  ;;  %v11669_v39 = vpop.eup %11668 }
 0x7ae   :  { %v1508_v44 = vadd.f32 1.0, %v11669_v39 }
 0x7af   :  { %11670 = vrcp.f32 %v1501_v38 }
 0x7b0   :  { %11672 = vrcp.f32 %v1508_v44 }
 0x7b9   :  { %v11671_v48 = vpop.eup %11670 }
 0x7ba   :  { %v1512_v52 = vmul.f32 %v11671_v48, %v1511_v47  ;;  %v11673_v61 = vpop.eup %11672 }
 0x7bb   :  { %v1515_v62 = vsub.f32 1.0, %v11673_v61  ;;  %v1517_v6 = vmul.f32 %v11673_v61, %v12992_v13 }
 0x7bc   :  { %v1513_v59 = vadd.f32 %v1512_v52, %v1496_v56 }
 0x7be   :  { %11674 = vtanh.f32 %v1513_v59  ;;  %v1671_v59 = vld [vmem:[#allocation2 + $0x28] sm:$0xc] }
 0x7c8   :  { %v11675_v1 = vpop.eup %11674 }
 0x7c9   :  { %v1516_v10 = vmul.f32 %v11675_v1, %v1515_v62 }
 0x7cb   :  { %v1518_v12 = vadd.f32 %v1517_v6, %v1516_v10 }
 0x7cd   :  { %v13041_v15 = vsel %vm1524_vm0, %v1518_v12, %v12992_v13  ;;  %v1526_v16 = vsel %vm1524_vm0, %v1518_v12, 0.0 }
 0x7ce   :  { %1527 = vst [vmem:[#allocation3 + $0x8] sm:$0x3] %v1526_v16  ;;  %1593 = vmatmul.mubr.f32.vlgmr.msra.gmra.mrb[16].mxu1 %v13041_v15  ;;  %8528 = vmatmul.mubr.f32.vlgmr.msra.gmra.mrb[12].mxu0 %v13041_v15  ;;  %v1702_v1 = vrot.slane %v13041_v15, 6 }
 0x7cf   :  { %9945 = vmatpush1.bf16.msra.mxu1 %v12697_v43  ;;  %9976 = vmatpush3.bf16.msra.mxu0 %v12701_v51 }
 0x7d0   :  { %9947 = vmatprep.subr.bf16.mxu1 %v12699_v45  ;;  %9977 = vmatprep.subr.bf16.mxu0 %v12310_v30 }
 0x7d1   :  { %1782 = vmatprep.mubr.f32.mxu1 %v12309_v22  ;;  %8562 = vmatprep.mubr.msk.f32.mxu0 %vm12311_vm11, %v12309_v22 }
 0x7d3   :  { %9949 = vmatpush1.bf16.msra.mxu1 %v12707_v54  ;;  %9979 = vmatpush3.bf16.msra.mxu0 %v12714_v60 }
 0x7d4   :  { %9951 = vmatprep.subr.bf16.mxu1 %v12711_v55  ;;  %9980 = vmatprep.subr.bf16.mxu0 %v12310_v30 }
 0x7d7   :  { %9953 = vmatpush1.bf16.msra.mxu1 %v12721_v63  ;;  %9982 = vmatpush3.bf16.msra.mxu0 %v12728_v5 }
 0x7d8   :  { %9955 = vmatprep.subr.bf16.mxu1 %v12725_v0  ;;  %9983 = vmatprep.subr.bf16.mxu0 %v12310_v30 }
 0x7db   :  { %9957 = vmatpush1.bf16.msra.mxu1 %v12732_v8  ;;  %9985 = vmatpush3.bf16.msra.mxu0 %v12738_v14 }
 0x7dc   :  { %9959 = vmatprep.subr.bf16.mxu1 %v12735_v9  ;;  %9986 = vmatprep.subr.bf16.mxu0 %v12310_v30 }
 0x7df   :  { %9961 = vmatpush1.bf16.msra.mxu1 %v12742_v19  ;;  %9988 = vmatpush3.bf16.msra.mxu0 %v12748_v26 }
 0x7e0   :  { %9963 = vmatprep.subr.bf16.mxu1 %v12745_v20  ;;  %9989 = vmatprep.subr.bf16.mxu0 %v12310_v30 }
 0x7e3   :  { %9965 = vmatpush1.bf16.msra.mxu1 %v12752_v31  ;;  %9991 = vmatpush3.bf16.msra.mxu0 %v12758_v37 }
 0x7e4   :  { %9967 = vmatprep.subr.bf16.mxu1 %v12755_v32  ;;  %9992 = vmatprep.subr.bf16.mxu0 %v12310_v30 }
 0x7e7   :  { %9969 = vmatpush1.bf16.msra.mxu1 %v12762_v40  ;;  %9994 = vmatpush3.bf16.msra.mxu0 %v12768_v46 }
 0x7e8   :  { %9971 = vmatprep.subr.bf16.mxu1 %v12765_v41  ;;  %9995 = vmatprep.subr.bf16.mxu0 %v12310_v30 }
 0x7eb   :  { %9973 = vmatpush1.bf16.msra.mxu1 %v12772_v49  ;;  %9997 = vmatpush3.bf16.msra.mxu0 %v12776_v50 }
 0x7ec   :  { %9999 = vmatprep.subr.bf16.mxu1 %v12680_v29  ;;  %10030 = vmatprep.subr.bf16.mxu0 %v12310_v30 }
 0x8a1   :  { %v1594_v13 = vpop.f32.mrb[16].mxu1  ;;  %v1665_v11 = vpop.f32.mrb[12].mxu0 }
 0x8a2   :  { %v1673_v21 = vrot.slane %v1594_v13, 6  ;;  %v1596_v23 = vpop.f32.mrb[17].mxu1  ;;  %v8529_v24 = vpop.f32.mrb[13].mxu0  ;;  %v1692_v44 = vadd.f32 %v12836_v42, %v1665_v11 }
 0x8a3   :  { %v1683_v27 = vrot.slane %v1596_v23, 6 }
 0x8a4   :  { %v1675_v28 = vadd.f32 %v1673_v21, %v1669_v25  ;;  %v1694_v48 = vrot.slane %v1692_v44, 6  ;;  %v13084_v21 = vpop.permute.xlu1 %1709  ;;  %v2107_v44 = vld [vmem:[#allocation11 + $0x38] sm:$0xff] }
 0x8a5   :  { %v1685_v35 = vadd.f32 %v1683_v27, %v1670_v34  ;;  %vm1711_vm1 = vcmp.eq.s32.totalorder %v13084_v21, 1 }
 0x8a6   :  { %v7605_v33 = vmul.f32 -1.442695, %v1675_v28 }
 0x8a7   :  { %v7606_v36 = vmul.f32 -1.442695, %v1685_v35 }
 0x8a8   :  { %11676 = vpow2.f32 %v7605_v33 }
 0x8a9   :  { %11678 = vpow2.f32 %v7606_v36 }
 0x8b2   :  { %v11677_v38 = vpop.eup %11676 }
 0x8b3   :  { %v1679_v39 = vadd.f32 1.0, %v11677_v38  ;;  %v11679_v29 = vpop.eup %11678  ;;  %v2100_v38 = vld [vmem:[#allocation11] sm:$0xff] }
 0x8b4   :  { %v1689_v47 = vadd.f32 1.0, %v11679_v29  ;;  %v13131_v29 = vpop.permute.xlu0 %1899 }
 0x8b5   :  { %11680 = vrcp.f32 %v1679_v39  ;;  %v2103_v39 = vld [vmem:[#allocation11 + $0x18] sm:$0xff]  ;;  %vm1901_vm2 = vcmp.eq.s32.totalorder %v13131_v29, 1  ;;  %v7451_v29 = vld [vmem:[#allocation26 + $0x28] sm:$0xff] }
 0x8b6   :  { %11682 = vrcp.f32 %v1689_v47  ;;  %v2110_v47 = vld [vmem:[#allocation11 + $0x50] sm:$0xff] }
 0x8bf   :  { %v11681_v52 = vpop.eup %11680 }
 0x8c0   :  { %v1696_v56 = vmul.f32 %v11681_v52, %v1694_v48  ;;  %v11683_v62 = vpop.eup %11682  ;;  %v10056_v52 = vpack.c.bf16 %v2103_v39, %v2100_v38  ;;  %v2105_v38 = vld [vmem:[#allocation11 + $0x28] sm:$0xff] }
 0x8c1   :  { %v1699_v10 = vsub.f32 1.0, %v11683_v62  ;;  %v1704_v16 = vmul.f32 %v11683_v62, %v1702_v1 }
 0x8c2   :  { %v1697_v61 = vadd.f32 %v1696_v56, %v1671_v59  ;;  %v10058_v56 = vpack.c.bf16 %v2110_v47, %v2107_v44  ;;  %v2106_v59 = vld [vmem:[#allocation11 + $0x30] sm:$0xff]  ;;  %v2111_v44 = vld [vmem:[#allocation11 + $0x58] sm:$0xff] }
 0x8c4   :  { %11684 = vtanh.f32 %v1697_v61  ;;  %v2109_v61 = vld [vmem:[#allocation11 + $0x48] sm:$0xff] }
 0x8ce   :  { %v11685_v6 = vpop.eup %11684 }
 0x8cf   :  { %v1700_v12 = vmul.f32 %v11685_v6, %v1699_v10  ;;  %v2113_v10 = vld [vmem:[#allocation11 + $0x68] sm:$0xff]  ;;  %v2116_v6 = vld [vmem:[#allocation11 + $0x80] sm:$0xff] }
 0x8d1   :  { %v1705_v13 = vadd.f32 %v1704_v16, %v1700_v12  ;;  %v2098_v12 = vld [vmem:[#allocation3] sm:$0xff]  ;;  %v10060_v16 = vpack.c.bf16 %v2109_v61, %v2106_v59  ;;  %v2323_v59 = vld [vmem:[#allocation13] sm:$0xff]  ;;  %v2326_v61 = vld [vmem:[#allocation13 + $0x18] sm:$0xff] }
 0x8d3   :  { %v1713_v23 = vrot.slane %v1705_v13, 2  ;;  %v10062_v13 = vpack.c.bf16 %v2116_v6, %v2113_v10  ;;  %v2114_v10 = vld [vmem:[#allocation11 + $0x70] sm:$0xff]  ;;  %v2117_v6 = vld [vmem:[#allocation11 + $0x88] sm:$0xff] }
 0x8d5   :  { %v13090_v11 = vsel %vm1711_vm1, %v1713_v23, %v13041_v15  ;;  %v1716_v24 = vsel %vm1711_vm1, %v1713_v23, 0.0  ;;  %v1861_v15 = vld [vmem:[#allocation2 + $0x28] sm:$0x30]  ;;  %v2112_v23 = vld [vmem:[#allocation11 + $0x60] sm:$0xff] }
 0x8d6   :  { %1717 = vst [vmem:[#allocation3 + $0xa] sm:$0x3] %v1716_v24  ;;  %1783 = vmatmul.mubr.f32.vlgmr.msra.gmra.mrb[18].mxu1 %v13090_v11  ;;  %8563 = vmatmul.mubr.f32.vlgmr.msra.gmra.mrb[14].mxu0 %v13090_v11  ;;  %v1892_v28 = vrot.slane %v13090_v11, 4  ;;  %v2115_v24 = vld [vmem:[#allocation11 + $0x78] sm:$0xff] }
 0x8d7   :  { %10001 = vmatpush1.bf16.msra.mxu1 %v12697_v43  ;;  %10032 = vmatpush3.bf16.msra.mxu0 %v12701_v51  ;;  %v2101_v43 = vld [vmem:[#allocation11 + $0x8] sm:$0xff] }
 0x8d8   :  { %10003 = vmatprep.subr.bf16.mxu1 %v12699_v45  ;;  %10033 = vmatprep.subr.bf16.mxu0 %v12310_v30  ;;  %v2104_v45 = vld [vmem:[#allocation11 + $0x20] sm:$0xff] }
 0x8d9   :  { %1972 = vmatprep.mubr.f32.mxu1 %v12309_v22  ;;  %8597 = vmatprep.mubr.msk.f32.mxu0 %vm12311_vm11, %v12309_v22  ;;  %v10054_v51 = vpack.c.bf16 %v2104_v45, %v2101_v43  ;;  %v2122_v43 = vld [vmem:[#allocation11 + $0xb0] sm:$0xff]  ;;  %v10064_v45 = vpack.c.bf16 %v2115_v24, %v2112_v23 }
 0x8da   :  { %v2329_v24 = vld [vmem:[#allocation13 + $0x30] sm:$0xff] }
 0x8db   :  { %10005 = vmatpush1.bf16.msra.mxu1 %v12707_v54  ;;  %10035 = vmatpush3.bf16.msra.mxu0 %v12714_v60 }
 0x8dc   :  { %10007 = vmatprep.subr.bf16.mxu1 %v12711_v55  ;;  %10036 = vmatprep.subr.bf16.mxu0 %v12310_v30 }
 0x8df   :  { %10009 = vmatpush1.bf16.msra.mxu1 %v12721_v63  ;;  %10038 = vmatpush3.bf16.msra.mxu0 %v12728_v5  ;;  %v1859_v5 = vld [vmem:[#allocation2 + $0x18] sm:$0x30] }
 0x8e0   :  { %10011 = vmatprep.subr.bf16.mxu1 %v12725_v0  ;;  %10039 = vmatprep.subr.bf16.mxu0 %v12310_v30 }
 0x8e3   :  { %10013 = vmatpush1.bf16.msra.mxu1 %v12732_v8  ;;  %10041 = vmatpush3.bf16.msra.mxu0 %v12738_v14 }
 0x8e4   :  { %10015 = vmatprep.subr.bf16.mxu1 %v12735_v9  ;;  %10042 = vmatprep.subr.bf16.mxu0 %v12310_v30 }
 0x8e7   :  { %10017 = vmatpush1.bf16.msra.mxu1 %v12742_v19  ;;  %10044 = vmatpush3.bf16.msra.mxu0 %v12748_v26  ;;  %v1860_v19 = vld [vmem:[#allocation2 + $0x20] sm:$0x30] }
 0x8e8   :  { %10019 = vmatprep.subr.bf16.mxu1 %v12745_v20  ;;  %10045 = vmatprep.subr.bf16.mxu0 %v12310_v30 }
 0x8eb   :  { %10021 = vmatpush1.bf16.msra.mxu1 %v12752_v31  ;;  %10047 = vmatpush3.bf16.msra.mxu0 %v12758_v37 }
 0x8ec   :  { %10023 = vmatprep.subr.bf16.mxu1 %v12755_v32  ;;  %10048 = vmatprep.subr.bf16.mxu0 %v12310_v30 }
 0x8ef   :  { %10025 = vmatpush1.bf16.msra.mxu1 %v12762_v40  ;;  %10050 = vmatpush3.bf16.msra.mxu0 %v12768_v46 }
 0x8f0   :  { %10027 = vmatprep.subr.bf16.mxu1 %v12765_v41  ;;  %10051 = vmatprep.subr.bf16.mxu0 %v12310_v30 }
 0x8f3   :  { %10029 = vmatpush1.bf16.msra.mxu1 %v12772_v49  ;;  %10053 = vmatpush3.bf16.msra.mxu0 %v12776_v50 }
 0x8f4   :  { %10055 = vmatprep.subr.bf16.mxu1 %v10054_v51 }
 0x9a9   :  { %v1784_v54 = vpop.f32.mrb[18].mxu1  ;;  %v1855_v55 = vpop.f32.mrb[14].mxu0 }
 0x9aa   :  { %v1863_v60 = vrot.slane %v1784_v54, 4  ;;  %v1786_v63 = vpop.f32.mrb[19].mxu1  ;;  %v8564_v0 = vpop.f32.mrb[15].mxu0  ;;  %v1882_v40 = vadd.f32 %v12836_v42, %v1855_v55  ;;  %v2118_v54 = vld [vmem:[#allocation11 + $0x90] sm:$0xff]  ;;  %v2121_v55 = vld [vmem:[#allocation11 + $0xa8] sm:$0xff] }
 0x9ab   :  { %v1873_v8 = vrot.slane %v1786_v63, 4  ;;  %v2128_v63 = vld [vmem:[#allocation11 + $0xe0] sm:$0xff]  ;;  %v10068_v0 = vpack.c.bf16 %v2121_v55, %v2118_v54  ;;  %v2336_v55 = vld [vmem:[#allocation13 + $0x68] sm:$0xff] }
 0x9ac   :  { %v1865_v9 = vadd.f32 %v1863_v60, %v1859_v5  ;;  %v1884_v46 = vrot.slane %v1882_v40, 4  ;;  %v2125_v60 = vld [vmem:[#allocation11 + $0xc8] sm:$0xff]  ;;  %v2140_v40 = vld [vmem:[#allocation11 + $0x140] sm:$0xff] }
 0x9ad   :  { %v1875_v20 = vadd.f32 %v1873_v8, %v1860_v19  ;;  %v10070_v5 = vpack.c.bf16 %v2128_v63, %v2125_v60  ;;  %v2124_v8 = vld [vmem:[#allocation11 + $0xc0] sm:$0xff]  ;;  %v2134_v19 = vld [vmem:[#allocation11 + $0x110] sm:$0xff] }
 0x9ae   :  { %v7607_v14 = vmul.f32 -1.442695, %v1865_v9  ;;  %v2127_v9 = vld [vmem:[#allocation11 + $0xd8] sm:$0xff]  ;;  %v2339_v60 = vld [vmem:[#allocation13 + $0x80] sm:$0xff] }
 0x9af   :  { %v7608_v26 = vmul.f32 -1.442695, %v1875_v20  ;;  %v10072_v20 = vpack.c.bf16 %v2127_v9, %v2124_v8  ;;  %v13157_v63 = vpack.c.bf16 %v2339_v60, %v2336_v55  ;;  %v2126_v9 = vld [vmem:[#allocation11 + $0xd0] sm:$0xff]  ;;  %v2368_v55 = vld [vmem:[#allocation13 + $0x168] sm:$0xff] }
 0x9b0   :  { %11686 = vpow2.f32 %v7607_v14  ;;  %v2131_v14 = vld [vmem:[#allocation11 + $0xf8] sm:$0xff] }
 0x9b1   :  { %11688 = vpow2.f32 %v7608_v26  ;;  %v10074_v26 = vpack.c.bf16 %v2134_v19, %v2131_v14  ;;  %v2129_v14 = vld [vmem:[#allocation11 + $0xe8] sm:$0xff] }
 0x9b2   :  { %v10102_v19 = vpack.c.bf16 %v2129_v14, %v2126_v9 }
 0x9ba   :  { %v11687_v31 = vpop.eup %11686 }
 0x9bb   :  { %v1869_v32 = vadd.f32 1.0, %v11687_v31  ;;  %v11689_v37 = vpop.eup %11688  ;;  %v2130_v31 = vld [vmem:[#allocation11 + $0xf0] sm:$0xff] }
 0x9bc   :  { %v1879_v41 = vadd.f32 1.0, %v11689_v37  ;;  %v2137_v37 = vld [vmem:[#allocation11 + $0x128] sm:$0xff] }
 0x9bd   :  { %11690 = vrcp.f32 %v1869_v32  ;;  %v2133_v32 = vld [vmem:[#allocation11 + $0x108] sm:$0xff] }
 0x9be   :  { %11692 = vrcp.f32 %v1879_v41  ;;  %v10076_v41 = vpack.c.bf16 %v2133_v32, %v2130_v31  ;;  %v2341_v32 = vld [vmem:[#allocation13 + $0x90] sm:$0xff] }
 0x9c7   :  { %v11691_v49 = vpop.eup %11690 }
 0x9c8   :  { %v1886_v50 = vmul.f32 %v11691_v49, %v1884_v46  ;;  %v11693_v27 = vpop.eup %11692  ;;  %v10078_v46 = vpack.c.bf16 %v2140_v40, %v2137_v37  ;;  %v2136_v49 = vld [vmem:[#allocation11 + $0x120] sm:$0xff]  ;;  %v2344_v37 = vld [vmem:[#allocation13 + $0xa8] sm:$0xff] }
 0x9c9   :  { %v1889_v33 = vsub.f32 1.0, %v11693_v27  ;;  %v1894_v36 = vmul.f32 %v11693_v27, %v1892_v28  ;;  %v13165_v40 = vpack.c.bf16 %v2344_v37, %v2341_v32 }
 0x9ca   :  { %v1887_v25 = vadd.f32 %v1886_v50, %v1861_v15  ;;  %v2139_v50 = vld [vmem:[#allocation11 + $0x138] sm:$0xff] }
 0x9cb   :  { %v2143_v15 = vld [vmem:[#allocation11 + $0x158] sm:$0xff]  ;;  %v10080_v27 = vpack.c.bf16 %v2139_v50, %v2136_v49  ;;  %v2348_v50 = vld [vmem:[#allocation13 + $0xc8] sm:$0xff] }
 0x9cc   :  { %11694 = vtanh.f32 %v1887_v25  ;;  %v2146_v25 = vld [vmem:[#allocation11 + $0x170] sm:$0xff] }
 0x9cd   :  { %v10082_v28 = vpack.c.bf16 %v2146_v25, %v2143_v15  ;;  %v2351_v15 = vld [vmem:[#allocation13 + $0xe0] sm:$0xff] }
 0x9ce   :  { %v13169_v25 = vpack.c.bf16 %v2351_v15, %v2348_v50 }
 0x9d6   :  { %v11695_v34 = vpop.eup %11694 }
 0x9d7   :  { %v1890_v35 = vmul.f32 %v11695_v34, %v1889_v33  ;;  %v2142_v33 = vld [vmem:[#allocation11 + $0x150] sm:$0xff]  ;;  %v2145_v34 = vld [vmem:[#allocation11 + $0x168] sm:$0xff] }
 0x9d9   :  { %v1895_v42 = vadd.f32 %v1894_v36, %v1890_v35  ;;  %v10084_v35 = vpack.c.bf16 %v2145_v34, %v2142_v33  ;;  %v2102_v36 = vld [vmem:[#allocation11 + $0x10] sm:$0xff] }
 0x9da   :  { %v10086_v39 = vpack.c.bf16 %v2105_v38, %v2102_v36  ;;  %v2138_v34 = vld [vmem:[#allocation11 + $0x130] sm:$0xff]  ;;  %v2354_v36 = vld [vmem:[#allocation13 + $0xf8] sm:$0xff] }
 0x9db   :  { %v1903_v48 = vrot.slane %v1895_v42, 4  ;;  %v2108_v42 = vld [vmem:[#allocation11 + $0x40] sm:$0xff] }
 0x9dc   :  { %10087 = vmatprep.subr.bf16.mxu0 %v10086_v39  ;;  %v10090_v47 = vpack.c.bf16 %v2111_v44, %v2108_v42  ;;  %v2353_v42 = vld [vmem:[#allocation13 + $0xf0] sm:$0xff]  ;;  %v2356_v44 = vld [vmem:[#allocation13 + $0x108] sm:$0xff] }
 0x9dd   :  { %v13137_v62 = vsel %vm1901_vm2, %v1903_v48, %v13090_v11  ;;  %v1906_v1 = vsel %vm1901_vm2, %v1903_v48, 0.0  ;;  %v2119_v11 = vld [vmem:[#allocation11 + $0x98] sm:$0xff]  ;;  %v2324_v48 = vld [vmem:[#allocation13 + $0x8] sm:$0xff] }
 0x9de   :  { %1907 = vst [vmem:[#allocation3 + $0xc] sm:$0x3] %v1906_v1  ;;  %1973 = vmatmul.mubr.f32.vlgmr.msra.gmra.mrb[20].mxu1 %v13137_v62  ;;  %8598 = vmatmul.mubr.f32.vlgmr.msra.gmra.mrb[16].mxu0 %v13137_v62  ;;  %v10066_v51 = vpack.c.bf16 %v2122_v43, %v2119_v11  ;;  %v13147_v1 = vpack.c.bf16 %v2326_v61, %v2323_v59  ;;  %v2332_v11 = vld [vmem:[#allocation13 + $0x48] sm:$0xff]  ;;  %v2147_v59 = vld [vmem:[#allocation11 + $0x178] sm:$0xff] }
 0x9df   :  { %10057 = vmatpush1.bf16.msra.mxu1 %v10056_v52  ;;  %8632 = vmatprep.mubr.f32.mxu0 %v2098_v12  ;;  %v2327_v52 = vld [vmem:[#allocation13 + $0x20] sm:$0xff]  ;;  %v13153_v43 = vpack.c.bf16 %v2332_v11, %v2329_v24  ;;  %v2360_v61 = vld [vmem:[#allocation13 + $0x128] sm:$0xff]  ;;  %v2366_v11 = vld [vmem:[#allocation13 + $0x158] sm:$0xff] }
 0x9e0   :  { %10059 = vmatprep.subr.bf16.mxu1 %v10058_v56  ;;  %2229 = vmatprep.mubr.f32.mxu1 %v12309_v22  ;;  %v13145_v56 = vpack.c.bf16 %v2327_v52, %v2324_v48  ;;  %v13177_v48 = vpack.c.bf16 %v2356_v44, %v2353_v42  ;;  %v2144_v52 = vld [vmem:[#allocation11 + $0x160] sm:$0xff] }
 0x9e1   :  { %10089 = vmatpush3.bf16.msra.mxu0 %v10086_v39  ;;  %v2357_v39 = vld [vmem:[#allocation13 + $0x110] sm:$0xff] }
 0x9e2   :  { %10091 = vmatprep.subr.bf16.mxu0 %v10090_v47 }
 0x9e3   :  { %10061 = vmatpush1.bf16.msra.mxu1 %v10060_v16  ;;  %v2330_v16 = vld [vmem:[#allocation13 + $0x38] sm:$0xff] }
 0x9e4   :  { %10063 = vmatprep.subr.bf16.mxu1 %v10062_v13  ;;  %v2333_v13 = vld [vmem:[#allocation13 + $0x50] sm:$0xff] }
 0x9e5   :  { %10093 = vmatpush3.bf16.msra.mxu0 %v10090_v47  ;;  %v13151_v23 = vpack.c.bf16 %v2333_v13, %v2330_v16  ;;  %v13175_v47 = vpack.c.bf16 %v2357_v39, %v2354_v36  ;;  %v2362_v16 = vld [vmem:[#allocation13 + $0x138] sm:$0xff] }
 0x9e7   :  { %10065 = vmatpush1.bf16.msra.mxu1 %v10064_v45  ;;  %v2120_v45 = vld [vmem:[#allocation11 + $0xa0] sm:$0xff] }
 0x9e8   :  { %10067 = vmatprep.subr.bf16.mxu1 %v10066_v51  ;;  %v2123_v51 = vld [vmem:[#allocation11 + $0xb8] sm:$0xff] }
 0x9e9   :  { %v10098_v54 = vpack.c.bf16 %v2123_v51, %v2120_v45  ;;  %v2369_v45 = vld [vmem:[#allocation13 + $0x170] sm:$0xff] }
 0x9ea   :  { %v13186_v51 = vpack.c.bf16 %v2369_v45, %v2366_v11  ;;  %v2082_v45 = vrot.slane %v13137_v62, 2 }
 0x9eb   :  { %10069 = vmatpush1.bf16.msra.mxu1 %v10068_v0  ;;  %v2335_v0 = vld [vmem:[#allocation13 + $0x60] sm:$0xff] }
 0x9ec   :  { %10071 = vmatprep.subr.bf16.mxu1 %v10070_v5  ;;  %v2338_v5 = vld [vmem:[#allocation13 + $0x78] sm:$0xff] }
 0x9ed   :  { %v13159_v8 = vpack.c.bf16 %v2338_v5, %v2335_v0 }
 0x9ef   :  { %10073 = vmatpush1.bf16.msra.mxu1 %v10072_v20  ;;  %v2342_v20 = vld [vmem:[#allocation13 + $0x98] sm:$0xff] }
 0x9f0   :  { %10075 = vmatprep.subr.bf16.mxu1 %v10074_v26  ;;  %v2345_v26 = vld [vmem:[#allocation13 + $0xb0] sm:$0xff] }
 0x9f1   :  { %v13163_v31 = vpack.c.bf16 %v2345_v26, %v2342_v20  ;;  %v2049_v20 = vld [vmem:[#allocation2 + $0x18] sm:$0xc0] }
 0x9f3   :  { %10077 = vmatpush1.bf16.msra.mxu1 %v10076_v41  ;;  %v2132_v41 = vld [vmem:[#allocation11 + $0x100] sm:$0xff] }
 0x9f4   :  { %10079 = vmatprep.subr.bf16.mxu1 %v10078_v46  ;;  %v2135_v46 = vld [vmem:[#allocation11 + $0x118] sm:$0xff] }
 0x9f5   :  { %v10106_v49 = vpack.c.bf16 %v2135_v46, %v2132_v41  ;;  %v2050_v41 = vld [vmem:[#allocation2 + $0x20] sm:$0xc0] }
 0x9f7   :  { %10081 = vmatpush1.bf16.msra.mxu1 %v10080_v27  ;;  %v2347_v27 = vld [vmem:[#allocation13 + $0xc0] sm:$0xff] }
 0x9f8   :  { %10083 = vmatprep.subr.bf16.mxu1 %v10082_v28  ;;  %v2350_v28 = vld [vmem:[#allocation13 + $0xd8] sm:$0xff] }
 0x9f9   :  { %v13171_v33 = vpack.c.bf16 %v2350_v28, %v2347_v27  ;;  %v11962_v28 = vld [vmem:[%s14630_s2] ss:$0 sm:$0xff] }
 0x9fb   :  { %10085 = vmatpush1.bf16.msra.mxu1 %v10084_v35  ;;  %v2141_v35 = vld [vmem:[#allocation11 + $0x148] sm:$0xff] }
 0x9fc   :  { %10119 = vmatprep.subr.bf16.mxu1 %v13145_v56  ;;  %v10110_v38 = vpack.c.bf16 %v2141_v35, %v2138_v34  ;;  %v13198_v35 = vld [vmem:[#allocation14] sm:$0x7] }
 0x9fd   :  { %v13202_v39 = vrot.slane %v13198_v35, %v12821_v53  ;;  %v13206_v44 = vrot.slane %v13198_v35, %v12826_v57 }
 0x9fe   :  { %2230 = vmatmul.mubr.f32.vlgmr.msra.gmra.mrb[22].mxu1 %v2098_v12  ;;  %v10094_v12 = vpack.c.bf16 %v2117_v6, %v2114_v10  ;;  %v10114_v10 = vpack.c.bf16 %v2147_v59, %v2144_v52  ;;  %v2363_v6 = vld [vmem:[#allocation13 + $0x140] sm:$0xff]  ;;  %v2051_v59 = vld [vmem:[#allocation2 + $0x28] sm:$0xc0] }
 0x9ff   :  { %2235 = vmatprep.mubr.f32.mxu1 %v12309_v22  ;;  %10121 = vmatpush1.bf16.msra.mxu1 %v13147_v1  ;;  %v13180_v13 = vpack.c.bf16 %v2363_v6, %v2360_v61 }
 0xa00   :  { %10095 = vmatprep.subr.bf16.mxu0 %v10094_v12  ;;  %10123 = vmatprep.subr.bf16.mxu1 %v13151_v23 }
 0xa01   :  { %10097 = vmatpush3.bf16.msra.mxu0 %v10094_v12  ;;  %v2359_v12 = vld [vmem:[#allocation13 + $0x120] sm:$0xff] }
 0xa02   :  { %10099 = vmatprep.subr.bf16.mxu0 %v10098_v54  ;;  %v13183_v24 = vpack.c.bf16 %v2362_v16, %v2359_v12 }
 0xa03   :  { %10125 = vmatpush1.bf16.msra.mxu1 %v13153_v43 }
 0xa04   :  { %10127 = vmatprep.subr.bf16.mxu1 %v13157_v63 }
 0xa05   :  { %10101 = vmatpush3.bf16.msra.mxu0 %v10098_v54  ;;  %v2365_v54 = vld [vmem:[#allocation13 + $0x150] sm:$0xff] }
 0xa06   :  { %10103 = vmatprep.subr.bf16.mxu0 %v10102_v19  ;;  %v13190_v60 = vpack.c.bf16 %v2368_v55, %v2365_v54 }
 0xa07   :  { %10129 = vmatpush1.bf16.msra.mxu1 %v13159_v8 }
 0xa08   :  { %10131 = vmatprep.subr.bf16.mxu1 %v13163_v31 }
 0xa09   :  { %10105 = vmatpush3.bf16.msra.mxu0 %v10102_v19 }
 0xa0a   :  { %10107 = vmatprep.subr.bf16.mxu0 %v10106_v49 }
 0xa0b   :  { %10133 = vmatpush1.bf16.msra.mxu1 %v13165_v40 }
 0xa0c   :  { %10135 = vmatprep.subr.bf16.mxu1 %v13169_v25 }
 0xa0d   :  { %10109 = vmatpush3.bf16.msra.mxu0 %v10106_v49 }
 0xa0e   :  { %10111 = vmatprep.subr.bf16.mxu0 %v10110_v38 }
 0xa0f   :  { %10137 = vmatpush1.bf16.msra.mxu1 %v13171_v33 }
 0xa10   :  { %10139 = vmatprep.subr.bf16.mxu1 %v13175_v47 }
 0xa11   :  { %10113 = vmatpush3.bf16.msra.mxu0 %v10110_v38 }
 0xa12   :  { %10115 = vmatprep.subr.bf16.mxu0 %v10114_v10 }
 0xa13   :  { %10141 = vmatpush1.bf16.msra.mxu1 %v13177_v48 }
 0xa14   :  { %10143 = vmatprep.subr.bf16.mxu1 %v13180_v13 }
 0xa15   :  { %10117 = vmatpush3.bf16.msra.mxu0 %v10114_v10 }
 0xa16   :  { %10150 = vmatprep.subr.bf16.mxu0 %v12310_v30 }
 0xa17   :  { %10145 = vmatpush1.bf16.msra.mxu1 %v13183_v24 }
 0xa18   :  { %10147 = vmatprep.subr.bf16.mxu1 %v13186_v51 }
 0xa1b   :  { %10149 = vmatpush1.bf16.msra.mxu1 %v13190_v60 }
 0xa1c   :  { %10175 = vmatprep.subr.bf16.mxu1 %v13145_v56 }
 0xab1   :  { %v1974_v0 = vpop.f32.mrb[20].mxu1  ;;  %v2045_v5 = vpop.f32.mrb[16].mxu0 }
 0xab2   :  { %v2053_v9 = vrot.slane %v1974_v0, 2  ;;  %v1976_v14 = vpop.f32.mrb[21].mxu1  ;;  %v8599_v19 = vpop.f32.mrb[17].mxu0  ;;  %v2072_v34 = vadd.f32 %v11962_v28, %v2045_v5 }
 0xab3   :  { %v2063_v26 = vrot.slane %v1976_v14, 2  ;;  %v13213_v14 = vpop.permute.xlu1 %2089 }
 0xab4   :  { %v2055_v32 = vadd.f32 %v2053_v9, %v2049_v20  ;;  %v2074_v38 = vrot.slane %v2072_v34, 2  ;;  %vm2091_vm4 = vcmp.eq.s32.totalorder %v13213_v14, 1  ;;  %v2343_v34 = vld [vmem:[#allocation13 + $0xa0] sm:$0xff] }
 0xab5   :  { %v2065_v46 = vadd.f32 %v2063_v26, %v2050_v41  ;;  %v2325_v26 = vld [vmem:[#allocation13 + $0x10] sm:$0xff]  ;;  %v2331_v41 = vld [vmem:[#allocation13 + $0x40] sm:$0xff] }
 0xab6   :  { %v7609_v37 = vmul.f32 -1.442695, %v2055_v32  ;;  %v2328_v32 = vld [vmem:[#allocation13 + $0x28] sm:$0xff] }
 0xab7   :  { %v7610_v49 = vmul.f32 -1.442695, %v2065_v46  ;;  %v2334_v46 = vld [vmem:[#allocation13 + $0x58] sm:$0xff] }
 0xab8   :  { %11696 = vpow2.f32 %v7609_v37  ;;  %v13221_v37 = vpack.c.bf16 %v2328_v32, %v2325_v26 }
 0xab9   :  { %11698 = vpow2.f32 %v7610_v49 }
 0xac2   :  { %v11697_v50 = vpop.eup %11696 }
 0xac3   :  { %v2059_v15 = vadd.f32 1.0, %v11697_v50  ;;  %v11699_v27 = vpop.eup %11698  ;;  %v13225_v50 = vpack.c.bf16 %v2334_v46, %v2331_v41 }
 0xac4   :  { %v2069_v36 = vadd.f32 1.0, %v11699_v27  ;;  %v2340_v27 = vld [vmem:[#allocation13 + $0x88] sm:$0xff] }
 0xac5   :  { %11700 = vrcp.f32 %v2059_v15  ;;  %v2337_v15 = vld [vmem:[#allocation13 + $0x70] sm:$0xff] }
 0xac6   :  { %11702 = vrcp.f32 %v2069_v36  ;;  %v13232_v28 = vpack.c.bf16 %v2340_v27, %v2337_v15  ;;  %v2346_v36 = vld [vmem:[#allocation13 + $0xb8] sm:$0xff] }
 0xacf   :  { %v11701_v42 = vpop.eup %11700 }
 0xad0   :  { %v2076_v52 = vmul.f32 %v11701_v42, %v2074_v38  ;;  %v11703_v11 = vpop.eup %11702  ;;  %v13239_v38 = vpack.c.bf16 %v2346_v36, %v2343_v34  ;;  %v2349_v42 = vld [vmem:[#allocation13 + $0xd0] sm:$0xff] }
 0xad1   :  { %v2231_v61 = vpop.f32.mrb[22].mxu1  ;;  %v2079_v54 = vsub.f32 1.0, %v11703_v11  ;;  %v2084_v5 = vmul.f32 %v11703_v11, %v2082_v45  ;;  %v2367_v45 = vld [vmem:[#allocation13 + $0x160] sm:$0xff] }
 0xad2   :  { %v2077_v10 = vadd.f32 %v2076_v52, %v2051_v59  ;;  %v2232_v6 = vadd.f32 %v2231_v61, %v13202_v39  ;;  %v2233_v12 = vpop.f32.mrb[23].mxu1  ;;  %v2352_v52 = vld [vmem:[#allocation13 + $0xe8] sm:$0xff]  ;;  %v2355_v61 = vld [vmem:[#allocation13 + $0x100] sm:$0xff] }
 0xad3   :  { %v2234_v16 = vadd.f32 %v2233_v12, %v13206_v44  ;;  %v13245_v59 = vpack.c.bf16 %v2352_v52, %v2349_v42  ;;  %v2361_v12 = vld [vmem:[#allocation13 + $0x130] sm:$0xff] }
 0xad4   :  { %11704 = vtanh.f32 %v2077_v10  ;;  %2317 = vst [vmem:[#allocation2] sm:$0xff] %v2232_v6  ;;  %v2358_v10 = vld [vmem:[#allocation13 + $0x118] sm:$0xff] }
 0xad5   :  { %2318 = vst [vmem:[#allocation2 + $0x8] sm:$0xff] %v2234_v16  ;;  %v13251_v6 = vpack.c.bf16 %v2358_v10, %v2355_v61  ;;  %v2364_v16 = vld [vmem:[#allocation13 + $0x148] sm:$0xff] }
 0xad6   :  { %v13257_v11 = vpack.c.bf16 %v2364_v16, %v2361_v12 }
 0xadb   :  { %v2513_v34 = vld [vmem:[#allocation2] sm:$0x3] }
 0xade   :  { %v11705_v55 = vpop.eup %11704 }
 0xadf   :  { %v2080_v0 = vmul.f32 %v11705_v55, %v2079_v54  ;;  %v2370_v54 = vld [vmem:[#allocation13 + $0x178] sm:$0xff] }
 0xae0   :  { %v13263_v55 = vpack.c.bf16 %v2370_v54, %v2367_v45 }
 0xae1   :  { %v13211_v9 = vadd.f32 %v2084_v5, %v2080_v0  ;;  %v2161_v0 = vrot.slane %v13198_v35, %v12828_v58  ;;  %v2514_v35 = vld [vmem:[#allocation2 + $0x8] sm:$0x3] }
 0xae3   :  { %v2093_v19 = vrot.slane %v13211_v9, 6 }
 0xae5   :  { %v2096_v20 = vsel %vm2091_vm4, %v2093_v19, 0.0 }
 0xae6   :  { %2097 = vst [vmem:[#allocation3 + $0xe] sm:$0x3] %v2096_v20 }
 0xaed   :  { %v2099_v49 = vld [vmem:[#allocation3 + $0x8] sm:$0xff] }
 0xaee   :  { %2236 = vmatmul.mubr.f32.gmra.mrb[24].mxu1 %v2099_v49  ;;  %8633 = vmatmul.mubr.f32.vlgmr.msra.gmra.mrb[18].mxu0 %v2099_v49 }
 0xaef   :  { %10152 = vmatpush3.bf16.msra.mxu0 %v13221_v37  ;;  %2436 = vmatprep.mubr.f32.mxu1 %v12309_v22 }
 0xaf0   :  { %10153 = vmatprep.subr.bf16.mxu0 %v12310_v30  ;;  %8667 = vmatprep.mubr.msk.f32.mxu0 %vm12311_vm11, %v12309_v22 }
 0xaf2   :  { %2437 = vmatmul.mubr.f32.vlgmr.msra.gmra.mrb[26].mxu1 %v12309_v22 }
 0xaf3   :  { %10155 = vmatpush3.bf16.msra.mxu0 %v13225_v50  ;;  %10177 = vmatpush1.bf16.msra.mxu1 %v13147_v1 }
 0xaf4   :  { %10156 = vmatprep.subr.bf16.mxu0 %v12310_v30  ;;  %10179 = vmatprep.subr.bf16.mxu1 %v13151_v23 }
 0xaf5   :  { %2610 = vmatprep.mubr.f32.mxu1 %v12309_v22 }
 0xaf7   :  { %10158 = vmatpush3.bf16.msra.mxu0 %v13232_v28  ;;  %10181 = vmatpush1.bf16.msra.mxu1 %v13153_v43 }
 0xaf8   :  { %10159 = vmatprep.subr.bf16.mxu0 %v12310_v30  ;;  %10183 = vmatprep.subr.bf16.mxu1 %v13157_v63 }
 0xafb   :  { %10161 = vmatpush3.bf16.msra.mxu0 %v13239_v38  ;;  %10185 = vmatpush1.bf16.msra.mxu1 %v13159_v8 }
 0xafc   :  { %10162 = vmatprep.subr.bf16.mxu0 %v12310_v30  ;;  %10187 = vmatprep.subr.bf16.mxu1 %v13163_v31 }
 0xaff   :  { %10164 = vmatpush3.bf16.msra.mxu0 %v13245_v59  ;;  %10189 = vmatpush1.bf16.msra.mxu1 %v13165_v40 }
 0xb00   :  { %10165 = vmatprep.subr.bf16.mxu0 %v12310_v30  ;;  %10191 = vmatprep.subr.bf16.mxu1 %v13169_v25 }
 0xb03   :  { %10167 = vmatpush3.bf16.msra.mxu0 %v13251_v6  ;;  %10193 = vmatpush1.bf16.msra.mxu1 %v13171_v33 }
 0xb04   :  { %10168 = vmatprep.subr.bf16.mxu0 %v12310_v30  ;;  %10195 = vmatprep.subr.bf16.mxu1 %v13175_v47 }
 0xb07   :  { %10170 = vmatpush3.bf16.msra.mxu0 %v13257_v11  ;;  %10197 = vmatpush1.bf16.msra.mxu1 %v13177_v48 }
 0xb08   :  { %10171 = vmatprep.subr.bf16.mxu0 %v12310_v30  ;;  %10199 = vmatprep.subr.bf16.mxu1 %v13180_v13 }
 0xb0b   :  { %10173 = vmatpush3.bf16.msra.mxu0 %v13263_v55  ;;  %10201 = vmatpush1.bf16.msra.mxu1 %v13183_v24 }
 0xb0c   :  { %10206 = vmatprep.subr.bf16.mxu0 %v12310_v30  ;;  %10203 = vmatprep.subr.bf16.mxu1 %v13186_v51 }
 0xb0e   :  { %8668 = vmatmul.mubr.f32.vlgmr.msra.gmra.mrb[20].mxu0 %v12309_v22 }
 0xb0f   :  { %10208 = vmatpush3.bf16.msra.mxu0 %v13221_v37  ;;  %10205 = vmatpush1.bf16.msra.mxu1 %v13190_v60 }
 0xb10   :  { %10209 = vmatprep.subr.bf16.mxu0 %v12310_v30  ;;  %8702 = vmatprep.mubr.msk.f32.mxu0 %vm12311_vm11, %v12309_v22 }
 0xb11   :  { %10231 = vmatprep.subr.bf16.mxu1 %v13145_v56 }
 0xb13   :  { %10211 = vmatpush3.bf16.msra.mxu0 %v13225_v50 }
 0xb14   :  { %10212 = vmatprep.subr.bf16.mxu0 %v12310_v30 }
 0xb17   :  { %10214 = vmatpush3.bf16.msra.mxu0 %v13232_v28 }
 0xb18   :  { %10215 = vmatprep.subr.bf16.mxu0 %v12310_v30 }
 0xb1b   :  { %10217 = vmatpush3.bf16.msra.mxu0 %v13239_v38 }
 0xb1c   :  { %10218 = vmatprep.subr.bf16.mxu0 %v12310_v30 }
 0xb1f   :  { %10220 = vmatpush3.bf16.msra.mxu0 %v13245_v59 }
 0xb20   :  { %10221 = vmatprep.subr.bf16.mxu0 %v12310_v30 }
 0xb23   :  { %10223 = vmatpush3.bf16.msra.mxu0 %v13251_v6 }
 0xb24   :  { %10224 = vmatprep.subr.bf16.mxu0 %v12310_v30 }
 0xb27   :  { %10226 = vmatpush3.bf16.msra.mxu0 %v13257_v11 }
 0xb28   :  { %10227 = vmatprep.subr.bf16.mxu0 %v12310_v30 }
 0xb2b   :  { %10229 = vmatpush3.bf16.msra.mxu0 %v13263_v55 }
 0xb2c   :  { %10262 = vmatprep.subr.bf16.mxu0 %v12310_v30 }
 0xbc1   :  { %v2237_v5 = vpop.f32.mrb[24].mxu1  ;;  %v8634_v20 = vpop.f32.mrb[18].mxu0 }
 0xbc2   :  { %v2238_v26 = vadd.f32 %v2237_v5, %v13202_v39  ;;  %v2314_v32 = vadd.f32 %v8634_v20, %v2161_v0  ;;  %v2239_v41 = vpop.f32.mrb[25].mxu1  ;;  %v2308_v46 = vpop.f32.mrb[19].mxu0 }
 0xbc3   :  { %v2240_v49 = vadd.f32 %v2239_v41, %v13206_v44  ;;  %v2309_v15 = vadd.f32 %v2308_v46, %v2161_v0  ;;  %v13297_v44 = vld [vmem:[#allocation16] ss:$0 sm:$0xff] }
 0xbc4   :  { %2320 = vst [vmem:[#allocation2 + $0x18] sm:$0xff] %v2238_v26  ;;  %2322 = vst [vmem:[#allocation2 + $0x28] sm:$0xff] %v2314_v32 }
 0xbc5   :  { %2321 = vst [vmem:[#allocation2 + $0x20] sm:$0xff] %v2240_v49  ;;  %2319 = vst [vmem:[#allocation2 + $0x10] sm:$0xff] %v2309_v15  ;;  %v2438_v27 = vpop.f32.mrb[26].mxu1 }
 0xbc6   :  { %v2516_v36 = vadd.f32 %v2513_v34, %v2438_v27  ;;  %v2440_v42 = vpop.f32.mrb[27].mxu1 }
 0xbc7   :  { %v2523_v61 = vadd.f32 %v2514_v35, %v2440_v42 }
 0xbc8   :  { %v7611_v52 = vmul.f32 -1.442695, %v2516_v36 }
 0xbc9   :  { %v7612_v10 = vmul.f32 -1.442695, %v2523_v61 }
 0xbca   :  { %11706 = vpow2.f32 %v7611_v52 }
 0xbcb   :  { %11708 = vpow2.f32 %v7612_v10 }
 0xbcc   :  { %v2515_v32 = vld [vmem:[#allocation2 + $0x10] sm:$0x3] }
 0xbd4   :  { %v11707_v39 = vpop.eup %11706 }
 0xbd5   :  { %v2520_v12 = vadd.f32 1.0, %v11707_v39  ;;  %v11709_v16 = vpop.eup %11708 }
 0xbd6   :  { %v2527_v45 = vadd.f32 1.0, %v11709_v16 }
 0xbd7   :  { %11710 = vrcp.f32 %v2520_v12  ;;  %v2687_v12 = vld [vmem:[#allocation2] sm:$0xc] }
 0xbd8   :  { %11712 = vrcp.f32 %v2527_v45 }
 0xbe1   :  { %v11711_v54 = vpop.eup %11710  ;;  %v2509_v0 = vpop.f32.mrb[20].mxu0 }
 0xbe2   :  { %v2536_v5 = vadd.f32 %v13297_v44, %v2509_v0  ;;  %v8669_v20 = vpop.f32.mrb[21].mxu0  ;;  %v11713_v46 = vpop.eup %11712  ;;  %v2688_v0 = vld [vmem:[#allocation2 + $0x8] sm:$0xc] }
 0xbe3   :  { %v2540_v49 = vsub.f32 1.0, %v11713_v46  ;;  %v2542_v34 = vmul.f32 0.0, %v11713_v46 }
 0xbe4   :  { %v2537_v26 = vmul.f32 %v11711_v54, %v2536_v5 }
 0xbe6   :  { %v2538_v41 = vadd.f32 %v2537_v26, %v2515_v32 }
 0xbe8   :  { %11714 = vtanh.f32 %v2538_v41 }
 0xbf2   :  { %v11715_v15 = vpop.eup %11714 }
 0xbf3   :  { %v2541_v27 = vmul.f32 %v11715_v15, %v2540_v49 }
 0xbf5   :  { %v2543_v36 = vadd.f32 %v2542_v34, %v2541_v27 }
 0xbf7   :  { %7614 = vmatmul.mubr.msk.f32.vlgmr.msra.gmra.mrb[28].mxu1 %vm780_vm12, %v2543_v36  ;;  %8703 = vmatmul.mubr.msk.f32.vlgmr.msra.gmra.mrb[22].mxu0 %vm780_vm12, %v2543_v36  ;;  %v13306_v42 = vsel %vm780_vm12, %v2543_v36, 0.0  ;;  %v2689_v36 = vld [vmem:[#allocation2 + $0x10] sm:$0xc] }
 0xbf8   :  { %10233 = vmatpush1.bf16.msra.mxu1 %v13147_v1  ;;  %10264 = vmatpush3.bf16.msra.mxu0 %v13221_v37  ;;  %2545 = vst [vmem:[#allocation3] sm:$0x3] %v13306_v42 }
 0xbf9   :  { %10235 = vmatprep.subr.bf16.mxu1 %v13151_v23  ;;  %10265 = vmatprep.subr.bf16.mxu0 %v12310_v30 }
 0xbfa   :  { %2794 = vmatprep.mubr.f32.mxu1 %v12309_v22  ;;  %8737 = vmatprep.mubr.msk.f32.mxu0 %vm12311_vm11, %v12309_v22 }
 0xbfc   :  { %10237 = vmatpush1.bf16.msra.mxu1 %v13153_v43  ;;  %10267 = vmatpush3.bf16.msra.mxu0 %v13225_v50 }
 0xbfd   :  { %10239 = vmatprep.subr.bf16.mxu1 %v13157_v63  ;;  %10268 = vmatprep.subr.bf16.mxu0 %v12310_v30 }
 0xc00   :  { %10241 = vmatpush1.bf16.msra.mxu1 %v13159_v8  ;;  %10270 = vmatpush3.bf16.msra.mxu0 %v13232_v28 }
 0xc01   :  { %10243 = vmatprep.subr.bf16.mxu1 %v13163_v31  ;;  %10271 = vmatprep.subr.bf16.mxu0 %v12310_v30 }
 0xc04   :  { %10245 = vmatpush1.bf16.msra.mxu1 %v13165_v40  ;;  %10273 = vmatpush3.bf16.msra.mxu0 %v13239_v38 }
 0xc05   :  { %10247 = vmatprep.subr.bf16.mxu1 %v13169_v25  ;;  %10274 = vmatprep.subr.bf16.mxu0 %v12310_v30 }
 0xc08   :  { %10249 = vmatpush1.bf16.msra.mxu1 %v13171_v33  ;;  %10276 = vmatpush3.bf16.msra.mxu0 %v13245_v59 }
 0xc09   :  { %10251 = vmatprep.subr.bf16.mxu1 %v13175_v47  ;;  %10277 = vmatprep.subr.bf16.mxu0 %v12310_v30 }
 0xc0c   :  { %10253 = vmatpush1.bf16.msra.mxu1 %v13177_v48  ;;  %10279 = vmatpush3.bf16.msra.mxu0 %v13251_v6 }
 0xc0d   :  { %10255 = vmatprep.subr.bf16.mxu1 %v13180_v13  ;;  %10280 = vmatprep.subr.bf16.mxu0 %v12310_v30 }
 0xc10   :  { %10257 = vmatpush1.bf16.msra.mxu1 %v13183_v24  ;;  %10282 = vmatpush3.bf16.msra.mxu0 %v13257_v11 }
 0xc11   :  { %10259 = vmatprep.subr.bf16.mxu1 %v13186_v51  ;;  %10283 = vmatprep.subr.bf16.mxu0 %v12310_v30 }
 0xc14   :  { %10261 = vmatpush1.bf16.msra.mxu1 %v13190_v60  ;;  %10285 = vmatpush3.bf16.msra.mxu0 %v13263_v55 }
 0xc15   :  { %10287 = vmatprep.subr.bf16.mxu1 %v13145_v56  ;;  %10318 = vmatprep.subr.bf16.mxu0 %v12310_v30 }
 0xcca   :  { %v2612_v52 = vpop.f32.mrb[28].mxu1  ;;  %v2683_v35 = vpop.f32.mrb[22].mxu0 }
 0xccb   :  { %v2691_v61 = vrot.slane %v2612_v52, 6  ;;  %v2614_v10 = vpop.f32.mrb[29].mxu1  ;;  %v8704_v39 = vpop.f32.mrb[23].mxu0  ;;  %v2710_v46 = vadd.f32 %v13297_v44, %v2683_v35 }
 0xccc   :  { %v2701_v16 = vrot.slane %v2614_v10, 6  ;;  %v2720_v39 = vrot.slane %v13306_v42, 6 }
 0xccd   :  { %v2693_v45 = vadd.f32 %v2691_v61, %v2687_v12  ;;  %v2712_v15 = vrot.slane %v2710_v46, 6  ;;  %v2871_v46 = vld [vmem:[#allocation2] sm:$0x30] }
 0xcce   :  { %v2703_v5 = vadd.f32 %v2701_v16, %v2688_v0 }
 0xccf   :  { %v7616_v54 = vmul.f32 -1.442695, %v2693_v45 }
 0xcd0   :  { %v7617_v20 = vmul.f32 -1.442695, %v2703_v5 }
 0xcd1   :  { %11716 = vpow2.f32 %v7616_v54 }
 0xcd2   :  { %11718 = vpow2.f32 %v7617_v20 }
 0xcdb   :  { %v11717_v26 = vpop.eup %11716 }
 0xcdc   :  { %v2697_v32 = vadd.f32 1.0, %v11717_v26  ;;  %v11719_v41 = vpop.eup %11718 }
 0xcdd   :  { %v2707_v49 = vadd.f32 1.0, %v11719_v41 }
 0xcde   :  { %11720 = vrcp.f32 %v2697_v32 }
 0xcdf   :  { %11722 = vrcp.f32 %v2707_v49 }
 0xce8   :  { %v11721_v27 = vpop.eup %11720 }
 0xce9   :  { %v2714_v34 = vmul.f32 %v11721_v27, %v2712_v15  ;;  %v11723_v61 = vpop.eup %11722 }
 0xcea   :  { %v2717_v10 = vsub.f32 1.0, %v11723_v61  ;;  %v2722_v45 = vmul.f32 %v11723_v61, %v2720_v39 }
 0xceb   :  { %v2715_v52 = vadd.f32 %v2714_v34, %v2689_v36  ;;  %v2872_v34 = vld [vmem:[#allocation2 + $0x8] sm:$0x30] }
 0xced   :  { %11724 = vtanh.f32 %v2715_v52 }
 0xcf7   :  { %v11725_v12 = vpop.eup %11724 }
 0xcf8   :  { %v2718_v16 = vmul.f32 %v11725_v12, %v2717_v10 }
 0xcfa   :  { %v2723_v54 = vadd.f32 %v2722_v45, %v2718_v16 }
 0xcfc   :  { %v2725_v0 = vrot.slane %v2723_v54, 2 }
 0xcfe   :  { %v13349_v35 = vsel %vm966_vm13, %v2725_v0, %v13306_v42  ;;  %v2728_v5 = vsel %vm966_vm13, %v2725_v0, 0.0 }
 0xcff   :  { %2729 = vst [vmem:[#allocation3 + $0x2] sm:$0x3] %v2728_v5  ;;  %2795 = vmatmul.mubr.f32.vlgmr.msra.gmra.mrb[30].mxu1 %v13349_v35  ;;  %8738 = vmatmul.mubr.f32.vlgmr.msra.gmra.mrb[24].mxu0 %v13349_v35  ;;  %v2873_v5 = vld [vmem:[#allocation2 + $0x10] sm:$0x30] }
 0xd00   :  { %10289 = vmatpush1.bf16.msra.mxu1 %v13147_v1  ;;  %10320 = vmatpush3.bf16.msra.mxu0 %v13221_v37 }
 0xd01   :  { %10291 = vmatprep.subr.bf16.mxu1 %v13151_v23  ;;  %10321 = vmatprep.subr.bf16.mxu0 %v12310_v30 }
 0xd02   :  { %2978 = vmatprep.mubr.f32.mxu1 %v12309_v22  ;;  %8772 = vmatprep.mubr.msk.f32.mxu0 %vm12311_vm11, %v12309_v22 }
 0xd04   :  { %10293 = vmatpush1.bf16.msra.mxu1 %v13153_v43  ;;  %10323 = vmatpush3.bf16.msra.mxu0 %v13225_v50 }
 0xd05   :  { %10295 = vmatprep.subr.bf16.mxu1 %v13157_v63  ;;  %10324 = vmatprep.subr.bf16.mxu0 %v12310_v30 }
 0xd08   :  { %10297 = vmatpush1.bf16.msra.mxu1 %v13159_v8  ;;  %10326 = vmatpush3.bf16.msra.mxu0 %v13232_v28 }
 0xd09   :  { %10299 = vmatprep.subr.bf16.mxu1 %v13163_v31  ;;  %10327 = vmatprep.subr.bf16.mxu0 %v12310_v30 }
 0xd0c   :  { %10301 = vmatpush1.bf16.msra.mxu1 %v13165_v40  ;;  %10329 = vmatpush3.bf16.msra.mxu0 %v13239_v38 }
 0xd0d   :  { %10303 = vmatprep.subr.bf16.mxu1 %v13169_v25  ;;  %10330 = vmatprep.subr.bf16.mxu0 %v12310_v30 }
 0xd10   :  { %10305 = vmatpush1.bf16.msra.mxu1 %v13171_v33  ;;  %10332 = vmatpush3.bf16.msra.mxu0 %v13245_v59 }
 0xd11   :  { %10307 = vmatprep.subr.bf16.mxu1 %v13175_v47  ;;  %10333 = vmatprep.subr.bf16.mxu0 %v12310_v30 }
 0xd14   :  { %10309 = vmatpush1.bf16.msra.mxu1 %v13177_v48  ;;  %10335 = vmatpush3.bf16.msra.mxu0 %v13251_v6 }
 0xd15   :  { %10311 = vmatprep.subr.bf16.mxu1 %v13180_v13  ;;  %10336 = vmatprep.subr.bf16.mxu0 %v12310_v30 }
 0xd18   :  { %10313 = vmatpush1.bf16.msra.mxu1 %v13183_v24  ;;  %10338 = vmatpush3.bf16.msra.mxu0 %v13257_v11 }
 0xd19   :  { %10315 = vmatprep.subr.bf16.mxu1 %v13186_v51  ;;  %10339 = vmatprep.subr.bf16.mxu0 %v12310_v30 }
 0xd1c   :  { %10317 = vmatpush1.bf16.msra.mxu1 %v13190_v60  ;;  %10341 = vmatpush3.bf16.msra.mxu0 %v13263_v55 }
 0xd1d   :  { %10343 = vmatprep.subr.bf16.mxu1 %v13145_v56  ;;  %10374 = vmatprep.subr.bf16.mxu0 %v12310_v30 }
 0xdd2   :  { %v2796_v42 = vpop.f32.mrb[30].mxu1  ;;  %v2867_v20 = vpop.f32.mrb[24].mxu0 }
 0xdd3   :  { %v2875_v26 = vrot.slane %v2796_v42, 4  ;;  %v2798_v32 = vpop.f32.mrb[31].mxu1  ;;  %v8739_v41 = vpop.f32.mrb[25].mxu0  ;;  %v2894_v12 = vadd.f32 %v13297_v44, %v2867_v20 }
 0xdd4   :  { %v2885_v49 = vrot.slane %v2798_v32, 4  ;;  %v2904_v32 = vrot.slane %v13349_v35, 4 }
 0xdd5   :  { %v2877_v15 = vadd.f32 %v2875_v26, %v2871_v46  ;;  %v2896_v45 = vrot.slane %v2894_v12, 4  ;;  %v3055_v12 = vld [vmem:[#allocation2] sm:$0xc0] }
 0xdd6   :  { %v2887_v36 = vadd.f32 %v2885_v49, %v2872_v34 }
 0xdd7   :  { %v7618_v27 = vmul.f32 -1.442695, %v2877_v15 }
 0xdd8   :  { %v7619_v52 = vmul.f32 -1.442695, %v2887_v36 }
 0xdd9   :  { %11726 = vpow2.f32 %v7618_v27 }
 0xdda   :  { %11728 = vpow2.f32 %v7619_v52 }
 0xde3   :  { %v11727_v61 = vpop.eup %11726 }
 0xde4   :  { %v2881_v10 = vadd.f32 1.0, %v11727_v61  ;;  %v11729_v39 = vpop.eup %11728 }
 0xde5   :  { %v2891_v16 = vadd.f32 1.0, %v11729_v39 }
 0xde6   :  { %11730 = vrcp.f32 %v2881_v10 }
 0xde7   :  { %11732 = vrcp.f32 %v2891_v16 }
 0xdf0   :  { %v11731_v54 = vpop.eup %11730 }
 0xdf1   :  { %v2898_v0 = vmul.f32 %v11731_v54, %v2896_v45  ;;  %v11733_v26 = vpop.eup %11732 }
 0xdf2   :  { %v2901_v41 = vsub.f32 1.0, %v11733_v26  ;;  %v2906_v15 = vmul.f32 %v11733_v26, %v2904_v32 }
 0xdf3   :  { %v2899_v42 = vadd.f32 %v2898_v0, %v2873_v5  ;;  %v3056_v0 = vld [vmem:[#allocation2 + $0x8] sm:$0xc0] }
 0xdf5   :  { %11734 = vtanh.f32 %v2899_v42 }
 0xdff   :  { %v11735_v46 = vpop.eup %11734 }
 0xe00   :  { %v2902_v49 = vmul.f32 %v11735_v46, %v2901_v41 }
 0xe02   :  { %v2907_v27 = vadd.f32 %v2906_v15, %v2902_v49 }
 0xe04   :  { %v2909_v34 = vrot.slane %v2907_v27, 4 }
 0xe06   :  { %v13395_v20 = vsel %vm1156_vm14, %v2909_v34, %v13349_v35  ;;  %v2912_v36 = vsel %vm1156_vm14, %v2909_v34, 0.0 }
 0xe07   :  { %2913 = vst [vmem:[#allocation3 + $0x4] sm:$0x3] %v2912_v36  ;;  %2979 = vmatmul.mubr.f32.vlgmr.msra.gmra.mrb[32].mxu1 %v13395_v20  ;;  %8773 = vmatmul.mubr.f32.vlgmr.msra.gmra.mrb[26].mxu0 %v13395_v20  ;;  %v3057_v36 = vld [vmem:[#allocation2 + $0x10] sm:$0xc0] }
 0xe08   :  { %10345 = vmatpush1.bf16.msra.mxu1 %v13147_v1  ;;  %10376 = vmatpush3.bf16.msra.mxu0 %v13221_v37 }
 0xe09   :  { %10347 = vmatprep.subr.bf16.mxu1 %v13151_v23  ;;  %10377 = vmatprep.subr.bf16.mxu0 %v12310_v30 }
 0xe0a   :  { %3162 = vmatprep.mubr.f32.mxu1 %v12309_v22  ;;  %8807 = vmatprep.mubr.msk.f32.mxu0 %vm12311_vm11, %v12309_v22 }
 0xe0c   :  { %10349 = vmatpush1.bf16.msra.mxu1 %v13153_v43  ;;  %10379 = vmatpush3.bf16.msra.mxu0 %v13225_v50 }
 0xe0d   :  { %10351 = vmatprep.subr.bf16.mxu1 %v13157_v63  ;;  %10380 = vmatprep.subr.bf16.mxu0 %v12310_v30 }
 0xe10   :  { %10353 = vmatpush1.bf16.msra.mxu1 %v13159_v8  ;;  %10382 = vmatpush3.bf16.msra.mxu0 %v13232_v28 }
 0xe11   :  { %10355 = vmatprep.subr.bf16.mxu1 %v13163_v31  ;;  %10383 = vmatprep.subr.bf16.mxu0 %v12310_v30 }
 0xe14   :  { %10357 = vmatpush1.bf16.msra.mxu1 %v13165_v40  ;;  %10385 = vmatpush3.bf16.msra.mxu0 %v13239_v38 }
 0xe15   :  { %10359 = vmatprep.subr.bf16.mxu1 %v13169_v25  ;;  %10386 = vmatprep.subr.bf16.mxu0 %v12310_v30 }
 0xe18   :  { %10361 = vmatpush1.bf16.msra.mxu1 %v13171_v33  ;;  %10388 = vmatpush3.bf16.msra.mxu0 %v13245_v59 }
 0xe19   :  { %10363 = vmatprep.subr.bf16.mxu1 %v13175_v47  ;;  %10389 = vmatprep.subr.bf16.mxu0 %v12310_v30 }
 0xe1c   :  { %10365 = vmatpush1.bf16.msra.mxu1 %v13177_v48  ;;  %10391 = vmatpush3.bf16.msra.mxu0 %v13251_v6 }
 0xe1d   :  { %10367 = vmatprep.subr.bf16.mxu1 %v13180_v13  ;;  %10392 = vmatprep.subr.bf16.mxu0 %v12310_v30 }
 0xe20   :  { %10369 = vmatpush1.bf16.msra.mxu1 %v13183_v24  ;;  %10394 = vmatpush3.bf16.msra.mxu0 %v13257_v11 }
 0xe21   :  { %10371 = vmatprep.subr.bf16.mxu1 %v13186_v51  ;;  %10395 = vmatprep.subr.bf16.mxu0 %v12310_v30 }
 0xe24   :  { %10373 = vmatpush1.bf16.msra.mxu1 %v13190_v60  ;;  %10397 = vmatpush3.bf16.msra.mxu0 %v13263_v55 }
 0xe25   :  { %10399 = vmatprep.subr.bf16.mxu1 %v13145_v56  ;;  %10430 = vmatprep.subr.bf16.mxu0 %v12310_v30 }
 0xeda   :  { %v2980_v35 = vpop.f32.mrb[32].mxu1  ;;  %v3051_v52 = vpop.f32.mrb[26].mxu0 }
 0xedb   :  { %v3059_v61 = vrot.slane %v2980_v35, 2  ;;  %v2982_v10 = vpop.f32.mrb[33].mxu1  ;;  %v8774_v39 = vpop.f32.mrb[27].mxu0  ;;  %v3078_v46 = vadd.f32 %v13297_v44, %v3051_v52 }
 0xedc   :  { %v3069_v16 = vrot.slane %v2982_v10, 2  ;;  %v3088_v10 = vrot.slane %v13395_v20, 2 }
 0xedd   :  { %v3061_v45 = vadd.f32 %v3059_v61, %v3055_v12  ;;  %v3080_v15 = vrot.slane %v3078_v46, 2 }
 0xede   :  { %v3071_v5 = vadd.f32 %v3069_v16, %v3056_v0 }
 0xedf   :  { %v7620_v54 = vmul.f32 -1.442695, %v3061_v45 }
 0xee0   :  { %v7621_v42 = vmul.f32 -1.442695, %v3071_v5 }
 0xee1   :  { %11736 = vpow2.f32 %v7620_v54 }
 0xee2   :  { %11738 = vpow2.f32 %v7621_v42  ;;  %v3239_v42 = vld [vmem:[#allocation2 + $0x18] sm:$0x3] }
 0xeeb   :  { %v11737_v26 = vpop.eup %11736 }
 0xeec   :  { %v3065_v32 = vadd.f32 1.0, %v11737_v26  ;;  %v11739_v41 = vpop.eup %11738 }
 0xeed   :  { %v3075_v49 = vadd.f32 1.0, %v11739_v41 }
 0xeee   :  { %11740 = vrcp.f32 %v3065_v32 }
 0xeef   :  { %11742 = vrcp.f32 %v3075_v49 }
 0xef8   :  { %v11741_v27 = vpop.eup %11740 }
 0xef9   :  { %v3082_v34 = vmul.f32 %v11741_v27, %v3080_v15  ;;  %v11743_v61 = vpop.eup %11742  ;;  %v3240_v15 = vld [vmem:[#allocation2 + $0x20] sm:$0x3] }
 0xefa   :  { %v3085_v39 = vsub.f32 1.0, %v11743_v61  ;;  %v3090_v45 = vmul.f32 %v11743_v61, %v3088_v10 }
 0xefb   :  { %v3083_v35 = vadd.f32 %v3082_v34, %v3057_v36 }
 0xefd   :  { %11744 = vtanh.f32 %v3083_v35 }
 0xf07   :  { %v11745_v12 = vpop.eup %11744 }
 0xf08   :  { %v3086_v16 = vmul.f32 %v11745_v12, %v3085_v39 }
 0xf0a   :  { %v3091_v54 = vadd.f32 %v3090_v45, %v3086_v16  ;;  %v3241_v45 = vld [vmem:[#allocation2 + $0x28] sm:$0x3] }
 0xf0c   :  { %v3093_v0 = vrot.slane %v3091_v54, 6 }
 0xf0e   :  { %v13441_v52 = vsel %vm1346_vm15, %v3093_v0, %v13395_v20  ;;  %v3096_v5 = vsel %vm1346_vm15, %v3093_v0, 0.0 }
 0xf0f   :  { %3097 = vst [vmem:[#allocation3 + $0x6] sm:$0x3] %v3096_v5  ;;  %3163 = vmatmul.mubr.f32.vlgmr.msra.gmra.mrb[34].mxu1 %v13441_v52  ;;  %8808 = vmatmul.mubr.f32.vlgmr.msra.gmra.mrb[28].mxu0 %v13441_v52 }
 0xf10   :  { %10401 = vmatpush1.bf16.msra.mxu1 %v13147_v1  ;;  %10432 = vmatpush3.bf16.msra.mxu0 %v13221_v37 }
 0xf11   :  { %10403 = vmatprep.subr.bf16.mxu1 %v13151_v23  ;;  %10433 = vmatprep.subr.bf16.mxu0 %v12310_v30 }
 0xf12   :  { %3331 = vmatprep.mubr.f32.mxu1 %v12309_v22  ;;  %8842 = vmatprep.mubr.msk.f32.mxu0 %vm12311_vm11, %v12309_v22 }
 0xf14   :  { %10405 = vmatpush1.bf16.msra.mxu1 %v13153_v43  ;;  %10435 = vmatpush3.bf16.msra.mxu0 %v13225_v50 }
 0xf15   :  { %10407 = vmatprep.subr.bf16.mxu1 %v13157_v63  ;;  %10436 = vmatprep.subr.bf16.mxu0 %v12310_v30 }
 0xf18   :  { %10409 = vmatpush1.bf16.msra.mxu1 %v13159_v8  ;;  %10438 = vmatpush3.bf16.msra.mxu0 %v13232_v28 }
 0xf19   :  { %10411 = vmatprep.subr.bf16.mxu1 %v13163_v31  ;;  %10439 = vmatprep.subr.bf16.mxu0 %v12310_v30 }
 0xf1c   :  { %10413 = vmatpush1.bf16.msra.mxu1 %v13165_v40  ;;  %10441 = vmatpush3.bf16.msra.mxu0 %v13239_v38 }
 0xf1d   :  { %10415 = vmatprep.subr.bf16.mxu1 %v13169_v25  ;;  %10442 = vmatprep.subr.bf16.mxu0 %v12310_v30 }
 0xf20   :  { %10417 = vmatpush1.bf16.msra.mxu1 %v13171_v33  ;;  %10444 = vmatpush3.bf16.msra.mxu0 %v13245_v59 }
 0xf21   :  { %10419 = vmatprep.subr.bf16.mxu1 %v13175_v47  ;;  %10445 = vmatprep.subr.bf16.mxu0 %v12310_v30 }
 0xf24   :  { %10421 = vmatpush1.bf16.msra.mxu1 %v13177_v48  ;;  %10447 = vmatpush3.bf16.msra.mxu0 %v13251_v6 }
 0xf25   :  { %10423 = vmatprep.subr.bf16.mxu1 %v13180_v13  ;;  %10448 = vmatprep.subr.bf16.mxu0 %v12310_v30 }
 0xf28   :  { %10425 = vmatpush1.bf16.msra.mxu1 %v13183_v24  ;;  %10450 = vmatpush3.bf16.msra.mxu0 %v13257_v11 }
 0xf29   :  { %10427 = vmatprep.subr.bf16.mxu1 %v13186_v51  ;;  %10451 = vmatprep.subr.bf16.mxu0 %v12310_v30 }
 0xf2c   :  { %10429 = vmatpush1.bf16.msra.mxu1 %v13190_v60  ;;  %10453 = vmatpush3.bf16.msra.mxu0 %v13263_v55 }
 0xf2d   :  { %10455 = vmatprep.subr.bf16.mxu1 %v13145_v56  ;;  %10486 = vmatprep.subr.bf16.mxu0 %v12310_v30 }
 0xfe2   :  { %v3164_v20 = vpop.f32.mrb[34].mxu1  ;;  %v3235_v26 = vpop.f32.mrb[28].mxu0 }
 0xfe3   :  { %v3242_v32 = vadd.f32 %v3239_v42, %v3164_v20  ;;  %v3166_v41 = vpop.f32.mrb[35].mxu1  ;;  %v8809_v46 = vpop.f32.mrb[29].mxu0  ;;  %v3256_v39 = vadd.f32 %v13297_v44, %v3235_v26 }
 0xfe4   :  { %v3249_v27 = vadd.f32 %v3240_v15, %v3166_v41 }
 0xfe5   :  { %v7622_v49 = vmul.f32 -1.442695, %v3242_v32 }
 0xfe6   :  { %v7623_v34 = vmul.f32 -1.442695, %v3249_v27 }
 0xfe7   :  { %11746 = vpow2.f32 %v7622_v49 }
 0xfe8   :  { %11748 = vpow2.f32 %v7623_v34 }
 0xff1   :  { %v11747_v36 = vpop.eup %11746 }
 0xff2   :  { %v3246_v35 = vadd.f32 1.0, %v11747_v36  ;;  %v11749_v61 = vpop.eup %11748  ;;  %v3408_v36 = vld [vmem:[#allocation2 + $0x18] sm:$0xc] }
 0xff3   :  { %v3253_v10 = vadd.f32 1.0, %v11749_v61 }
 0xff4   :  { %11750 = vrcp.f32 %v3246_v35 }
 0xff5   :  { %11752 = vrcp.f32 %v3253_v10 }
 0xffe   :  { %v11751_v12 = vpop.eup %11750 }
 0xfff   :  { %v3257_v16 = vmul.f32 %v11751_v12, %v3256_v39  ;;  %v11753_v0 = vpop.eup %11752  ;;  %v3409_v39 = vld [vmem:[#allocation2 + $0x20] sm:$0xc] }
0x1000   :  { %v3260_v5 = vsub.f32 1.0, %v11753_v0  ;;  %v3262_v32 = vmul.f32 %v11753_v0, %v13441_v52 }
0x1001   :  { %v3258_v54 = vadd.f32 %v3257_v16, %v3241_v45 }
0x1003   :  { %11754 = vtanh.f32 %v3258_v54 }
0x100d   :  { %v11755_v20 = vpop.eup %11754 }
0x100e   :  { %v3261_v42 = vmul.f32 %v11755_v20, %v3260_v5 }
0x1010   :  { %v3263_v41 = vadd.f32 %v3262_v32, %v3261_v42 }
0x1012   :  { %v13487_v46 = vsel %vm1524_vm0, %v3263_v41, %v13441_v52  ;;  %v3265_v26 = vsel %vm1524_vm0, %v3263_v41, 0.0  ;;  %v3410_v41 = vld [vmem:[#allocation2 + $0x28] sm:$0xc] }
0x1013   :  { %3266 = vst [vmem:[#allocation3 + $0x8] sm:$0x3] %v3265_v26  ;;  %3332 = vmatmul.mubr.f32.vlgmr.msra.gmra.mrb[36].mxu1 %v13487_v46  ;;  %8843 = vmatmul.mubr.f32.vlgmr.msra.gmra.mrb[30].mxu0 %v13487_v46 }
0x1014   :  { %10457 = vmatpush1.bf16.msra.mxu1 %v13147_v1  ;;  %10488 = vmatpush3.bf16.msra.mxu0 %v13221_v37 }
0x1015   :  { %10459 = vmatprep.subr.bf16.mxu1 %v13151_v23  ;;  %10489 = vmatprep.subr.bf16.mxu0 %v12310_v30 }
0x1016   :  { %3515 = vmatprep.mubr.f32.mxu1 %v12309_v22  ;;  %8877 = vmatprep.mubr.msk.f32.mxu0 %vm12311_vm11, %v12309_v22 }
0x1018   :  { %10461 = vmatpush1.bf16.msra.mxu1 %v13153_v43  ;;  %10491 = vmatpush3.bf16.msra.mxu0 %v13225_v50 }
0x1019   :  { %10463 = vmatprep.subr.bf16.mxu1 %v13157_v63  ;;  %10492 = vmatprep.subr.bf16.mxu0 %v12310_v30 }
0x101c   :  { %10465 = vmatpush1.bf16.msra.mxu1 %v13159_v8  ;;  %10494 = vmatpush3.bf16.msra.mxu0 %v13232_v28 }
0x101d   :  { %10467 = vmatprep.subr.bf16.mxu1 %v13163_v31  ;;  %10495 = vmatprep.subr.bf16.mxu0 %v12310_v30 }
0x1020   :  { %10469 = vmatpush1.bf16.msra.mxu1 %v13165_v40  ;;  %10497 = vmatpush3.bf16.msra.mxu0 %v13239_v38 }
0x1021   :  { %10471 = vmatprep.subr.bf16.mxu1 %v13169_v25  ;;  %10498 = vmatprep.subr.bf16.mxu0 %v12310_v30 }
0x1024   :  { %10473 = vmatpush1.bf16.msra.mxu1 %v13171_v33  ;;  %10500 = vmatpush3.bf16.msra.mxu0 %v13245_v59 }
0x1025   :  { %10475 = vmatprep.subr.bf16.mxu1 %v13175_v47  ;;  %10501 = vmatprep.subr.bf16.mxu0 %v12310_v30 }
0x1028   :  { %10477 = vmatpush1.bf16.msra.mxu1 %v13177_v48  ;;  %10503 = vmatpush3.bf16.msra.mxu0 %v13251_v6 }
0x1029   :  { %10479 = vmatprep.subr.bf16.mxu1 %v13180_v13  ;;  %10504 = vmatprep.subr.bf16.mxu0 %v12310_v30 }
0x102c   :  { %10481 = vmatpush1.bf16.msra.mxu1 %v13183_v24  ;;  %10506 = vmatpush3.bf16.msra.mxu0 %v13257_v11 }
0x102d   :  { %10483 = vmatprep.subr.bf16.mxu1 %v13186_v51  ;;  %10507 = vmatprep.subr.bf16.mxu0 %v12310_v30 }
0x1030   :  { %10485 = vmatpush1.bf16.msra.mxu1 %v13190_v60  ;;  %10509 = vmatpush3.bf16.msra.mxu0 %v13263_v55 }
0x1031   :  { %10511 = vmatprep.subr.bf16.mxu1 %v13145_v56  ;;  %10542 = vmatprep.subr.bf16.mxu0 %v12310_v30 }
0x10e6   :  { %v3333_v52 = vpop.f32.mrb[36].mxu1  ;;  %v3404_v49 = vpop.f32.mrb[30].mxu0 }
0x10e7   :  { %v3412_v15 = vrot.slane %v3333_v52, 6  ;;  %v3335_v27 = vpop.f32.mrb[37].mxu1  ;;  %v8844_v34 = vpop.f32.mrb[31].mxu0  ;;  %v3431_v0 = vadd.f32 %v13297_v44, %v3404_v49 }
0x10e8   :  { %v3422_v35 = vrot.slane %v3335_v27, 6 }
0x10e9   :  { %v3414_v61 = vadd.f32 %v3412_v15, %v3408_v36  ;;  %v3433_v20 = vrot.slane %v3431_v0, 6  ;;  %v3441_v15 = vrot.slane %v13487_v46, 6 }
0x10ea   :  { %v3424_v12 = vadd.f32 %v3422_v35, %v3409_v39 }
0x10eb   :  { %v7624_v10 = vmul.f32 -1.442695, %v3414_v61 }
0x10ec   :  { %v7625_v16 = vmul.f32 -1.442695, %v3424_v12 }
0x10ed   :  { %11756 = vpow2.f32 %v7624_v10 }
0x10ee   :  { %11758 = vpow2.f32 %v7625_v16 }
0x10f7   :  { %v11757_v45 = vpop.eup %11756 }
0x10f8   :  { %v3418_v54 = vadd.f32 1.0, %v11757_v45  ;;  %v11759_v56 = vpop.eup %11758 }
0x10f9   :  { %v3428_v5 = vadd.f32 1.0, %v11759_v56 }
0x10fa   :  { %11760 = vrcp.f32 %v3418_v54 }
0x10fb   :  { %11762 = vrcp.f32 %v3428_v5 }
0x1104   :  { %v11761_v42 = vpop.eup %11760 }
0x1105   :  { %v3435_v32 = vmul.f32 %v11761_v42, %v3433_v20  ;;  %v11763_v52 = vpop.eup %11762  ;;  %v3947_v20 = vpop.permute.xlu0 %3946 }
0x1106   :  { %v3438_v27 = vsub.f32 1.0, %v11763_v52  ;;  %v3443_v35 = vmul.f32 %v11763_v52, %v3441_v15  ;;  %vm3951_vm5 = vcmp.eq.s32.totalorder %v3947_v20, %v12671_v18  ;;  %v3819_v52 = vld [vmem:[#allocation3] sm:$0xff]  ;;  %v4230_v20 = vld [vmem:[#allocation22 + $0x18] sm:$0xff] }
0x1107   :  { %v3436_v26 = vadd.f32 %v3435_v32, %v3410_v41  ;;  %v3950_v32 = vpop.permute.xlu1 %3949  ;;  %v7631_v15 = vsel %vm3951_vm5, 1.0, %v12309_v22 }
0x1108   :  { %vm3952_vm6 = vcmp.eq.s32.totalorder %v3950_v32, %v12671_v18  ;;  %v4228_v18 = vld [vmem:[#allocation22 + $0x8] sm:$0xff] }
0x1109   :  { %11764 = vtanh.f32 %v3436_v26 }
0x1113   :  { %v11765_v34 = vpop.eup %11764 }
0x1114   :  { %v3439_v36 = vmul.f32 %v11765_v34, %v3438_v27  ;;  %v7632_v27 = vsel %vm3952_vm6, 1.0, %v12309_v22  ;;  %v4042_v34 = vld [vmem:[#allocation20 + $0x10] sm:$0xff] }
0x1116   :  { %v3444_v61 = vadd.f32 %v3443_v35, %v3439_v36  ;;  %v4045_v36 = vld [vmem:[#allocation20 + $0x28] sm:$0xff] }
0x1117   :  { %v10606_v35 = vpack.c.bf16 %v4045_v36, %v4042_v34 }
0x1118   :  { %v3446_v10 = vrot.slane %v3444_v61, 2  ;;  %v4231_v61 = vld [vmem:[#allocation22 + $0x20] sm:$0xff] }
0x111a   :  { %v13533_v49 = vsel %vm1711_vm1, %v3446_v10, %v13487_v46  ;;  %v3449_v39 = vsel %vm1711_vm1, %v3446_v10, 0.0  ;;  %v3594_v46 = vld [vmem:[#allocation2 + $0x28] sm:$0x30]  ;;  %v13589_v10 = vpack.c.bf16 %v4231_v61, %v4228_v18  ;;  %v4233_v61 = vld [vmem:[#allocation22 + $0x30] sm:$0xff] }
0x111b   :  { %3450 = vst [vmem:[#allocation3 + $0xa] sm:$0x3] %v3449_v39  ;;  %3516 = vmatmul.mubr.f32.vlgmr.msra.gmra.mrb[38].mxu1 %v13533_v49  ;;  %8878 = vmatmul.mubr.f32.vlgmr.msra.gmra.mrb[32].mxu0 %v13533_v49  ;;  %v3625_v45 = vrot.slane %v13533_v49, 4  ;;  %v3822_v39 = vld [vmem:[%s14580_s12 + $0x8] sm:$0xff] }
0x111c   :  { %10513 = vmatpush1.bf16.msra.mxu1 %v13147_v1  ;;  %10544 = vmatpush3.bf16.msra.mxu0 %v13221_v37  ;;  %v3957_v1 = vld [vmem:[#allocation19] sm:$0xff] }
0x111d   :  { %10515 = vmatprep.subr.bf16.mxu1 %v13151_v23  ;;  %10545 = vmatprep.subr.bf16.mxu0 %v12310_v30  ;;  %v3958_v23 = vld [vmem:[#allocation19 + $0x8] sm:$0xff] }
0x111e   :  { %3699 = vmatprep.mubr.f32.mxu1 %v12309_v22  ;;  %8912 = vmatprep.mubr.msk.f32.mxu0 %vm12311_vm11, %v12309_v22 }
0x1120   :  { %10517 = vmatpush1.bf16.msra.mxu1 %v13153_v43  ;;  %10547 = vmatpush3.bf16.msra.mxu0 %v13225_v50  ;;  %v10598_v43 = vpack.c.bf16 %v3958_v23, %v3957_v1  ;;  %v3823_v23 = vld [vmem:[%s14580_s12 + $0x10] sm:$0xff] }
0x1121   :  { %10519 = vmatprep.subr.bf16.mxu1 %v13157_v63  ;;  %10548 = vmatprep.subr.bf16.mxu0 %v12310_v30 }
0x1124   :  { %10521 = vmatpush1.bf16.msra.mxu1 %v13159_v8  ;;  %10550 = vmatpush3.bf16.msra.mxu0 %v13232_v28 }
0x1125   :  { %10523 = vmatprep.subr.bf16.mxu1 %v13163_v31  ;;  %10551 = vmatprep.subr.bf16.mxu0 %v12310_v30 }
0x1128   :  { %10525 = vmatpush1.bf16.msra.mxu1 %v13165_v40  ;;  %10553 = vmatpush3.bf16.msra.mxu0 %v13239_v38 }
0x1129   :  { %10527 = vmatprep.subr.bf16.mxu1 %v13169_v25  ;;  %10554 = vmatprep.subr.bf16.mxu0 %v12310_v30 }
0x112c   :  { %10529 = vmatpush1.bf16.msra.mxu1 %v13171_v33  ;;  %10556 = vmatpush3.bf16.msra.mxu0 %v13245_v59  ;;  %v3592_v33 = vld [vmem:[#allocation2 + $0x18] sm:$0x30] }
0x112d   :  { %10531 = vmatprep.subr.bf16.mxu1 %v13175_v47  ;;  %10557 = vmatprep.subr.bf16.mxu0 %v12310_v30 }
0x1130   :  { %10533 = vmatpush1.bf16.msra.mxu1 %v13177_v48  ;;  %10559 = vmatpush3.bf16.msra.mxu0 %v13251_v6 }
0x1131   :  { %10535 = vmatprep.subr.bf16.mxu1 %v13180_v13  ;;  %10560 = vmatprep.subr.bf16.mxu0 %v12310_v30 }
0x1134   :  { %10537 = vmatpush1.bf16.msra.mxu1 %v13183_v24  ;;  %10562 = vmatpush3.bf16.msra.mxu0 %v13257_v11  ;;  %v3593_v24 = vld [vmem:[#allocation2 + $0x20] sm:$0x30] }
0x1135   :  { %10539 = vmatprep.subr.bf16.mxu1 %v13186_v51  ;;  %10563 = vmatprep.subr.bf16.mxu0 %v12310_v30 }
0x1138   :  { %10541 = vmatpush1.bf16.msra.mxu1 %v13190_v60  ;;  %10565 = vmatpush3.bf16.msra.mxu0 %v13263_v55 }
0x1139   :  { %10599 = vmatprep.subr.bf16.mxu0 %v10598_v43 }
0x11ee   :  { %v3517_v63 = vpop.f32.mrb[38].mxu1  ;;  %v3588_v8 = vpop.f32.mrb[32].mxu0 }
0x11ef   :  { %v3596_v31 = vrot.slane %v3517_v63, 4  ;;  %v3519_v40 = vpop.f32.mrb[39].mxu1  ;;  %v8879_v25 = vpop.f32.mrb[33].mxu0  ;;  %v3615_v38 = vadd.f32 %v13297_v44, %v3588_v8  ;;  %v3825_v8 = vld [vmem:[%s14580_s12 + $0x20] sm:$0xff] }
0x11f0   :  { %v3606_v47 = vrot.slane %v3519_v40, 4  ;;  %v3827_v25 = vld [vmem:[%s14580_s12 + $0x30] sm:$0xff] }
0x11f1   :  { %v3598_v48 = vadd.f32 %v3596_v31, %v3592_v33  ;;  %v3617_v6 = vrot.slane %v3615_v38, 4  ;;  %v3826_v31 = vld [vmem:[%s14580_s12 + $0x28] sm:$0xff]  ;;  %v3828_v33 = vld [vmem:[%s14580_s12 + $0x38] sm:$0xff]  ;;  %v3835_v38 = vld [vmem:[%s14580_s12 + $0x70] sm:$0xff] }
0x11f2   :  { %v3608_v51 = vadd.f32 %v3606_v47, %v3593_v24  ;;  %v10574_v40 = vpack.c.bf16 %v3826_v31, %v3825_v8  ;;  %v10578_v47 = vpack.c.bf16 %v3828_v33, %v3827_v25  ;;  %v4239_v8 = vld [vmem:[#allocation22 + $0x60] sm:$0xff]  ;;  %v4242_v31 = vld [vmem:[#allocation22 + $0x78] sm:$0xff]  ;;  %v4249_v33 = vld [vmem:[#allocation22 + $0xb0] sm:$0xff] }
0x11f3   :  { %v7626_v13 = vmul.f32 -1.442695, %v3598_v48  ;;  %v3829_v48 = vld [vmem:[%s14580_s12 + $0x40] sm:$0xff] }
0x11f4   :  { %v7627_v37 = vmul.f32 -1.442695, %v3608_v51  ;;  %v3831_v51 = vld [vmem:[%s14580_s12 + $0x50] sm:$0xff]  ;;  %v4246_v25 = vld [vmem:[#allocation22 + $0x98] sm:$0xff] }
0x11f5   :  { %11766 = vpow2.f32 %v7626_v13  ;;  %v3830_v13 = vld [vmem:[%s14580_s12 + $0x48] sm:$0xff] }
0x11f6   :  { %11768 = vpow2.f32 %v7627_v37  ;;  %v10582_v24 = vpack.c.bf16 %v3830_v13, %v3829_v48  ;;  %v3832_v37 = vld [vmem:[%s14580_s12 + $0x58] sm:$0xff]  ;;  %v13665_v48 = vpack.c.bf16 %v4249_v33, %v4246_v25 }
0x11f7   :  { %v4245_v13 = vld [vmem:[#allocation22 + $0x90] sm:$0xff] }
0x11ff   :  { %v11767_v60 = vpop.eup %11766 }
0x1200   :  { %v3602_v50 = vadd.f32 1.0, %v11767_v60  ;;  %v11769_v28 = vpop.eup %11768  ;;  %v10586_v60 = vpack.c.bf16 %v3832_v37, %v3831_v51  ;;  %v4252_v51 = vld [vmem:[#allocation22 + $0xc8] sm:$0xff]  ;;  %v4255_v37 = vld [vmem:[#allocation22 + $0xe0] sm:$0xff] }
0x1201   :  { %v3612_v59 = vadd.f32 1.0, %v11769_v28  ;;  %v3834_v28 = vld [vmem:[%s14580_s12 + $0x68] sm:$0xff] }
0x1202   :  { %11770 = vrcp.f32 %v3602_v50  ;;  %v3833_v50 = vld [vmem:[%s14580_s12 + $0x60] sm:$0xff] }
0x1203   :  { %11772 = vrcp.f32 %v3612_v59  ;;  %v10590_v59 = vpack.c.bf16 %v3834_v28, %v3833_v50  ;;  %v13671_v28 = vpack.c.bf16 %v4255_v37, %v4252_v51 }
0x120c   :  { %v11771_v11 = vpop.eup %11770 }
0x120d   :  { %v3619_v55 = vmul.f32 %v11771_v11, %v3617_v6  ;;  %v11773_v16 = vpop.eup %11772  ;;  %v3836_v6 = vld [vmem:[%s14580_s12 + $0x78] sm:$0xff] }
0x120e   :  { %v3622_v54 = vsub.f32 1.0, %v11773_v16  ;;  %v3627_v5 = vmul.f32 %v11773_v16, %v3625_v45  ;;  %v10594_v11 = vpack.c.bf16 %v3836_v6, %v3835_v38  ;;  %v4251_v38 = vld [vmem:[#allocation22 + $0xc0] sm:$0xff] }
0x120f   :  { %v3620_v12 = vadd.f32 %v3619_v55, %v3594_v46  ;;  %v4041_v55 = vld [vmem:[#allocation20 + $0x8] sm:$0xff]  ;;  %v4044_v46 = vld [vmem:[#allocation20 + $0x20] sm:$0xff] }
0x1211   :  { %11774 = vtanh.f32 %v3620_v12  ;;  %v10602_v12 = vpack.c.bf16 %v4044_v46, %v4041_v55  ;;  %v4261_v55 = vld [vmem:[#allocation22 + $0x110] sm:$0xff] }
0x121b   :  { %v11775_v56 = vpop.eup %11774 }
0x121c   :  { %v3623_v0 = vmul.f32 %v11775_v56, %v3622_v54 }
0x121e   :  { %v3628_v42 = vadd.f32 %v3627_v5, %v3623_v0  ;;  %v4227_v5 = vld [vmem:[#allocation22] sm:$0xff] }
0x121f   :  { %v13644_v34 = vpack.c.bf16 %v4230_v20, %v4227_v5 }
0x1220   :  { %v3630_v41 = vrot.slane %v3628_v42, 4  ;;  %v3776_v42 = vld [vmem:[#allocation2 + $0x18] sm:$0xc0] }
0x1222   :  { %v13578_v44 = vsel %vm1901_vm2, %v3630_v41, %v13533_v49  ;;  %v3633_v26 = vsel %vm1901_vm2, %v3630_v41, 0.0  ;;  %v3821_v49 = vld [vmem:[%s14580_s12] sm:$0xff] }
0x1223   :  { %3634 = vst [vmem:[#allocation3 + $0xc] sm:$0x3] %v3633_v26  ;;  %3700 = vmatmul.mubr.f32.vlgmr.msra.gmra.mrb[40].mxu1 %v13578_v44  ;;  %8913 = vmatmul.mubr.f32.vlgmr.msra.gmra.mrb[34].mxu0 %v13578_v44  ;;  %v10566_v1 = vpack.c.bf16 %v3822_v39, %v3821_v49  ;;  %v4234_v41 = vld [vmem:[#allocation22 + $0x38] sm:$0xff]  ;;  %v4237_v26 = vld [vmem:[#allocation22 + $0x50] sm:$0xff]  ;;  %v4236_v49 = vld [vmem:[#allocation22 + $0x48] sm:$0xff]  ;;  %v3809_v51 = vrot.slane %v13578_v44, 2 }
0x1224   :  { %8947 = vmatprep.mubr.f32.mxu1 %v3819_v52  ;;  %10601 = vmatpush3.bf16.msra.mxu0 %v10598_v43  ;;  %v3824_v43 = vld [vmem:[%s14580_s12 + $0x18] sm:$0xff]  ;;  %v13648_v18 = vpack.c.bf16 %v4237_v26, %v4234_v41  ;;  %v4263_v26 = vld [vmem:[#allocation22 + $0x120] sm:$0xff] }
0x1225   :  { %8954 = vmatprep.mubr.msk.f32.mxu0 %vm285_vm3, %v7631_v15  ;;  %10607 = vmatprep.subr.bf16.mxu0 %v10606_v35  ;;  %v10570_v63 = vpack.c.bf16 %v3824_v43, %v3823_v23  ;;  %v3777_v15 = vld [vmem:[#allocation2 + $0x20] sm:$0xc0]  ;;  %v4243_v23 = vld [vmem:[#allocation22 + $0x80] sm:$0xff]  ;;  %v13655_v43 = vpack.c.bf16 %v4236_v49, %v4233_v61 }
0x1226   :  { %10567 = vmatprep.subr.bf16.mxu1 %v10566_v1 }
0x1227   :  { %8955 = vmatmul.mubr.msk.f32.vlgmr.msra.gmra.mrb[36].mxu0 %vm285_vm3, %v7632_v27  ;;  %10569 = vmatpush3.bf16.msra.mxu1 %v10566_v1  ;;  %v4240_v1 = vld [vmem:[#allocation22 + $0x68] sm:$0xff] }
0x1228   :  { %10609 = vmatpush3.bf16.msra.mxu0 %v10606_v35  ;;  %10571 = vmatprep.subr.bf16.mxu1 %v10570_v63 }
0x1229   :  { %10611 = vmatprep.subr.bf16.mxu0 %v13589_v10 }
0x122b   :  { %10573 = vmatpush3.bf16.msra.mxu1 %v10570_v63  ;;  %v13659_v63 = vpack.c.bf16 %v4243_v23, %v4240_v1  ;;  %v4269_v23 = vld [vmem:[#allocation22 + $0x150] sm:$0xff] }
0x122c   :  { %10575 = vmatprep.subr.bf16.mxu1 %v10574_v40 }
0x122f   :  { %10577 = vmatpush3.bf16.msra.mxu1 %v10574_v40 }
0x1230   :  { %10579 = vmatprep.subr.bf16.mxu1 %v10578_v47 }
0x1233   :  { %10581 = vmatpush3.bf16.msra.mxu1 %v10578_v47  ;;  %v13662_v47 = vpack.c.bf16 %v4242_v31, %v4239_v8 }
0x1234   :  { %10583 = vmatprep.subr.bf16.mxu1 %v10582_v24 }
0x1237   :  { %10585 = vmatpush3.bf16.msra.mxu1 %v10582_v24  ;;  %v4248_v24 = vld [vmem:[#allocation22 + $0xa8] sm:$0xff] }
0x1238   :  { %10587 = vmatprep.subr.bf16.mxu1 %v10586_v60 }
0x123b   :  { %10589 = vmatpush3.bf16.msra.mxu1 %v10586_v60  ;;  %v13668_v60 = vpack.c.bf16 %v4248_v24, %v4245_v13  ;;  %v13703_v13 = vsel %vm2091_vm4, %v2093_v19, %v13137_v62 }
0x123c   :  { %10591 = vmatprep.subr.bf16.mxu1 %v10590_v59 }
0x123f   :  { %10593 = vmatpush3.bf16.msra.mxu1 %v10590_v59  ;;  %v4254_v59 = vld [vmem:[#allocation22 + $0xd8] sm:$0xff] }
0x1240   :  { %10595 = vmatprep.subr.bf16.mxu1 %v10594_v11  ;;  %v13674_v46 = vpack.c.bf16 %v4254_v59, %v4251_v38 }
0x1243   :  { %10597 = vmatpush3.bf16.msra.mxu1 %v10594_v11  ;;  %v4258_v11 = vld [vmem:[#allocation22 + $0xf8] sm:$0xff] }
0x1244   :  { %10603 = vmatprep.subr.bf16.mxu1 %v10602_v12  ;;  %v13677_v12 = vpack.c.bf16 %v4261_v55, %v4258_v11  ;;  %v4043_v11 = vld [vmem:[#allocation20 + $0x18] sm:$0xff] }
0x12f6   :  { %v3701_v16 = vpop.f32.mrb[40].mxu1  ;;  %v13640_v45 = vpop.f32.mrb[34].mxu0 }
0x12f7   :  { %v3780_v54 = vrot.slane %v3701_v16, 2  ;;  %v3703_v56 = vpop.f32.mrb[41].mxu1  ;;  %v8914_v0 = vpop.f32.mrb[35].mxu0  ;;  %v4257_v16 = vld [vmem:[#allocation22 + $0xf0] sm:$0xff] }
0x12f8   :  { %v3790_v32 = vrot.slane %v3703_v56, 2  ;;  %v4264_v56 = vld [vmem:[#allocation22 + $0x128] sm:$0xff]  ;;  %v4267_v0 = vld [vmem:[#allocation22 + $0x140] sm:$0xff] }
0x12f9   :  { %v3782_v52 = vadd.f32 %v3780_v54, %v3776_v42  ;;  %v4260_v54 = vld [vmem:[#allocation22 + $0x108] sm:$0xff]  ;;  %v11963_v42 = vld [vmem:[#allocation16] ss:$0 sm:$0xff]  ;;  %v13684_v41 = vpack.c.bf16 %v4267_v0, %v4264_v56 }
0x12fa   :  { %v13642_v27 = vpop.f32.mrb[36].mxu0  ;;  %v3792_v39 = vadd.f32 %v3790_v32, %v3777_v15  ;;  %v13680_v20 = vpack.c.bf16 %v4260_v54, %v4257_v16  ;;  %v3799_v32 = vadd.f32 %v11963_v42, %v13640_v45  ;;  %v4270_v15 = vld [vmem:[#allocation22 + $0x158] sm:$0xff]  ;;  %v4272_v45 = vld [vmem:[#allocation22 + $0x168] sm:$0xff]  ;;  %v4229_v16 = vld [vmem:[#allocation22 + $0x10] sm:$0xff] }
0x12fb   :  { %v7628_v36 = vmul.f32 -1.442695, %v3782_v52  ;;  %v13646_v35 = vpop.f32.mrb[37].mxu0  ;;  %v4266_v52 = vld [vmem:[#allocation22 + $0x138] sm:$0xff]  ;;  %v13693_v25 = vpack.c.bf16 %v4272_v45, %v4269_v23  ;;  %v4232_v54 = vld [vmem:[#allocation22 + $0x28] sm:$0xff]  ;;  %v4259_v45 = vld [vmem:[#allocation22 + $0x100] sm:$0xff] }
0x12fc   :  { %8961 = vmatprep.mubr.msk.f32.mxu0 %vm285_vm3, %v13646_v35  ;;  %v7629_v40 = vmul.f32 -1.442695, %v3792_v39  ;;  %v13687_v49 = vpack.c.bf16 %v4266_v52, %v4263_v26  ;;  %v3801_v39 = vrot.slane %v3799_v32, 2  ;;  %v13728_v0 = vpack.c.bf16 %v4232_v54, %v4229_v16  ;;  %v4238_v42 = vld [vmem:[#allocation22 + $0x58] sm:$0xff]  ;;  %v4241_v26 = vld [vmem:[#allocation22 + $0x70] sm:$0xff]  ;;  %v4244_v52 = vld [vmem:[#allocation22 + $0x88] sm:$0xff] }
0x12fd   :  { %11776 = vpow2.f32 %v7628_v36  ;;  %8962 = vmatmul.mubr.msk.f32.vlgmr.msra.gmra.mrb[38].mxu0 %vm285_vm3, %v13642_v27  ;;  %v4273_v36 = vld [vmem:[#allocation22 + $0x170] sm:$0xff] }
0x12fe   :  { %10613 = vmatpush1.bf16.msra.mxu0 %v13644_v34  ;;  %4340 = vmatprep.mubr.f32.mxu0 %v12309_v22  ;;  %11778 = vpow2.f32 %v7629_v40  ;;  %v13690_v1 = vpack.c.bf16 %v4273_v36, %v4270_v15  ;;  %v3778_v40 = vld [vmem:[#allocation2 + $0x28] sm:$0xc0]  ;;  %v4250_v36 = vld [vmem:[#allocation22 + $0xb8] sm:$0xff] }
0x12ff   :  { %10615 = vmatprep.subr.bf16.mxu0 %v13648_v18  ;;  %v4247_v15 = vld [vmem:[#allocation22 + $0xa0] sm:$0xff] }
0x1302   :  { %10617 = vmatpush1.bf16.msra.mxu0 %v13655_v43 }
0x1303   :  { %10619 = vmatprep.subr.bf16.mxu0 %v13659_v63 }
0x1306   :  { %10621 = vmatpush1.bf16.msra.mxu0 %v13662_v47 }
0x1307   :  { %v11777_v50 = vpop.eup %11776  ;;  %10623 = vmatprep.subr.bf16.mxu0 %v13665_v48 }
0x1308   :  { %v3786_v6 = vadd.f32 1.0, %v11777_v50  ;;  %v11779_v5 = vpop.eup %11778 }
0x1309   :  { %v3796_v61 = vadd.f32 1.0, %v11779_v5  ;;  %v4235_v5 = vld [vmem:[#allocation22 + $0x40] sm:$0xff] }
0x130a   :  { %11780 = vrcp.f32 %v3786_v6  ;;  %10625 = vmatpush1.bf16.msra.mxu0 %v13668_v60  ;;  %v4040_v6 = vld [vmem:[#allocation20] sm:$0xff]  ;;  %v13737_v32 = vpack.c.bf16 %v4238_v42, %v4235_v5 }
0x130b   :  { %10627 = vmatprep.subr.bf16.mxu0 %v13671_v28  ;;  %11782 = vrcp.f32 %v3796_v61  ;;  %v10604_v55 = vpack.c.bf16 %v4043_v11, %v4040_v6  ;;  %v13751_v61 = vpack.c.bf16 %v4250_v36, %v4247_v15 }
0x130e   :  { %10629 = vmatpush1.bf16.msra.mxu0 %v13674_v46 }
0x130f   :  { %10631 = vmatprep.subr.bf16.mxu0 %v13677_v12 }
0x1312   :  { %10633 = vmatpush1.bf16.msra.mxu0 %v13680_v20 }
0x1313   :  { %10635 = vmatprep.subr.bf16.mxu0 %v13684_v41 }
0x1314   :  { %v11781_v8 = vpop.eup %11780 }
0x1315   :  { %v3803_v31 = vmul.f32 %v11781_v8, %v3801_v39  ;;  %v11783_v24 = vpop.eup %11782  ;;  %v4256_v39 = vld [vmem:[#allocation22 + $0xe8] sm:$0xff]  ;;  %v4262_v8 = vld [vmem:[#allocation22 + $0x118] sm:$0xff] }
0x1316   :  { %10637 = vmatpush1.bf16.msra.mxu0 %v13687_v49  ;;  %v3806_v37 = vsub.f32 1.0, %v11783_v24  ;;  %v3811_v62 = vmul.f32 %v11783_v24, %v3809_v51  ;;  %v4271_v51 = vld [vmem:[#allocation22 + $0x160] sm:$0xff] }
0x1317   :  { %v3804_v33 = vadd.f32 %v3803_v31, %v3778_v40  ;;  %10639 = vmatprep.subr.bf16.mxu0 %v13690_v1  ;;  %v13759_v31 = vpack.c.bf16 %v4262_v8, %v4259_v45  ;;  %v4265_v40 = vld [vmem:[#allocation22 + $0x130] sm:$0xff] }
0x1319   :  { %11784 = vtanh.f32 %v3804_v33  ;;  %v4268_v33 = vld [vmem:[#allocation22 + $0x148] sm:$0xff] }
0x131a   :  { %10641 = vmatpush1.bf16.msra.mxu0 %v13693_v25  ;;  %v13763_v24 = vpack.c.bf16 %v4268_v33, %v4265_v40 }
0x131b   :  { %10667 = vmatprep.subr.bf16.mxu0 %v13589_v10 }
0x131d   :  { %4341 = vmatmul.mubr.f32.vlgmr.msra.gmra.mrb[40].mxu0 %v13703_v13 }
0x131e   :  { %10669 = vmatpush1.bf16.msra.mxu0 %v13644_v34  ;;  %4515 = vmatprep.mubr.f32.mxu0 %v12309_v22 }
0x131f   :  { %10671 = vmatprep.subr.bf16.mxu0 %v13648_v18 }
0x1322   :  { %10673 = vmatpush1.bf16.msra.mxu0 %v13655_v43 }
0x1323   :  { %v11785_v50 = vpop.eup %11784  ;;  %10675 = vmatprep.subr.bf16.mxu0 %v13659_v63 }
0x1324   :  { %v3807_v9 = vmul.f32 %v11785_v50, %v3806_v37  ;;  %v4274_v37 = vld [vmem:[#allocation22 + $0x178] sm:$0xff] }
0x1325   :  { %v13767_v50 = vpack.c.bf16 %v4274_v37, %v4271_v51 }
0x1326   :  { %v13712_v19 = vadd.f32 %v3811_v62, %v3807_v9  ;;  %10677 = vmatpush1.bf16.msra.mxu0 %v13662_v47  ;;  %v4046_v9 = vld [vmem:[%s14585_s17] sm:$0x7] }
0x1327   :  { %10679 = vmatprep.subr.bf16.mxu0 %v13665_v48  ;;  %v4059_v62 = vrot.slane %v4046_v9, %v12828_v58  ;;  %v4055_v36 = vrot.slane %v4046_v9, %v12826_v57 }
0x1328   :  { %v3814_v38 = vrot.slane %v13712_v19, 6  ;;  %v5974_v19 = vld [vmem:[#allocation25 + $0xd0] sm:$0xff] }
0x132a   :  { %v3817_v59 = vsel %vm2091_vm4, %v3814_v38, 0.0  ;;  %10681 = vmatpush1.bf16.msra.mxu0 %v13668_v60 }
0x132b   :  { %3818 = vst [vmem:[#allocation3 + $0xe] sm:$0x3] %v3817_v59  ;;  %10683 = vmatprep.subr.bf16.mxu0 %v13671_v28 }
0x132e   :  { %10685 = vmatpush1.bf16.msra.mxu0 %v13674_v46 }
0x132f   :  { %10687 = vmatprep.subr.bf16.mxu0 %v13677_v12 }
0x1332   :  { %v3820_v56 = vld [vmem:[#allocation3 + $0x8] sm:$0xff]  ;;  %10689 = vmatpush1.bf16.msra.mxu0 %v13680_v20 }
0x1333   :  { %8948 = vmatmul.mubr.f32.vlgmr.msra.gmra.mrb[42].mxu1 %v3820_v56  ;;  %10691 = vmatprep.subr.bf16.mxu0 %v13684_v41  ;;  %v7630_v56 = vld [vmem:[#allocation17] ss:$0 sm:$0xff] }
0x1334   :  { %10605 = vmatpush1.bf16.msra.mxu1 %v10604_v55  ;;  %4133 = vmatprep.mubr.f32.mxu1 %v12309_v22 }
0x1335   :  { %10642 = vmatprep.subr.bf16.mxu1 %v12310_v30 }
0x1336   :  { %10693 = vmatpush1.bf16.msra.mxu0 %v13687_v49 }
0x1337   :  { %7635 = vmatmul.mubr.msk.f32.vlgmr.msra.gmra.mrb[44].mxu1 %vm285_vm3, %v13646_v35  ;;  %10695 = vmatprep.subr.bf16.mxu0 %v13690_v1  ;;  %v13745_v35 = vpack.c.bf16 %v4244_v52, %v4241_v26  ;;  %v4051_v52 = vrot.slane %v4046_v9, %v12821_v53 }
0x1338   :  { %10644 = vmatpush3.bf16.msra.mxu1 %v13728_v0  ;;  %4139 = vmatprep.mubr.f32.mxu1 %v12309_v22 }
0x1339   :  { %10645 = vmatprep.subr.bf16.mxu1 %v12310_v30 }
0x133a   :  { %10697 = vmatpush1.bf16.msra.mxu0 %v13693_v25 }
0x133b   :  { %7636 = vmatmul.mubr.msk.f32.gmra.mrb[46].mxu1 %vm285_vm3, %v13642_v27  ;;  %10723 = vmatprep.subr.bf16.mxu0 %v13589_v10  ;;  %v4253_v27 = vld [vmem:[#allocation22 + $0xd0] sm:$0xff] }
0x133c   :  { %10647 = vmatpush3.bf16.msra.mxu1 %v13737_v32  ;;  %8996 = vmatprep.mubr.msk.f32.mxu1 %vm12311_vm11, %v12309_v22  ;;  %v13755_v23 = vpack.c.bf16 %v4256_v39, %v4253_v27 }
0x133d   :  { %10648 = vmatprep.subr.bf16.mxu1 %v12310_v30 }
0x1340   :  { %10650 = vmatpush3.bf16.msra.mxu1 %v13745_v35 }
0x1341   :  { %10651 = vmatprep.subr.bf16.mxu1 %v12310_v30 }
0x1344   :  { %10653 = vmatpush3.bf16.msra.mxu1 %v13751_v61 }
0x1345   :  { %10654 = vmatprep.subr.bf16.mxu1 %v12310_v30 }
0x1348   :  { %10656 = vmatpush3.bf16.msra.mxu1 %v13755_v23 }
0x1349   :  { %10657 = vmatprep.subr.bf16.mxu1 %v12310_v30 }
0x134c   :  { %10659 = vmatpush3.bf16.msra.mxu1 %v13759_v31 }
0x134d   :  { %10660 = vmatprep.subr.bf16.mxu1 %v12310_v30 }
0x1350   :  { %10662 = vmatpush3.bf16.msra.mxu1 %v13763_v24 }
0x1351   :  { %10663 = vmatprep.subr.bf16.mxu1 %v12310_v30 }
0x1354   :  { %10665 = vmatpush3.bf16.msra.mxu1 %v13767_v50 }
0x1355   :  { %10698 = vmatprep.subr.bf16.mxu1 %v12310_v30 }
0x1357   :  { %8997 = vmatmul.mubr.f32.vlgmr.msra.gmra.mrb[48].mxu1 %v13703_v13 }
0x1358   :  { %10700 = vmatpush3.bf16.msra.mxu1 %v13728_v0  ;;  %9031 = vmatprep.mubr.msk.f32.mxu1 %vm12311_vm11, %v12309_v22 }
0x1359   :  { %10701 = vmatprep.subr.bf16.mxu1 %v12310_v30 }
0x135c   :  { %10703 = vmatpush3.bf16.msra.mxu1 %v13737_v32 }
0x135d   :  { %10704 = vmatprep.subr.bf16.mxu1 %v12310_v30 }
0x1360   :  { %10706 = vmatpush3.bf16.msra.mxu1 %v13745_v35 }
0x1361   :  { %10707 = vmatprep.subr.bf16.mxu1 %v12310_v30 }
0x1364   :  { %10709 = vmatpush3.bf16.msra.mxu1 %v13751_v61 }
0x1365   :  { %10710 = vmatprep.subr.bf16.mxu1 %v12310_v30 }
0x1368   :  { %10712 = vmatpush3.bf16.msra.mxu1 %v13755_v23 }
0x1369   :  { %10713 = vmatprep.subr.bf16.mxu1 %v12310_v30 }
0x136c   :  { %10715 = vmatpush3.bf16.msra.mxu1 %v13759_v31 }
0x136d   :  { %10716 = vmatprep.subr.bf16.mxu1 %v12310_v30 }
0x1370   :  { %10718 = vmatpush3.bf16.msra.mxu1 %v13763_v24 }
0x1371   :  { %10719 = vmatprep.subr.bf16.mxu1 %v12310_v30 }
0x1374   :  { %10721 = vmatpush3.bf16.msra.mxu1 %v13767_v50 }
0x1375   :  { %10754 = vmatprep.subr.bf16.mxu1 %v12310_v30 }
0x13d0   :  { %v8963_v59 = vpop.f32.mrb[38].mxu0 }
0x13d1   :  { %v4218_v6 = vadd.f32 %v8963_v59, %v4059_v62  ;;  %v4212_v11 = vpop.f32.mrb[39].mxu0 }
0x13d2   :  { %v4213_v55 = vadd.f32 %v4212_v11, %v4059_v62 }
0x13d3   :  { %4226 = vst [vmem:[#allocation4 + $0x28] sm:$0xff] %v4218_v6 }
0x13d4   :  { %4223 = vst [vmem:[#allocation4 + $0x10] sm:$0xff] %v4213_v55 }
0x13f0   :  { %v4342_v16 = vpop.f32.mrb[40].mxu0 }
0x13f1   :  { %v4344_v54 = vpop.f32.mrb[41].mxu0 }
0x1406   :  { %v8949_v5 = vpop.f32.mrb[42].mxu1 }
0x1407   :  { %v13795_v42 = vadd.f32 %v8949_v5, %v7630_v56  ;;  %v3910_v26 = vpop.f32.mrb[43].mxu1 }
0x1408   :  { %v13798_v15 = vadd.f32 %v7630_v56, %v3910_v26 }
0x1409   :  { %3921 = vmax.xlane.f32.xlu1 %v13795_v42 }
0x140a   :  { %3919 = vmax.xlane.f32.xlu0 %v13798_v15  ;;  %v4135_v27 = vpop.f32.mrb[44].mxu1 }
0x140b   :  { %v4136_v39 = vadd.f32 %v4135_v27, %v4051_v52  ;;  %v4137_v45 = vpop.f32.mrb[45].mxu1 }
0x140c   :  { %v4138_v8 = vadd.f32 %v4137_v45, %v4055_v36 }
0x140d   :  { %4221 = vst [vmem:[#allocation4] sm:$0xff] %v4136_v39 }
0x140e   :  { %4222 = vst [vmem:[#allocation4 + $0x8] sm:$0xff] %v4138_v8  ;;  %v4141_v40 = vpop.f32.mrb[46].mxu1 }
0x140f   :  { %v4142_v33 = vadd.f32 %v4141_v40, %v4051_v52  ;;  %v4143_v51 = vpop.f32.mrb[47].mxu1  ;;  %v13806_v52 = vld [vmem:[%s14586_s18] ss:$0 sm:$0xff] }
0x1410   :  { %v4144_v37 = vadd.f32 %v4143_v51, %v4055_v36 }
0x1411   :  { %4224 = vst [vmem:[#allocation4 + $0x18] sm:$0xff] %v4142_v33 }
0x1412   :  { %4225 = vst [vmem:[#allocation4 + $0x20] sm:$0xff] %v4144_v37 }
0x1414   :  { %v4417_v62 = vld [vmem:[#allocation4] sm:$0x3] }
0x1415   :  { %v4420_v59 = vadd.f32 %v4417_v62, %v4342_v16  ;;  %v4418_v6 = vld [vmem:[#allocation4 + $0x8] sm:$0x3] }
0x1416   :  { %v4427_v11 = vadd.f32 %v4418_v6, %v4344_v54  ;;  %v4419_v54 = vld [vmem:[#allocation4 + $0x10] sm:$0x3] }
0x1417   :  { %v7639_v9 = vmul.f32 -1.442695, %v4420_v59 }
0x1418   :  { %v7640_v55 = vmul.f32 -1.442695, %v4427_v11 }
0x1419   :  { %11786 = vpow2.f32 %v7639_v9 }
0x141a   :  { %11788 = vpow2.f32 %v7640_v55 }
0x1423   :  { %v11787_v56 = vpop.eup %11786 }
0x1424   :  { %v4424_v5 = vadd.f32 1.0, %v11787_v56  ;;  %v11789_v26 = vpop.eup %11788 }
0x1425   :  { %v4431_v36 = vadd.f32 1.0, %v11789_v26 }
0x1426   :  { %11790 = vrcp.f32 %v4424_v5 }
0x1427   :  { %11792 = vrcp.f32 %v4431_v36 }
0x142a   :  { %v4413_v27 = vpop.f32.mrb[48].mxu1 }
0x142b   :  { %v8998_v39 = vpop.f32.mrb[49].mxu1  ;;  %v4440_v16 = vadd.f32 %v13806_v52, %v4413_v27 }
0x1430   :  { %v11791_v45 = vpop.eup %11790 }
0x1431   :  { %v4441_v8 = vmul.f32 %v11791_v45, %v4440_v16  ;;  %v11793_v33 = vpop.eup %11792  ;;  %v4592_v45 = vld [vmem:[#allocation4] sm:$0xc] }
0x1432   :  { %v4444_v51 = vsub.f32 1.0, %v11793_v33  ;;  %v4446_v59 = vmul.f32 %v11793_v33, %v13703_v13  ;;  %v4593_v33 = vld [vmem:[#allocation4 + $0x8] sm:$0xc] }
0x1433   :  { %v4442_v40 = vadd.f32 %v4441_v8, %v4419_v54 }
0x1435   :  { %11794 = vtanh.f32 %v4442_v40 }
0x143f   :  { %v11795_v37 = vpop.eup %11794 }
0x1440   :  { %v4445_v62 = vmul.f32 %v11795_v37, %v4444_v51 }
0x1442   :  { %v4447_v6 = vadd.f32 %v4446_v59, %v4445_v62 }
0x1444   :  { %v13813_v9 = vsel %vm780_vm12, %v4447_v6, %v13703_v13  ;;  %v4449_v11 = vsel %vm780_vm12, %v4447_v6, 0.0 }
0x1445   :  { %4450 = vst [vmem:[#allocation5] sm:$0x3] %v4449_v11  ;;  %4516 = vmatmul.mubr.f32.vlgmr.msra.gmra.mrb[42].mxu0 %v13813_v9  ;;  %9032 = vmatmul.mubr.f32.vlgmr.msra.gmra.mrb[50].mxu1 %v13813_v9 }
0x1446   :  { %10725 = vmatpush1.bf16.msra.mxu0 %v13644_v34  ;;  %10756 = vmatpush3.bf16.msra.mxu1 %v13728_v0 }
0x1447   :  { %10727 = vmatprep.subr.bf16.mxu0 %v13648_v18  ;;  %10757 = vmatprep.subr.bf16.mxu1 %v12310_v30 }
0x1448   :  { %4699 = vmatprep.mubr.f32.mxu0 %v12309_v22  ;;  %9066 = vmatprep.mubr.msk.f32.mxu1 %vm12311_vm11, %v12309_v22 }
0x144a   :  { %10729 = vmatpush1.bf16.msra.mxu0 %v13655_v43  ;;  %10759 = vmatpush3.bf16.msra.mxu1 %v13737_v32 }
0x144b   :  { %10731 = vmatprep.subr.bf16.mxu0 %v13659_v63  ;;  %10760 = vmatprep.subr.bf16.mxu1 %v12310_v30 }
0x144e   :  { %10733 = vmatpush1.bf16.msra.mxu0 %v13662_v47  ;;  %10762 = vmatpush3.bf16.msra.mxu1 %v13745_v35 }
0x144f   :  { %10735 = vmatprep.subr.bf16.mxu0 %v13665_v48  ;;  %10763 = vmatprep.subr.bf16.mxu1 %v12310_v30 }
0x1452   :  { %10737 = vmatpush1.bf16.msra.mxu0 %v13668_v60  ;;  %10765 = vmatpush3.bf16.msra.mxu1 %v13751_v61 }
0x1453   :  { %10739 = vmatprep.subr.bf16.mxu0 %v13671_v28  ;;  %10766 = vmatprep.subr.bf16.mxu1 %v12310_v30 }
0x1456   :  { %10741 = vmatpush1.bf16.msra.mxu0 %v13674_v46  ;;  %10768 = vmatpush3.bf16.msra.mxu1 %v13755_v23 }
0x1457   :  { %10743 = vmatprep.subr.bf16.mxu0 %v13677_v12  ;;  %10769 = vmatprep.subr.bf16.mxu1 %v12310_v30 }
0x145a   :  { %10745 = vmatpush1.bf16.msra.mxu0 %v13680_v20  ;;  %10771 = vmatpush3.bf16.msra.mxu1 %v13759_v31 }
0x145b   :  { %10747 = vmatprep.subr.bf16.mxu0 %v13684_v41  ;;  %10772 = vmatprep.subr.bf16.mxu1 %v12310_v30 }
0x145e   :  { %10749 = vmatpush1.bf16.msra.mxu0 %v13687_v49  ;;  %10774 = vmatpush3.bf16.msra.mxu1 %v13763_v24 }
0x145f   :  { %10751 = vmatprep.subr.bf16.mxu0 %v13690_v1  ;;  %10775 = vmatprep.subr.bf16.mxu1 %v12310_v30 }
0x1462   :  { %10753 = vmatpush1.bf16.msra.mxu0 %v13693_v25  ;;  %10777 = vmatpush3.bf16.msra.mxu1 %v13767_v50 }
0x1463   :  { %10779 = vmatprep.subr.bf16.mxu0 %v13589_v10  ;;  %10810 = vmatprep.subr.bf16.mxu1 %v12310_v30 }
0x1496   :  { %v13855_v11 = vpop.xlane.xlu1 %3921 }
0x1497   :  { %v3920_v13 = vpop.xlane.xlu0 %3919 }
0x1498   :  { %v3923_v55 = vsub.f32 %v13798_v15, %v3920_v13 }
0x149a   :  { %v3925_v56 = vmul.f32 1.442695, %v3923_v55 }
0x149c   :  { %11796 = vpow2.f32 %v3925_v56 }
0x14a6   :  { %v11797_v5 = vpop.eup %11796 }
0x14a7   :  { %3929 = vadd.xlane.f32.xlu1 %v11797_v5 }
0x1518   :  { %v4517_v26 = vpop.f32.mrb[42].mxu0  ;;  %v4588_v27 = vpop.f32.mrb[50].mxu1 }
0x1519   :  { %v4596_v39 = vrot.slane %v4517_v26, 6  ;;  %v4519_v36 = vpop.f32.mrb[43].mxu0  ;;  %v9033_v16 = vpop.f32.mrb[51].mxu1  ;;  %v4615_v55 = vadd.f32 %v13806_v52, %v4588_v27 }
0x151a   :  { %v4606_v8 = vrot.slane %v4519_v36, 6  ;;  %v4594_v16 = vld [vmem:[#allocation4 + $0x10] sm:$0xc] }
0x151b   :  { %v4598_v54 = vadd.f32 %v4596_v39, %v4592_v45  ;;  %v4617_v26 = vrot.slane %v4615_v55, 6 }
0x151c   :  { %v4608_v51 = vadd.f32 %v4606_v8, %v4593_v33 }
0x151d   :  { %v7642_v40 = vmul.f32 -1.442695, %v4598_v54 }
0x151e   :  { %v7643_v37 = vmul.f32 -1.442695, %v4608_v51  ;;  %v4625_v51 = vrot.slane %v13813_v9, 6 }
0x151f   :  { %11798 = vpow2.f32 %v7642_v40 }
0x1520   :  { %11800 = vpow2.f32 %v7643_v37 }
0x1529   :  { %v11799_v62 = vpop.eup %11798 }
0x152a   :  { %v4602_v59 = vadd.f32 1.0, %v11799_v62  ;;  %v11801_v6 = vpop.eup %11800 }
0x152b   :  { %v4612_v56 = vadd.f32 1.0, %v11801_v6 }
0x152c   :  { %11802 = vrcp.f32 %v4602_v59 }
0x1534   :  { %v3930_v5 = vpop.xlane.xlu1 %3929 }
0x1535   :  { %11804 = vlog2.f32 %v3930_v5 }
0x1536   :  { %v11803_v36 = vpop.eup %11802  ;;  %11806 = vrcp.f32 %v4612_v56 }
0x1537   :  { %v4619_v39 = vmul.f32 %v11803_v36, %v4617_v26 }
0x1539   :  { %v4620_v45 = vadd.f32 %v4619_v39, %v4594_v16  ;;  %v4776_v16 = vld [vmem:[#allocation4] sm:$0x30] }
0x153b   :  { %11808 = vtanh.f32 %v4620_v45 }
0x153f   :  { %v11805_v8 = vpop.eup %11804 }
0x1540   :  { %v3934_v54 = vmul.f32 0.6931472, %v11805_v8  ;;  %v11807_v40 = vpop.eup %11806 }
0x1541   :  { %v4622_v62 = vsub.f32 1.0, %v11807_v40  ;;  %v4627_v6 = vmul.f32 %v11807_v40, %v4625_v51  ;;  %v4777_v40 = vld [vmem:[#allocation4 + $0x8] sm:$0x30] }
0x1542   :  { %v3937_v33 = vadd.f32 %v3934_v54, %v3920_v13 }
0x1544   :  { %v3939_v37 = vsub.f32 %v13798_v15, %v3937_v33 }
0x1545   :  { %v11809_v27 = vpop.eup %11808 }
0x1546   :  { %3941 = vst [vmem:[%s14593_s25] sm:$0xff] %v3939_v37  ;;  %v4623_v59 = vmul.f32 %v11809_v27, %v4622_v62 }
0x1548   :  { %v4628_v55 = vadd.f32 %v4627_v6, %v4623_v59 }
0x154a   :  { %v4630_v56 = vrot.slane %v4628_v55, 2 }
0x154c   :  { %v13866_v5 = vsel %vm966_vm13, %v4630_v56, %v13813_v9  ;;  %v4633_v13 = vsel %vm966_vm13, %v4630_v56, 0.0 }
0x154d   :  { %4634 = vst [vmem:[#allocation5 + $0x2] sm:$0x3] %v4633_v13  ;;  %4700 = vmatmul.mubr.f32.vlgmr.msra.gmra.mrb[44].mxu0 %v13866_v5  ;;  %9067 = vmatmul.mubr.f32.vlgmr.msra.gmra.mrb[52].mxu1 %v13866_v5 }
0x154e   :  { %10781 = vmatpush1.bf16.msra.mxu0 %v13644_v34  ;;  %10812 = vmatpush3.bf16.msra.mxu1 %v13728_v0 }
0x154f   :  { %10783 = vmatprep.subr.bf16.mxu0 %v13648_v18  ;;  %10813 = vmatprep.subr.bf16.mxu1 %v12310_v30 }
0x1550   :  { %4883 = vmatprep.mubr.f32.mxu0 %v12309_v22  ;;  %9101 = vmatprep.mubr.msk.f32.mxu1 %vm12311_vm11, %v12309_v22 }
0x1552   :  { %10785 = vmatpush1.bf16.msra.mxu0 %v13655_v43  ;;  %10815 = vmatpush3.bf16.msra.mxu1 %v13737_v32 }
0x1553   :  { %10787 = vmatprep.subr.bf16.mxu0 %v13659_v63  ;;  %10816 = vmatprep.subr.bf16.mxu1 %v12310_v30 }
0x1556   :  { %10789 = vmatpush1.bf16.msra.mxu0 %v13662_v47  ;;  %10818 = vmatpush3.bf16.msra.mxu1 %v13745_v35 }
0x1557   :  { %10791 = vmatprep.subr.bf16.mxu0 %v13665_v48  ;;  %10819 = vmatprep.subr.bf16.mxu1 %v12310_v30 }
0x155a   :  { %10793 = vmatpush1.bf16.msra.mxu0 %v13668_v60  ;;  %10821 = vmatpush3.bf16.msra.mxu1 %v13751_v61 }
0x155b   :  { %10795 = vmatprep.subr.bf16.mxu0 %v13671_v28  ;;  %10822 = vmatprep.subr.bf16.mxu1 %v12310_v30 }
0x155e   :  { %10797 = vmatpush1.bf16.msra.mxu0 %v13674_v46  ;;  %10824 = vmatpush3.bf16.msra.mxu1 %v13755_v23 }
0x155f   :  { %10799 = vmatprep.subr.bf16.mxu0 %v13677_v12  ;;  %10825 = vmatprep.subr.bf16.mxu1 %v12310_v30 }
0x1562   :  { %10801 = vmatpush1.bf16.msra.mxu0 %v13680_v20  ;;  %10827 = vmatpush3.bf16.msra.mxu1 %v13759_v31 }
0x1563   :  { %10803 = vmatprep.subr.bf16.mxu0 %v13684_v41  ;;  %10828 = vmatprep.subr.bf16.mxu1 %v12310_v30 }
0x1566   :  { %10805 = vmatpush1.bf16.msra.mxu0 %v13687_v49  ;;  %10830 = vmatpush3.bf16.msra.mxu1 %v13763_v24 }
0x1567   :  { %10807 = vmatprep.subr.bf16.mxu0 %v13690_v1  ;;  %10831 = vmatprep.subr.bf16.mxu1 %v12310_v30 }
0x156a   :  { %10809 = vmatpush1.bf16.msra.mxu0 %v13693_v25  ;;  %10833 = vmatpush3.bf16.msra.mxu1 %v13767_v50 }
0x156b   :  { %10835 = vmatprep.subr.bf16.mxu0 %v13589_v10  ;;  %10866 = vmatprep.subr.bf16.mxu1 %v12310_v30 }
0x1620   :  { %v4701_v15 = vpop.f32.mrb[44].mxu0  ;;  %v4772_v9 = vpop.f32.mrb[52].mxu1 }
0x1621   :  { %v4780_v26 = vrot.slane %v4701_v15, 4  ;;  %v4703_v36 = vpop.f32.mrb[45].mxu0  ;;  %v9068_v39 = vpop.f32.mrb[53].mxu1  ;;  %v4799_v59 = vadd.f32 %v13806_v52, %v4772_v9  ;;  %v4778_v15 = vld [vmem:[#allocation4 + $0x10] sm:$0x30] }
0x1622   :  { %v4790_v45 = vrot.slane %v4703_v36, 4  ;;  %v4809_v39 = vrot.slane %v13866_v5, 4 }
0x1623   :  { %v4782_v8 = vadd.f32 %v4780_v26, %v4776_v16  ;;  %v4801_v55 = vrot.slane %v4799_v59, 4 }
0x1624   :  { %v4792_v33 = vadd.f32 %v4790_v45, %v4777_v40 }
0x1625   :  { %v7644_v54 = vmul.f32 -1.442695, %v4782_v8 }
0x1626   :  { %v7645_v51 = vmul.f32 -1.442695, %v4792_v33 }
0x1627   :  { %11810 = vpow2.f32 %v7644_v54 }
0x1628   :  { %11812 = vpow2.f32 %v7645_v51 }
0x1631   :  { %v11811_v37 = vpop.eup %11810 }
0x1632   :  { %v4786_v62 = vadd.f32 1.0, %v11811_v37  ;;  %v11813_v27 = vpop.eup %11812 }
0x1633   :  { %v4796_v6 = vadd.f32 1.0, %v11813_v27 }
0x1634   :  { %11814 = vrcp.f32 %v4786_v62 }
0x1635   :  { %11816 = vrcp.f32 %v4796_v6  ;;  %v4960_v6 = vld [vmem:[#allocation4] sm:$0xc0] }
0x163e   :  { %v11815_v56 = vpop.eup %11814 }
0x163f   :  { %v4803_v13 = vmul.f32 %v11815_v56, %v4801_v55  ;;  %v11817_v26 = vpop.eup %11816 }
0x1640   :  { %v4806_v16 = vsub.f32 1.0, %v11817_v26  ;;  %v4811_v54 = vmul.f32 %v11817_v26, %v4809_v39 }
0x1641   :  { %v4804_v36 = vadd.f32 %v4803_v13, %v4778_v15  ;;  %v4961_v15 = vld [vmem:[#allocation4 + $0x8] sm:$0xc0] }
0x1643   :  { %11818 = vtanh.f32 %v4804_v36 }
0x164d   :  { %v11819_v45 = vpop.eup %11818 }
0x164e   :  { %v4807_v8 = vmul.f32 %v11819_v45, %v4806_v16 }
0x1650   :  { %v4812_v40 = vadd.f32 %v4811_v54, %v4807_v8 }
0x1652   :  { %v4814_v33 = vrot.slane %v4812_v40, 4 }
0x1654   :  { %v13912_v9 = vsel %vm1156_vm14, %v4814_v33, %v13866_v5  ;;  %v4817_v51 = vsel %vm1156_vm14, %v4814_v33, 0.0 }
0x1655   :  { %4818 = vst [vmem:[#allocation5 + $0x4] sm:$0x3] %v4817_v51  ;;  %4884 = vmatmul.mubr.f32.vlgmr.msra.gmra.mrb[46].mxu0 %v13912_v9  ;;  %9102 = vmatmul.mubr.f32.vlgmr.msra.gmra.mrb[54].mxu1 %v13912_v9 }
0x1656   :  { %10837 = vmatpush1.bf16.msra.mxu0 %v13644_v34  ;;  %10868 = vmatpush3.bf16.msra.mxu1 %v13728_v0 }
0x1657   :  { %10839 = vmatprep.subr.bf16.mxu0 %v13648_v18  ;;  %10869 = vmatprep.subr.bf16.mxu1 %v12310_v30 }
0x1658   :  { %5067 = vmatprep.mubr.f32.mxu0 %v12309_v22  ;;  %9136 = vmatprep.mubr.msk.f32.mxu1 %vm12311_vm11, %v12309_v22 }
0x165a   :  { %10841 = vmatpush1.bf16.msra.mxu0 %v13655_v43  ;;  %10871 = vmatpush3.bf16.msra.mxu1 %v13737_v32 }
0x165b   :  { %10843 = vmatprep.subr.bf16.mxu0 %v13659_v63  ;;  %10872 = vmatprep.subr.bf16.mxu1 %v12310_v30 }
0x165e   :  { %10845 = vmatpush1.bf16.msra.mxu0 %v13662_v47  ;;  %10874 = vmatpush3.bf16.msra.mxu1 %v13745_v35 }
0x165f   :  { %10847 = vmatprep.subr.bf16.mxu0 %v13665_v48  ;;  %10875 = vmatprep.subr.bf16.mxu1 %v12310_v30 }
0x1662   :  { %10849 = vmatpush1.bf16.msra.mxu0 %v13668_v60  ;;  %10877 = vmatpush3.bf16.msra.mxu1 %v13751_v61 }
0x1663   :  { %10851 = vmatprep.subr.bf16.mxu0 %v13671_v28  ;;  %10878 = vmatprep.subr.bf16.mxu1 %v12310_v30 }
0x1666   :  { %10853 = vmatpush1.bf16.msra.mxu0 %v13674_v46  ;;  %10880 = vmatpush3.bf16.msra.mxu1 %v13755_v23 }
0x1667   :  { %10855 = vmatprep.subr.bf16.mxu0 %v13677_v12  ;;  %10881 = vmatprep.subr.bf16.mxu1 %v12310_v30 }
0x166a   :  { %10857 = vmatpush1.bf16.msra.mxu0 %v13680_v20  ;;  %10883 = vmatpush3.bf16.msra.mxu1 %v13759_v31 }
0x166b   :  { %10859 = vmatprep.subr.bf16.mxu0 %v13684_v41  ;;  %10884 = vmatprep.subr.bf16.mxu1 %v12310_v30 }
0x166e   :  { %10861 = vmatpush1.bf16.msra.mxu0 %v13687_v49  ;;  %10886 = vmatpush3.bf16.msra.mxu1 %v13763_v24 }
0x166f   :  { %10863 = vmatprep.subr.bf16.mxu0 %v13690_v1  ;;  %10887 = vmatprep.subr.bf16.mxu1 %v12310_v30 }
0x1672   :  { %10865 = vmatpush1.bf16.msra.mxu0 %v13693_v25  ;;  %10889 = vmatpush3.bf16.msra.mxu1 %v13767_v50 }
0x1673   :  { %10891 = vmatprep.subr.bf16.mxu0 %v13589_v10  ;;  %10922 = vmatprep.subr.bf16.mxu1 %v12310_v30 }
0x1728   :  { %v4885_v5 = vpop.f32.mrb[46].mxu0  ;;  %v4956_v37 = vpop.f32.mrb[54].mxu1 }
0x1729   :  { %v4964_v62 = vrot.slane %v4885_v5, 2  ;;  %v4887_v27 = vpop.f32.mrb[47].mxu0  ;;  %v9103_v59 = vpop.f32.mrb[55].mxu1  ;;  %v4983_v8 = vadd.f32 %v13806_v52, %v4956_v37  ;;  %v4962_v5 = vld [vmem:[#allocation4 + $0x10] sm:$0xc0] }
0x172a   :  { %v4974_v55 = vrot.slane %v4887_v27, 2  ;;  %v4993_v59 = vrot.slane %v13912_v9, 2 }
0x172b   :  { %v4966_v56 = vadd.f32 %v4964_v62, %v4960_v6  ;;  %v4985_v40 = vrot.slane %v4983_v8, 2 }
0x172c   :  { %v4976_v36 = vadd.f32 %v4974_v55, %v4961_v15 }
0x172d   :  { %v7646_v13 = vmul.f32 -1.442695, %v4966_v56 }
0x172e   :  { %v7647_v26 = vmul.f32 -1.442695, %v4976_v36 }
0x172f   :  { %11820 = vpow2.f32 %v7646_v13 }
0x1730   :  { %11822 = vpow2.f32 %v7647_v26 }
0x1739   :  { %v11821_v39 = vpop.eup %11820 }
0x173a   :  { %v4970_v16 = vadd.f32 1.0, %v11821_v39  ;;  %v11823_v45 = vpop.eup %11822  ;;  %v5144_v39 = vld [vmem:[#allocation4 + $0x18] sm:$0x3] }
0x173b   :  { %v4980_v54 = vadd.f32 1.0, %v11823_v45 }
0x173c   :  { %11824 = vrcp.f32 %v4970_v16 }
0x173d   :  { %11826 = vrcp.f32 %v4980_v54 }
0x1746   :  { %v11825_v33 = vpop.eup %11824 }
0x1747   :  { %v4987_v51 = vmul.f32 %v11825_v33, %v4985_v40  ;;  %v11827_v62 = vpop.eup %11826  ;;  %v5145_v33 = vld [vmem:[#allocation4 + $0x20] sm:$0x3] }
0x1748   :  { %v4990_v6 = vsub.f32 1.0, %v11827_v62  ;;  %v4995_v13 = vmul.f32 %v11827_v62, %v4993_v59 }
0x1749   :  { %v4988_v27 = vadd.f32 %v4987_v51, %v4962_v5 }
0x174b   :  { %11828 = vtanh.f32 %v4988_v27 }
0x1755   :  { %v11829_v55 = vpop.eup %11828 }
0x1756   :  { %v4991_v56 = vmul.f32 %v11829_v55, %v4990_v6 }
0x1758   :  { %v4996_v15 = vadd.f32 %v4995_v13, %v4991_v56 }
0x175a   :  { %v4998_v36 = vrot.slane %v4996_v15, 6  ;;  %v5146_v15 = vld [vmem:[#allocation4 + $0x28] sm:$0x3] }
0x175c   :  { %v13958_v37 = vsel %vm1346_vm15, %v4998_v36, %v13912_v9  ;;  %v5001_v26 = vsel %vm1346_vm15, %v4998_v36, 0.0 }
0x175d   :  { %5002 = vst [vmem:[#allocation5 + $0x6] sm:$0x3] %v5001_v26  ;;  %5068 = vmatmul.mubr.f32.vlgmr.msra.gmra.mrb[48].mxu0 %v13958_v37  ;;  %9137 = vmatmul.mubr.f32.vlgmr.msra.gmra.mrb[56].mxu1 %v13958_v37 }
0x175e   :  { %10893 = vmatpush1.bf16.msra.mxu0 %v13644_v34  ;;  %10924 = vmatpush3.bf16.msra.mxu1 %v13728_v0 }
0x175f   :  { %10895 = vmatprep.subr.bf16.mxu0 %v13648_v18  ;;  %10925 = vmatprep.subr.bf16.mxu1 %v12310_v30 }
0x1760   :  { %5236 = vmatprep.mubr.f32.mxu0 %v12309_v22  ;;  %9171 = vmatprep.mubr.msk.f32.mxu1 %vm12311_vm11, %v12309_v22 }
0x1762   :  { %10897 = vmatpush1.bf16.msra.mxu0 %v13655_v43  ;;  %10927 = vmatpush3.bf16.msra.mxu1 %v13737_v32 }
0x1763   :  { %10899 = vmatprep.subr.bf16.mxu0 %v13659_v63  ;;  %10928 = vmatprep.subr.bf16.mxu1 %v12310_v30 }
0x1766   :  { %10901 = vmatpush1.bf16.msra.mxu0 %v13662_v47  ;;  %10930 = vmatpush3.bf16.msra.mxu1 %v13745_v35 }
0x1767   :  { %10903 = vmatprep.subr.bf16.mxu0 %v13665_v48  ;;  %10931 = vmatprep.subr.bf16.mxu1 %v12310_v30 }
0x176a   :  { %10905 = vmatpush1.bf16.msra.mxu0 %v13668_v60  ;;  %10933 = vmatpush3.bf16.msra.mxu1 %v13751_v61 }
0x176b   :  { %10907 = vmatprep.subr.bf16.mxu0 %v13671_v28  ;;  %10934 = vmatprep.subr.bf16.mxu1 %v12310_v30 }
0x176e   :  { %10909 = vmatpush1.bf16.msra.mxu0 %v13674_v46  ;;  %10936 = vmatpush3.bf16.msra.mxu1 %v13755_v23 }
0x176f   :  { %10911 = vmatprep.subr.bf16.mxu0 %v13677_v12  ;;  %10937 = vmatprep.subr.bf16.mxu1 %v12310_v30 }
0x1772   :  { %10913 = vmatpush1.bf16.msra.mxu0 %v13680_v20  ;;  %10939 = vmatpush3.bf16.msra.mxu1 %v13759_v31 }
0x1773   :  { %10915 = vmatprep.subr.bf16.mxu0 %v13684_v41  ;;  %10940 = vmatprep.subr.bf16.mxu1 %v12310_v30 }
0x1776   :  { %10917 = vmatpush1.bf16.msra.mxu0 %v13687_v49  ;;  %10942 = vmatpush3.bf16.msra.mxu1 %v13763_v24 }
0x1777   :  { %10919 = vmatprep.subr.bf16.mxu0 %v13690_v1  ;;  %10943 = vmatprep.subr.bf16.mxu1 %v12310_v30 }
0x177a   :  { %10921 = vmatpush1.bf16.msra.mxu0 %v13693_v25  ;;  %10945 = vmatpush3.bf16.msra.mxu1 %v13767_v50 }
0x177b   :  { %10947 = vmatprep.subr.bf16.mxu0 %v13589_v10  ;;  %10978 = vmatprep.subr.bf16.mxu1 %v12310_v30 }
0x1830   :  { %v5069_v9 = vpop.f32.mrb[48].mxu0  ;;  %v5140_v16 = vpop.f32.mrb[56].mxu1 }
0x1831   :  { %v5147_v45 = vadd.f32 %v5144_v39, %v5069_v9  ;;  %v5071_v8 = vpop.f32.mrb[49].mxu0  ;;  %v9138_v54 = vpop.f32.mrb[57].mxu1  ;;  %v5161_v55 = vadd.f32 %v13806_v52, %v5140_v16 }
0x1832   :  { %v5154_v51 = vadd.f32 %v5145_v33, %v5071_v8 }
0x1833   :  { %v7648_v40 = vmul.f32 -1.442695, %v5147_v45 }
0x1834   :  { %v7649_v5 = vmul.f32 -1.442695, %v5154_v51 }
0x1835   :  { %11830 = vpow2.f32 %v7648_v40 }
0x1836   :  { %11832 = vpow2.f32 %v7649_v5 }
0x183f   :  { %v11831_v27 = vpop.eup %11830 }
0x1840   :  { %v5151_v62 = vadd.f32 1.0, %v11831_v27  ;;  %v11833_v59 = vpop.eup %11832 }
0x1841   :  { %v5158_v6 = vadd.f32 1.0, %v11833_v59 }
0x1842   :  { %11834 = vrcp.f32 %v5151_v62  ;;  %v5313_v62 = vld [vmem:[#allocation4 + $0x18] sm:$0xc] }
0x1843   :  { %11836 = vrcp.f32 %v5158_v6 }
0x184c   :  { %v11835_v56 = vpop.eup %11834 }
0x184d   :  { %v5162_v13 = vmul.f32 %v11835_v56, %v5161_v55  ;;  %v11837_v26 = vpop.eup %11836  ;;  %v5314_v56 = vld [vmem:[#allocation4 + $0x20] sm:$0xc] }
0x184e   :  { %v5165_v9 = vsub.f32 1.0, %v11837_v26  ;;  %v5167_v8 = vmul.f32 %v11837_v26, %v13958_v37 }
0x184f   :  { %v5163_v36 = vadd.f32 %v5162_v13, %v5146_v15 }
0x1851   :  { %11838 = vtanh.f32 %v5163_v36 }
0x185b   :  { %v11839_v39 = vpop.eup %11838 }
0x185c   :  { %v5166_v45 = vmul.f32 %v11839_v39, %v5165_v9 }
0x185e   :  { %v5168_v54 = vadd.f32 %v5167_v8, %v5166_v45 }
0x1860   :  { %v14004_v40 = vsel %vm1524_vm0, %v5168_v54, %v13958_v37  ;;  %v5170_v16 = vsel %vm1524_vm0, %v5168_v54, 0.0 }
0x1861   :  { %5171 = vst [vmem:[#allocation5 + $0x8] sm:$0x3] %v5170_v16  ;;  %5237 = vmatmul.mubr.f32.vlgmr.msra.gmra.mrb[50].mxu0 %v14004_v40  ;;  %9172 = vmatmul.mubr.f32.vlgmr.msra.gmra.mrb[58].mxu1 %v14004_v40  ;;  %v5315_v16 = vld [vmem:[#allocation4 + $0x28] sm:$0xc] }
0x1862   :  { %10949 = vmatpush1.bf16.msra.mxu0 %v13644_v34  ;;  %10980 = vmatpush3.bf16.msra.mxu1 %v13728_v0 }
0x1863   :  { %10951 = vmatprep.subr.bf16.mxu0 %v13648_v18  ;;  %10981 = vmatprep.subr.bf16.mxu1 %v12310_v30 }
0x1864   :  { %5420 = vmatprep.mubr.f32.mxu0 %v12309_v22  ;;  %9206 = vmatprep.mubr.msk.f32.mxu1 %vm12311_vm11, %v12309_v22 }
0x1866   :  { %10953 = vmatpush1.bf16.msra.mxu0 %v13655_v43  ;;  %10983 = vmatpush3.bf16.msra.mxu1 %v13737_v32 }
0x1867   :  { %10955 = vmatprep.subr.bf16.mxu0 %v13659_v63  ;;  %10984 = vmatprep.subr.bf16.mxu1 %v12310_v30 }
0x186a   :  { %10957 = vmatpush1.bf16.msra.mxu0 %v13662_v47  ;;  %10986 = vmatpush3.bf16.msra.mxu1 %v13745_v35 }
0x186b   :  { %10959 = vmatprep.subr.bf16.mxu0 %v13665_v48  ;;  %10987 = vmatprep.subr.bf16.mxu1 %v12310_v30 }
0x186e   :  { %10961 = vmatpush1.bf16.msra.mxu0 %v13668_v60  ;;  %10989 = vmatpush3.bf16.msra.mxu1 %v13751_v61 }
0x186f   :  { %10963 = vmatprep.subr.bf16.mxu0 %v13671_v28  ;;  %10990 = vmatprep.subr.bf16.mxu1 %v12310_v30 }
0x1872   :  { %10965 = vmatpush1.bf16.msra.mxu0 %v13674_v46  ;;  %10992 = vmatpush3.bf16.msra.mxu1 %v13755_v23 }
0x1873   :  { %10967 = vmatprep.subr.bf16.mxu0 %v13677_v12  ;;  %10993 = vmatprep.subr.bf16.mxu1 %v12310_v30 }
0x1876   :  { %10969 = vmatpush1.bf16.msra.mxu0 %v13680_v20  ;;  %10995 = vmatpush3.bf16.msra.mxu1 %v13759_v31 }
0x1877   :  { %10971 = vmatprep.subr.bf16.mxu0 %v13684_v41  ;;  %10996 = vmatprep.subr.bf16.mxu1 %v12310_v30 }
0x187a   :  { %10973 = vmatpush1.bf16.msra.mxu0 %v13687_v49  ;;  %10998 = vmatpush3.bf16.msra.mxu1 %v13763_v24 }
0x187b   :  { %10975 = vmatprep.subr.bf16.mxu0 %v13690_v1  ;;  %10999 = vmatprep.subr.bf16.mxu1 %v12310_v30 }
0x187e   :  { %10977 = vmatpush1.bf16.msra.mxu0 %v13693_v25  ;;  %11001 = vmatpush3.bf16.msra.mxu1 %v13767_v50 }
0x187f   :  { %11003 = vmatprep.subr.bf16.mxu0 %v13589_v10  ;;  %11034 = vmatprep.subr.bf16.mxu1 %v12310_v30 }
0x1934   :  { %v5238_v37 = vpop.f32.mrb[50].mxu0  ;;  %v5309_v33 = vpop.f32.mrb[58].mxu1 }
0x1935   :  { %v5317_v51 = vrot.slane %v5238_v37, 6  ;;  %v5240_v5 = vpop.f32.mrb[51].mxu0  ;;  %v9173_v27 = vpop.f32.mrb[59].mxu1  ;;  %v5336_v9 = vadd.f32 %v13806_v52, %v5309_v33 }
0x1936   :  { %v5327_v59 = vrot.slane %v5240_v5, 6  ;;  %v5346_v5 = vrot.slane %v14004_v40, 6 }
0x1937   :  { %v5319_v6 = vadd.f32 %v5317_v51, %v5313_v62  ;;  %v5338_v45 = vrot.slane %v5336_v9, 6 }
0x1938   :  { %v5329_v13 = vadd.f32 %v5327_v59, %v5314_v56 }
0x1939   :  { %v7650_v55 = vmul.f32 -1.442695, %v5319_v6 }
0x193a   :  { %v7651_v15 = vmul.f32 -1.442695, %v5329_v13 }
0x193b   :  { %11840 = vpow2.f32 %v7650_v55 }
0x193c   :  { %11842 = vpow2.f32 %v7651_v15 }
0x1945   :  { %v11841_v36 = vpop.eup %11840 }
0x1946   :  { %v5323_v26 = vadd.f32 1.0, %v11841_v36  ;;  %v11843_v10 = vpop.eup %11842 }
0x1947   :  { %v5333_v39 = vadd.f32 1.0, %v11843_v10 }
0x1948   :  { %11844 = vrcp.f32 %v5323_v26 }
0x1949   :  { %11846 = vrcp.f32 %v5333_v39 }
0x1952   :  { %v11845_v8 = vpop.eup %11844 }
0x1953   :  { %v5340_v54 = vmul.f32 %v11845_v8, %v5338_v45  ;;  %v11847_v51 = vpop.eup %11846  ;;  %v5725_v8 = vld [vmem:[#allocation23] sm:$0xff] }
0x1954   :  { %v5343_v27 = vsub.f32 1.0, %v11847_v51  ;;  %v5348_v6 = vmul.f32 %v11847_v51, %v5346_v5 }
0x1955   :  { %v5341_v37 = vadd.f32 %v5340_v54, %v5315_v16  ;;  %v5728_v54 = vld [vmem:[#allocation23 + $0x18] sm:$0xff] }
0x1956   :  { %v11060_v5 = vpack.c.bf16 %v5728_v54, %v5725_v8  ;;  %v5767_v54 = vld [vmem:[#allocation23 + $0x150] sm:$0xff] }
0x1957   :  { %11848 = vtanh.f32 %v5341_v37  ;;  %v5732_v37 = vld [vmem:[#allocation23 + $0x38] sm:$0xff] }
0x1961   :  { %v11849_v62 = vpop.eup %11848 }
0x1962   :  { %v5344_v59 = vmul.f32 %v11849_v62, %v5343_v27  ;;  %v5731_v62 = vld [vmem:[#allocation23 + $0x30] sm:$0xff] }
0x1964   :  { %v5349_v55 = vadd.f32 %v5348_v6, %v5344_v59  ;;  %v5734_v59 = vld [vmem:[#allocation23 + $0x48] sm:$0xff] }
0x1966   :  { %v5351_v56 = vrot.slane %v5349_v55, 2 }
0x1968   :  { %v14050_v33 = vsel %vm1711_vm1, %v5351_v56, %v14004_v40  ;;  %v5354_v13 = vsel %vm1711_vm1, %v5351_v56, 0.0  ;;  %v5499_v40 = vld [vmem:[#allocation4 + $0x28] sm:$0x30]  ;;  %v5738_v56 = vld [vmem:[#allocation23 + $0x68] sm:$0xff] }
0x1969   :  { %5355 = vst [vmem:[#allocation5 + $0xa] sm:$0x3] %v5354_v13  ;;  %5421 = vmatmul.mubr.f32.vlgmr.msra.gmra.mrb[52].mxu0 %v14050_v33  ;;  %9207 = vmatmul.mubr.f32.vlgmr.msra.gmra.mrb[60].mxu1 %v14050_v33  ;;  %v5530_v26 = vrot.slane %v14050_v33, 4  ;;  %v5741_v13 = vld [vmem:[#allocation23 + $0x80] sm:$0xff] }
0x196a   :  { %11005 = vmatpush1.bf16.msra.mxu0 %v13644_v34  ;;  %11036 = vmatpush3.bf16.msra.mxu1 %v13728_v0  ;;  %v5726_v34 = vld [vmem:[#allocation23 + $0x8] sm:$0xff] }
0x196b   :  { %11007 = vmatprep.subr.bf16.mxu0 %v13648_v18  ;;  %11037 = vmatprep.subr.bf16.mxu1 %v12310_v30  ;;  %v5729_v18 = vld [vmem:[#allocation23 + $0x20] sm:$0xff] }
0x196c   :  { %5604 = vmatprep.mubr.f32.mxu0 %v12309_v22  ;;  %9241 = vmatprep.mubr.msk.f32.mxu1 %vm12311_vm11, %v12309_v22 }
0x196e   :  { %11009 = vmatpush1.bf16.msra.mxu0 %v13655_v43  ;;  %11039 = vmatpush3.bf16.msra.mxu1 %v13737_v32  ;;  %v11058_v43 = vpack.c.bf16 %v5729_v18, %v5726_v34  ;;  %v5723_v34 = vld [vmem:[#allocation5] sm:$0xff]  ;;  %v11064_v18 = vpack.c.bf16 %v5734_v59, %v5731_v62  ;;  %v5736_v62 = vld [vmem:[#allocation23 + $0x58] sm:$0xff] }
0x196f   :  { %11011 = vmatprep.subr.bf16.mxu0 %v13659_v63  ;;  %11040 = vmatprep.subr.bf16.mxu1 %v12310_v30 }
0x1972   :  { %11013 = vmatpush1.bf16.msra.mxu0 %v13662_v47  ;;  %11042 = vmatpush3.bf16.msra.mxu1 %v13745_v35 }
0x1973   :  { %11015 = vmatprep.subr.bf16.mxu0 %v13665_v48  ;;  %11043 = vmatprep.subr.bf16.mxu1 %v12310_v30 }
0x1976   :  { %11017 = vmatpush1.bf16.msra.mxu0 %v13668_v60  ;;  %11045 = vmatpush3.bf16.msra.mxu1 %v13751_v61 }
0x1977   :  { %11019 = vmatprep.subr.bf16.mxu0 %v13671_v28  ;;  %11046 = vmatprep.subr.bf16.mxu1 %v12310_v30 }
0x197a   :  { %11021 = vmatpush1.bf16.msra.mxu0 %v13674_v46  ;;  %11048 = vmatpush3.bf16.msra.mxu1 %v13755_v23  ;;  %v5497_v46 = vld [vmem:[#allocation4 + $0x18] sm:$0x30] }
0x197b   :  { %11023 = vmatprep.subr.bf16.mxu0 %v13677_v12  ;;  %11049 = vmatprep.subr.bf16.mxu1 %v12310_v30 }
0x197e   :  { %11025 = vmatpush1.bf16.msra.mxu0 %v13680_v20  ;;  %11051 = vmatpush3.bf16.msra.mxu1 %v13759_v31 }
0x197f   :  { %11027 = vmatprep.subr.bf16.mxu0 %v13684_v41  ;;  %11052 = vmatprep.subr.bf16.mxu1 %v12310_v30 }
0x1982   :  { %11029 = vmatpush1.bf16.msra.mxu0 %v13687_v49  ;;  %11054 = vmatpush3.bf16.msra.mxu1 %v13763_v24  ;;  %v5498_v49 = vld [vmem:[#allocation4 + $0x20] sm:$0x30] }
0x1983   :  { %11031 = vmatprep.subr.bf16.mxu0 %v13690_v1  ;;  %11055 = vmatprep.subr.bf16.mxu1 %v12310_v30 }
0x1986   :  { %11033 = vmatpush1.bf16.msra.mxu0 %v13693_v25  ;;  %11057 = vmatpush3.bf16.msra.mxu1 %v13767_v50 }
0x1987   :  { %11059 = vmatprep.subr.bf16.mxu0 %v11058_v43  ;;  %v11066_v43 = vpack.c.bf16 %v5741_v13, %v5738_v56  ;;  %v5952_v56 = vld [vmem:[#allocation25 + $0x20] sm:$0xff] }
0x1a3c   :  { %v5422_v63 = vpop.f32.mrb[52].mxu0  ;;  %v5493_v47 = vpop.f32.mrb[60].mxu1 }
0x1a3d   :  { %v5501_v48 = vrot.slane %v5422_v63, 4  ;;  %v5424_v60 = vpop.f32.mrb[53].mxu0  ;;  %v9208_v28 = vpop.f32.mrb[61].mxu1  ;;  %v5520_v61 = vadd.f32 %v13806_v52, %v5493_v47  ;;  %v5735_v52 = vld [vmem:[#allocation23 + $0x50] sm:$0xff]  ;;  %v5737_v63 = vld [vmem:[#allocation23 + $0x60] sm:$0xff]  ;;  %v5740_v47 = vld [vmem:[#allocation23 + $0x78] sm:$0xff] }
0x1a3e   :  { %v5511_v12 = vrot.slane %v5424_v60, 4  ;;  %v11062_v27 = vpack.c.bf16 %v5735_v52, %v5732_v37  ;;  %v11068_v60 = vpack.c.bf16 %v5740_v47, %v5737_v63  ;;  %v5727_v52 = vld [vmem:[#allocation23 + $0x10] sm:$0xff]  ;;  %v5742_v47 = vld [vmem:[#allocation23 + $0x88] sm:$0xff] }
0x1a3f   :  { %v5503_v20 = vadd.f32 %v5501_v48, %v5497_v46  ;;  %v5522_v31 = vrot.slane %v5520_v61, 4  ;;  %v5747_v48 = vld [vmem:[#allocation23 + $0xb0] sm:$0xff] }
0x1a40   :  { %v5513_v1 = vadd.f32 %v5511_v12, %v5498_v49  ;;  %v5743_v46 = vld [vmem:[#allocation23 + $0x90] sm:$0xff]  ;;  %v5746_v12 = vld [vmem:[#allocation23 + $0xa8] sm:$0xff] }
0x1a41   :  { %v7652_v41 = vmul.f32 -1.442695, %v5503_v20  ;;  %v5750_v20 = vld [vmem:[#allocation23 + $0xc8] sm:$0xff]  ;;  %v11072_v49 = vpack.c.bf16 %v5746_v12, %v5743_v46  ;;  %v5954_v46 = vld [vmem:[#allocation25 + $0x30] sm:$0xff] }
0x1a42   :  { %v7653_v0 = vmul.f32 -1.442695, %v5513_v1  ;;  %v5957_v12 = vld [vmem:[#allocation25 + $0x48] sm:$0xff] }
0x1a43   :  { %11850 = vpow2.f32 %v7652_v41  ;;  %v5753_v41 = vld [vmem:[#allocation23 + $0xe0] sm:$0xff] }
0x1a44   :  { %11852 = vpow2.f32 %v7653_v0  ;;  %v11074_v1 = vpack.c.bf16 %v5753_v41, %v5750_v20  ;;  %v5749_v0 = vld [vmem:[#allocation23 + $0xc0] sm:$0xff]  ;;  %v14110_v20 = vpack.c.bf16 %v5957_v12, %v5954_v46 }
0x1a45   :  { %v5745_v41 = vld [vmem:[#allocation23 + $0xa0] sm:$0xff] }
0x1a46   :  { %v5988_v12 = vld [vmem:[#allocation25 + $0x140] sm:$0xff] }
0x1a4d   :  { %v11851_v25 = vpop.eup %11850 }
0x1a4e   :  { %v5507_v32 = vadd.f32 1.0, %v11851_v25  ;;  %v11853_v35 = vpop.eup %11852  ;;  %v5752_v25 = vld [vmem:[#allocation23 + $0xd8] sm:$0xff] }
0x1a4f   :  { %v5517_v23 = vadd.f32 1.0, %v11853_v35  ;;  %v5759_v35 = vld [vmem:[#allocation23 + $0x110] sm:$0xff]  ;;  %v11076_v61 = vpack.c.bf16 %v5752_v25, %v5749_v0  ;;  %v5961_v0 = vld [vmem:[#allocation25 + $0x68] sm:$0xff]  ;;  %v5964_v25 = vld [vmem:[#allocation25 + $0x80] sm:$0xff] }
0x1a50   :  { %11854 = vrcp.f32 %v5507_v32  ;;  %v5756_v32 = vld [vmem:[#allocation23 + $0xf8] sm:$0xff] }
0x1a51   :  { %11856 = vrcp.f32 %v5517_v23  ;;  %v11078_v23 = vpack.c.bf16 %v5759_v35, %v5756_v32  ;;  %v14114_v32 = vpack.c.bf16 %v5964_v25, %v5961_v0  ;;  %v5960_v35 = vld [vmem:[#allocation25 + $0x60] sm:$0xff]  ;;  %v5991_v25 = vld [vmem:[#allocation25 + $0x158] sm:$0xff] }
0x1a5a   :  { %v11855_v24 = vpop.eup %11854 }
0x1a5b   :  { %v5524_v50 = vmul.f32 %v11855_v24, %v5522_v31  ;;  %v11857_v36 = vpop.eup %11856  ;;  %v5755_v31 = vld [vmem:[#allocation23 + $0xf0] sm:$0xff]  ;;  %v5758_v24 = vld [vmem:[#allocation23 + $0x108] sm:$0xff] }
0x1a5c   :  { %v5527_v10 = vsub.f32 1.0, %v11857_v36  ;;  %v5532_v45 = vmul.f32 %v11857_v36, %v5530_v26  ;;  %v5761_v26 = vld [vmem:[#allocation23 + $0x120] sm:$0xff] }
0x1a5d   :  { %v5525_v15 = vadd.f32 %v5524_v50, %v5499_v40  ;;  %v5762_v50 = vld [vmem:[#allocation23 + $0x128] sm:$0xff]  ;;  %v5765_v40 = vld [vmem:[#allocation23 + $0x140] sm:$0xff] }
0x1a5e   :  { %v11082_v36 = vpack.c.bf16 %v5765_v40, %v5762_v50  ;;  %v5967_v40 = vld [vmem:[#allocation25 + $0x98] sm:$0xff] }
0x1a5f   :  { %11858 = vtanh.f32 %v5525_v15  ;;  %v11080_v15 = vpack.c.bf16 %v5758_v24, %v5755_v31  ;;  %v5751_v31 = vld [vmem:[#allocation23 + $0xd0] sm:$0xff]  ;;  %v5754_v24 = vld [vmem:[#allocation23 + $0xe8] sm:$0xff] }
0x1a60   :  { %v11106_v50 = vpack.c.bf16 %v5754_v24, %v5751_v31  ;;  %v5990_v31 = vld [vmem:[#allocation25 + $0x150] sm:$0xff]  ;;  %v5993_v24 = vld [vmem:[#allocation25 + $0x168] sm:$0xff] }
0x1a69   :  { %v11859_v9 = vpop.eup %11858 }
0x1a6a   :  { %v5528_v39 = vmul.f32 %v11859_v9, %v5527_v10  ;;  %v5764_v10 = vld [vmem:[#allocation23 + $0x138] sm:$0xff] }
0x1a6b   :  { %v5768_v9 = vld [vmem:[#allocation23 + $0x158] sm:$0xff] }
0x1a6c   :  { %v5533_v16 = vadd.f32 %v5532_v45, %v5528_v39  ;;  %v5771_v39 = vld [vmem:[#allocation23 + $0x170] sm:$0xff]  ;;  %v11084_v45 = vpack.c.bf16 %v5764_v10, %v5761_v26  ;;  %v5969_v10 = vld [vmem:[#allocation25 + $0xa8] sm:$0xff] }
0x1a6d   :  { %v11086_v8 = vpack.c.bf16 %v5771_v39, %v5768_v9  ;;  %v5966_v26 = vld [vmem:[#allocation25 + $0x90] sm:$0xff]  ;;  %v5757_v39 = vld [vmem:[#allocation23 + $0x100] sm:$0xff] }
0x1a6e   :  { %v5535_v51 = vrot.slane %v5533_v16, 4  ;;  %v5770_v16 = vld [vmem:[#allocation23 + $0x168] sm:$0xff]  ;;  %v14122_v9 = vpack.c.bf16 %v5969_v10, %v5966_v26 }
0x1a6f   :  { %v11088_v37 = vpack.c.bf16 %v5770_v16, %v5767_v54  ;;  %v5973_v54 = vld [vmem:[#allocation25 + $0xc8] sm:$0xff]  ;;  %v5976_v16 = vld [vmem:[#allocation25 + $0xe0] sm:$0xff] }
0x1a70   :  { %v14094_v6 = vsel %vm1901_vm2, %v5535_v51, %v14050_v33  ;;  %v5538_v55 = vsel %vm1901_vm2, %v5535_v51, 0.0  ;;  %v5744_v33 = vld [vmem:[#allocation23 + $0x98] sm:$0xff]  ;;  %v5730_v51 = vld [vmem:[#allocation23 + $0x28] sm:$0xff] }
0x1a71   :  { %5539 = vst [vmem:[#allocation5 + $0xc] sm:$0x3] %v5538_v55  ;;  %5605 = vmatmul.mubr.f32.vlgmr.msra.gmra.mrb[54].mxu0 %v14094_v6  ;;  %9242 = vmatmul.mubr.f32.vlgmr.msra.gmra.mrb[62].mxu1 %v14094_v6  ;;  %v11070_v28 = vpack.c.bf16 %v5747_v48, %v5744_v33  ;;  %v5949_v55 = vld [vmem:[#allocation25 + $0x8] sm:$0xff]  ;;  %v5955_v48 = vld [vmem:[#allocation25 + $0x38] sm:$0xff] }
0x1a72   :  { %11061 = vmatpush1.bf16.msra.mxu0 %v11060_v5  ;;  %9276 = vmatprep.mubr.f32.mxu1 %v5723_v34  ;;  %v11090_v5 = vpack.c.bf16 %v5730_v51, %v5727_v52  ;;  %v14102_v13 = vpack.c.bf16 %v5952_v56, %v5949_v55  ;;  %v5972_v52 = vld [vmem:[#allocation25 + $0xc0] sm:$0xff]  ;;  %v5975_v51 = vld [vmem:[#allocation25 + $0xd8] sm:$0xff]  ;;  %v5982_v56 = vld [vmem:[#allocation25 + $0x110] sm:$0xff] }
0x1a73   :  { %11063 = vmatprep.subr.bf16.mxu0 %v11062_v27  ;;  %5854 = vmatprep.mubr.f32.mxu0 %v12309_v22  ;;  %v5733_v27 = vld [vmem:[#allocation23 + $0x40] sm:$0xff] }
0x1a74   :  { %11091 = vmatprep.subr.bf16.mxu1 %v11090_v5  ;;  %v11094_v59 = vpack.c.bf16 %v5736_v62, %v5733_v27  ;;  %v5763_v27 = vld [vmem:[#allocation23 + $0x130] sm:$0xff]  ;;  %v5766_v62 = vld [vmem:[#allocation23 + $0x148] sm:$0xff] }
0x1a75   :  { %11093 = vmatpush3.bf16.msra.mxu1 %v11090_v5  ;;  %v14128_v5 = vpack.c.bf16 %v5975_v51, %v5972_v52  ;;  %v11114_v55 = vpack.c.bf16 %v5766_v62, %v5763_v27 }
0x1a76   :  { %11065 = vmatpush1.bf16.msra.mxu0 %v11064_v18  ;;  %v5948_v18 = vld [vmem:[#allocation25] sm:$0xff]  ;;  %11095 = vmatprep.subr.bf16.mxu1 %v11094_v59 }
0x1a77   :  { %11067 = vmatprep.subr.bf16.mxu0 %v11066_v43  ;;  %v5951_v43 = vld [vmem:[#allocation25 + $0x18] sm:$0xff] }
0x1a78   :  { %v14104_v63 = vpack.c.bf16 %v5951_v43, %v5948_v18  ;;  %v5978_v18 = vld [vmem:[#allocation25 + $0xf0] sm:$0xff]  ;;  %v5981_v43 = vld [vmem:[#allocation25 + $0x108] sm:$0xff] }
0x1a79   :  { %11097 = vmatpush3.bf16.msra.mxu1 %v11094_v59  ;;  %v5979_v59 = vld [vmem:[#allocation25 + $0xf8] sm:$0xff] }
0x1a7a   :  { %11069 = vmatpush1.bf16.msra.mxu0 %v11068_v60  ;;  %v5958_v60 = vld [vmem:[#allocation25 + $0x50] sm:$0xff] }
0x1a7b   :  { %11071 = vmatprep.subr.bf16.mxu0 %v11070_v28  ;;  %v14108_v28 = vpack.c.bf16 %v5958_v60, %v5955_v48  ;;  %v5772_v48 = vld [vmem:[#allocation23 + $0x178] sm:$0xff]  ;;  %v5985_v60 = vld [vmem:[#allocation25 + $0x128] sm:$0xff] }
0x1a7e   :  { %11073 = vmatpush1.bf16.msra.mxu0 %v11072_v49  ;;  %v5748_v49 = vld [vmem:[#allocation23 + $0xb8] sm:$0xff] }
0x1a7f   :  { %11075 = vmatprep.subr.bf16.mxu0 %v11074_v1  ;;  %v11102_v1 = vpack.c.bf16 %v5748_v49, %v5745_v41  ;;  %v5984_v41 = vld [vmem:[#allocation25 + $0x120] sm:$0xff]  ;;  %v5987_v49 = vld [vmem:[#allocation25 + $0x138] sm:$0xff] }
0x1a80   :  { %v14140_v0 = vpack.c.bf16 %v5987_v49, %v5984_v41 }
0x1a82   :  { %11077 = vmatpush1.bf16.msra.mxu0 %v11076_v61  ;;  %v5963_v61 = vld [vmem:[#allocation25 + $0x78] sm:$0xff] }
0x1a83   :  { %11079 = vmatprep.subr.bf16.mxu0 %v11078_v23  ;;  %v14116_v23 = vpack.c.bf16 %v5963_v61, %v5960_v35  ;;  %v5994_v35 = vld [vmem:[#allocation25 + $0x170] sm:$0xff] }
0x1a84   :  { %v14145_v61 = vpack.c.bf16 %v5994_v35, %v5991_v25  ;;  %v5683_v35 = vld [vmem:[#allocation4 + $0x28] sm:$0xc0] }
0x1a86   :  { %11081 = vmatpush1.bf16.msra.mxu0 %v11080_v15  ;;  %v5970_v15 = vld [vmem:[#allocation25 + $0xb0] sm:$0xff] }
0x1a87   :  { %11083 = vmatprep.subr.bf16.mxu0 %v11082_v36  ;;  %v14120_v36 = vpack.c.bf16 %v5970_v15, %v5967_v40 }
0x1a8a   :  { %11085 = vmatpush1.bf16.msra.mxu0 %v11084_v45  ;;  %v5760_v45 = vld [vmem:[#allocation23 + $0x118] sm:$0xff] }
0x1a8b   :  { %11087 = vmatprep.subr.bf16.mxu0 %v11086_v8  ;;  %v11110_v8 = vpack.c.bf16 %v5760_v45, %v5757_v39  ;;  %v5681_v45 = vld [vmem:[#allocation4 + $0x18] sm:$0xc0] }
0x1a8e   :  { %11089 = vmatpush1.bf16.msra.mxu0 %v11088_v37  ;;  %v14126_v37 = vpack.c.bf16 %v5976_v16, %v5973_v54  ;;  %v5682_v16 = vld [vmem:[#allocation4 + $0x20] sm:$0xc0] }
0x1a8f   :  { %11123 = vmatprep.subr.bf16.mxu0 %v14102_v13 }
0x1a91   :  { %5855 = vmatmul.mubr.f32.vlgmr.msra.gmra.mrb[56].mxu0 %v5723_v34  ;;  %v5739_v34 = vld [vmem:[#allocation23 + $0x70] sm:$0xff] }
0x1a92   :  { %5860 = vmatprep.mubr.f32.mxu0 %v12309_v22  ;;  %11125 = vmatpush1.bf16.msra.mxu0 %v14104_v63  ;;  %v11098_v33 = vpack.c.bf16 %v5742_v47, %v5739_v34  ;;  %v14132_v34 = vpack.c.bf16 %v5982_v56, %v5979_v59  ;;  %v14134_v47 = vpack.c.bf16 %v5981_v43, %v5978_v18  ;;  %v11964_v18 = vld [vmem:[%s14586_s18] ss:$0 sm:$0xff] }
0x1a93   :  { %11127 = vmatprep.subr.bf16.mxu0 %v14108_v28 }
0x1a94   :  { %11099 = vmatprep.subr.bf16.mxu1 %v11098_v33 }
0x1a95   :  { %11101 = vmatpush3.bf16.msra.mxu1 %v11098_v33  ;;  %v5769_v33 = vld [vmem:[#allocation23 + $0x160] sm:$0xff] }
0x1a96   :  { %11129 = vmatpush1.bf16.msra.mxu0 %v14110_v20  ;;  %11103 = vmatprep.subr.bf16.mxu1 %v11102_v1  ;;  %v11118_v46 = vpack.c.bf16 %v5772_v48, %v5769_v33  ;;  %v14158_v33 = vld [vmem:[%s14589_s21] sm:$0x7] }
0x1a97   :  { %11131 = vmatprep.subr.bf16.mxu0 %v14114_v32  ;;  %v14167_v41 = vrot.slane %v14158_v33, %v12826_v57 }
0x1a99   :  { %11105 = vmatpush3.bf16.msra.mxu1 %v11102_v1  ;;  %v14137_v1 = vpack.c.bf16 %v5988_v12, %v5985_v60  ;;  %v14162_v60 = vrot.slane %v14158_v33, %v12821_v53  ;;  %v5714_v12 = vrot.slane %v14094_v6, 2 }
0x1a9a   :  { %11133 = vmatpush1.bf16.msra.mxu0 %v14116_v23  ;;  %11107 = vmatprep.subr.bf16.mxu1 %v11106_v50 }
0x1a9b   :  { %11135 = vmatprep.subr.bf16.mxu0 %v14120_v36 }
0x1a9d   :  { %11109 = vmatpush3.bf16.msra.mxu1 %v11106_v50  ;;  %v14147_v50 = vpack.c.bf16 %v5993_v24, %v5990_v31 }
0x1a9e   :  { %11137 = vmatpush1.bf16.msra.mxu0 %v14122_v9  ;;  %11111 = vmatprep.subr.bf16.mxu1 %v11110_v8 }
0x1a9f   :  { %11139 = vmatprep.subr.bf16.mxu0 %v14126_v37 }
0x1aa1   :  { %11113 = vmatpush3.bf16.msra.mxu1 %v11110_v8 }
0x1aa2   :  { %11141 = vmatpush1.bf16.msra.mxu0 %v14128_v5  ;;  %11115 = vmatprep.subr.bf16.mxu1 %v11114_v55 }
0x1aa3   :  { %11143 = vmatprep.subr.bf16.mxu0 %v14132_v34 }
0x1aa5   :  { %11117 = vmatpush3.bf16.msra.mxu1 %v11114_v55 }
0x1aa6   :  { %11145 = vmatpush1.bf16.msra.mxu0 %v14134_v47  ;;  %11119 = vmatprep.subr.bf16.mxu1 %v11118_v46 }
0x1aa7   :  { %11147 = vmatprep.subr.bf16.mxu0 %v14137_v1 }
0x1aa9   :  { %11121 = vmatpush3.bf16.msra.mxu1 %v11118_v46 }
0x1aaa   :  { %11149 = vmatpush1.bf16.msra.mxu0 %v14140_v0  ;;  %11154 = vmatprep.subr.bf16.mxu1 %v12310_v30 }
0x1aab   :  { %11151 = vmatprep.subr.bf16.mxu0 %v14145_v61 }
0x1aae   :  { %11153 = vmatpush1.bf16.msra.mxu0 %v14147_v50 }
0x1aaf   :  { %11179 = vmatprep.subr.bf16.mxu0 %v14102_v13 }
0x1b44   :  { %v5606_v40 = vpop.f32.mrb[54].mxu0  ;;  %v5677_v15 = vpop.f32.mrb[62].mxu1 }
0x1b45   :  { %v5685_v26 = vrot.slane %v5606_v40, 2  ;;  %v5608_v10 = vpop.f32.mrb[55].mxu0  ;;  %v9243_v39 = vpop.f32.mrb[63].mxu1  ;;  %v5704_v43 = vadd.f32 %v11964_v18, %v5677_v15  ;;  %v14187_v18 = vsel %vm2091_vm4, %v3814_v38, %v13578_v44  ;;  %v5977_v38 = vld [vmem:[#allocation25 + $0xe8] sm:$0xff] }
0x1b46   :  { %v5695_v8 = vrot.slane %v5608_v10, 2 }
0x1b47   :  { %v5687_v54 = vadd.f32 %v5685_v26, %v5681_v45  ;;  %v5706_v48 = vrot.slane %v5704_v43, 2 }
0x1b48   :  { %v5697_v52 = vadd.f32 %v5695_v8, %v5682_v16  ;;  %v5953_v16 = vld [vmem:[#allocation25 + $0x28] sm:$0xff] }
0x1b49   :  { %v7654_v51 = vmul.f32 -1.442695, %v5687_v54  ;;  %v5950_v54 = vld [vmem:[#allocation25 + $0x10] sm:$0xff] }
0x1b4a   :  { %v7655_v27 = vmul.f32 -1.442695, %v5697_v52  ;;  %v14173_v52 = vpack.c.bf16 %v5953_v16, %v5950_v54 }
0x1b4b   :  { %11860 = vpow2.f32 %v7654_v51  ;;  %v5956_v51 = vld [vmem:[#allocation25 + $0x40] sm:$0xff] }
0x1b4c   :  { %11862 = vpow2.f32 %v7655_v27  ;;  %v5959_v27 = vld [vmem:[#allocation25 + $0x58] sm:$0xff] }
0x1b55   :  { %v11861_v62 = vpop.eup %11860 }
0x1b56   :  { %v11863_v59 = vpop.eup %11862  ;;  %v5691_v55 = vadd.f32 1.0, %v11861_v62 }
0x1b57   :  { %v5701_v56 = vadd.f32 1.0, %v11863_v59  ;;  %v14177_v59 = vpack.c.bf16 %v5959_v27, %v5956_v51 }
0x1b58   :  { %11864 = vrcp.f32 %v5691_v55  ;;  %v5962_v55 = vld [vmem:[#allocation25 + $0x70] sm:$0xff] }
0x1b59   :  { %11866 = vrcp.f32 %v5701_v56  ;;  %v5965_v56 = vld [vmem:[#allocation25 + $0x88] sm:$0xff] }
0x1b5a   :  { %v14191_v43 = vpack.c.bf16 %v5965_v56, %v5962_v55 }
0x1b62   :  { %v11865_v46 = vpop.eup %11864 }
0x1b63   :  { %v11867_v49 = vpop.eup %11866  ;;  %v5708_v25 = vmul.f32 %v11865_v46, %v5706_v48  ;;  %v5968_v48 = vld [vmem:[#allocation25 + $0xa0] sm:$0xff]  ;;  %v5971_v46 = vld [vmem:[#allocation25 + $0xb8] sm:$0xff] }
0x1b64   :  { %v5716_v31 = vmul.f32 %v11867_v49, %v5714_v12  ;;  %v5856_v24 = vpop.f32.mrb[56].mxu0  ;;  %v5711_v53 = vsub.f32 1.0, %v11867_v49  ;;  %v14198_v44 = vpack.c.bf16 %v5971_v46, %v5968_v48  ;;  %v14204_v12 = vpack.c.bf16 %v5977_v38, %v5974_v19  ;;  %v5980_v49 = vld [vmem:[#allocation25 + $0x100] sm:$0xff] }
0x1b65   :  { %v5709_v40 = vadd.f32 %v5708_v25, %v5683_v35  ;;  %v5857_v15 = vadd.f32 %v5856_v24, %v14162_v60  ;;  %v5858_v26 = vpop.f32.mrb[57].mxu0  ;;  %v5983_v25 = vld [vmem:[#allocation25 + $0x118] sm:$0xff]  ;;  %v5989_v24 = vld [vmem:[#allocation25 + $0x148] sm:$0xff] }
0x1b66   :  { %v5859_v10 = vadd.f32 %v5858_v26, %v14167_v41  ;;  %v14210_v35 = vpack.c.bf16 %v5983_v25, %v5980_v49  ;;  %v5995_v26 = vld [vmem:[#allocation25 + $0x178] sm:$0xff] }
0x1b67   :  { %11868 = vtanh.f32 %v5709_v40  ;;  %5942 = vst [vmem:[#allocation4] sm:$0xff] %v5857_v15  ;;  %v5992_v15 = vld [vmem:[#allocation25 + $0x160] sm:$0xff] }
0x1b68   :  { %5943 = vst [vmem:[#allocation4 + $0x8] sm:$0xff] %v5859_v10  ;;  %v14222_v10 = vpack.c.bf16 %v5995_v26, %v5992_v15 }
0x1b71   :  { %v11869_v6 = vpop.eup %11868 }
0x1b72   :  { %v5712_v39 = vmul.f32 %v11869_v6, %v5711_v53  ;;  %v5786_v53 = vrot.slane %v14158_v33, %v12828_v58  ;;  %v6139_v58 = vld [vmem:[#allocation4 + $0x8] sm:$0x3] }
0x1b74   :  { %v5717_v45 = vadd.f32 %v5716_v31, %v5712_v39  ;;  %v5986_v31 = vld [vmem:[#allocation25 + $0x130] sm:$0xff] }
0x1b75   :  { %v14216_v40 = vpack.c.bf16 %v5989_v24, %v5986_v31 }
0x1b76   :  { %v5719_v57 = vrot.slane %v5717_v45, 6 }
0x1b78   :  { %v5721_v8 = vsel %vm2091_vm4, %v5719_v57, 0.0 }
0x1b79   :  { %5722 = vst [vmem:[#allocation5 + $0xe] sm:$0x3] %v5721_v8 }
0x1b80   :  { %v5724_v62 = vld [vmem:[#allocation5 + $0x8] sm:$0xff] }
0x1b81   :  { %5861 = vmatmul.mubr.f32.gmra.mrb[58].mxu0 %v5724_v62  ;;  %9277 = vmatmul.mubr.f32.vlgmr.msra.gmra.mrb[64].mxu1 %v5724_v62  ;;  %v6138_v62 = vld [vmem:[#allocation4] sm:$0x3] }
0x1b82   :  { %11156 = vmatpush3.bf16.msra.mxu1 %v14173_v52  ;;  %6061 = vmatprep.mubr.f32.mxu0 %v12309_v22 }
0x1b83   :  { %11157 = vmatprep.subr.bf16.mxu1 %v12310_v30  ;;  %9311 = vmatprep.mubr.msk.f32.mxu1 %vm12311_vm11, %v12309_v22 }
0x1b85   :  { %6062 = vmatmul.mubr.f32.vlgmr.msra.gmra.mrb[60].mxu0 %v14187_v18 }
0x1b86   :  { %11159 = vmatpush3.bf16.msra.mxu1 %v14177_v59  ;;  %11181 = vmatpush1.bf16.msra.mxu0 %v14104_v63 }
0x1b87   :  { %11160 = vmatprep.subr.bf16.mxu1 %v12310_v30  ;;  %11183 = vmatprep.subr.bf16.mxu0 %v14108_v28 }
0x1b88   :  { %6236 = vmatprep.mubr.f32.mxu0 %v12309_v22 }
0x1b8a   :  { %11162 = vmatpush3.bf16.msra.mxu1 %v14191_v43  ;;  %11185 = vmatpush1.bf16.msra.mxu0 %v14110_v20 }
0x1b8b   :  { %11163 = vmatprep.subr.bf16.mxu1 %v12310_v30  ;;  %11187 = vmatprep.subr.bf16.mxu0 %v14114_v32 }
0x1b8e   :  { %11165 = vmatpush3.bf16.msra.mxu1 %v14198_v44  ;;  %11189 = vmatpush1.bf16.msra.mxu0 %v14116_v23 }
0x1b8f   :  { %11166 = vmatprep.subr.bf16.mxu1 %v12310_v30  ;;  %11191 = vmatprep.subr.bf16.mxu0 %v14120_v36 }
0x1b92   :  { %11168 = vmatpush3.bf16.msra.mxu1 %v14204_v12  ;;  %11193 = vmatpush1.bf16.msra.mxu0 %v14122_v9 }
0x1b93   :  { %11169 = vmatprep.subr.bf16.mxu1 %v12310_v30  ;;  %11195 = vmatprep.subr.bf16.mxu0 %v14126_v37 }
0x1b96   :  { %11171 = vmatpush3.bf16.msra.mxu1 %v14210_v35  ;;  %11197 = vmatpush1.bf16.msra.mxu0 %v14128_v5 }
0x1b97   :  { %11172 = vmatprep.subr.bf16.mxu1 %v12310_v30  ;;  %11199 = vmatprep.subr.bf16.mxu0 %v14132_v34 }
0x1b9a   :  { %11174 = vmatpush3.bf16.msra.mxu1 %v14216_v40  ;;  %11201 = vmatpush1.bf16.msra.mxu0 %v14134_v47 }
0x1b9b   :  { %11175 = vmatprep.subr.bf16.mxu1 %v12310_v30  ;;  %11203 = vmatprep.subr.bf16.mxu0 %v14137_v1 }
0x1b9e   :  { %11177 = vmatpush3.bf16.msra.mxu1 %v14222_v10  ;;  %11205 = vmatpush1.bf16.msra.mxu0 %v14140_v0 }
0x1b9f   :  { %11210 = vmatprep.subr.bf16.mxu1 %v12310_v30  ;;  %11207 = vmatprep.subr.bf16.mxu0 %v14145_v61 }
0x1ba1   :  { %9312 = vmatmul.mubr.f32.vlgmr.msra.gmra.mrb[66].mxu1 %v14187_v18 }
0x1ba2   :  { %11212 = vmatpush3.bf16.msra.mxu1 %v14173_v52  ;;  %11209 = vmatpush1.bf16.msra.mxu0 %v14147_v50 }
0x1ba3   :  { %11213 = vmatprep.subr.bf16.mxu1 %v12310_v30  ;;  %9346 = vmatprep.mubr.msk.f32.mxu1 %vm12311_vm11, %v12309_v22 }
0x1ba4   :  { %11235 = vmatprep.subr.bf16.mxu0 %v14102_v13 }
0x1ba6   :  { %11215 = vmatpush3.bf16.msra.mxu1 %v14177_v59 }
0x1ba7   :  { %11216 = vmatprep.subr.bf16.mxu1 %v12310_v30 }
0x1baa   :  { %11218 = vmatpush3.bf16.msra.mxu1 %v14191_v43 }
0x1bab   :  { %11219 = vmatprep.subr.bf16.mxu1 %v12310_v30 }
0x1bae   :  { %11221 = vmatpush3.bf16.msra.mxu1 %v14198_v44 }
0x1baf   :  { %11222 = vmatprep.subr.bf16.mxu1 %v12310_v30 }
0x1bb2   :  { %11224 = vmatpush3.bf16.msra.mxu1 %v14204_v12 }
0x1bb3   :  { %11225 = vmatprep.subr.bf16.mxu1 %v12310_v30 }
0x1bb6   :  { %11227 = vmatpush3.bf16.msra.mxu1 %v14210_v35 }
0x1bb7   :  { %11228 = vmatprep.subr.bf16.mxu1 %v12310_v30 }
0x1bba   :  { %11230 = vmatpush3.bf16.msra.mxu1 %v14216_v40 }
0x1bbb   :  { %11231 = vmatprep.subr.bf16.mxu1 %v12310_v30 }
0x1bbe   :  { %11233 = vmatpush3.bf16.msra.mxu1 %v14222_v10 }
0x1bbf   :  { %11266 = vmatprep.subr.bf16.mxu1 %v12310_v30 }
0x1c54   :  { %v5862_v6 = vpop.f32.mrb[58].mxu0  ;;  %v9278_v39 = vpop.f32.mrb[64].mxu1 }
0x1c55   :  { %v5863_v45 = vadd.f32 %v5862_v6, %v14162_v60  ;;  %v5939_v57 = vadd.f32 %v9278_v39, %v5786_v53  ;;  %v5864_v8 = vpop.f32.mrb[59].mxu0  ;;  %v5933_v54 = vpop.f32.mrb[65].mxu1 }
0x1c56   :  { %v5865_v16 = vadd.f32 %v5864_v8, %v14167_v41  ;;  %v5934_v51 = vadd.f32 %v5933_v54, %v5786_v53  ;;  %v14259_v41 = vld [vmem:[%s14631_s27] ss:$0 sm:$0xff] }
0x1c57   :  { %5945 = vst [vmem:[#allocation4 + $0x18] sm:$0xff] %v5863_v45  ;;  %5947 = vst [vmem:[#allocation4 + $0x28] sm:$0xff] %v5939_v57 }
0x1c58   :  { %5946 = vst [vmem:[#allocation4 + $0x20] sm:$0xff] %v5865_v16  ;;  %5944 = vst [vmem:[#allocation4 + $0x10] sm:$0xff] %v5934_v51  ;;  %v6063_v27 = vpop.f32.mrb[60].mxu0 }
0x1c59   :  { %v6141_v55 = vadd.f32 %v6138_v62, %v6063_v27  ;;  %v6065_v56 = vpop.f32.mrb[61].mxu0 }
0x1c5a   :  { %v6148_v33 = vadd.f32 %v6139_v58, %v6065_v56 }
0x1c5b   :  { %v7656_v48 = vmul.f32 -1.442695, %v6141_v55 }
0x1c5c   :  { %v7657_v46 = vmul.f32 -1.442695, %v6148_v33 }
0x1c5d   :  { %11870 = vpow2.f32 %v7656_v48  ;;  %v6313_v48 = vld [vmem:[#allocation4] sm:$0xc] }
0x1c5e   :  { %11872 = vpow2.f32 %v7657_v46 }
0x1c5f   :  { %v6140_v53 = vld [vmem:[#allocation4 + $0x10] sm:$0x3] }
0x1c67   :  { %v11871_v60 = vpop.eup %11870 }
0x1c68   :  { %v6145_v19 = vadd.f32 1.0, %v11871_v60  ;;  %v11873_v38 = vpop.eup %11872  ;;  %v6314_v60 = vld [vmem:[#allocation4 + $0x8] sm:$0xc] }
0x1c69   :  { %v6152_v49 = vadd.f32 1.0, %v11873_v38 }
0x1c6a   :  { %11874 = vrcp.f32 %v6145_v19 }
0x1c6b   :  { %11876 = vrcp.f32 %v6152_v49 }
0x1c74   :  { %v11875_v25 = vpop.eup %11874  ;;  %v6134_v31 = vpop.f32.mrb[66].mxu1 }
0x1c75   :  { %v6161_v24 = vadd.f32 %v14259_v41, %v6134_v31  ;;  %v9313_v15 = vpop.f32.mrb[67].mxu1  ;;  %v11877_v39 = vpop.eup %11876 }
0x1c76   :  { %v6165_v45 = vsub.f32 1.0, %v11877_v39  ;;  %v6167_v54 = vmul.f32 %v11877_v39, %v14187_v18  ;;  %v6315_v39 = vld [vmem:[#allocation4 + $0x10] sm:$0xc] }
0x1c77   :  { %v6162_v26 = vmul.f32 %v11875_v25, %v6161_v24 }
0x1c79   :  { %v6163_v6 = vadd.f32 %v6162_v26, %v6140_v53 }
0x1c7b   :  { %11878 = vtanh.f32 %v6163_v6 }
0x1c85   :  { %v11879_v57 = vpop.eup %11878 }
0x1c86   :  { %v6166_v8 = vmul.f32 %v11879_v57, %v6165_v45 }
0x1c88   :  { %v6168_v16 = vadd.f32 %v6167_v54, %v6166_v8 }
0x1c8a   :  { %v14266_v51 = vsel %vm780_vm12, %v6168_v16, %v14187_v18  ;;  %v6170_v27 = vsel %vm780_vm12, %v6168_v16, 0.0 }
0x1c8b   :  { %6171 = vst [vmem:[#allocation5] sm:$0x3] %v6170_v27  ;;  %6237 = vmatmul.mubr.f32.vlgmr.msra.gmra.mrb[62].mxu0 %v14266_v51  ;;  %9347 = vmatmul.mubr.f32.vlgmr.msra.gmra.mrb[68].mxu1 %v14266_v51  ;;  %v6346_v8 = vrot.slane %v14266_v51, 6 }
0x1c8c   :  { %11237 = vmatpush1.bf16.msra.mxu0 %v14104_v63  ;;  %11268 = vmatpush3.bf16.msra.mxu1 %v14173_v52 }
0x1c8d   :  { %11239 = vmatprep.subr.bf16.mxu0 %v14108_v28  ;;  %11269 = vmatprep.subr.bf16.mxu1 %v12310_v30 }
0x1c8e   :  { %6420 = vmatprep.mubr.f32.mxu0 %v12309_v22  ;;  %9381 = vmatprep.mubr.msk.f32.mxu1 %vm12311_vm11, %v12309_v22 }
0x1c90   :  { %11241 = vmatpush1.bf16.msra.mxu0 %v14110_v20  ;;  %11271 = vmatpush3.bf16.msra.mxu1 %v14177_v59 }
0x1c91   :  { %11243 = vmatprep.subr.bf16.mxu0 %v14114_v32  ;;  %11272 = vmatprep.subr.bf16.mxu1 %v12310_v30 }
0x1c94   :  { %11245 = vmatpush1.bf16.msra.mxu0 %v14116_v23  ;;  %11274 = vmatpush3.bf16.msra.mxu1 %v14191_v43 }
0x1c95   :  { %11247 = vmatprep.subr.bf16.mxu0 %v14120_v36  ;;  %11275 = vmatprep.subr.bf16.mxu1 %v12310_v30 }
0x1c98   :  { %11249 = vmatpush1.bf16.msra.mxu0 %v14122_v9  ;;  %11277 = vmatpush3.bf16.msra.mxu1 %v14198_v44 }
0x1c99   :  { %11251 = vmatprep.subr.bf16.mxu0 %v14126_v37  ;;  %11278 = vmatprep.subr.bf16.mxu1 %v12310_v30 }
0x1c9c   :  { %11253 = vmatpush1.bf16.msra.mxu0 %v14128_v5  ;;  %11280 = vmatpush3.bf16.msra.mxu1 %v14204_v12 }
0x1c9d   :  { %11255 = vmatprep.subr.bf16.mxu0 %v14132_v34  ;;  %11281 = vmatprep.subr.bf16.mxu1 %v12310_v30 }
0x1ca0   :  { %11257 = vmatpush1.bf16.msra.mxu0 %v14134_v47  ;;  %11283 = vmatpush3.bf16.msra.mxu1 %v14210_v35 }
0x1ca1   :  { %11259 = vmatprep.subr.bf16.mxu0 %v14137_v1  ;;  %11284 = vmatprep.subr.bf16.mxu1 %v12310_v30 }
0x1ca4   :  { %11261 = vmatpush1.bf16.msra.mxu0 %v14140_v0  ;;  %11286 = vmatpush3.bf16.msra.mxu1 %v14216_v40 }
0x1ca5   :  { %11263 = vmatprep.subr.bf16.mxu0 %v14145_v61  ;;  %11287 = vmatprep.subr.bf16.mxu1 %v12310_v30 }
0x1ca8   :  { %11265 = vmatpush1.bf16.msra.mxu0 %v14147_v50  ;;  %11289 = vmatpush3.bf16.msra.mxu1 %v14222_v10 }
0x1ca9   :  { %11291 = vmatprep.subr.bf16.mxu0 %v14102_v13  ;;  %11322 = vmatprep.subr.bf16.mxu1 %v12310_v30 }
0x1d5e   :  { %v6238_v2 = vpop.f32.mrb[62].mxu0  ;;  %v6309_v18 = vpop.f32.mrb[68].mxu1 }
0x1d5f   :  { %v6317_v62 = vrot.slane %v6238_v2, 6  ;;  %v6240_v55 = vpop.f32.mrb[63].mxu0  ;;  %v9348_v56 = vpop.f32.mrb[69].mxu1  ;;  %v6336_v24 = vadd.f32 %v14259_v41, %v6309_v18 }
0x1d60   :  { %v6327_v58 = vrot.slane %v6240_v55, 6 }
0x1d61   :  { %v6319_v33 = vadd.f32 %v6317_v62, %v6313_v48  ;;  %v6338_v26 = vrot.slane %v6336_v24, 6 }
0x1d62   :  { %v6329_v19 = vadd.f32 %v6327_v58, %v6314_v60 }
0x1d63   :  { %v7659_v46 = vmul.f32 -1.442695, %v6319_v33 }
0x1d64   :  { %v7660_v38 = vmul.f32 -1.442695, %v6329_v19 }
0x1d65   :  { %11880 = vpow2.f32 %v7659_v46  ;;  %v6497_v46 = vld [vmem:[#allocation4] sm:$0x30] }
0x1d66   :  { %11882 = vpow2.f32 %v7660_v38 }
0x1d6f   :  { %v11881_v49 = vpop.eup %11880 }
0x1d70   :  { %v6323_v25 = vadd.f32 1.0, %v11881_v49  ;;  %v11883_v31 = vpop.eup %11882  ;;  %v6498_v49 = vld [vmem:[#allocation4 + $0x8] sm:$0x30] }
0x1d71   :  { %v6333_v15 = vadd.f32 1.0, %v11883_v31 }
0x1d72   :  { %11884 = vrcp.f32 %v6323_v25 }
0x1d73   :  { %11886 = vrcp.f32 %v6333_v15 }
0x1d7c   :  { %v11885_v53 = vpop.eup %11884 }
0x1d7d   :  { %v6340_v6 = vmul.f32 %v11885_v53, %v6338_v26  ;;  %v11887_v57 = vpop.eup %11886 }
0x1d7e   :  { %v6343_v54 = vsub.f32 1.0, %v11887_v57  ;;  %v6348_v2 = vmul.f32 %v11887_v57, %v6346_v8  ;;  %v6499_v8 = vld [vmem:[#allocation4 + $0x10] sm:$0x30] }
0x1d7f   :  { %v6341_v45 = vadd.f32 %v6340_v6, %v6315_v39 }
0x1d81   :  { %11888 = vtanh.f32 %v6341_v45 }
0x1d8b   :  { %v11889_v16 = vpop.eup %11888 }
0x1d8c   :  { %v6344_v27 = vmul.f32 %v11889_v16, %v6343_v54 }
0x1d8e   :  { %v6349_v62 = vadd.f32 %v6348_v2, %v6344_v27 }
0x1d90   :  { %v6351_v55 = vrot.slane %v6349_v62, 2 }
0x1d92   :  { %v14312_v18 = vsel %vm966_vm13, %v6351_v55, %v14266_v51  ;;  %v6354_v56 = vsel %vm966_vm13, %v6351_v55, 0.0 }
0x1d93   :  { %6355 = vst [vmem:[#allocation5 + $0x2] sm:$0x3] %v6354_v56  ;;  %6421 = vmatmul.mubr.f32.vlgmr.msra.gmra.mrb[64].mxu0 %v14312_v18  ;;  %9382 = vmatmul.mubr.f32.vlgmr.msra.gmra.mrb[70].mxu1 %v14312_v18  ;;  %v6530_v27 = vrot.slane %v14312_v18, 4 }
0x1d94   :  { %11293 = vmatpush1.bf16.msra.mxu0 %v14104_v63  ;;  %11324 = vmatpush3.bf16.msra.mxu1 %v14173_v52 }
0x1d95   :  { %11295 = vmatprep.subr.bf16.mxu0 %v14108_v28  ;;  %11325 = vmatprep.subr.bf16.mxu1 %v12310_v30 }
0x1d96   :  { %6604 = vmatprep.mubr.f32.mxu0 %v12309_v22  ;;  %9416 = vmatprep.mubr.msk.f32.mxu1 %vm12311_vm11, %v12309_v22 }
0x1d98   :  { %11297 = vmatpush1.bf16.msra.mxu0 %v14110_v20  ;;  %11327 = vmatpush3.bf16.msra.mxu1 %v14177_v59 }
0x1d99   :  { %11299 = vmatprep.subr.bf16.mxu0 %v14114_v32  ;;  %11328 = vmatprep.subr.bf16.mxu1 %v12310_v30 }
0x1d9c   :  { %11301 = vmatpush1.bf16.msra.mxu0 %v14116_v23  ;;  %11330 = vmatpush3.bf16.msra.mxu1 %v14191_v43 }
0x1d9d   :  { %11303 = vmatprep.subr.bf16.mxu0 %v14120_v36  ;;  %11331 = vmatprep.subr.bf16.mxu1 %v12310_v30 }
0x1da0   :  { %11305 = vmatpush1.bf16.msra.mxu0 %v14122_v9  ;;  %11333 = vmatpush3.bf16.msra.mxu1 %v14198_v44 }
0x1da1   :  { %11307 = vmatprep.subr.bf16.mxu0 %v14126_v37  ;;  %11334 = vmatprep.subr.bf16.mxu1 %v12310_v30 }
0x1da4   :  { %11309 = vmatpush1.bf16.msra.mxu0 %v14128_v5  ;;  %11336 = vmatpush3.bf16.msra.mxu1 %v14204_v12 }
0x1da5   :  { %11311 = vmatprep.subr.bf16.mxu0 %v14132_v34  ;;  %11337 = vmatprep.subr.bf16.mxu1 %v12310_v30 }
0x1da8   :  { %11313 = vmatpush1.bf16.msra.mxu0 %v14134_v47  ;;  %11339 = vmatpush3.bf16.msra.mxu1 %v14210_v35 }
0x1da9   :  { %11315 = vmatprep.subr.bf16.mxu0 %v14137_v1  ;;  %11340 = vmatprep.subr.bf16.mxu1 %v12310_v30 }
0x1dac   :  { %11317 = vmatpush1.bf16.msra.mxu0 %v14140_v0  ;;  %11342 = vmatpush3.bf16.msra.mxu1 %v14216_v40 }
0x1dad   :  { %11319 = vmatprep.subr.bf16.mxu0 %v14145_v61  ;;  %11343 = vmatprep.subr.bf16.mxu1 %v12310_v30 }
0x1db0   :  { %11321 = vmatpush1.bf16.msra.mxu0 %v14147_v50  ;;  %11345 = vmatpush3.bf16.msra.mxu1 %v14222_v10 }
0x1db1   :  { %11347 = vmatprep.subr.bf16.mxu0 %v14102_v13  ;;  %11378 = vmatprep.subr.bf16.mxu1 %v12310_v30 }
0x1e66   :  { %v6422_v17 = vpop.f32.mrb[64].mxu0  ;;  %v6493_v51 = vpop.f32.mrb[70].mxu1 }
0x1e67   :  { %v6501_v48 = vrot.slane %v6422_v17, 4  ;;  %v6424_v58 = vpop.f32.mrb[65].mxu0  ;;  %v9383_v33 = vpop.f32.mrb[71].mxu1  ;;  %v6520_v53 = vadd.f32 %v14259_v41, %v6493_v51 }
0x1e68   :  { %v6511_v60 = vrot.slane %v6424_v58, 4 }
0x1e69   :  { %v6503_v19 = vadd.f32 %v6501_v48, %v6497_v46  ;;  %v6522_v39 = vrot.slane %v6520_v53, 4 }
0x1e6a   :  { %v6513_v25 = vadd.f32 %v6511_v60, %v6498_v49 }
0x1e6b   :  { %v7661_v38 = vmul.f32 -1.442695, %v6503_v19  ;;  %v6681_v19 = vld [vmem:[#allocation4] sm:$0xc0] }
0x1e6c   :  { %v7662_v31 = vmul.f32 -1.442695, %v6513_v25 }
0x1e6d   :  { %11890 = vpow2.f32 %v7661_v38 }
0x1e6e   :  { %11892 = vpow2.f32 %v7662_v31  ;;  %v6682_v31 = vld [vmem:[#allocation4 + $0x8] sm:$0xc0] }
0x1e77   :  { %v11891_v24 = vpop.eup %11890 }
0x1e78   :  { %v6507_v15 = vadd.f32 1.0, %v11891_v24  ;;  %v11893_v26 = vpop.eup %11892 }
0x1e79   :  { %v6517_v6 = vadd.f32 1.0, %v11893_v26 }
0x1e7a   :  { %11894 = vrcp.f32 %v6507_v15 }
0x1e7b   :  { %11896 = vrcp.f32 %v6517_v6 }
0x1e84   :  { %v11895_v45 = vpop.eup %11894 }
0x1e85   :  { %v6524_v57 = vmul.f32 %v11895_v45, %v6522_v39  ;;  %v11897_v16 = vpop.eup %11896 }
0x1e86   :  { %v6527_v2 = vsub.f32 1.0, %v11897_v16  ;;  %v6532_v56 = vmul.f32 %v11897_v16, %v6530_v27  ;;  %v6683_v16 = vld [vmem:[#allocation4 + $0x10] sm:$0xc0] }
0x1e87   :  { %v6525_v54 = vadd.f32 %v6524_v57, %v6499_v8 }
0x1e89   :  { %11898 = vtanh.f32 %v6525_v54 }
0x1e93   :  { %v11899_v62 = vpop.eup %11898 }
0x1e94   :  { %v6528_v55 = vmul.f32 %v11899_v62, %v6527_v2 }
0x1e96   :  { %v6533_v17 = vadd.f32 %v6532_v56, %v6528_v55 }
0x1e98   :  { %v6535_v48 = vrot.slane %v6533_v17, 4 }
0x1e9a   :  { %v14358_v51 = vsel %vm1156_vm14, %v6535_v48, %v14312_v18  ;;  %v6538_v58 = vsel %vm1156_vm14, %v6535_v48, 0.0 }
0x1e9b   :  { %6539 = vst [vmem:[#allocation5 + $0x4] sm:$0x3] %v6538_v58  ;;  %6605 = vmatmul.mubr.f32.vlgmr.msra.gmra.mrb[66].mxu0 %v14358_v51  ;;  %9417 = vmatmul.mubr.f32.vlgmr.msra.gmra.mrb[72].mxu1 %v14358_v51  ;;  %v6714_v62 = vrot.slane %v14358_v51, 2 }
0x1e9c   :  { %11349 = vmatpush1.bf16.msra.mxu0 %v14104_v63  ;;  %11380 = vmatpush3.bf16.msra.mxu1 %v14173_v52 }
0x1e9d   :  { %11351 = vmatprep.subr.bf16.mxu0 %v14108_v28  ;;  %11381 = vmatprep.subr.bf16.mxu1 %v12310_v30 }
0x1e9e   :  { %6788 = vmatprep.mubr.f32.mxu0 %v12309_v22  ;;  %9451 = vmatprep.mubr.msk.f32.mxu1 %vm12311_vm11, %v12309_v22 }
0x1ea0   :  { %11353 = vmatpush1.bf16.msra.mxu0 %v14110_v20  ;;  %11383 = vmatpush3.bf16.msra.mxu1 %v14177_v59 }
0x1ea1   :  { %11355 = vmatprep.subr.bf16.mxu0 %v14114_v32  ;;  %11384 = vmatprep.subr.bf16.mxu1 %v12310_v30 }
0x1ea4   :  { %11357 = vmatpush1.bf16.msra.mxu0 %v14116_v23  ;;  %11386 = vmatpush3.bf16.msra.mxu1 %v14191_v43 }
0x1ea5   :  { %11359 = vmatprep.subr.bf16.mxu0 %v14120_v36  ;;  %11387 = vmatprep.subr.bf16.mxu1 %v12310_v30 }
0x1ea8   :  { %11361 = vmatpush1.bf16.msra.mxu0 %v14122_v9  ;;  %11389 = vmatpush3.bf16.msra.mxu1 %v14198_v44 }
0x1ea9   :  { %11363 = vmatprep.subr.bf16.mxu0 %v14126_v37  ;;  %11390 = vmatprep.subr.bf16.mxu1 %v12310_v30 }
0x1eac   :  { %11365 = vmatpush1.bf16.msra.mxu0 %v14128_v5  ;;  %11392 = vmatpush3.bf16.msra.mxu1 %v14204_v12 }
0x1ead   :  { %11367 = vmatprep.subr.bf16.mxu0 %v14132_v34  ;;  %11393 = vmatprep.subr.bf16.mxu1 %v12310_v30 }
0x1eb0   :  { %11369 = vmatpush1.bf16.msra.mxu0 %v14134_v47  ;;  %11395 = vmatpush3.bf16.msra.mxu1 %v14210_v35 }
0x1eb1   :  { %11371 = vmatprep.subr.bf16.mxu0 %v14137_v1  ;;  %11396 = vmatprep.subr.bf16.mxu1 %v12310_v30 }
0x1eb4   :  { %11373 = vmatpush1.bf16.msra.mxu0 %v14140_v0  ;;  %11398 = vmatpush3.bf16.msra.mxu1 %v14216_v40 }
0x1eb5   :  { %11375 = vmatprep.subr.bf16.mxu0 %v14145_v61  ;;  %11399 = vmatprep.subr.bf16.mxu1 %v12310_v30 }
0x1eb8   :  { %11377 = vmatpush1.bf16.msra.mxu0 %v14147_v50  ;;  %11401 = vmatpush3.bf16.msra.mxu1 %v14222_v10 }
0x1eb9   :  { %11403 = vmatprep.subr.bf16.mxu0 %v14102_v13  ;;  %11434 = vmatprep.subr.bf16.mxu1 %v12310_v30 }
0x1f6e   :  { %v6606_v4 = vpop.f32.mrb[66].mxu0  ;;  %v6677_v18 = vpop.f32.mrb[72].mxu1 }
0x1f6f   :  { %v6685_v33 = vrot.slane %v6606_v4, 2  ;;  %v6608_v46 = vpop.f32.mrb[67].mxu0  ;;  %v9418_v60 = vpop.f32.mrb[73].mxu1  ;;  %v6704_v39 = vadd.f32 %v14259_v41, %v6677_v18 }
0x1f70   :  { %v6695_v38 = vrot.slane %v6608_v46, 2 }
0x1f71   :  { %v6687_v49 = vadd.f32 %v6685_v33, %v6681_v19  ;;  %v6706_v57 = vrot.slane %v6704_v39, 2 }
0x1f72   :  { %v6697_v24 = vadd.f32 %v6695_v38, %v6682_v31 }
0x1f73   :  { %v7663_v25 = vmul.f32 -1.442695, %v6687_v49 }
0x1f74   :  { %v7664_v15 = vmul.f32 -1.442695, %v6697_v24 }
0x1f75   :  { %11900 = vpow2.f32 %v7663_v25  ;;  %v6866_v25 = vld [vmem:[#allocation4 + $0x20] sm:$0x3] }
0x1f76   :  { %11902 = vpow2.f32 %v7664_v15 }
0x1f7f   :  { %v11901_v26 = vpop.eup %11900 }
0x1f80   :  { %v6691_v53 = vadd.f32 1.0, %v11901_v26  ;;  %v11903_v6 = vpop.eup %11902 }
0x1f81   :  { %v6701_v45 = vadd.f32 1.0, %v11903_v6 }
0x1f82   :  { %11904 = vrcp.f32 %v6691_v53 }
0x1f83   :  { %11906 = vrcp.f32 %v6701_v45 }
0x1f8c   :  { %v11905_v8 = vpop.eup %11904 }
0x1f8d   :  { %v6708_v54 = vmul.f32 %v11905_v8, %v6706_v57  ;;  %v11907_v2 = vpop.eup %11906  ;;  %v6867_v8 = vld [vmem:[#allocation4 + $0x28] sm:$0x3] }
0x1f8e   :  { %v6711_v55 = vsub.f32 1.0, %v11907_v2  ;;  %v6716_v48 = vmul.f32 %v11907_v2, %v6714_v62 }
0x1f8f   :  { %v6709_v27 = vadd.f32 %v6708_v54, %v6683_v16 }
0x1f91   :  { %11908 = vtanh.f32 %v6709_v27 }
0x1f9b   :  { %v11909_v56 = vpop.eup %11908 }
0x1f9c   :  { %v6712_v17 = vmul.f32 %v11909_v56, %v6711_v55 }
0x1f9e   :  { %v6717_v58 = vadd.f32 %v6716_v48, %v6712_v17 }
0x1fa0   :  { %v6719_v4 = vrot.slane %v6717_v58, 6 }
0x1fa2   :  { %v14404_v18 = vsel %vm1346_vm15, %v6719_v4, %v14358_v51  ;;  %v6722_v33 = vsel %vm1346_vm15, %v6719_v4, 0.0  ;;  %v6865_v51 = vld [vmem:[#allocation4 + $0x18] sm:$0x3] }
0x1fa3   :  { %6723 = vst [vmem:[#allocation5 + $0x6] sm:$0x3] %v6722_v33  ;;  %6789 = vmatmul.mubr.f32.vlgmr.msra.gmra.mrb[68].mxu0 %v14404_v18  ;;  %9452 = vmatmul.mubr.f32.vlgmr.msra.gmra.mrb[74].mxu1 %v14404_v18 }
0x1fa4   :  { %11405 = vmatpush1.bf16.msra.mxu0 %v14104_v63  ;;  %11436 = vmatpush3.bf16.msra.mxu1 %v14173_v52 }
0x1fa5   :  { %11407 = vmatprep.subr.bf16.mxu0 %v14108_v28  ;;  %11437 = vmatprep.subr.bf16.mxu1 %v12310_v30 }
0x1fa6   :  { %6957 = vmatprep.mubr.f32.mxu0 %v12309_v22  ;;  %9486 = vmatprep.mubr.msk.f32.mxu1 %vm12311_vm11, %v12309_v22 }
0x1fa8   :  { %11409 = vmatpush1.bf16.msra.mxu0 %v14110_v20  ;;  %11439 = vmatpush3.bf16.msra.mxu1 %v14177_v59 }
0x1fa9   :  { %11411 = vmatprep.subr.bf16.mxu0 %v14114_v32  ;;  %11440 = vmatprep.subr.bf16.mxu1 %v12310_v30 }
0x1fac   :  { %11413 = vmatpush1.bf16.msra.mxu0 %v14116_v23  ;;  %11442 = vmatpush3.bf16.msra.mxu1 %v14191_v43 }
0x1fad   :  { %11415 = vmatprep.subr.bf16.mxu0 %v14120_v36  ;;  %11443 = vmatprep.subr.bf16.mxu1 %v12310_v30 }
0x1fb0   :  { %11417 = vmatpush1.bf16.msra.mxu0 %v14122_v9  ;;  %11445 = vmatpush3.bf16.msra.mxu1 %v14198_v44 }
0x1fb1   :  { %11419 = vmatprep.subr.bf16.mxu0 %v14126_v37  ;;  %11446 = vmatprep.subr.bf16.mxu1 %v12310_v30 }
0x1fb4   :  { %11421 = vmatpush1.bf16.msra.mxu0 %v14128_v5  ;;  %11448 = vmatpush3.bf16.msra.mxu1 %v14204_v12 }
0x1fb5   :  { %11423 = vmatprep.subr.bf16.mxu0 %v14132_v34  ;;  %11449 = vmatprep.subr.bf16.mxu1 %v12310_v30 }
0x1fb8   :  { %11425 = vmatpush1.bf16.msra.mxu0 %v14134_v47  ;;  %11451 = vmatpush3.bf16.msra.mxu1 %v14210_v35 }
0x1fb9   :  { %11427 = vmatprep.subr.bf16.mxu0 %v14137_v1  ;;  %11452 = vmatprep.subr.bf16.mxu1 %v12310_v30 }
0x1fbc   :  { %11429 = vmatpush1.bf16.msra.mxu0 %v14140_v0  ;;  %11454 = vmatpush3.bf16.msra.mxu1 %v14216_v40 }
0x1fbd   :  { %11431 = vmatprep.subr.bf16.mxu0 %v14145_v61  ;;  %11455 = vmatprep.subr.bf16.mxu1 %v12310_v30 }
0x1fc0   :  { %11433 = vmatpush1.bf16.msra.mxu0 %v14147_v50  ;;  %11457 = vmatpush3.bf16.msra.mxu1 %v14222_v10 }
0x1fc1   :  { %11459 = vmatprep.subr.bf16.mxu0 %v14102_v13  ;;  %11490 = vmatprep.subr.bf16.mxu1 %v12310_v30 }
0x2076   :  { %v6790_v7 = vpop.f32.mrb[68].mxu0  ;;  %v6861_v46 = vpop.f32.mrb[74].mxu1 }
0x2077   :  { %v6868_v60 = vadd.f32 %v6865_v51, %v6790_v7  ;;  %v6792_v19 = vpop.f32.mrb[69].mxu0  ;;  %v9453_v38 = vpop.f32.mrb[75].mxu1  ;;  %v6882_v39 = vadd.f32 %v14259_v41, %v6861_v46  ;;  %v7034_v7 = vld [vmem:[#allocation4 + $0x18] sm:$0xc] }
0x2078   :  { %v6875_v31 = vadd.f32 %v6866_v25, %v6792_v19  ;;  %v7035_v19 = vld [vmem:[#allocation4 + $0x20] sm:$0xc] }
0x2079   :  { %v7665_v49 = vmul.f32 -1.442695, %v6868_v60 }
0x207a   :  { %v7666_v24 = vmul.f32 -1.442695, %v6875_v31 }
0x207b   :  { %11910 = vpow2.f32 %v7665_v49 }
0x207c   :  { %11912 = vpow2.f32 %v7666_v24 }
0x2085   :  { %v11911_v15 = vpop.eup %11910 }
0x2086   :  { %v6872_v26 = vadd.f32 1.0, %v11911_v15  ;;  %v11913_v53 = vpop.eup %11912 }
0x2087   :  { %v6879_v6 = vadd.f32 1.0, %v11913_v53 }
0x2088   :  { %11914 = vrcp.f32 %v6872_v26 }
0x2089   :  { %11916 = vrcp.f32 %v6879_v6 }
0x2092   :  { %v11915_v45 = vpop.eup %11914 }
0x2093   :  { %v6883_v57 = vmul.f32 %v11915_v45, %v6882_v39  ;;  %v11917_v16 = vpop.eup %11916  ;;  %v7036_v39 = vld [vmem:[#allocation4 + $0x28] sm:$0xc] }
0x2094   :  { %v6886_v27 = vsub.f32 1.0, %v11917_v16  ;;  %v6888_v55 = vmul.f32 %v11917_v16, %v14404_v18 }
0x2095   :  { %v6884_v54 = vadd.f32 %v6883_v57, %v6867_v8 }
0x2097   :  { %11918 = vtanh.f32 %v6884_v54 }
0x20a1   :  { %v11919_v2 = vpop.eup %11918 }
0x20a2   :  { %v6887_v62 = vmul.f32 %v11919_v2, %v6886_v27 }
0x20a4   :  { %v6889_v56 = vadd.f32 %v6888_v55, %v6887_v62 }
0x20a6   :  { %v14450_v17 = vsel %vm1524_vm0, %v6889_v56, %v14404_v18  ;;  %v6891_v48 = vsel %vm1524_vm0, %v6889_v56, 0.0 }
0x20a7   :  { %6892 = vst [vmem:[#allocation5 + $0x8] sm:$0x3] %v6891_v48  ;;  %6958 = vmatmul.mubr.f32.vlgmr.msra.gmra.mrb[70].mxu0 %v14450_v17  ;;  %9487 = vmatmul.mubr.f32.vlgmr.msra.gmra.mrb[76].mxu1 %v14450_v17  ;;  %v7067_v8 = vrot.slane %v14450_v17, 6 }
0x20a8   :  { %11461 = vmatpush1.bf16.msra.mxu0 %v14104_v63  ;;  %11492 = vmatpush3.bf16.msra.mxu1 %v14173_v52 }
0x20a9   :  { %11463 = vmatprep.subr.bf16.mxu0 %v14108_v28  ;;  %11493 = vmatprep.subr.bf16.mxu1 %v12310_v30 }
0x20aa   :  { %7141 = vmatprep.mubr.f32.mxu0 %v12309_v22  ;;  %9521 = vmatprep.mubr.msk.f32.mxu1 %vm12311_vm11, %v12309_v22 }
0x20ac   :  { %11465 = vmatpush1.bf16.msra.mxu0 %v14110_v20  ;;  %11495 = vmatpush3.bf16.msra.mxu1 %v14177_v59 }
0x20ad   :  { %11467 = vmatprep.subr.bf16.mxu0 %v14114_v32  ;;  %11496 = vmatprep.subr.bf16.mxu1 %v12310_v30 }
0x20b0   :  { %11469 = vmatpush1.bf16.msra.mxu0 %v14116_v23  ;;  %11498 = vmatpush3.bf16.msra.mxu1 %v14191_v43 }
0x20b1   :  { %11471 = vmatprep.subr.bf16.mxu0 %v14120_v36  ;;  %11499 = vmatprep.subr.bf16.mxu1 %v12310_v30 }
0x20b4   :  { %11473 = vmatpush1.bf16.msra.mxu0 %v14122_v9  ;;  %11501 = vmatpush3.bf16.msra.mxu1 %v14198_v44 }
0x20b5   :  { %11475 = vmatprep.subr.bf16.mxu0 %v14126_v37  ;;  %11502 = vmatprep.subr.bf16.mxu1 %v12310_v30 }
0x20b8   :  { %11477 = vmatpush1.bf16.msra.mxu0 %v14128_v5  ;;  %11504 = vmatpush3.bf16.msra.mxu1 %v14204_v12 }
0x20b9   :  { %11479 = vmatprep.subr.bf16.mxu0 %v14132_v34  ;;  %11505 = vmatprep.subr.bf16.mxu1 %v12310_v30 }
0x20bc   :  { %11481 = vmatpush1.bf16.msra.mxu0 %v14134_v47  ;;  %11507 = vmatpush3.bf16.msra.mxu1 %v14210_v35 }
0x20bd   :  { %11483 = vmatprep.subr.bf16.mxu0 %v14137_v1  ;;  %11508 = vmatprep.subr.bf16.mxu1 %v12310_v30 }
0x20c0   :  { %11485 = vmatpush1.bf16.msra.mxu0 %v14140_v0  ;;  %11510 = vmatpush3.bf16.msra.mxu1 %v14216_v40 }
0x20c1   :  { %11487 = vmatprep.subr.bf16.mxu0 %v14145_v61  ;;  %11511 = vmatprep.subr.bf16.mxu1 %v12310_v30 }
0x20c4   :  { %11489 = vmatpush1.bf16.msra.mxu0 %v14147_v50  ;;  %11513 = vmatpush3.bf16.msra.mxu1 %v14222_v10 }
0x20c5   :  { %11515 = vmatprep.subr.bf16.mxu0 %v14102_v13  ;;  %11546 = vmatprep.subr.bf16.mxu1 %v12310_v30 }
0x217a   :  { %v6959_v3 = vpop.f32.mrb[70].mxu0  ;;  %v7030_v58 = vpop.f32.mrb[76].mxu1 }
0x217b   :  { %v7038_v4 = vrot.slane %v6959_v3, 6  ;;  %v6961_v18 = vpop.f32.mrb[71].mxu0  ;;  %v9488_v33 = vpop.f32.mrb[77].mxu1  ;;  %v7057_v24 = vadd.f32 %v14259_v41, %v7030_v58 }
0x217c   :  { %v7048_v51 = vrot.slane %v6961_v18, 6  ;;  %v7444_v33 = vld [vmem:[#allocation5] sm:$0xff] }
0x217d   :  { %v7040_v46 = vadd.f32 %v7038_v4, %v7034_v7  ;;  %v7059_v26 = vrot.slane %v7057_v24, 6  ;;  %v7446_v7 = vld [vmem:[#allocation26] sm:$0xff] }
0x217e   :  { %v7050_v38 = vadd.f32 %v7048_v51, %v7035_v19  ;;  %v7447_v51 = vld [vmem:[#allocation26 + $0x8] sm:$0xff]  ;;  %v7449_v19 = vld [vmem:[#allocation26 + $0x18] sm:$0xff] }
0x217f   :  { %v7667_v60 = vmul.f32 -1.442695, %v7040_v46  ;;  %v11570_v46 = vpack.c.bf16 %v7447_v51, %v7446_v7 }
0x2180   :  { %v7668_v49 = vmul.f32 -1.442695, %v7050_v38 }
0x2181   :  { %11920 = vpow2.f32 %v7667_v60  ;;  %v7448_v60 = vld [vmem:[#allocation26 + $0x10] sm:$0xff] }
0x2182   :  { %11922 = vpow2.f32 %v7668_v49  ;;  %v11574_v38 = vpack.c.bf16 %v7449_v19, %v7448_v60  ;;  %v7450_v49 = vld [vmem:[#allocation26 + $0x20] sm:$0xff] }
0x218b   :  { %v11921_v25 = vpop.eup %11920 }
0x218c   :  { %v7044_v31 = vadd.f32 1.0, %v11921_v25  ;;  %v11923_v13 = vpop.eup %11922  ;;  %v11578_v25 = vpack.c.bf16 %v7451_v29, %v7450_v49 }
0x218d   :  { %v7054_v15 = vadd.f32 1.0, %v11923_v13  ;;  %v7453_v13 = vld [vmem:[#allocation26 + $0x38] sm:$0xff] }
0x218e   :  { %11924 = vrcp.f32 %v7044_v31  ;;  %v7452_v31 = vld [vmem:[#allocation26 + $0x30] sm:$0xff] }
0x218f   :  { %11926 = vrcp.f32 %v7054_v15  ;;  %v11582_v24 = vpack.c.bf16 %v7453_v13, %v7452_v31  ;;  %v7454_v15 = vld [vmem:[#allocation26 + $0x40] sm:$0xff] }
0x2198   :  { %v11925_v53 = vpop.eup %11924 }
0x2199   :  { %v7061_v6 = vmul.f32 %v11925_v53, %v7059_v26  ;;  %v11927_v57 = vpop.eup %11926  ;;  %v7455_v26 = vld [vmem:[#allocation26 + $0x48] sm:$0xff] }
0x219a   :  { %v7064_v54 = vsub.f32 1.0, %v11927_v57  ;;  %v7069_v2 = vmul.f32 %v11927_v57, %v7067_v8  ;;  %v11586_v53 = vpack.c.bf16 %v7455_v26, %v7454_v15  ;;  %v7458_v57 = vld [vmem:[#allocation26 + $0x60] sm:$0xff]  ;;  %v7459_v8 = vld [vmem:[#allocation26 + $0x68] sm:$0xff] }
0x219b   :  { %v7062_v45 = vadd.f32 %v7061_v6, %v7036_v39  ;;  %v7456_v6 = vld [vmem:[#allocation26 + $0x50] sm:$0xff]  ;;  %v7457_v39 = vld [vmem:[#allocation26 + $0x58] sm:$0xff] }
0x219d   :  { %11928 = vtanh.f32 %v7062_v45  ;;  %v11590_v45 = vpack.c.bf16 %v7457_v39, %v7456_v6 }
0x21a7   :  { %v11929_v16 = vpop.eup %11928 }
0x21a8   :  { %v7065_v27 = vmul.f32 %v11929_v16, %v7064_v54  ;;  %v7460_v54 = vld [vmem:[#allocation26 + $0x70] sm:$0xff]  ;;  %v11594_v16 = vpack.c.bf16 %v7459_v8, %v7458_v57 }
0x21aa   :  { %v7070_v62 = vadd.f32 %v7069_v2, %v7065_v27  ;;  %v7461_v27 = vld [vmem:[#allocation26 + $0x78] sm:$0xff] }
0x21ab   :  { %v11598_v2 = vpack.c.bf16 %v7461_v27, %v7460_v54 }
0x21ac   :  { %v7072_v55 = vrot.slane %v7070_v62, 2 }
0x21ae   :  { %v14496_v56 = vsel %vm1711_vm1, %v7072_v55, %v14450_v17  ;;  %v7075_v48 = vsel %vm1711_vm1, %v7072_v55, 0.0 }
0x21af   :  { %7076 = vst [vmem:[#allocation5 + $0xa] sm:$0x3] %v7075_v48  ;;  %7142 = vmatmul.mubr.f32.vlgmr.msra.gmra.mrb[72].mxu0 %v14496_v56  ;;  %9522 = vmatmul.mubr.f32.vlgmr.msra.gmra.mrb[78].mxu1 %v14496_v56 }
0x21b0   :  { %11517 = vmatpush1.bf16.msra.mxu0 %v14104_v63  ;;  %11548 = vmatpush3.bf16.msra.mxu1 %v14173_v52 }
0x21b1   :  { %11519 = vmatprep.subr.bf16.mxu0 %v14108_v28  ;;  %11549 = vmatprep.subr.bf16.mxu1 %v12310_v30 }
0x21b2   :  { %7325 = vmatprep.mubr.f32.mxu0 %v12309_v22  ;;  %9556 = vmatprep.mubr.msk.f32.mxu1 %vm12311_vm11, %v12309_v22 }
0x21b4   :  { %11521 = vmatpush1.bf16.msra.mxu0 %v14110_v20  ;;  %11551 = vmatpush3.bf16.msra.mxu1 %v14177_v59 }
0x21b5   :  { %11523 = vmatprep.subr.bf16.mxu0 %v14114_v32  ;;  %11552 = vmatprep.subr.bf16.mxu1 %v12310_v30  ;;  %v7218_v32 = vld [vmem:[#allocation4 + $0x18] sm:$0x30] }
0x21b8   :  { %11525 = vmatpush1.bf16.msra.mxu0 %v14116_v23  ;;  %11554 = vmatpush3.bf16.msra.mxu1 %v14191_v43  ;;  %v7220_v43 = vld [vmem:[#allocation4 + $0x28] sm:$0x30] }
0x21b9   :  { %11527 = vmatprep.subr.bf16.mxu0 %v14120_v36  ;;  %11555 = vmatprep.subr.bf16.mxu1 %v12310_v30 }
0x21bc   :  { %11529 = vmatpush1.bf16.msra.mxu0 %v14122_v9  ;;  %11557 = vmatpush3.bf16.msra.mxu1 %v14198_v44 }
0x21bd   :  { %11531 = vmatprep.subr.bf16.mxu0 %v14126_v37  ;;  %11558 = vmatprep.subr.bf16.mxu1 %v12310_v30  ;;  %v7219_v37 = vld [vmem:[#allocation4 + $0x20] sm:$0x30] }
0x21c0   :  { %11533 = vmatpush1.bf16.msra.mxu0 %v14128_v5  ;;  %11560 = vmatpush3.bf16.msra.mxu1 %v14204_v12 }
0x21c1   :  { %11535 = vmatprep.subr.bf16.mxu0 %v14132_v34  ;;  %11561 = vmatprep.subr.bf16.mxu1 %v12310_v30 }
0x21c4   :  { %11537 = vmatpush1.bf16.msra.mxu0 %v14134_v47  ;;  %11563 = vmatpush3.bf16.msra.mxu1 %v14210_v35  ;;  %v7251_v35 = vrot.slane %v14496_v56, 4 }
0x21c5   :  { %11539 = vmatprep.subr.bf16.mxu0 %v14137_v1  ;;  %11564 = vmatprep.subr.bf16.mxu1 %v12310_v30 }
0x21c8   :  { %11541 = vmatpush1.bf16.msra.mxu0 %v14140_v0  ;;  %11566 = vmatpush3.bf16.msra.mxu1 %v14216_v40 }
0x21c9   :  { %11543 = vmatprep.subr.bf16.mxu0 %v14145_v61  ;;  %11567 = vmatprep.subr.bf16.mxu1 %v12310_v30 }
0x21cc   :  { %11545 = vmatpush1.bf16.msra.mxu0 %v14147_v50  ;;  %11569 = vmatpush3.bf16.msra.mxu1 %v14222_v10 }
0x21cd   :  { %11571 = vmatprep.subr.bf16.mxu0 %v11570_v46 }
0x2282   :  { %v7143_v22 = vpop.f32.mrb[72].mxu0  ;;  %v7214_v21 = vpop.f32.mrb[78].mxu1 }
0x2283   :  { %v7222_v63 = vrot.slane %v7143_v22, 4  ;;  %v7145_v28 = vpop.f32.mrb[73].mxu0  ;;  %v9523_v20 = vpop.f32.mrb[79].mxu1  ;;  %v7241_v0 = vadd.f32 %v14259_v41, %v7214_v21  ;;  %v7402_v21 = vld [vmem:[#allocation4 + $0x18] sm:$0xc0] }
0x2284   :  { %v7232_v23 = vrot.slane %v7145_v28, 4  ;;  %v7403_v20 = vld [vmem:[#allocation4 + $0x20] sm:$0xc0] }
0x2285   :  { %v7224_v36 = vadd.f32 %v7222_v63, %v7218_v32  ;;  %v7243_v50 = vrot.slane %v7241_v0, 4 }
0x2286   :  { %v7234_v5 = vadd.f32 %v7232_v23, %v7219_v37 }
0x2287   :  { %v7669_v9 = vmul.f32 -1.442695, %v7224_v36 }
0x2288   :  { %v7670_v34 = vmul.f32 -1.442695, %v7234_v5 }
0x2289   :  { %11930 = vpow2.f32 %v7669_v9 }
0x228a   :  { %11932 = vpow2.f32 %v7670_v34 }
0x2293   :  { %v11931_v47 = vpop.eup %11930 }
0x2294   :  { %v7228_v30 = vadd.f32 1.0, %v11931_v47  ;;  %v11933_v1 = vpop.eup %11932  ;;  %v11965_v47 = vld [vmem:[%s14631_s27] ss:$0 sm:$0xff] }
0x2295   :  { %v7238_v61 = vadd.f32 1.0, %v11933_v1 }
0x2296   :  { %11934 = vrcp.f32 %v7228_v30 }
0x2297   :  { %11936 = vrcp.f32 %v7238_v61 }
0x22a0   :  { %v11935_v52 = vpop.eup %11934 }
0x22a1   :  { %v7245_v59 = vmul.f32 %v11935_v52, %v7243_v50  ;;  %v11937_v12 = vpop.eup %11936 }
0x22a2   :  { %v7248_v40 = vsub.f32 1.0, %v11937_v12  ;;  %v7253_v3 = vmul.f32 %v11937_v12, %v7251_v35 }
0x22a3   :  { %v7246_v44 = vadd.f32 %v7245_v59, %v7220_v43  ;;  %v7404_v59 = vld [vmem:[#allocation4 + $0x28] sm:$0xc0] }
0x22a5   :  { %11938 = vtanh.f32 %v7246_v44 }
0x22af   :  { %v11939_v10 = vpop.eup %11938 }
0x22b0   :  { %v7249_v17 = vmul.f32 %v11939_v10, %v7248_v40 }
0x22b2   :  { %v7254_v58 = vadd.f32 %v7253_v3, %v7249_v17 }
0x22b4   :  { %v7256_v4 = vrot.slane %v7254_v58, 4 }
0x22b6   :  { %v14540_v41 = vsel %vm1901_vm2, %v7256_v4, %v14496_v56  ;;  %v7259_v18 = vsel %vm1901_vm2, %v7256_v4, 0.0  ;;  %v3924_v4 = vsub.f32 %v13795_v42, %v13855_v11 }
0x22b7   :  { %7260 = vst [vmem:[#allocation5 + $0xc] sm:$0x3] %v7259_v18  ;;  %7326 = vmatmul.mubr.f32.vlgmr.msra.gmra.mrb[74].mxu0 %v14540_v41  ;;  %9557 = vmatmul.mubr.f32.vlgmr.msra.gmra.mrb[80].mxu1 %v14540_v41  ;;  %v7435_v61 = vrot.slane %v14540_v41, 2  ;;  %v7673_v18 = vld [vmem:[%s14632_s0] ss:$0 sm:$0xff] }
0x22b8   :  { %9591 = vmatprep.mubr.f32.mxu0 %v7444_v33  ;;  %11573 = vmatpush3.bf16.msra.mxu0 %v11570_v46  ;;  %v3927_v41 = vmul.f32 1.442695, %v3924_v4 }
0x22b9   :  { %11575 = vmatprep.subr.bf16.mxu0 %v11574_v38 }
0x22bc   :  { %11577 = vmatpush3.bf16.msra.mxu0 %v11574_v38 }
0x22bd   :  { %11579 = vmatprep.subr.bf16.mxu0 %v11578_v25 }
0x22c0   :  { %11581 = vmatpush3.bf16.msra.mxu0 %v11578_v25 }
0x22c1   :  { %11583 = vmatprep.subr.bf16.mxu0 %v11582_v24 }
0x22c4   :  { %11585 = vmatpush3.bf16.msra.mxu0 %v11582_v24 }
0x22c5   :  { %11587 = vmatprep.subr.bf16.mxu0 %v11586_v53 }
0x22c8   :  { %11589 = vmatpush3.bf16.msra.mxu0 %v11586_v53 }
0x22c9   :  { %11591 = vmatprep.subr.bf16.mxu0 %v11590_v45 }
0x22cc   :  { %11593 = vmatpush3.bf16.msra.mxu0 %v11590_v45 }
0x22cd   :  { %11595 = vmatprep.subr.bf16.mxu0 %v11594_v16 }
0x22d0   :  { %11597 = vmatpush3.bf16.msra.mxu0 %v11594_v16 }
0x22d1   :  { %11599 = vmatprep.subr.bf16.mxu0 %v11598_v2 }
0x22d4   :  { %11601 = vmatpush3.bf16.msra.mxu0 %v11598_v2 }
0x238a   :  { %v7327_v62 = vpop.f32.mrb[74].mxu0  ;;  %v7398_v55 = vpop.f32.mrb[80].mxu1 }
0x238b   :  { %v7406_v56 = vrot.slane %v7327_v62, 2  ;;  %v7329_v48 = vpop.f32.mrb[75].mxu0  ;;  %v9558_v22 = vpop.f32.mrb[81].mxu1  ;;  %v7425_v30 = vadd.f32 %v11965_v47, %v7398_v55 }
0x238c   :  { %v7416_v63 = vrot.slane %v7329_v48, 2 }
0x238d   :  { %v7408_v28 = vadd.f32 %v7406_v56, %v7402_v21  ;;  %v7427_v1 = vrot.slane %v7425_v30, 2 }
0x238e   :  { %v7418_v32 = vadd.f32 %v7416_v63, %v7403_v20 }
0x238f   :  { %v7671_v23 = vmul.f32 -1.442695, %v7408_v28 }
0x2390   :  { %v7672_v36 = vmul.f32 -1.442695, %v7418_v32 }
0x2391   :  { %11940 = vpow2.f32 %v7671_v23 }
0x2392   :  { %11942 = vpow2.f32 %v7672_v36 }
0x239b   :  { %v11941_v9 = vpop.eup %11940 }
0x239c   :  { %v11943_v37 = vpop.eup %11942  ;;  %v7412_v5 = vadd.f32 1.0, %v11941_v9 }
0x239d   :  { %v7422_v34 = vadd.f32 1.0, %v11943_v37 }
0x239e   :  { %11944 = vrcp.f32 %v7412_v5 }
0x239f   :  { %11946 = vrcp.f32 %v7422_v34 }
0x23a8   :  { %v11945_v0 = vpop.eup %11944 }
0x23a9   :  { %v11947_v50 = vpop.eup %11946  ;;  %v7429_v52 = vmul.f32 %v11945_v0, %v7427_v1 }
0x23aa   :  { %v7437_v43 = vmul.f32 %v11947_v50, %v7435_v61  ;;  %v7432_v12 = vsub.f32 1.0, %v11947_v50 }
0x23ab   :  { %v7430_v44 = vadd.f32 %v7429_v52, %v7404_v59 }
0x23ad   :  { %11948 = vtanh.f32 %v7430_v44 }
0x23ae   :  { %11950 = vpow2.f32 %v3927_v41 }
0x23b7   :  { %v11949_v35 = vpop.eup %11948 }
0x23b8   :  { %v7433_v40 = vmul.f32 %v11949_v35, %v7432_v12  ;;  %v11951_v14 = vpop.eup %11950 }
0x23ba   :  { %v7438_v10 = vadd.f32 %v7437_v43, %v7433_v40 }
0x23bc   :  { %v7440_v17 = vrot.slane %v7438_v10, 6 }
0x23be   :  { %v7442_v3 = vsel %vm2091_vm4, %v7440_v17, 0.0 }
0x23bf   :  { %7443 = vst [vmem:[#allocation5 + $0xe] sm:$0x3] %v7442_v3 }
0x23c6   :  { %v7445_v58 = vld [vmem:[#allocation5 + $0x8] sm:$0xff] }
0x23c7   :  { %9592 = vmatmul.mubr.f32.vlgmr.msra.gmra.mrb[76].mxu0 %v7445_v58 }
0x249a   :  { %v9593_v33 = vpop.f32.mrb[76].mxu0 }
0x249b   :  { %v7535_v7 = vpop.f32.mrb[77].mxu0  ;;  %v7541_v46 = vadd.f32 %v9593_v33, %v7673_v18 }
0x249c   :  { %v7536_v51 = vadd.f32 %v7673_v18, %v7535_v7 }
0x249e   :  { %7544 = vmax.xlane.f32.xlu0 %v7536_v51 }
0x24a2   :  { %7546 = vmax.xlane.f32.xlu0 %v7541_v46 }
0x24a6   :  { %3931 = vadd.xlane.f32.xlu0 %v11951_v14 }
0x252b   :  { %v7545_v60 = vpop.xlane.xlu0 %7544 }
0x252c   :  { %v7548_v19 = vsub.f32 %v7536_v51, %v7545_v60 }
0x252e   :  { %v7550_v38 = vmul.f32 1.442695, %v7548_v19 }
0x252f   :  { %v7547_v49 = vpop.xlane.xlu0 %7546 }
0x2530   :  { %11952 = vpow2.f32 %v7550_v38  ;;  %v7549_v29 = vsub.f32 %v7541_v46, %v7547_v49 }
0x2532   :  { %v7552_v25 = vmul.f32 1.442695, %v7549_v29 }
0x2533   :  { %v3932_v31 = vpop.xlane.xlu0 %3931 }
0x2534   :  { %11954 = vpow2.f32 %v7552_v25 }
0x2535   :  { %11956 = vlog2.f32 %v3932_v31 }
0x253a   :  { %v11953_v13 = vpop.eup %11952 }
0x253b   :  { %7554 = vadd.xlane.f32.xlu1 %v11953_v13 }
0x253e   :  { %v11955_v24 = vpop.eup %11954 }
0x253f   :  { %v11957_v15 = vpop.eup %11956  ;;  %7556 = vadd.xlane.f32.xlu0 %v11955_v24 }
0x2540   :  { %v3936_v26 = vmul.f32 0.6931472, %v11957_v15 }
0x2542   :  { %v3938_v53 = vadd.f32 %v3936_v26, %v13855_v11 }
0x2544   :  { %v3940_v6 = vsub.f32 %v13795_v42, %v3938_v53 }
0x2546   :  { %3942 = vst [vmem:[%s14593_s25 + $0x8] sm:$0xff] %v3940_v6 }
0x25c8   :  { %v7555_v39 = vpop.xlane.xlu1 %7554 }
0x25c9   :  { %11958 = vlog2.f32 %v7555_v39 }
0x25cc   :  { %v7557_v45 = vpop.xlane.xlu0 %7556 }
0x25cd   :  { %11960 = vlog2.f32 %v7557_v45 }
0x25d3   :  { %v11959_v57 = vpop.eup %11958 }
0x25d4   :  { %v7559_v8 = vmul.f32 0.6931472, %v11959_v57 }
0x25d6   :  { %v7562_v54 = vadd.f32 %v7559_v8, %v7545_v60 }
0x25d7   :  { %v11961_v16 = vpop.eup %11960 }
0x25d8   :  { %v7564_v27 = vsub.f32 %v7536_v51, %v7562_v54  ;;  %v7561_v2 = vmul.f32 0.6931472, %v11961_v16 }
0x25da   :  { %7566 = vst [vmem:[%s14633_s24] sm:$0xff] %v7564_v27  ;;  %v7563_v11 = vadd.f32 %v7561_v2, %v7547_v49 }
0x25dc   :  { %v7565_v42 = vsub.f32 %v7541_v46, %v7563_v11 }
0x25de   :  { %7567 = vst [vmem:[%s14633_s24 + $0x8] sm:$0xff] %v7565_v42 }
0x25df   :  { %7576 = vsyncpa [#allocation7], 1 }
0x25e0   :  { %7577 = vsyncpa [#allocation9], 1 }
0x25e1   :  { %7578 = vsyncpa [#allocation12], 1 }
0x25e2   :  { %7579 = vsyncpa [#allocation15], 1 }
0x25e3   :  { %7580 = vsyncpa [#allocation18], 1 }
0x25e4   :  { %7581 = vsyncpa [#allocation21], 1 }
0x25e5   :  { %7582 = vsyncpa [#allocation24], 1 }
0x25e6   :  { %7583 = vsyncpa [#allocation27], 1 }

</bundles_post_ra>
